<compile_context>
chip_gen: v7x
topology: tpu7x:2x2x1
jax: 0.10.0
libtpu: 0.0.40
codegen_flags: <defaults>
</compile_context>

<pallas_src>
import jax
import jax.numpy as jnp
from jax.experimental import pallas as pl
from jax.experimental.pallas import tpu as pltpu

# ----------------------------------------------------------------------------
# Layer configuration (logical PyTorch dims and lane-padded dims)
# ----------------------------------------------------------------------------

ENCODER_DIMS = [(784, 500, True), (500, 500, True), (500, 2000, True), (2000, 10, False)]
DECODER_DIMS = [(10, 2000, True), (2000, 500, True), (500, 500, True), (500, 784, False)]
ALL_DIMS = ENCODER_DIMS + DECODER_DIMS

LANE = 128
SUBLANE = 8


def _round_up(n, m):
    return ((n + m - 1) // m) * m


PAD_DIMS = [(_round_up(i, LANE), _round_up(o, LANE), a) for (i, o, a) in ALL_DIMS]

IN_DIM, LATENT_DIM, OUT_DIM = 784, 10, 784
IN_PAD = _round_up(IN_DIM, LANE)        # 896
LATENT_PAD = _round_up(LATENT_DIM, LANE)  # 128
OUT_PAD = _round_up(OUT_DIM, LANE)      # 896
LATENT_LAYER = len(ENCODER_DIMS) - 1    # index of encoder output layer


# ----------------------------------------------------------------------------
# Fused kernel: 8 matmuls + biases + ReLUs, everything VMEM-resident
# ----------------------------------------------------------------------------

def _fused_ae_kernel(x_ref, *refs):
    # refs = [w0, b0, w1, b1, ..., w7, b7, latent_ref, gen_ref]
    wb_refs = refs[: 2 * len(PAD_DIMS)]
    latent_ref, gen_ref = refs[-2], refs[-1]

    h = x_ref[...]  # bf16 (TB, IN_PAD)
    n_layers = len(PAD_DIMS)
    for li, (_, _, use_act) in enumerate(PAD_DIMS):
        w = wb_refs[2 * li][...]        # bf16 (in_pad, out_pad)
        b = wb_refs[2 * li + 1][...]    # f32  (1, out_pad)
        y = jnp.dot(h, w, preferred_element_type=jnp.float32) + b
        if use_act:
            y = jnp.maximum(y, 0.0)
        if li == LATENT_LAYER:
            latent_ref[...] = y         # encoder output (no activation)
        if li == n_layers - 1:
            gen_ref[...] = y            # reconstruction (no activation)
        h = y.astype(jnp.bfloat16)      # bf16 activations feed next MXU pass


def autoencoder_forward(params, x):
    """Mirrors AutoEncoder.forward: returns (latent, reconstruction)."""
    B = x.shape[0]
    # Batch tile: 128 rows (MXU-friendly) for large batches, else round up to 8.
    tb = 128 if B >= 128 else _round_up(max(B, SUBLANE), SUBLANE)
    b_pad = _round_up(B, tb)
    num_tiles = b_pad // tb

    # Pad input to (b_pad, 896) zeros, cast to bf16.
    x_pad = jnp.zeros((b_pad, IN_PAD), jnp.bfloat16)
    x_pad = x_pad.at[:B, :IN_DIM].set(x.astype(jnp.bfloat16))

    wb_flat = []
    in_specs = [pl.BlockSpec((tb, IN_PAD), lambda i: (i, 0))]
    for (w, b) in params:
        wb_flat.extend([w, b])
        # Whole-array, grid-invariant blocks: weights stay resident in VMEM.
        in_specs.append(pl.BlockSpec(w.shape, lambda i: (0, 0)))
        in_specs.append(pl.BlockSpec(b.shape, lambda i: (0, 0)))

    flops = 2 * b_pad * sum(ip * op for (ip, op, _) in PAD_DIMS)
    bytes_accessed = (
        x_pad.size * x_pad.dtype.itemsize
        + sum(a.size * a.dtype.itemsize for a in wb_flat)
        + b_pad * (LATENT_PAD + OUT_PAD) * 4
    )

    latent_pad, gen_pad = pl.pallas_call(
        _fused_ae_kernel,
        out_shape=(
            jax.ShapeDtypeStruct((b_pad, LATENT_PAD), jnp.float32),
            jax.ShapeDtypeStruct((b_pad, OUT_PAD), jnp.float32),
        ),
        grid_spec=pltpu.PrefetchScalarGridSpec(
            num_scalar_prefetch=0,
            grid=(num_tiles,),
            in_specs=in_specs,
            out_specs=[
                pl.BlockSpec((tb, LATENT_PAD), lambda i: (i, 0)),
                pl.BlockSpec((tb, OUT_PAD), lambda i: (i, 0)),
            ],
        ),
        compiler_params=pltpu.CompilerParams(
            dimension_semantics=("parallel",),      # batch tiles across TCs (v7x)
            vmem_limit_bytes=48 * 1024 * 1024,      # > v5e's 16 MiB default scope
        ),
        cost_estimate=pl.CostEstimate(
            flops=flops, transcendentals=0, bytes_accessed=bytes_accessed
        ),
    )(x_pad, *wb_flat)

    return latent_pad[:B, :LATENT_DIM], gen_pad[:B, :OUT_DIM]


# ----------------------------------------------------------------------------
# Parameters: PyTorch-default-style uniform init, stored pre-transposed
# (in, out), zero-padded to lane multiples, weights bf16 / biases f32.
# ----------------------------------------------------------------------------

def init_params(key):
    params = []
    for (in_dim, out_dim, _a), (in_pad, out_pad, _pa) in zip(ALL_DIMS, PAD_DIMS):
        key, kw, kb = jax.random.split(key, 3)
        bound = 1.0 / jnp.sqrt(jnp.float32(in_dim))
        w = jax.random.uniform(kw, (in_dim, out_dim), jnp.float32, -bound, bound)
        b = jax.random.uniform(kb, (1, out_dim), jnp.float32, -bound, bound)
        w_pad = (
            jnp.zeros((in_pad, out_pad), jnp.bfloat16)
            .at[:in_dim, :out_dim].set(w.astype(jnp.bfloat16))
        )
        b_pad = jnp.zeros((1, out_pad), jnp.float32).at[:, :out_dim].set(b)
        params.append((w_pad, b_pad))
    return params


# Plain-JAX reference with identical numerics (bf16 inputs, f32 accumulate).
def ref_forward(params, x):
    B = x.shape[0]
    h = jnp.zeros((B, IN_PAD), jnp.bfloat16).at[:, :IN_DIM].set(x.astype(jnp.bfloat16))
    latent = None
    y = None
    for li, ((w, b), (_, _, use_act)) in enumerate(zip(params, PAD_DIMS)):
        y = jnp.dot(h, w, preferred_element_type=jnp.float32) + b
        if use_act:
            y = jnp.maximum(y, 0.0)
        if li == LATENT_LAYER:
            latent = y
        h = y.astype(jnp.bfloat16)
    return latent[:, :LATENT_DIM], y[:, :OUT_DIM]


if __name__ == "__main__":
    key = jax.random.PRNGKey(0)
    key, kx = jax.random.split(key)

    B = 8
    x = jax.random.normal(kx, (B, 784), jnp.float32)

    params = init_params(key)

    latent, gen = jax.jit(autoencoder_forward)(params, x)
    jax.block_until_ready((latent, gen))

    assert latent.shape == (B, 10), latent.shape
    assert gen.shape == (B, 784), gen.shape

    lat_ref, gen_ref = ref_forward(params, x)
    assert jnp.allclose(latent, lat_ref, atol=1e-2, rtol=1e-2), (
        float(jnp.max(jnp.abs(latent - lat_ref))))
    assert jnp.allclose(gen, gen_ref, atol=1e-2, rtol=1e-2), (
        float(jnp.max(jnp.abs(gen - gen_ref))))

    print("KERNEL_OK")
</pallas_src>

<mosaic_0001>
module attributes {stable_mosaic.version = 11 : i64} {
  func.func @_fused_ae_kernel(%arg0: i32, %arg1: memref<8x896xbf16, #tpu.memory_space<vmem>>, %arg2: memref<896x512xbf16, #tpu.memory_space<vmem>>, %arg3: memref<1x512xf32, #tpu.memory_space<vmem>>, %arg4: memref<512x512xbf16, #tpu.memory_space<vmem>>, %arg5: memref<1x512xf32, #tpu.memory_space<vmem>>, %arg6: memref<512x2048xbf16, #tpu.memory_space<vmem>>, %arg7: memref<1x2048xf32, #tpu.memory_space<vmem>>, %arg8: memref<2048x128xbf16, #tpu.memory_space<vmem>>, %arg9: memref<1x128xf32, #tpu.memory_space<vmem>>, %arg10: memref<128x2048xbf16, #tpu.memory_space<vmem>>, %arg11: memref<1x2048xf32, #tpu.memory_space<vmem>>, %arg12: memref<2048x512xbf16, #tpu.memory_space<vmem>>, %arg13: memref<1x512xf32, #tpu.memory_space<vmem>>, %arg14: memref<512x512xbf16, #tpu.memory_space<vmem>>, %arg15: memref<1x512xf32, #tpu.memory_space<vmem>>, %arg16: memref<512x896xbf16, #tpu.memory_space<vmem>>, %arg17: memref<1x896xf32, #tpu.memory_space<vmem>>, %arg18: memref<8x128xf32, #tpu.memory_space<vmem>>, %arg19: memref<8x896xf32, #tpu.memory_space<vmem>>) attributes {dimension_semantics = [#tpu.dimension_semantics<parallel>], iteration_bounds = array<i64: 1>, scalar_prefetch = 0 : i64, scratch_operands = 0 : i64, tpu.core_type = #tpu.core_type<tc>, window_params = [{transform_indices = @transform_0, window_bounds = array<i64: 8, 896>}, {pipeline_mode = #tpu.pipeline_mode<synchronous>, transform_indices = @transform_1, window_bounds = array<i64: 896, 512>}, {pipeline_mode = #tpu.pipeline_mode<synchronous>, transform_indices = @transform_2, window_bounds = array<i64: 1, 512>}, {pipeline_mode = #tpu.pipeline_mode<synchronous>, transform_indices = @transform_3, window_bounds = array<i64: 512, 512>}, {pipeline_mode = #tpu.pipeline_mode<synchronous>, transform_indices = @transform_4, window_bounds = array<i64: 1, 512>}, {pipeline_mode = #tpu.pipeline_mode<synchronous>, transform_indices = @transform_5, window_bounds = array<i64: 512, 2048>}, {pipeline_mode = #tpu.pipeline_mode<synchronous>, transform_indices = @transform_6, window_bounds = array<i64: 1, 2048>}, {pipeline_mode = #tpu.pipeline_mode<synchronous>, transform_indices = @transform_7, window_bounds = array<i64: 2048, 128>}, {pipeline_mode = #tpu.pipeline_mode<synchronous>, transform_indices = @transform_8, window_bounds = array<i64: 1, 128>}, {pipeline_mode = #tpu.pipeline_mode<synchronous>, transform_indices = @transform_9, window_bounds = array<i64: 128, 2048>}, {pipeline_mode = #tpu.pipeline_mode<synchronous>, transform_indices = @transform_10, window_bounds = array<i64: 1, 2048>}, {pipeline_mode = #tpu.pipeline_mode<synchronous>, transform_indices = @transform_11, window_bounds = array<i64: 2048, 512>}, {pipeline_mode = #tpu.pipeline_mode<synchronous>, transform_indices = @transform_12, window_bounds = array<i64: 1, 512>}, {pipeline_mode = #tpu.pipeline_mode<synchronous>, transform_indices = @transform_13, window_bounds = array<i64: 512, 512>}, {pipeline_mode = #tpu.pipeline_mode<synchronous>, transform_indices = @transform_14, window_bounds = array<i64: 1, 512>}, {pipeline_mode = #tpu.pipeline_mode<synchronous>, transform_indices = @transform_15, window_bounds = array<i64: 512, 896>}, {pipeline_mode = #tpu.pipeline_mode<synchronous>, transform_indices = @transform_16, window_bounds = array<i64: 1, 896>}, {transform_indices = @transform_17, window_bounds = array<i64: 8, 128>}, {transform_indices = @transform_18, window_bounds = array<i64: 8, 896>}]} {
    %c0 = arith.constant 0 : index
    %c0_0 = arith.constant 0 : index
    %0 = vector.load %arg1[%c0, %c0_0] : memref<8x896xbf16, #tpu.memory_space<vmem>>, vector<8x896xbf16>
    %c0_1 = arith.constant 0 : index
    %c0_2 = arith.constant 0 : index
    %1 = vector.load %arg2[%c0_1, %c0_2] : memref<896x512xbf16, #tpu.memory_space<vmem>>, vector<896x512xbf16>
    %c0_3 = arith.constant 0 : index
    %c0_4 = arith.constant 0 : index
    %2 = vector.load %arg3[%c0_3, %c0_4] : memref<1x512xf32, #tpu.memory_space<vmem>>, vector<1x512xf32>
    %cst = arith.constant dense<0.000000e+00> : vector<8x512xf32>
    %3 = tpu.matmul %0, %1, %cst {dimension_numbers = #tpu.dot_dimension_numbers<[1], [0], [0], [1], [0, 0, 1, 1], [], []>} : vector<8x896xbf16>, vector<896x512xbf16>, vector<8x512xf32> -> vector<8x512xf32>
    %4 = vector.broadcast %2 : vector<1x512xf32> to vector<8x512xf32>
    %5 = arith.addf %3, %4 : vector<8x512xf32>
    %cst_5 = arith.constant 0.000000e+00 : f32
    %6 = vector.broadcast %cst_5 : f32 to vector<8x512xf32>
    %7 = arith.maximumf %5, %6 : vector<8x512xf32>
    %8 = arith.truncf %7 : vector<8x512xf32> to vector<8x512xbf16>
    %c0_6 = arith.constant 0 : index
    %c0_7 = arith.constant 0 : index
    %9 = vector.load %arg4[%c0_6, %c0_7] : memref<512x512xbf16, #tpu.memory_space<vmem>>, vector<512x512xbf16>
    %c0_8 = arith.constant 0 : index
    %c0_9 = arith.constant 0 : index
    %10 = vector.load %arg5[%c0_8, %c0_9] : memref<1x512xf32, #tpu.memory_space<vmem>>, vector<1x512xf32>
    %cst_10 = arith.constant dense<0.000000e+00> : vector<8x512xf32>
    %11 = tpu.matmul %8, %9, %cst_10 {dimension_numbers = #tpu.dot_dimension_numbers<[1], [0], [0], [1], [0, 0, 1, 1], [], []>} : vector<8x512xbf16>, vector<512x512xbf16>, vector<8x512xf32> -> vector<8x512xf32>
    %12 = vector.broadcast %10 : vector<1x512xf32> to vector<8x512xf32>
    %13 = arith.addf %11, %12 : vector<8x512xf32>
    %cst_11 = arith.constant 0.000000e+00 : f32
    %14 = vector.broadcast %cst_11 : f32 to vector<8x512xf32>
    %15 = arith.maximumf %13, %14 : vector<8x512xf32>
    %16 = arith.truncf %15 : vector<8x512xf32> to vector<8x512xbf16>
    %c0_12 = arith.constant 0 : index
    %c0_13 = arith.constant 0 : index
    %17 = vector.load %arg6[%c0_12, %c0_13] : memref<512x2048xbf16, #tpu.memory_space<vmem>>, vector<512x2048xbf16>
    %c0_14 = arith.constant 0 : index
    %c0_15 = arith.constant 0 : index
    %18 = vector.load %arg7[%c0_14, %c0_15] : memref<1x2048xf32, #tpu.memory_space<vmem>>, vector<1x2048xf32>
    %cst_16 = arith.constant dense<0.000000e+00> : vector<8x2048xf32>
    %19 = tpu.matmul %16, %17, %cst_16 {dimension_numbers = #tpu.dot_dimension_numbers<[1], [0], [0], [1], [0, 0, 1, 1], [], []>} : vector<8x512xbf16>, vector<512x2048xbf16>, vector<8x2048xf32> -> vector<8x2048xf32>
    %20 = vector.broadcast %18 : vector<1x2048xf32> to vector<8x2048xf32>
    %21 = arith.addf %19, %20 : vector<8x2048xf32>
    %cst_17 = arith.constant 0.000000e+00 : f32
    %22 = vector.broadcast %cst_17 : f32 to vector<8x2048xf32>
    %23 = arith.maximumf %21, %22 : vector<8x2048xf32>
    %24 = arith.truncf %23 : vector<8x2048xf32> to vector<8x2048xbf16>
    %c0_18 = arith.constant 0 : index
    %c0_19 = arith.constant 0 : index
    %25 = vector.load %arg8[%c0_18, %c0_19] : memref<2048x128xbf16, #tpu.memory_space<vmem>>, vector<2048x128xbf16>
    %c0_20 = arith.constant 0 : index
    %c0_21 = arith.constant 0 : index
    %26 = vector.load %arg9[%c0_20, %c0_21] : memref<1x128xf32, #tpu.memory_space<vmem>>, vector<1x128xf32>
    %cst_22 = arith.constant dense<0.000000e+00> : vector<8x128xf32>
    %27 = tpu.matmul %24, %25, %cst_22 {dimension_numbers = #tpu.dot_dimension_numbers<[1], [0], [0], [1], [0, 0, 1, 1], [], []>} : vector<8x2048xbf16>, vector<2048x128xbf16>, vector<8x128xf32> -> vector<8x128xf32>
    %28 = vector.broadcast %26 : vector<1x128xf32> to vector<8x128xf32>
    %29 = arith.addf %27, %28 : vector<8x128xf32>
    %c0_23 = arith.constant 0 : index
    %c0_24 = arith.constant 0 : index
    %30 = vector.load %arg18[%c0_23, %c0_24] : memref<8x128xf32, #tpu.memory_space<vmem>>, vector<8x128xf32>
    tpu.vector_store %arg18[%c0_23, %c0_24], %29 {strides = array<i32>} : memref<8x128xf32, #tpu.memory_space<vmem>>, vector<8x128xf32>,
    %31 = arith.truncf %29 : vector<8x128xf32> to vector<8x128xbf16>
    %c0_25 = arith.constant 0 : index
    %c0_26 = arith.constant 0 : index
    %32 = vector.load %arg10[%c0_25, %c0_26] : memref<128x2048xbf16, #tpu.memory_space<vmem>>, vector<128x2048xbf16>
    %c0_27 = arith.constant 0 : index
    %c0_28 = arith.constant 0 : index
    %33 = vector.load %arg11[%c0_27, %c0_28] : memref<1x2048xf32, #tpu.memory_space<vmem>>, vector<1x2048xf32>
    %cst_29 = arith.constant dense<0.000000e+00> : vector<8x2048xf32>
    %34 = tpu.matmul %31, %32, %cst_29 {dimension_numbers = #tpu.dot_dimension_numbers<[1], [0], [0], [1], [0, 0, 1, 1], [], []>} : vector<8x128xbf16>, vector<128x2048xbf16>, vector<8x2048xf32> -> vector<8x2048xf32>
    %35 = vector.broadcast %33 : vector<1x2048xf32> to vector<8x2048xf32>
    %36 = arith.addf %34, %35 : vector<8x2048xf32>
    %cst_30 = arith.constant 0.000000e+00 : f32
    %37 = vector.broadcast %cst_30 : f32 to vector<8x2048xf32>
    %38 = arith.maximumf %36, %37 : vector<8x2048xf32>
    %39 = arith.truncf %38 : vector<8x2048xf32> to vector<8x2048xbf16>
    %c0_31 = arith.constant 0 : index
    %c0_32 = arith.constant 0 : index
    %40 = vector.load %arg12[%c0_31, %c0_32] : memref<2048x512xbf16, #tpu.memory_space<vmem>>, vector<2048x512xbf16>
    %c0_33 = arith.constant 0 : index
    %c0_34 = arith.constant 0 : index
    %41 = vector.load %arg13[%c0_33, %c0_34] : memref<1x512xf32, #tpu.memory_space<vmem>>, vector<1x512xf32>
    %cst_35 = arith.constant dense<0.000000e+00> : vector<8x512xf32>
    %42 = tpu.matmul %39, %40, %cst_35 {dimension_numbers = #tpu.dot_dimension_numbers<[1], [0], [0], [1], [0, 0, 1, 1], [], []>} : vector<8x2048xbf16>, vector<2048x512xbf16>, vector<8x512xf32> -> vector<8x512xf32>
    %43 = vector.broadcast %41 : vector<1x512xf32> to vector<8x512xf32>
    %44 = arith.addf %42, %43 : vector<8x512xf32>
    %cst_36 = arith.constant 0.000000e+00 : f32
    %45 = vector.broadcast %cst_36 : f32 to vector<8x512xf32>
    %46 = arith.maximumf %44, %45 : vector<8x512xf32>
    %47 = arith.truncf %46 : vector<8x512xf32> to vector<8x512xbf16>
    %c0_37 = arith.constant 0 : index
    %c0_38 = arith.constant 0 : index
    %48 = vector.load %arg14[%c0_37, %c0_38] : memref<512x512xbf16, #tpu.memory_space<vmem>>, vector<512x512xbf16>
    %c0_39 = arith.constant 0 : index
    %c0_40 = arith.constant 0 : index
    %49 = vector.load %arg15[%c0_39, %c0_40] : memref<1x512xf32, #tpu.memory_space<vmem>>, vector<1x512xf32>
    %cst_41 = arith.constant dense<0.000000e+00> : vector<8x512xf32>
    %50 = tpu.matmul %47, %48, %cst_41 {dimension_numbers = #tpu.dot_dimension_numbers<[1], [0], [0], [1], [0, 0, 1, 1], [], []>} : vector<8x512xbf16>, vector<512x512xbf16>, vector<8x512xf32> -> vector<8x512xf32>
    %51 = vector.broadcast %49 : vector<1x512xf32> to vector<8x512xf32>
    %52 = arith.addf %50, %51 : vector<8x512xf32>
    %cst_42 = arith.constant 0.000000e+00 : f32
    %53 = vector.broadcast %cst_42 : f32 to vector<8x512xf32>
    %54 = arith.maximumf %52, %53 : vector<8x512xf32>
    %55 = arith.truncf %54 : vector<8x512xf32> to vector<8x512xbf16>
    %c0_43 = arith.constant 0 : index
    %c0_44 = arith.constant 0 : index
    %56 = vector.load %arg16[%c0_43, %c0_44] : memref<512x896xbf16, #tpu.memory_space<vmem>>, vector<512x896xbf16>
    %c0_45 = arith.constant 0 : index
    %c0_46 = arith.constant 0 : index
    %57 = vector.load %arg17[%c0_45, %c0_46] : memref<1x896xf32, #tpu.memory_space<vmem>>, vector<1x896xf32>
    %cst_47 = arith.constant dense<0.000000e+00> : vector<8x896xf32>
    %58 = tpu.matmul %55, %56, %cst_47 {dimension_numbers = #tpu.dot_dimension_numbers<[1], [0], [0], [1], [0, 0, 1, 1], [], []>} : vector<8x512xbf16>, vector<512x896xbf16>, vector<8x896xf32> -> vector<8x896xf32>
    %59 = vector.broadcast %57 : vector<1x896xf32> to vector<8x896xf32>
    %60 = arith.addf %58, %59 : vector<8x896xf32>
    %c0_48 = arith.constant 0 : index
    %c0_49 = arith.constant 0 : index
    %61 = vector.load %arg19[%c0_48, %c0_49] : memref<8x896xf32, #tpu.memory_space<vmem>>, vector<8x896xf32>
    tpu.vector_store %arg19[%c0_48, %c0_49], %60 {strides = array<i32>} : memref<8x896xf32, #tpu.memory_space<vmem>>, vector<8x896xf32>,
    return
  }
  func.func @transform_0(%arg0: i32) -> (i32, i32) {
    %c0_i32 = arith.constant 0 : i32
    %c0_i32_0 = arith.constant 0 : i32
    return %arg0, %c0_i32 : i32, i32
  }
  func.func @transform_1(%arg0: i32) -> (i32, i32) {
    %c0_i32 = arith.constant 0 : i32
    %c0_i32_0 = arith.constant 0 : i32
    %c0_i32_1 = arith.constant 0 : i32
    return %c0_i32, %c0_i32_0 : i32, i32
  }
  func.func @transform_2(%arg0: i32) -> (i32, i32) {
    %c0_i32 = arith.constant 0 : i32
    %c0_i32_0 = arith.constant 0 : i32
    %c0_i32_1 = arith.constant 0 : i32
    return %c0_i32, %c0_i32_0 : i32, i32
  }
  func.func @transform_3(%arg0: i32) -> (i32, i32) {
    %c0_i32 = arith.constant 0 : i32
    %c0_i32_0 = arith.constant 0 : i32
    %c0_i32_1 = arith.constant 0 : i32
    return %c0_i32, %c0_i32_0 : i32, i32
  }
  func.func @transform_4(%arg0: i32) -> (i32, i32) {
    %c0_i32 = arith.constant 0 : i32
    %c0_i32_0 = arith.constant 0 : i32
    %c0_i32_1 = arith.constant 0 : i32
    return %c0_i32, %c0_i32_0 : i32, i32
  }
  func.func @transform_5(%arg0: i32) -> (i32, i32) {
    %c0_i32 = arith.constant 0 : i32
    %c0_i32_0 = arith.constant 0 : i32
    %c0_i32_1 = arith.constant 0 : i32
    return %c0_i32, %c0_i32_0 : i32, i32
  }
  func.func @transform_6(%arg0: i32) -> (i32, i32) {
    %c0_i32 = arith.constant 0 : i32
    %c0_i32_0 = arith.constant 0 : i32
    %c0_i32_1 = arith.constant 0 : i32
    return %c0_i32, %c0_i32_0 : i32, i32
  }
  func.func @transform_7(%arg0: i32) -> (i32, i32) {
    %c0_i32 = arith.constant 0 : i32
    %c0_i32_0 = arith.constant 0 : i32
    %c0_i32_1 = arith.constant 0 : i32
    return %c0_i32, %c0_i32_0 : i32, i32
  }
  func.func @transform_8(%arg0: i32) -> (i32, i32) {
    %c0_i32 = arith.constant 0 : i32
    %c0_i32_0 = arith.constant 0 : i32
    %c0_i32_1 = arith.constant 0 : i32
    return %c0_i32, %c0_i32_0 : i32, i32
  }
  func.func @transform_9(%arg0: i32) -> (i32, i32) {
    %c0_i32 = arith.constant 0 : i32
    %c0_i32_0 = arith.constant 0 : i32
    %c0_i32_1 = arith.constant 0 : i32
    return %c0_i32, %c0_i32_0 : i32, i32
  }
  func.func @transform_10(%arg0: i32) -> (i32, i32) {
    %c0_i32 = arith.constant 0 : i32
    %c0_i32_0 = arith.constant 0 : i32
    %c0_i32_1 = arith.constant 0 : i32
    return %c0_i32, %c0_i32_0 : i32, i32
  }
  func.func @transform_11(%arg0: i32) -> (i32, i32) {
    %c0_i32 = arith.constant 0 : i32
    %c0_i32_0 = arith.constant 0 : i32
    %c0_i32_1 = arith.constant 0 : i32
    return %c0_i32, %c0_i32_0 : i32, i32
  }
  func.func @transform_12(%arg0: i32) -> (i32, i32) {
    %c0_i32 = arith.constant 0 : i32
    %c0_i32_0 = arith.constant 0 : i32
    %c0_i32_1 = arith.constant 0 : i32
    return %c0_i32, %c0_i32_0 : i32, i32
  }
  func.func @transform_13(%arg0: i32) -> (i32, i32) {
    %c0_i32 = arith.constant 0 : i32
    %c0_i32_0 = arith.constant 0 : i32
    %c0_i32_1 = arith.constant 0 : i32
    return %c0_i32, %c0_i32_0 : i32, i32
  }
  func.func @transform_14(%arg0: i32) -> (i32, i32) {
    %c0_i32 = arith.constant 0 : i32
    %c0_i32_0 = arith.constant 0 : i32
    %c0_i32_1 = arith.constant 0 : i32
    return %c0_i32, %c0_i32_0 : i32, i32
  }
  func.func @transform_15(%arg0: i32) -> (i32, i32) {
    %c0_i32 = arith.constant 0 : i32
    %c0_i32_0 = arith.constant 0 : i32
    %c0_i32_1 = arith.constant 0 : i32
    return %c0_i32, %c0_i32_0 : i32, i32
  }
  func.func @transform_16(%arg0: i32) -> (i32, i32) {
    %c0_i32 = arith.constant 0 : i32
    %c0_i32_0 = arith.constant 0 : i32
    %c0_i32_1 = arith.constant 0 : i32
    return %c0_i32, %c0_i32_0 : i32, i32
  }
  func.func @transform_17(%arg0: i32) -> (i32, i32) {
    %c0_i32 = arith.constant 0 : i32
    %c0_i32_0 = arith.constant 0 : i32
    return %arg0, %c0_i32 : i32, i32
  }
  func.func @transform_18(%arg0: i32) -> (i32, i32) {
    %c0_i32 = arith.constant 0 : i32
    %c0_i32_0 = arith.constant 0 : i32
    return %arg0, %c0_i32 : i32, i32
  }
}

</mosaic_0001>

<bundles_post_ra>
// kernel: autoencoder_forward.1
= control target key start
LH: loop header
LB: loop body
LE: loop exit
PB: predicated region body
PF: predicated region fallthrough
CT: control target
= control target key end

     0   :  { %s21396_s0 = inlined_call_operand.vmem [shape: bf16[8,896], index: 0, kind: input, shape index: {}]   ;;  %s21397_s1 = inlined_call_operand.hbm [shape: bf16[896,512], index: 1, kind: input, shape index: {}]   ;;  %s21398_s2 = inlined_call_operand.hbm [shape: f32[1,512], index: 2, kind: input, shape index: {}]   ;;  %s21399_s3 = inlined_call_operand.hbm [shape: bf16[512,512], index: 3, kind: input, shape index: {}]   ;;  %s21400_s4 = inlined_call_operand.hbm [shape: f32[1,512], index: 4, kind: input, shape index: {}]   ;;  %s21401_s5 = inlined_call_operand.hbm [shape: bf16[512,2048], index: 5, kind: input, shape index: {}]   ;;  %s21402_s6 = inlined_call_operand.hbm [shape: f32[1,2048], index: 6, kind: input, shape index: {}]   ;;  %s21403_s7 = inlined_call_operand.hbm [shape: bf16[2048,128], index: 7, kind: input, shape index: {}]   ;;  %s21404_s8 = inlined_call_operand.hbm [shape: f32[1,128], index: 8, kind: input, shape index: {}]   ;;  %s21405_s9 = inlined_call_operand.hbm [shape: bf16[128,2048], index: 9, kind: input, shape index: {}]   ;;  %s21406_s10 = inlined_call_operand.hbm [shape: f32[1,2048], index: 10, kind: input, shape index: {}]   ;;  %s21407_s11 = inlined_call_operand.hbm [shape: bf16[2048,512], index: 11, kind: input, shape index: {}]   ;;  %s21408_s12 = inlined_call_operand.hbm [shape: f32[1,512], index: 12, kind: input, shape index: {}]   ;;  %s21409_s13 = inlined_call_operand.hbm [shape: bf16[512,512], index: 13, kind: input, shape index: {}]   ;;  %s21410_s14 = inlined_call_operand.hbm [shape: f32[1,512], index: 14, kind: input, shape index: {}]   ;;  %s21411_s15 = inlined_call_operand.hbm [shape: bf16[512,896], index: 15, kind: input, shape index: {}]   ;;  %s21412_s16 = inlined_call_operand.hbm [shape: f32[1,896], index: 16, kind: input, shape index: {}]   ;;  %s21413_s17 = inlined_call_operand.hbm [shape: f32[8,128], index: 17, kind: output, shape index: {0}]   ;;  %s21414_s18 = inlined_call_operand.hbm [shape: f32[8,896], index: 18, kind: output, shape index: {1}]  }
   0x1   :  { %21418 = sst [smem:[#allocation42_spill]] %s21396_s0 }
   0x2   :  { %21419 = sst [smem:[#allocation43_spill]] %s21397_s1 }
   0x3   :  { %21420 = sst [smem:[#allocation44_spill]] %s21398_s2 }
   0x4   :  { %24 = vsyncpa [#allocation3], 0 }
   0x5   :  { %25 = vsyncpa [#allocation6], 0 }
   0x6   :  { %26 = vsyncpa [#allocation9], 0 }
   0x7   :  { %27 = vsyncpa [#allocation12], 0 }
   0x8   :  { %28 = vsyncpa [#allocation15], 0 }
   0x9   :  { %29 = vsyncpa [#allocation18], 0 }
   0xa   :  { %30 = vsyncpa [#allocation21], 0 }
   0xb   :  { %31 = vsyncpa [#allocation24], 0 }
   0xc   :  { %32 = vsyncpa [#allocation27], 0 }
   0xd   :  { %33 = vsyncpa [#allocation4], 0 }
   0xe   :  { %34 = vsyncpa [#allocation30], 0  ;;  %s20675_s27 = smov [#allocation5]   ;;  %s20676_s29 = smov [#allocation8]  }
   0xf   :  { %s55_s28 = sshll.u32 %s20675_s27, 4  ;;  %s77_s30 = sshll.u32 %s20676_s29, 4  ;;  %s56_s28 = int_to_ptr.vmem [resolvable:$true] %s55_s28  ;;  %s78_s30 = int_to_ptr.vmem [resolvable:$true] %s77_s30 }
  0x10   :  { %s21421_s1 = sld [smem:[#allocation44_spill]] }
  0x16   :  { %s20257_s20 = scalar_lea.hbm %s21421_s1, 64 }
  0x17   :  { %p20258_p0 = scmp.ne.s32.totalorder %s21421_s1, %s20257_s20  ;;  %p20261_p1 = scmp.lt.u32.totalorder %s20257_s20, %s21421_s1 }
  0x19   :  { %p20263_p2 = pnand %p20261_p1, %p20258_p0 }
  0x1b   :  { %20266 = shalt.err (!%p20263_p2)
}
  0x1c   :  { %s20267_s24 = scalar_lea.vmem %s56_s28, 64  ;;  %p20272_p4 = scmp.lt.s32.totalorder %s56_s28, %s56_s28 }
  0x1d   :  { %p20268_p3 = scmp.ne.s32.totalorder %s56_s28, %s20267_s24  ;;  %p20273_p5 = scmp.lt.s32.totalorder %s20267_s24, %s20267_s24 }
  0x1f   :  { %p20274_p6 = por %p20273_p5, %p20272_p4 }
  0x21   :  { %p20275_p7 = pnand %p20274_p6, %p20268_p3 }
  0x23   :  { %20278 = shalt.err (!%p20275_p7)
}
  0x24   :  { %58 = dma.hbm_to_vmem [thread:$0]  %s21421_s1, 64, %s56_s28, [#allocation6]  }
  0x25   :  { %s20279_s0 = scalar_lea.hbm %s21400_s4, 64 }
  0x26   :  { %p20280_p8 = scmp.ne.s32.totalorder %s21400_s4, %s20279_s0  ;;  %p20283_p9 = scmp.lt.u32.totalorder %s20279_s0, %s21400_s4 }
  0x28   :  { %p20285_p10 = pnand %p20283_p9, %p20280_p8 }
  0x2a   :  { %20288 = shalt.err (!%p20285_p10)
}
  0x2b   :  { %s20289_s2 = scalar_lea.vmem %s78_s30, 64  ;;  %p20294_p12 = scmp.lt.s32.totalorder %s78_s30, %s78_s30 }
  0x2c   :  { %p20290_p11 = scmp.ne.s32.totalorder %s78_s30, %s20289_s2  ;;  %p20295_p13 = scmp.lt.s32.totalorder %s20289_s2, %s20289_s2 }
  0x2e   :  { %p20296_p0 = por %p20295_p13, %p20294_p12 }
  0x30   :  { %p20297_p1 = pnand %p20296_p0, %p20290_p11 }
  0x32   :  { %20300 = shalt.err (!%p20297_p1)
}
  0x33   :  { %80 = dma.hbm_to_vmem [thread:$0]  %s21400_s4, 64, %s78_s30, [#allocation9]  }
  0x34   :  { %s20677_s23 = smov [#allocation11]   ;;  %s20678_s25 = smov [#allocation14]  }
  0x35   :  { %s99_s24 = sshll.u32 %s20677_s23, 4  ;;  %s121_s26 = sshll.u32 %s20678_s25, 4  ;;  %s100_s24 = int_to_ptr.vmem [resolvable:$true] %s99_s24  ;;  %s122_s26 = int_to_ptr.vmem [resolvable:$true] %s121_s26 }
  0x36   :  { %s20301_s0 = scalar_lea.hbm %s21402_s6, 256 }
  0x37   :  { %p20302_p2 = scmp.ne.s32.totalorder %s21402_s6, %s20301_s0  ;;  %p20305_p3 = scmp.lt.u32.totalorder %s20301_s0, %s21402_s6 }
  0x39   :  { %p20307_p4 = pnand %p20305_p3, %p20302_p2 }
  0x3b   :  { %20310 = shalt.err (!%p20307_p4)
}
  0x3c   :  { %s20311_s4 = scalar_lea.vmem %s100_s24, 256  ;;  %p20316_p6 = scmp.lt.s32.totalorder %s100_s24, %s100_s24 }
  0x3d   :  { %p20312_p5 = scmp.ne.s32.totalorder %s100_s24, %s20311_s4  ;;  %p20317_p7 = scmp.lt.s32.totalorder %s20311_s4, %s20311_s4 }
  0x3f   :  { %p20318_p8 = por %p20317_p7, %p20316_p6 }
  0x41   :  { %p20319_p9 = pnand %p20318_p8, %p20312_p5 }
  0x43   :  { %20322 = shalt.err (!%p20319_p9)
}
  0x44   :  { %102 = dma.hbm_to_vmem [thread:$0]  %s21402_s6, 256, %s100_s24, [#allocation12]  }
  0x45   :  { %s20323_s23 = scalar_lea.hbm %s21404_s8, 16 }
  0x46   :  { %p20324_p10 = scmp.ne.s32.totalorder %s21404_s8, %s20323_s23  ;;  %p20327_p11 = scmp.lt.u32.totalorder %s20323_s23, %s21404_s8 }
  0x48   :  { %p20329_p12 = pnand %p20327_p11, %p20324_p10 }
  0x4a   :  { %20332 = shalt.err (!%p20329_p12)
}
  0x4b   :  { %s20333_s19 = scalar_lea.vmem %s122_s26, 16  ;;  %s20337_s21 = scalar_lea.vmem %s122_s26, 32 }
  0x4c   :  { %p20334_p13 = scmp.ne.s32.totalorder %s122_s26, %s20333_s19  ;;  %p20338_p0 = scmp.lt.s32.totalorder %s122_s26, %s122_s26 }
  0x4d   :  { %p20339_p1 = scmp.lt.s32.totalorder %s20337_s21, %s20333_s19 }
  0x4f   :  { %p20340_p2 = por %p20339_p1, %p20338_p0 }
  0x51   :  { %p20341_p3 = pnand %p20340_p2, %p20334_p13 }
  0x53   :  { %20344 = shalt.err (!%p20341_p3)
}
  0x54   :  { %124 = dma.hbm_to_vmem [thread:$0]  %s21404_s8, 16, %s122_s26, [#allocation15]  }
  0x55   :  { %s20679_s20 = smov [#allocation17]   ;;  %s20680_s4 = smov [#allocation20]  }
  0x56   :  { %s143_s22 = sshll.u32 %s20679_s20, 4  ;;  %s165_s30 = sshll.u32 %s20680_s4, 4  ;;  %s144_s22 = int_to_ptr.vmem [resolvable:$true] %s143_s22  ;;  %s166_s30 = int_to_ptr.vmem [resolvable:$true] %s165_s30 }
  0x57   :  { %s20345_s1 = scalar_lea.hbm %s21406_s10, 256 }
  0x58   :  { %p20346_p4 = scmp.ne.s32.totalorder %s21406_s10, %s20345_s1  ;;  %p20349_p5 = scmp.lt.u32.totalorder %s20345_s1, %s21406_s10 }
  0x5a   :  { %p20351_p6 = pnand %p20349_p5, %p20346_p4 }
  0x5c   :  { %20354 = shalt.err (!%p20351_p6)
}
  0x5d   :  { %s20355_s8 = scalar_lea.vmem %s144_s22, 256  ;;  %p20360_p8 = scmp.lt.s32.totalorder %s144_s22, %s144_s22 }
  0x5e   :  { %p20356_p7 = scmp.ne.s32.totalorder %s144_s22, %s20355_s8  ;;  %p20361_p9 = scmp.lt.s32.totalorder %s20355_s8, %s20355_s8 }
  0x60   :  { %p20362_p10 = por %p20361_p9, %p20360_p8 }
  0x62   :  { %p20363_p11 = pnand %p20362_p10, %p20356_p7 }
  0x64   :  { %20366 = shalt.err (!%p20363_p11)
}
  0x65   :  { %146 = dma.hbm_to_vmem [thread:$0]  %s21406_s10, 256, %s144_s22, [#allocation18]  }
  0x66   :  { %s20367_s6 = scalar_lea.hbm %s21408_s12, 64 }
  0x67   :  { %p20368_p12 = scmp.ne.s32.totalorder %s21408_s12, %s20367_s6  ;;  %p20371_p13 = scmp.lt.u32.totalorder %s20367_s6, %s21408_s12 }
  0x69   :  { %p20373_p0 = pnand %p20371_p13, %p20368_p12 }
  0x6b   :  { %20376 = shalt.err (!%p20373_p0)
}
  0x6c   :  { %s20377_s28 = scalar_lea.vmem %s166_s30, 64  ;;  %p20382_p2 = scmp.lt.s32.totalorder %s166_s30, %s166_s30 }
  0x6d   :  { %p20378_p1 = scmp.ne.s32.totalorder %s166_s30, %s20377_s28  ;;  %p20383_p3 = scmp.lt.s32.totalorder %s20377_s28, %s20377_s28 }
  0x6f   :  { %p20384_p4 = por %p20383_p3, %p20382_p2 }
  0x71   :  { %p20385_p5 = pnand %p20384_p4, %p20378_p1 }
  0x73   :  { %20388 = shalt.err (!%p20385_p5)
}
  0x74   :  { %168 = dma.hbm_to_vmem [thread:$0]  %s21408_s12, 64, %s166_s30, [#allocation21]  }
  0x75   :  { %s20681_s1 = smov [#allocation23]   ;;  %s20682_s25 = smov [#allocation2]  }
  0x76   :  { %s187_s23 = sshll.u32 %s20681_s1, 4  ;;  %s42_s27 = sshll.u32 %s20682_s25, 4  ;;  %s188_s23 = int_to_ptr.vmem [resolvable:$true] %s187_s23  ;;  %s20868_s27 = int_to_ptr.vmem [resolvable:$true] %s42_s27 }
  0x77   :  { %s20389_s26 = scalar_lea.hbm %s21410_s14, 64 }
  0x78   :  { %p20390_p6 = scmp.ne.s32.totalorder %s21410_s14, %s20389_s26  ;;  %p20393_p7 = scmp.lt.u32.totalorder %s20389_s26, %s21410_s14 }
  0x7a   :  { %p20395_p8 = pnand %p20393_p7, %p20390_p6 }
  0x7c   :  { %20398 = shalt.err (!%p20395_p8)
}
  0x7d   :  { %s20399_s12 = scalar_lea.vmem %s188_s23, 64  ;;  %p20404_p10 = scmp.lt.s32.totalorder %s188_s23, %s188_s23 }
  0x7e   :  { %p20400_p9 = scmp.ne.s32.totalorder %s188_s23, %s20399_s12  ;;  %p20405_p11 = scmp.lt.s32.totalorder %s20399_s12, %s20399_s12 }
  0x80   :  { %p20406_p12 = por %p20405_p11, %p20404_p10 }
  0x82   :  { %p20407_p13 = pnand %p20406_p12, %p20400_p9 }
  0x84   :  { %20410 = shalt.err (!%p20407_p13)
}
  0x85   :  { %190 = dma.hbm_to_vmem [thread:$0]  %s21410_s14, 64, %s188_s23, [#allocation24]  }
  0x86   :  { %s21422_s2 = sld [smem:[#allocation43_spill]] }
  0x8c   :  { %s20411_s28 = scalar_lea.hbm %s21422_s2, 28672 }
  0x8d   :  { %p20412_p0 = scmp.ne.s32.totalorder %s21422_s2, %s20411_s28  ;;  %p20415_p1 = scmp.lt.u32.totalorder %s20411_s28, %s21422_s2 }
  0x8f   :  { %p20417_p2 = pnand %p20415_p1, %p20412_p0 }
  0x91   :  { %20420 = shalt.err (!%p20417_p2)
}
  0x92   :  { %s20421_s29 = scalar_lea.vmem %s20868_s27, 28672  ;;  %p20426_p4 = scmp.lt.s32.totalorder %s20868_s27, %s20868_s27 }
  0x93   :  { %p20422_p3 = scmp.ne.s32.totalorder %s20868_s27, %s20421_s29  ;;  %p20427_p5 = scmp.lt.s32.totalorder %s20421_s29, %s20421_s29 }
  0x95   :  { %p20428_p6 = por %p20427_p5, %p20426_p4 }
  0x97   :  { %p20429_p7 = pnand %p20428_p6, %p20422_p3 }
  0x99   :  { %20432 = shalt.err (!%p20429_p7)
}
  0x9a   :  { %s20683_s14 = smov 256   ;;  %s20684_s23 = smov 16  }
  0x9b   :  { %48 = dma.hbm_to_vmem [thread:$0]  %s21422_s2, 28672, %s20868_s27, [#allocation3], %s20683_s14, %s20683_s14, %s20684_s23  }
  0x9c   :  { %s20685_s0 = smov [#allocation7]   ;;  %s20686_s21 = smov [#allocation10]  }
  0x9d   :  { %s64_s19 = sshll.u32 %s20685_s0, 4  ;;  %s86_s6 = sshll.u32 %s20686_s21, 4  ;;  %s65_s19 = int_to_ptr.vmem [resolvable:$true] %s64_s19  ;;  %s20902_s6 = int_to_ptr.vmem [resolvable:$true] %s86_s6 }
  0x9e   :  { %s20433_s24 = scalar_lea.hbm %s21399_s3, 16384 }
  0x9f   :  { %p20434_p8 = scmp.ne.s32.totalorder %s21399_s3, %s20433_s24  ;;  %p20437_p9 = scmp.lt.u32.totalorder %s20433_s24, %s21399_s3 }
  0xa1   :  { %p20439_p10 = pnand %p20437_p9, %p20434_p8 }
  0xa3   :  { %20442 = shalt.err (!%p20439_p10)
}
  0xa4   :  { %s20443_s27 = scalar_lea.vmem %s65_s19, 16384  ;;  %p20448_p12 = scmp.lt.s32.totalorder %s65_s19, %s65_s19 }
  0xa5   :  { %p20444_p11 = scmp.ne.s32.totalorder %s65_s19, %s20443_s27  ;;  %p20449_p13 = scmp.lt.s32.totalorder %s20443_s27, %s20443_s27 }
  0xa7   :  { %p20450_p0 = por %p20449_p13, %p20448_p12 }
  0xa9   :  { %p20451_p1 = pnand %p20450_p0, %p20444_p11 }
  0xab   :  { %20454 = shalt.err (!%p20451_p1)
}
  0xac   :  { %70 = dma.hbm_to_vmem [thread:$0]  %s21399_s3, 16384, %s65_s19, [#allocation6], %s20683_s14, %s20683_s14, %s20684_s23  }
  0xad   :  { %s20455_s29 = scalar_lea.hbm %s21401_s5, 65536 }
  0xae   :  { %p20456_p2 = scmp.ne.s32.totalorder %s21401_s5, %s20455_s29  ;;  %p20459_p3 = scmp.lt.u32.totalorder %s20455_s29, %s21401_s5 }
  0xb0   :  { %p20461_p4 = pnand %p20459_p3, %p20456_p2 }
  0xb2   :  { %20464 = shalt.err (!%p20461_p4)
}
  0xb3   :  { %s20465_s12 = scalar_lea.vmem %s20902_s6, 65536  ;;  %p20470_p6 = scmp.lt.s32.totalorder %s20902_s6, %s20902_s6 }
  0xb4   :  { %p20466_p5 = scmp.ne.s32.totalorder %s20902_s6, %s20465_s12  ;;  %p20471_p7 = scmp.lt.s32.totalorder %s20465_s12, %s20465_s12 }
  0xb6   :  { %p20472_p8 = por %p20471_p7, %p20470_p6 }
  0xb8   :  { %p20473_p9 = pnand %p20472_p8, %p20466_p5 }
  0xba   :  { %20476 = shalt.err (!%p20473_p9)
}
  0xbb   :  { %s20687_s3 = smov 1024   ;;  %s20688_s19 = smov 64  }
  0xbc   :  { %92 = dma.hbm_to_vmem [thread:$0]  %s21401_s5, 65536, %s20902_s6, [#allocation9], %s20687_s3, %s20687_s3, %s20688_s19  }
  0xbd   :  { %s20689_s20 = smov [#allocation13]   ;;  %s20690_s28 = smov [#allocation16]  }
  0xbe   :  { %s108_s4 = sshll.u32 %s20689_s20, 4  ;;  %s130_s10 = sshll.u32 %s20690_s28, 4  ;;  %s109_s4 = int_to_ptr.vmem [resolvable:$true] %s108_s4  ;;  %s131_s10 = int_to_ptr.vmem [resolvable:$true] %s130_s10 }
  0xbf   :  { %s20477_s22 = scalar_lea.hbm %s21403_s7, 16384 }
  0xc0   :  { %p20478_p10 = scmp.ne.s32.totalorder %s21403_s7, %s20477_s22  ;;  %p20481_p11 = scmp.lt.u32.totalorder %s20477_s22, %s21403_s7 }
  0xc2   :  { %p20483_p12 = pnand %p20481_p11, %p20478_p10 }
  0xc4   :  { %20486 = shalt.err (!%p20483_p12)
}
  0xc5   :  { %s20487_s5 = scalar_lea.vmem %s109_s4, 16384  ;;  %p20492_p0 = scmp.lt.s32.totalorder %s109_s4, %s109_s4 }
  0xc6   :  { %p20488_p13 = scmp.ne.s32.totalorder %s109_s4, %s20487_s5  ;;  %p20493_p1 = scmp.lt.s32.totalorder %s20487_s5, %s20487_s5 }
  0xc8   :  { %p20494_p2 = por %p20493_p1, %p20492_p0 }
  0xca   :  { %p20495_p3 = pnand %p20494_p2, %p20488_p13 }
  0xcc   :  { %20498 = shalt.err (!%p20495_p3)
}
  0xcd   :  { %s20691_s6 = smov 4   ;;  %s20499_s30 = scalar_lea.hbm %s21405_s9, 16384 }
  0xce   :  { %114 = dma.hbm_to_vmem [thread:$0]  %s21403_s7, 16384, %s109_s4, [#allocation12], %s20688_s19, %s20688_s19, %s20691_s6  }
  0xcf   :  { %p20500_p4 = scmp.ne.s32.totalorder %s21405_s9, %s20499_s30  ;;  %p20503_p5 = scmp.lt.u32.totalorder %s20499_s30, %s21405_s9 }
  0xd1   :  { %p20505_p6 = pnand %p20503_p5, %p20500_p4 }
  0xd3   :  { %20508 = shalt.err (!%p20505_p6)
}
  0xd4   :  { %s20509_s2 = scalar_lea.vmem %s131_s10, 16384  ;;  %p20514_p8 = scmp.lt.s32.totalorder %s131_s10, %s131_s10 }
  0xd5   :  { %p20510_p7 = scmp.ne.s32.totalorder %s131_s10, %s20509_s2  ;;  %p20515_p9 = scmp.lt.s32.totalorder %s20509_s2, %s20509_s2 }
  0xd7   :  { %p20516_p10 = por %p20515_p9, %p20514_p8 }
  0xd9   :  { %p20517_p11 = pnand %p20516_p10, %p20510_p7 }
  0xdb   :  { %20520 = shalt.err (!%p20517_p11)
}
  0xdc   :  { %136 = dma.hbm_to_vmem [thread:$0]  %s21405_s9, 16384, %s131_s10, [#allocation15], %s20687_s3, %s20687_s3, %s20688_s19  }
  0xdd   :  { %s20692_s22 = smov [#allocation19]   ;;  %s20693_s25 = smov [#allocation22]  }
  0xde   :  { %s152_s1 = sshll.u32 %s20692_s22, 4  ;;  %s174_s29 = sshll.u32 %s20693_s25, 4  ;;  %s153_s1 = int_to_ptr.vmem [resolvable:$true] %s152_s1  ;;  %s175_s29 = int_to_ptr.vmem [resolvable:$true] %s174_s29 }
  0xdf   :  { %s20521_s6 = scalar_lea.hbm %s21407_s11, 65536 }
  0xe0   :  { %p20522_p12 = scmp.ne.s32.totalorder %s21407_s11, %s20521_s6  ;;  %p20525_p13 = scmp.lt.u32.totalorder %s20521_s6, %s21407_s11 }
  0xe2   :  { %p20527_p0 = pnand %p20525_p13, %p20522_p12 }
  0xe4   :  { %20530 = shalt.err (!%p20527_p0)
}
  0xe5   :  { %s20531_s9 = scalar_lea.vmem %s153_s1, 65536  ;;  %p20536_p2 = scmp.lt.s32.totalorder %s153_s1, %s153_s1 }
  0xe6   :  { %p20532_p1 = scmp.ne.s32.totalorder %s153_s1, %s20531_s9  ;;  %p20537_p3 = scmp.lt.s32.totalorder %s20531_s9, %s20531_s9 }
  0xe8   :  { %p20538_p4 = por %p20537_p3, %p20536_p2 }
  0xea   :  { %p20539_p5 = pnand %p20538_p4, %p20532_p1 }
  0xec   :  { %20542 = shalt.err (!%p20539_p5)
}
  0xed   :  { %158 = dma.hbm_to_vmem [thread:$0]  %s21407_s11, 65536, %s153_s1, [#allocation18], %s20683_s14, %s20683_s14, %s20684_s23  }
  0xee   :  { %s20543_s24 = scalar_lea.hbm %s21409_s13, 16384 }
  0xef   :  { %p20544_p6 = scmp.ne.s32.totalorder %s21409_s13, %s20543_s24  ;;  %p20547_p7 = scmp.lt.u32.totalorder %s20543_s24, %s21409_s13 }
  0xf1   :  { %p20549_p8 = pnand %p20547_p7, %p20544_p6 }
  0xf3   :  { %20552 = shalt.err (!%p20549_p8)
}
  0xf4   :  { %s20553_s7 = scalar_lea.vmem %s175_s29, 16384  ;;  %p20558_p10 = scmp.lt.s32.totalorder %s175_s29, %s175_s29 }
  0xf5   :  { %p20554_p9 = scmp.ne.s32.totalorder %s175_s29, %s20553_s7  ;;  %p20559_p11 = scmp.lt.s32.totalorder %s20553_s7, %s20553_s7 }
  0xf7   :  { %p20560_p12 = por %p20559_p11, %p20558_p10 }
  0xf9   :  { %p20561_p13 = pnand %p20560_p12, %p20554_p9 }
  0xfb   :  { %20564 = shalt.err (!%p20561_p13)
}
  0xfc   :  { %180 = dma.hbm_to_vmem [thread:$0]  %s21409_s13, 16384, %s175_s29, [#allocation21], %s20683_s14, %s20683_s14, %s20684_s23  }
  0xfd   :  { %s20694_s22 = smov [#allocation25]   ;;  %s20565_s5 = scalar_lea.hbm %s21411_s15, 28672 }
  0xfe   :  { %s196_s1 = sshll.u32 %s20694_s22, 4  ;;  %p20566_p0 = scmp.ne.s32.totalorder %s21411_s15, %s20565_s5  ;;  %s197_s1 = int_to_ptr.vmem [resolvable:$true] %s196_s1 }
  0xff   :  { %p20569_p1 = scmp.lt.u32.totalorder %s20565_s5, %s21411_s15 }
 0x101   :  { %p20571_p2 = pnand %p20569_p1, %p20566_p0 }
 0x103   :  { %20574 = shalt.err (!%p20571_p2)
}
 0x104   :  { %s20575_s12 = scalar_lea.vmem %s197_s1, 28672  ;;  %p20580_p4 = scmp.lt.s32.totalorder %s197_s1, %s197_s1 }
 0x105   :  { %p20576_p3 = scmp.ne.s32.totalorder %s197_s1, %s20575_s12  ;;  %p20581_p5 = scmp.lt.s32.totalorder %s20575_s12, %s20575_s12 }
 0x107   :  { %p20582_p6 = por %p20581_p5, %p20580_p4 }
 0x109   :  { %p20583_p7 = pnand %p20582_p6, %p20576_p3 }
 0x10b   :  { %20586 = shalt.err (!%p20583_p7)
}
 0x10c   :  { %s20695_s13 = smov 448   ;;  %s20696_s14 = smov 28  }
 0x10d   :  { %202 = dma.hbm_to_vmem [thread:$0]  %s21411_s15, 28672, %s197_s1, [#allocation24], %s20695_s13, %s20695_s13, %s20696_s14  }
 0x10e   :  { %s20697_s9 = smov [#allocation26]   ;;  %s20587_s30 = scalar_lea.hbm %s21412_s16, 112 }
 0x10f   :  { %s209_s3 = sshll.u32 %s20697_s9, 4  ;;  %p20588_p8 = scmp.ne.s32.totalorder %s21412_s16, %s20587_s30  ;;  %s210_s3 = int_to_ptr.vmem [resolvable:$true] %s209_s3 }
 0x110   :  { %p20591_p9 = scmp.lt.u32.totalorder %s20587_s30, %s21412_s16 }
 0x112   :  { %p20593_p10 = pnand %p20591_p9, %p20588_p8 }
 0x114   :  { %20596 = shalt.err (!%p20593_p10)
}
 0x115   :  { %s20597_s2 = scalar_lea.vmem %s210_s3, 112  ;;  %s20601_s15 = scalar_lea.vmem %s210_s3, 128 }
 0x116   :  { %p20598_p11 = scmp.ne.s32.totalorder %s210_s3, %s20597_s2  ;;  %p20602_p12 = scmp.lt.s32.totalorder %s210_s3, %s210_s3 }
 0x117   :  { %p20603_p13 = scmp.lt.s32.totalorder %s20601_s15, %s20597_s2 }
 0x119   :  { %p20604_p0 = por %p20603_p13, %p20602_p12 }
 0x11b   :  { %p20605_p1 = pnand %p20604_p0, %p20598_p11 }
 0x11d   :  { %20608 = shalt.err (!%p20605_p1)
}
 0x11e   :  { %212 = dma.hbm_to_vmem [thread:$0]  %s21412_s16, 112, %s210_s3, [#allocation27]  }
 0x11f   :  { %20653 = dma.done.wait [#allocation3], 28672  }
 0x120   :  { %20654 = vsyncadd [#allocation3], 4294938624 }
 0x121   :  { %20655 = dma.done.wait [#allocation6], 16448  }
 0x122   :  { %20656 = vsyncadd [#allocation6], 4294950848 }
 0x123   :  { %20657 = dma.done.wait [#allocation9], 65600  }
 0x124   :  { %20658 = vsyncadd [#allocation9], 4294901696 }
 0x125   :  { %20659 = dma.done.wait [#allocation12], 16640  }
 0x126   :  { %20660 = vsyncadd [#allocation12], 4294950656 }
 0x127   :  { %20661 = dma.done.wait [#allocation15], 16400  }
 0x128   :  { %20662 = vsyncadd [#allocation15], 4294950896 }
 0x129   :  { %20663 = dma.done.wait [#allocation18], 65792  }
 0x12a   :  { %20664 = vsyncadd [#allocation18], 4294901504 }
 0x12b   :  { %20665 = dma.done.wait [#allocation21], 16448  }
 0x12c   :  { %20666 = vsyncadd [#allocation21], 4294950848 }
 0x12d   :  { %20667 = dma.done.wait [#allocation24], 28736  }
 0x12e   :  { %20668 = vsyncadd [#allocation24], 4294938560 }
 0x12f   :  { %20669 = dma.done.wait [#allocation27], 112  }
 0x130   :  { %20670 = vsyncadd [#allocation27], 4294967184  ;;  %v20698_v0 = vmov 0   ;;  %v18313_v1 = vld [vmem:[#allocation2 + $0x4] ss:$16 sps:$4 sm:$0xff]   ;;  %s21423_s22 = sld [smem:[#allocation42_spill]] }
 0x131   :  { %1812 = vmatprep.mubr.bf16.mxu1 %v20698_v0  ;;  %v18315_v2 = vld [vmem:[#allocation2 + $0x604] ss:$16 sps:$4 sm:$0xff]   ;;  %1657 = vmatprep.subr.bf16.mxu0 %v18313_v1  ;;  %v18317_v3 = vld [vmem:[#allocation2] ss:$16 sps:$4 sm:$0xff]   ;;  %v18366_v34 = vld [vmem:[#allocation2 + $0xc] ss:$16 sps:$4 sm:$0xff]  }
 0x132   :  { %v18318_v4 = vld [vmem:[#allocation2 + $0x600] ss:$16 sps:$4 sm:$0xff]   ;;  %1780 = vmatprep.subr.bf16.mxu1 %v18315_v2  ;;  %v18319_v5 = vld [vmem:[#allocation2 + $0x24] ss:$16 sps:$4 sm:$0xff]   ;;  %1658 = vmatpush1.bf16.msra.mxu0 %v18317_v3  ;;  %v18364_v36 = vld [vmem:[#allocation2 + $0x8] ss:$16 sps:$4 sm:$0xff]  }
 0x133   :  { %1781 = vmatpush1.bf16.msra.mxu1 %v18318_v4  ;;  %v18321_v6 = vld [vmem:[#allocation2 + $0x624] ss:$16 sps:$4 sm:$0xff]   ;;  %v18323_v7 = vld [vmem:[#allocation2 + $0x20] ss:$16 sps:$4 sm:$0xff]   ;;  %1659 = vmatprep.subr.bf16.mxu0 %v18319_v5  ;;  %v18372_v39 = vld [vmem:[#allocation2 + $0x2c] ss:$16 sps:$4 sm:$0xff]  }
 0x134   :  { %v18324_v8 = vld [vmem:[#allocation2 + $0x620] ss:$16 sps:$4 sm:$0xff]   ;;  %1782 = vmatprep.subr.bf16.mxu1 %v18321_v6  ;;  %v18325_v9 = vld [vmem:[#allocation2 + $0x44] ss:$16 sps:$4 sm:$0xff]   ;;  %v18370_v40 = vld [vmem:[#allocation2 + $0x28] ss:$16 sps:$4 sm:$0xff]  }
 0x135   :  { %v18327_v10 = vld [vmem:[#allocation2 + $0x644] ss:$16 sps:$4 sm:$0xff]   ;;  %v18329_v11 = vld [vmem:[#allocation2 + $0x40] ss:$16 sps:$4 sm:$0xff]   ;;  %v18378_v43 = vld [vmem:[#allocation2 + $0x4c] ss:$16 sps:$4 sm:$0xff]  }
 0x136   :  { %v18330_v12 = vld [vmem:[#allocation2 + $0x640] ss:$16 sps:$4 sm:$0xff]   ;;  %1660 = vmatpush1.bf16.msra.mxu0 %v18323_v7  ;;  %v18331_v13 = vld [vmem:[#allocation2 + $0x64] ss:$16 sps:$4 sm:$0xff]   ;;  %v18363_v35 = vld [vmem:[%s21423_s22 + $0x18] ss:$0 sps:$4 sm:$0xff]  }
 0x137   :  { %1783 = vmatpush1.bf16.msra.mxu1 %v18324_v8  ;;  %1661 = vmatprep.subr.bf16.mxu0 %v18325_v9  ;;  %v18333_v14 = vld [vmem:[#allocation2 + $0x664] ss:$16 sps:$4 sm:$0xff]   ;;  %v18335_v15 = vld [vmem:[#allocation2 + $0x60] ss:$16 sps:$4 sm:$0xff]   ;;  %v18376_v44 = vld [vmem:[#allocation2 + $0x48] ss:$16 sps:$4 sm:$0xff]  }
 0x138   :  { %1784 = vmatprep.subr.bf16.mxu1 %v18327_v10  ;;  %v18336_v16 = vld [vmem:[#allocation2 + $0x660] ss:$16 sps:$4 sm:$0xff]   ;;  %v18337_v17 = vld [vmem:[#allocation2 + $0x84] ss:$16 sps:$4 sm:$0xff]   ;;  %v18384_v47 = vld [vmem:[#allocation2 + $0x6c] ss:$16 sps:$4 sm:$0xff]  }
 0x139   :  { %v18339_v18 = vld [vmem:[#allocation2 + $0x684] ss:$16 sps:$4 sm:$0xff]   ;;  %v18341_v19 = vld [vmem:[#allocation2 + $0x80] ss:$16 sps:$4 sm:$0xff]   ;;  %v18382_v48 = vld [vmem:[#allocation2 + $0x68] ss:$16 sps:$4 sm:$0xff]  }
 0x13a   :  { %1662 = vmatpush1.bf16.msra.mxu0 %v18329_v11  ;;  %v18342_v20 = vld [vmem:[#allocation2 + $0x680] ss:$16 sps:$4 sm:$0xff]   ;;  %v18343_v21 = vld [vmem:[#allocation2 + $0xa4] ss:$16 sps:$4 sm:$0xff]   ;;  %v18390_v53 = vld [vmem:[#allocation2 + $0x8c] ss:$16 sps:$4 sm:$0xff]  }
 0x13b   :  { %1785 = vmatpush1.bf16.msra.mxu1 %v18330_v12  ;;  %1663 = vmatprep.subr.bf16.mxu0 %v18331_v13  ;;  %v18345_v22 = vld [vmem:[#allocation2 + $0x6a4] ss:$16 sps:$4 sm:$0xff]   ;;  %v18347_v23 = vld [vmem:[#allocation2 + $0xa0] ss:$16 sps:$4 sm:$0xff]   ;;  %v18388_v54 = vld [vmem:[#allocation2 + $0x88] ss:$16 sps:$4 sm:$0xff]  }
 0x13c   :  { %1786 = vmatprep.subr.bf16.mxu1 %v18333_v14  ;;  %v18348_v24 = vld [vmem:[#allocation2 + $0x6a0] ss:$16 sps:$4 sm:$0xff]   ;;  %v18349_v25 = vld [vmem:[#allocation2 + $0xc4] ss:$16 sps:$4 sm:$0xff]   ;;  %v18396_v57 = vld [vmem:[#allocation2 + $0xac] ss:$16 sps:$4 sm:$0xff]  }
 0x13d   :  { %v18351_v26 = vld [vmem:[#allocation2 + $0x6c4] ss:$16 sps:$4 sm:$0xff]   ;;  %v18353_v27 = vld [vmem:[#allocation2 + $0xc0] ss:$16 sps:$4 sm:$0xff]   ;;  %v18394_v58 = vld [vmem:[#allocation2 + $0xa8] ss:$16 sps:$4 sm:$0xff]  }
 0x13e   :  { %1664 = vmatpush1.bf16.msra.mxu0 %v18335_v15  ;;  %v18354_v28 = vld [vmem:[#allocation2 + $0x6c0] ss:$16 sps:$4 sm:$0xff]   ;;  %v18355_v29 = vld [vmem:[#allocation2 + $0xe4] ss:$16 sps:$4 sm:$0xff]   ;;  %v18402_v61 = vld [vmem:[#allocation2 + $0xcc] ss:$16 sps:$4 sm:$0xff]  }
 0x13f   :  { %1787 = vmatpush1.bf16.msra.mxu1 %v18336_v16  ;;  %1665 = vmatprep.subr.bf16.mxu0 %v18337_v17  ;;  %v18357_v30 = vld [vmem:[#allocation2 + $0x6e4] ss:$16 sps:$4 sm:$0xff]   ;;  %v18359_v31 = vld [vmem:[#allocation2 + $0xe0] ss:$16 sps:$4 sm:$0xff]   ;;  %v18400_v62 = vld [vmem:[#allocation2 + $0xc8] ss:$16 sps:$4 sm:$0xff]  }
 0x140   :  { %1788 = vmatprep.subr.bf16.mxu1 %v18339_v18  ;;  %v18360_v32 = vld [vmem:[#allocation2 + $0x6e0] ss:$16 sps:$4 sm:$0xff]   ;;  %v18361_v33 = vld [vmem:[#allocation2 + $0x104] ss:$16 sps:$4 sm:$0xff]   ;;  %v18408_v2 = vld [vmem:[#allocation2 + $0xec] ss:$16 sps:$4 sm:$0xff]  }
 0x141   :  { %v18367_v37 = vld [vmem:[#allocation2 + $0x100] ss:$16 sps:$4 sm:$0xff]   ;;  %v18368_v38 = vld [vmem:[#allocation2 + $0x124] ss:$16 sps:$4 sm:$0xff]   ;;  %v18406_v3 = vld [vmem:[#allocation2 + $0xe8] ss:$16 sps:$4 sm:$0xff]  }
 0x142   :  { %1666 = vmatpush1.bf16.msra.mxu0 %v18341_v19  ;;  %v18373_v41 = vld [vmem:[#allocation2 + $0x120] ss:$16 sps:$4 sm:$0xff]   ;;  %v18374_v42 = vld [vmem:[#allocation2 + $0x144] ss:$16 sps:$4 sm:$0xff]   ;;  %v18417_v6 = vld [vmem:[#allocation2 + $0x10c] ss:$16 sps:$4 sm:$0xff]  }
 0x143   :  { %1789 = vmatpush1.bf16.msra.mxu1 %v18342_v20  ;;  %1667 = vmatprep.subr.bf16.mxu0 %v18343_v21  ;;  %v18379_v45 = vld [vmem:[#allocation2 + $0x140] ss:$16 sps:$4 sm:$0xff]   ;;  %v18380_v46 = vld [vmem:[#allocation2 + $0x164] ss:$16 sps:$4 sm:$0xff]   ;;  %v18415_v9 = vld [vmem:[#allocation2 + $0x108] ss:$16 sps:$4 sm:$0xff]  }
 0x144   :  { %1790 = vmatprep.subr.bf16.mxu1 %v18345_v22  ;;  %v262_v49 = vld [vmem:[%s21423_s22] sm:$0xff]  ;;  %v18423_v11 = vld [vmem:[#allocation2 + $0x12c] ss:$16 sps:$4 sm:$0xff]   ;;  %v18421_v13 = vld [vmem:[#allocation2 + $0x128] ss:$16 sps:$4 sm:$0xff]   ;;  %s20699_s12 = smov [#allocation28]  }
 0x145   :  { %v18385_v50 = vld [vmem:[#allocation2 + $0x160] ss:$16 sps:$4 sm:$0xff]   ;;  %v18386_v51 = vld [vmem:[#allocation2 + $0x184] ss:$16 sps:$4 sm:$0xff]   ;;  %v15900_v52 = vcombine.high %v262_v49, %v262_v49  ;;  %v21029_v7 = vcombine.low %v262_v49, %v262_v49  ;;  %v18429_v15 = vld [vmem:[#allocation2 + $0x14c] ss:$16 sps:$4 sm:$0xff]  }
 0x146   :  { %1668 = vmatpush1.bf16.msra.mxu0 %v18347_v23  ;;  %v18391_v55 = vld [vmem:[#allocation2 + $0x180] ss:$16 sps:$4 sm:$0xff]   ;;  %v18392_v56 = vld [vmem:[#allocation2 + $0x1a4] ss:$16 sps:$4 sm:$0xff]   ;;  %v18427_v17 = vld [vmem:[#allocation2 + $0x148] ss:$16 sps:$4 sm:$0xff]  }
 0x147   :  { %1791 = vmatpush1.bf16.msra.mxu1 %v18348_v24  ;;  %1669 = vmatprep.subr.bf16.mxu0 %v18349_v25  ;;  %v18397_v59 = vld [vmem:[#allocation2 + $0x1a0] ss:$16 sps:$4 sm:$0xff]   ;;  %v18398_v60 = vld [vmem:[#allocation2 + $0x1c4] ss:$16 sps:$4 sm:$0xff]   ;;  %v18435_v19 = vld [vmem:[#allocation2 + $0x16c] ss:$16 sps:$4 sm:$0xff]  }
 0x148   :  { %1792 = vmatprep.subr.bf16.mxu1 %v18351_v26  ;;  %1689 = vmatprep.mubr.bf16.mxu0 %v15900_v52  ;;  %v18403_v63 = vld [vmem:[#allocation2 + $0x1c0] ss:$16 sps:$4 sm:$0xff]   ;;  %v18404_v1 = vld [vmem:[#allocation2 + $0x1e4] ss:$16 sps:$4 sm:$0xff]   ;;  %v18433_v21 = vld [vmem:[#allocation2 + $0x168] ss:$16 sps:$4 sm:$0xff]  }
 0x149   :  { %v18409_v4 = vld [vmem:[#allocation2 + $0x1e0] ss:$16 sps:$4 sm:$0xff]   ;;  %v18414_v5 = vld [vmem:[#allocation2 + $0x204] ss:$16 sps:$4 sm:$0xff]   ;;  %v18441_v23 = vld [vmem:[#allocation2 + $0x18c] ss:$16 sps:$4 sm:$0xff]  }
 0x14a   :  { %1670 = vmatpush1.bf16.msra.mxu0 %v18353_v27  ;;  %v18412_v8 = vld [vmem:[#allocation2 + $0x200] ss:$16 sps:$4 sm:$0xff]   ;;  %v18420_v10 = vld [vmem:[#allocation2 + $0x224] ss:$16 sps:$4 sm:$0xff]   ;;  %v18439_v25 = vld [vmem:[#allocation2 + $0x188] ss:$16 sps:$4 sm:$0xff]  }
 0x14b   :  { %1793 = vmatpush1.bf16.msra.mxu1 %v18354_v28  ;;  %1671 = vmatprep.subr.bf16.mxu0 %v18355_v29  ;;  %v18418_v12 = vld [vmem:[#allocation2 + $0x220] ss:$16 sps:$4 sm:$0xff]   ;;  %v18426_v14 = vld [vmem:[#allocation2 + $0x244] ss:$16 sps:$4 sm:$0xff]   ;;  %v18447_v27 = vld [vmem:[#allocation2 + $0x1ac] ss:$16 sps:$4 sm:$0xff]  }
 0x14c   :  { %1794 = vmatprep.subr.bf16.mxu1 %v18357_v30  ;;  %v18424_v16 = vld [vmem:[#allocation2 + $0x240] ss:$16 sps:$4 sm:$0xff]   ;;  %v18432_v18 = vld [vmem:[#allocation2 + $0x264] ss:$16 sps:$4 sm:$0xff]   ;;  %v18445_v29 = vld [vmem:[#allocation2 + $0x1a8] ss:$16 sps:$4 sm:$0xff]  }
 0x14d   :  { %v18430_v20 = vld [vmem:[#allocation2 + $0x260] ss:$16 sps:$4 sm:$0xff]   ;;  %v18438_v22 = vld [vmem:[#allocation2 + $0x284] ss:$16 sps:$4 sm:$0xff]   ;;  %v18477_v49 = vld [vmem:[#allocation2 + $0x24c] ss:$16 sps:$4 sm:$0xff]  }
 0x14e   :  { %1672 = vmatpush1.bf16.msra.mxu0 %v18359_v31  ;;  %v18436_v24 = vld [vmem:[#allocation2 + $0x280] ss:$16 sps:$4 sm:$0xff]   ;;  %v18444_v26 = vld [vmem:[#allocation2 + $0x2a4] ss:$16 sps:$4 sm:$0xff]   ;;  %v18453_v31 = vld [vmem:[#allocation2 + $0x1cc] ss:$16 sps:$4 sm:$0xff]  }
 0x14f   :  { %1795 = vmatpush1.bf16.msra.mxu1 %v18360_v32  ;;  %1673 = vmatprep.subr.bf16.mxu0 %v18361_v33  ;;  %v18442_v28 = vld [vmem:[#allocation2 + $0x2a0] ss:$16 sps:$4 sm:$0xff]   ;;  %v18450_v30 = vld [vmem:[#allocation2 + $0x2c4] ss:$16 sps:$4 sm:$0xff]   ;;  %v21035_v32 = vld [vmem:[%s21423_s22 + $0x8] sm:$0xff]  ;;  %s15868_s13 = sshll.u32 %s20699_s12, 4  ;;  %s15869_s13 = int_to_ptr.vmem [resolvable:$true] %s15868_s13 }
 0x150   :  { %1821 = vmatprep.subr.bf16.mxu1 %v18366_v34  ;;  %v18448_v33 = vld [vmem:[#allocation2 + $0x2c0] ss:$16 sps:$4 sm:$0xff]   ;;  %v18451_v34 = vld [vmem:[#allocation2 + $0x1c8] ss:$16 sps:$4 sm:$0xff]   ;;  %s20609_s14 = scalar_lea.vmem %s15869_s13, 128  ;;  %p20614_p3 = scmp.lt.s32.totalorder %s15869_s13, %s15869_s13 }
 0x151   :  { %p20610_p2 = scmp.ne.s32.totalorder %s15869_s13, %s20609_s14  ;;  %p20615_p4 = scmp.lt.s32.totalorder %s20609_s14, %s20609_s14 }
 0x152   :  { %1813 = vmatmul.mubr.bf16.vlgmr.msra.gmra.mrb[0].mxu1 %v18363_v35  ;;  %1674 = vmatpush1.bf16.msra.mxu0 %v18367_v37  ;;  %v15902_v35 = vcombine.high %v21035_v32, %v21035_v32  ;;  %v18459_v37 = vld [vmem:[#allocation2 + $0x1ec] ss:$16 sps:$4 sm:$0xff]  }
 0x153   :  { %1822 = vmatpush1.bf16.msra.mxu1 %v18364_v36  ;;  %1675 = vmatprep.subr.bf16.mxu0 %v18368_v38  ;;  %v18456_v36 = vld [vmem:[#allocation2 + $0x2e4] ss:$16 sps:$4 sm:$0xff]   ;;  %v18454_v38 = vld [vmem:[#allocation2 + $0x2e0] ss:$16 sps:$4 sm:$0xff]   ;;  %p20616_p5 = por %p20615_p4, %p20614_p3 }
 0x154   :  { %1823 = vmatprep.subr.bf16.mxu1 %v18372_v39  ;;  %1853 = vmatprep.mubr.bf16.mxu1 %v15900_v52  ;;  %v18457_v39 = vld [vmem:[#allocation2 + $0x1e8] ss:$16 sps:$4 sm:$0xff]   ;;  %v18480_v52 = vld [vmem:[#allocation2 + $0x364] ss:$16 sps:$4 sm:$0xff]  }
 0x155   :  { %p20617_p6 = pnand %p20616_p5, %p20610_p2 }
 0x156   :  { %1676 = vmatpush1.bf16.msra.mxu0 %v18373_v41  ;;  %v18465_v41 = vld [vmem:[#allocation2 + $0x20c] ss:$16 sps:$4 sm:$0xff]  }
 0x157   :  { %1824 = vmatpush1.bf16.msra.mxu1 %v18370_v40  ;;  %1677 = vmatprep.subr.bf16.mxu0 %v18374_v42  ;;  %v18462_v40 = vld [vmem:[#allocation2 + $0x304] ss:$16 sps:$4 sm:$0xff]   ;;  %v18460_v42 = vld [vmem:[#allocation2 + $0x300] ss:$16 sps:$4 sm:$0xff]  }
 0x158   :  { %1825 = vmatprep.subr.bf16.mxu1 %v18378_v43  ;;  %v18463_v43 = vld [vmem:[#allocation2 + $0x208] ss:$16 sps:$4 sm:$0xff]  }
 0x15a   :  { %1678 = vmatpush1.bf16.msra.mxu0 %v18379_v45  ;;  %v18471_v45 = vld [vmem:[#allocation2 + $0x22c] ss:$16 sps:$4 sm:$0xff]  }
 0x15b   :  { %1826 = vmatpush1.bf16.msra.mxu1 %v18376_v44  ;;  %1679 = vmatprep.subr.bf16.mxu0 %v18380_v46  ;;  %v18468_v44 = vld [vmem:[#allocation2 + $0x324] ss:$16 sps:$4 sm:$0xff]   ;;  %v18466_v46 = vld [vmem:[#allocation2 + $0x320] ss:$16 sps:$4 sm:$0xff]  }
 0x15c   :  { %1827 = vmatprep.subr.bf16.mxu1 %v18384_v47  ;;  %v18469_v47 = vld [vmem:[#allocation2 + $0x228] ss:$16 sps:$4 sm:$0xff]  }
 0x15e   :  { %1680 = vmatpush1.bf16.msra.mxu0 %v18385_v50  ;;  %v18472_v50 = vld [vmem:[#allocation2 + $0x340] ss:$16 sps:$4 sm:$0xff]  }
 0x15f   :  { %1828 = vmatpush1.bf16.msra.mxu1 %v18382_v48  ;;  %1681 = vmatprep.subr.bf16.mxu0 %v18386_v51  ;;  %v18474_v48 = vld [vmem:[#allocation2 + $0x344] ss:$16 sps:$4 sm:$0xff]   ;;  %v18475_v51 = vld [vmem:[#allocation2 + $0x248] ss:$16 sps:$4 sm:$0xff]  }
 0x160   :  { %1829 = vmatprep.subr.bf16.mxu1 %v18390_v53  ;;  %v18483_v53 = vld [vmem:[#allocation2 + $0x26c] ss:$16 sps:$4 sm:$0xff]  }
 0x162   :  { %1682 = vmatpush1.bf16.msra.mxu0 %v18391_v55  ;;  %v18481_v55 = vld [vmem:[#allocation2 + $0x268] ss:$16 sps:$4 sm:$0xff]  }
 0x163   :  { %1830 = vmatpush1.bf16.msra.mxu1 %v18388_v54  ;;  %1683 = vmatprep.subr.bf16.mxu0 %v18392_v56  ;;  %v18478_v54 = vld [vmem:[#allocation2 + $0x360] ss:$16 sps:$4 sm:$0xff]   ;;  %v18486_v56 = vld [vmem:[#allocation2 + $0x384] ss:$16 sps:$4 sm:$0xff]  }
 0x164   :  { %1831 = vmatprep.subr.bf16.mxu1 %v18396_v57  ;;  %v18489_v57 = vld [vmem:[#allocation2 + $0x28c] ss:$16 sps:$4 sm:$0xff]  }
 0x166   :  { %1684 = vmatpush1.bf16.msra.mxu0 %v18397_v59  ;;  %v18487_v59 = vld [vmem:[#allocation2 + $0x288] ss:$16 sps:$4 sm:$0xff]  }
 0x167   :  { %1832 = vmatpush1.bf16.msra.mxu1 %v18394_v58  ;;  %1685 = vmatprep.subr.bf16.mxu0 %v18398_v60  ;;  %v18484_v58 = vld [vmem:[#allocation2 + $0x380] ss:$16 sps:$4 sm:$0xff]   ;;  %v18492_v60 = vld [vmem:[#allocation2 + $0x3a4] ss:$16 sps:$4 sm:$0xff]  }
 0x168   :  { %1833 = vmatprep.subr.bf16.mxu1 %v18402_v61  ;;  %v18495_v61 = vld [vmem:[#allocation2 + $0x2ac] ss:$16 sps:$4 sm:$0xff]  }
 0x16a   :  { %1686 = vmatpush1.bf16.msra.mxu0 %v18403_v63  ;;  %v18493_v63 = vld [vmem:[#allocation2 + $0x2a8] ss:$16 sps:$4 sm:$0xff]  }
 0x16b   :  { %1834 = vmatpush1.bf16.msra.mxu1 %v18400_v62  ;;  %1687 = vmatprep.subr.bf16.mxu0 %v18404_v1  ;;  %v18490_v62 = vld [vmem:[#allocation2 + $0x3a0] ss:$16 sps:$4 sm:$0xff]   ;;  %v18498_v1 = vld [vmem:[#allocation2 + $0x3c4] ss:$16 sps:$4 sm:$0xff]  }
 0x16c   :  { %1835 = vmatprep.subr.bf16.mxu1 %v18408_v2  ;;  %v18501_v2 = vld [vmem:[#allocation2 + $0x2cc] ss:$16 sps:$4 sm:$0xff]  }
 0x16e   :  { %1688 = vmatpush1.bf16.msra.mxu0 %v18409_v4  ;;  %v18499_v4 = vld [vmem:[#allocation2 + $0x2c8] ss:$16 sps:$4 sm:$0xff]  }
 0x16f   :  { %1836 = vmatpush1.bf16.msra.mxu1 %v18406_v3  ;;  %1698 = vmatprep.subr.bf16.mxu0 %v18414_v5  ;;  %v18496_v3 = vld [vmem:[#allocation2 + $0x3c0] ss:$16 sps:$4 sm:$0xff]   ;;  %v18504_v5 = vld [vmem:[#allocation2 + $0x3e4] ss:$16 sps:$4 sm:$0xff]  }
 0x170   :  { %1837 = vmatprep.subr.bf16.mxu1 %v18417_v6  ;;  %v18507_v6 = vld [vmem:[#allocation2 + $0x2ec] ss:$16 sps:$4 sm:$0xff]  }
 0x171   :  { %1690 = vmatmul.mubr.bf16.vlgmr.msra.gmra.mrb[0].mxu0 %v21029_v7 }
 0x172   :  { %1699 = vmatpush1.bf16.msra.mxu0 %v18412_v8  ;;  %1730 = vmatprep.mubr.bf16.mxu0 %v15902_v35  ;;  %v18505_v8 = vld [vmem:[#allocation2 + $0x2e8] ss:$16 sps:$4 sm:$0xff]  }
 0x173   :  { %1838 = vmatpush1.bf16.msra.mxu1 %v18415_v9  ;;  %1700 = vmatprep.subr.bf16.mxu0 %v18420_v10  ;;  %v18512_v9 = vld [vmem:[#allocation2 + $0x404] ss:$16 sps:$4 sm:$0xff]   ;;  %v18515_v10 = vld [vmem:[#allocation2 + $0x30c] ss:$16 sps:$4 sm:$0xff]  }
 0x174   :  { %1839 = vmatprep.subr.bf16.mxu1 %v18423_v11  ;;  %v21042_v11 = vcombine.low %v21035_v32, %v21035_v32  ;;  %v18542_v32 = vld [vmem:[#allocation2 + $0x4a4] ss:$16 sps:$4 sm:$0xff]  }
 0x176   :  { %1701 = vmatpush1.bf16.msra.mxu0 %v18418_v12  ;;  %v18510_v12 = vld [vmem:[#allocation2 + $0x400] ss:$16 sps:$4 sm:$0xff]  }
 0x177   :  { %1840 = vmatpush1.bf16.msra.mxu1 %v18421_v13  ;;  %1702 = vmatprep.subr.bf16.mxu0 %v18426_v14  ;;  %v18513_v13 = vld [vmem:[#allocation2 + $0x308] ss:$16 sps:$4 sm:$0xff]   ;;  %v18518_v14 = vld [vmem:[#allocation2 + $0x424] ss:$16 sps:$4 sm:$0xff]  }
 0x178   :  { %1841 = vmatprep.subr.bf16.mxu1 %v18429_v15  ;;  %v18521_v15 = vld [vmem:[#allocation2 + $0x32c] ss:$16 sps:$4 sm:$0xff]  }
 0x17a   :  { %1703 = vmatpush1.bf16.msra.mxu0 %v18424_v16  ;;  %v21047_v16 = vld [vmem:[%s21423_s22 + $0x10] sm:$0xff] }
 0x17b   :  { %1842 = vmatpush1.bf16.msra.mxu1 %v18427_v17  ;;  %1704 = vmatprep.subr.bf16.mxu0 %v18432_v18  ;;  %v21051_v17 = vcombine.high %v21047_v16, %v21047_v16  ;;  %v18516_v18 = vld [vmem:[#allocation2 + $0x420] ss:$16 sps:$4 sm:$0xff]  }
 0x17c   :  { %1843 = vmatprep.subr.bf16.mxu1 %v18435_v19  ;;  %v18519_v19 = vld [vmem:[#allocation2 + $0x328] ss:$16 sps:$4 sm:$0xff]  }
 0x17e   :  { %1705 = vmatpush1.bf16.msra.mxu0 %v18430_v20  ;;  %v18524_v20 = vld [vmem:[#allocation2 + $0x444] ss:$16 sps:$4 sm:$0xff]  }
 0x17f   :  { %1844 = vmatpush1.bf16.msra.mxu1 %v18433_v21  ;;  %1706 = vmatprep.subr.bf16.mxu0 %v18438_v22  ;;  %v18527_v21 = vld [vmem:[#allocation2 + $0x34c] ss:$16 sps:$4 sm:$0xff]   ;;  %v18522_v22 = vld [vmem:[#allocation2 + $0x440] ss:$16 sps:$4 sm:$0xff]  }
 0x180   :  { %1845 = vmatprep.subr.bf16.mxu1 %v18441_v23  ;;  %v18525_v23 = vld [vmem:[#allocation2 + $0x348] ss:$16 sps:$4 sm:$0xff]  }
 0x182   :  { %1707 = vmatpush1.bf16.msra.mxu0 %v18436_v24  ;;  %v18530_v24 = vld [vmem:[#allocation2 + $0x464] ss:$16 sps:$4 sm:$0xff]  }
 0x183   :  { %1846 = vmatpush1.bf16.msra.mxu1 %v18439_v25  ;;  %1708 = vmatprep.subr.bf16.mxu0 %v18444_v26  ;;  %v18533_v25 = vld [vmem:[#allocation2 + $0x36c] ss:$16 sps:$4 sm:$0xff]   ;;  %v18528_v26 = vld [vmem:[#allocation2 + $0x460] ss:$16 sps:$4 sm:$0xff]  }
 0x184   :  { %1847 = vmatprep.subr.bf16.mxu1 %v18447_v27  ;;  %v18531_v27 = vld [vmem:[#allocation2 + $0x368] ss:$16 sps:$4 sm:$0xff]  }
 0x186   :  { %1709 = vmatpush1.bf16.msra.mxu0 %v18442_v28  ;;  %v18536_v28 = vld [vmem:[#allocation2 + $0x484] ss:$16 sps:$4 sm:$0xff]  }
 0x187   :  { %1848 = vmatpush1.bf16.msra.mxu1 %v18445_v29  ;;  %1710 = vmatprep.subr.bf16.mxu0 %v18450_v30  ;;  %v18539_v29 = vld [vmem:[#allocation2 + $0x38c] ss:$16 sps:$4 sm:$0xff]   ;;  %v18534_v30 = vld [vmem:[#allocation2 + $0x480] ss:$16 sps:$4 sm:$0xff]  }
 0x188   :  { %1849 = vmatprep.subr.bf16.mxu1 %v18453_v31  ;;  %v18537_v31 = vld [vmem:[#allocation2 + $0x388] ss:$16 sps:$4 sm:$0xff]  }
 0x18a   :  { %1711 = vmatpush1.bf16.msra.mxu0 %v18448_v33  ;;  %v18545_v33 = vld [vmem:[#allocation2 + $0x3ac] ss:$16 sps:$4 sm:$0xff]  }
 0x18b   :  { %1850 = vmatpush1.bf16.msra.mxu1 %v18451_v34  ;;  %1712 = vmatprep.subr.bf16.mxu0 %v18456_v36  ;;  %v18540_v34 = vld [vmem:[#allocation2 + $0x4a0] ss:$16 sps:$4 sm:$0xff]   ;;  %v18548_v36 = vld [vmem:[#allocation2 + $0x4c4] ss:$16 sps:$4 sm:$0xff]  }
 0x18c   :  { %1851 = vmatprep.subr.bf16.mxu1 %v18459_v37  ;;  %v18551_v37 = vld [vmem:[#allocation2 + $0x3cc] ss:$16 sps:$4 sm:$0xff]  }
 0x18e   :  { %1713 = vmatpush1.bf16.msra.mxu0 %v18454_v38  ;;  %v18546_v38 = vld [vmem:[#allocation2 + $0x4c0] ss:$16 sps:$4 sm:$0xff]  }
 0x18f   :  { %1852 = vmatpush1.bf16.msra.mxu1 %v18457_v39  ;;  %1714 = vmatprep.subr.bf16.mxu0 %v18462_v40  ;;  %v18549_v39 = vld [vmem:[#allocation2 + $0x3c8] ss:$16 sps:$4 sm:$0xff]   ;;  %v18554_v40 = vld [vmem:[#allocation2 + $0x4e4] ss:$16 sps:$4 sm:$0xff]  }
 0x190   :  { %1862 = vmatprep.subr.bf16.mxu1 %v18465_v41  ;;  %v18557_v41 = vld [vmem:[#allocation2 + $0x3ec] ss:$16 sps:$4 sm:$0xff]  }
 0x192   :  { %1854 = vmatmul.mubr.bf16.vlgmr.msra.gmra.mrb[4].mxu1 %v21029_v7  ;;  %1715 = vmatpush1.bf16.msra.mxu0 %v18460_v42  ;;  %v18502_v7 = vld [vmem:[#allocation2 + $0x3e0] ss:$16 sps:$4 sm:$0xff]  }
 0x193   :  { %1863 = vmatpush1.bf16.msra.mxu1 %v18463_v43  ;;  %1716 = vmatprep.subr.bf16.mxu0 %v18468_v44  ;;  %v18552_v42 = vld [vmem:[#allocation2 + $0x4e0] ss:$16 sps:$4 sm:$0xff]   ;;  %v18555_v43 = vld [vmem:[#allocation2 + $0x3e8] ss:$16 sps:$4 sm:$0xff]   ;;  %v18560_v44 = vld [vmem:[#allocation2 + $0x504] ss:$16 sps:$4 sm:$0xff]  }
 0x194   :  { %1864 = vmatprep.subr.bf16.mxu1 %v18471_v45  ;;  %1894 = vmatprep.mubr.bf16.mxu1 %v15902_v35  ;;  %v18543_v35 = vld [vmem:[#allocation2 + $0x3a8] ss:$16 sps:$4 sm:$0xff]   ;;  %v18563_v45 = vld [vmem:[#allocation2 + $0x40c] ss:$16 sps:$4 sm:$0xff]  }
 0x196   :  { %1717 = vmatpush1.bf16.msra.mxu0 %v18466_v46  ;;  %v18558_v46 = vld [vmem:[#allocation2 + $0x500] ss:$16 sps:$4 sm:$0xff]  }
 0x197   :  { %1865 = vmatpush1.bf16.msra.mxu1 %v18469_v47  ;;  %1718 = vmatprep.subr.bf16.mxu0 %v18474_v48  ;;  %v18561_v47 = vld [vmem:[#allocation2 + $0x408] ss:$16 sps:$4 sm:$0xff]   ;;  %v18566_v48 = vld [vmem:[#allocation2 + $0x524] ss:$16 sps:$4 sm:$0xff]  }
 0x198   :  { %1866 = vmatprep.subr.bf16.mxu1 %v18477_v49  ;;  %v18569_v49 = vld [vmem:[#allocation2 + $0x42c] ss:$16 sps:$4 sm:$0xff]  }
 0x19a   :  { %1719 = vmatpush1.bf16.msra.mxu0 %v18472_v50  ;;  %v18564_v50 = vld [vmem:[#allocation2 + $0x520] ss:$16 sps:$4 sm:$0xff]  }
 0x19b   :  { %1867 = vmatpush1.bf16.msra.mxu1 %v18475_v51  ;;  %1720 = vmatprep.subr.bf16.mxu0 %v18480_v52  ;;  %v18567_v51 = vld [vmem:[#allocation2 + $0x428] ss:$16 sps:$4 sm:$0xff]   ;;  %v18572_v52 = vld [vmem:[#allocation2 + $0x544] ss:$16 sps:$4 sm:$0xff]  }
 0x19c   :  { %1868 = vmatprep.subr.bf16.mxu1 %v18483_v53  ;;  %v18575_v53 = vld [vmem:[#allocation2 + $0x44c] ss:$16 sps:$4 sm:$0xff]  }
 0x19e   :  { %1721 = vmatpush1.bf16.msra.mxu0 %v18478_v54  ;;  %v18570_v54 = vld [vmem:[#allocation2 + $0x540] ss:$16 sps:$4 sm:$0xff]  }
 0x19f   :  { %1869 = vmatpush1.bf16.msra.mxu1 %v18481_v55  ;;  %1722 = vmatprep.subr.bf16.mxu0 %v18486_v56  ;;  %v18573_v55 = vld [vmem:[#allocation2 + $0x448] ss:$16 sps:$4 sm:$0xff]   ;;  %v18578_v56 = vld [vmem:[#allocation2 + $0x564] ss:$16 sps:$4 sm:$0xff]  }
 0x1a0   :  { %1870 = vmatprep.subr.bf16.mxu1 %v18489_v57  ;;  %v18581_v57 = vld [vmem:[#allocation2 + $0x46c] ss:$16 sps:$4 sm:$0xff]  }
 0x1a2   :  { %1723 = vmatpush1.bf16.msra.mxu0 %v18484_v58  ;;  %v18576_v58 = vld [vmem:[#allocation2 + $0x560] ss:$16 sps:$4 sm:$0xff]  }
 0x1a3   :  { %1871 = vmatpush1.bf16.msra.mxu1 %v18487_v59  ;;  %1724 = vmatprep.subr.bf16.mxu0 %v18492_v60  ;;  %v18579_v59 = vld [vmem:[#allocation2 + $0x468] ss:$16 sps:$4 sm:$0xff]   ;;  %v18584_v60 = vld [vmem:[#allocation2 + $0x584] ss:$16 sps:$4 sm:$0xff]  }
 0x1a4   :  { %1872 = vmatprep.subr.bf16.mxu1 %v18495_v61  ;;  %v18587_v61 = vld [vmem:[#allocation2 + $0x48c] ss:$16 sps:$4 sm:$0xff]  }
 0x1a6   :  { %1725 = vmatpush1.bf16.msra.mxu0 %v18490_v62  ;;  %v18582_v62 = vld [vmem:[#allocation2 + $0x580] ss:$16 sps:$4 sm:$0xff]  }
 0x1a7   :  { %1873 = vmatpush1.bf16.msra.mxu1 %v18493_v63  ;;  %1726 = vmatprep.subr.bf16.mxu0 %v18498_v1  ;;  %v18585_v63 = vld [vmem:[#allocation2 + $0x488] ss:$16 sps:$4 sm:$0xff]   ;;  %v18590_v1 = vld [vmem:[#allocation2 + $0x5a4] ss:$16 sps:$4 sm:$0xff]  }
 0x1a8   :  { %1874 = vmatprep.subr.bf16.mxu1 %v18501_v2  ;;  %v18593_v2 = vld [vmem:[#allocation2 + $0x4ac] ss:$16 sps:$4 sm:$0xff]  }
 0x1aa   :  { %1727 = vmatpush1.bf16.msra.mxu0 %v18496_v3  ;;  %v18588_v3 = vld [vmem:[#allocation2 + $0x5a0] ss:$16 sps:$4 sm:$0xff]  }
 0x1ab   :  { %1875 = vmatpush1.bf16.msra.mxu1 %v18499_v4  ;;  %1728 = vmatprep.subr.bf16.mxu0 %v18504_v5  ;;  %v18591_v4 = vld [vmem:[#allocation2 + $0x4a8] ss:$16 sps:$4 sm:$0xff]   ;;  %v18596_v5 = vld [vmem:[#allocation2 + $0x5c4] ss:$16 sps:$4 sm:$0xff]  }
 0x1ac   :  { %1876 = vmatprep.subr.bf16.mxu1 %v18507_v6  ;;  %v18599_v6 = vld [vmem:[#allocation2 + $0x4cc] ss:$16 sps:$4 sm:$0xff]  }
 0x1ae   :  { %1729 = vmatpush1.bf16.msra.mxu0 %v18502_v7  ;;  %v18594_v7 = vld [vmem:[#allocation2 + $0x5c0] ss:$16 sps:$4 sm:$0xff]  }
 0x1af   :  { %1877 = vmatpush1.bf16.msra.mxu1 %v18505_v8  ;;  %1739 = vmatprep.subr.bf16.mxu0 %v18512_v9  ;;  %v18597_v8 = vld [vmem:[#allocation2 + $0x4c8] ss:$16 sps:$4 sm:$0xff]   ;;  %v18602_v9 = vld [vmem:[#allocation2 + $0x5e4] ss:$16 sps:$4 sm:$0xff]  }
 0x1b0   :  { %1878 = vmatprep.subr.bf16.mxu1 %v18515_v10  ;;  %v18605_v10 = vld [vmem:[#allocation2 + $0x4ec] ss:$16 sps:$4 sm:$0xff]  }
 0x1b1   :  { %1731 = vmatmul.mubr.bf16.vlgmr.msra.gmra.mrb[0].mxu0 %v21042_v11 }
 0x1b2   :  { %1740 = vmatpush1.bf16.msra.mxu0 %v18510_v12  ;;  %1771 = vmatprep.mubr.bf16.mxu0 %v21051_v17  ;;  %v18603_v12 = vld [vmem:[#allocation2 + $0x4e8] ss:$16 sps:$4 sm:$0xff]  }
 0x1b3   :  { %1879 = vmatpush1.bf16.msra.mxu1 %v18513_v13  ;;  %1741 = vmatprep.subr.bf16.mxu0 %v18518_v14  ;;  %v18610_v13 = vld [vmem:[#allocation2 + $0x50c] ss:$16 sps:$4 sm:$0xff]   ;;  %v18658_v14 = vld [vmem:[#allocation7 + $0x4] ss:$16 sps:$4 sm:$0xff]  }
 0x1b4   :  { %1880 = vmatprep.subr.bf16.mxu1 %v18521_v15  ;;  %v18608_v15 = vld [vmem:[#allocation2 + $0x508] ss:$16 sps:$4 sm:$0xff]  }
 0x1b6   :  { %1742 = vmatpush1.bf16.msra.mxu0 %v18516_v18  ;;  %v21059_v18 = vcombine.low %v21047_v16, %v21047_v16  ;;  %v18619_v16 = vld [vmem:[#allocation2 + $0x56c] ss:$16 sps:$4 sm:$0xff]  }
 0x1b7   :  { %1881 = vmatpush1.bf16.msra.mxu1 %v18519_v19  ;;  %1743 = vmatprep.subr.bf16.mxu0 %v18524_v20  ;;  %v18613_v19 = vld [vmem:[#allocation2 + $0x52c] ss:$16 sps:$4 sm:$0xff]   ;;  %v18664_v20 = vld [vmem:[#allocation7 + $0x24] ss:$16 sps:$4 sm:$0xff]  }
 0x1b8   :  { %1882 = vmatprep.subr.bf16.mxu1 %v18527_v21  ;;  %v18611_v21 = vld [vmem:[#allocation2 + $0x528] ss:$16 sps:$4 sm:$0xff]  }
 0x1ba   :  { %1744 = vmatpush1.bf16.msra.mxu0 %v18522_v22  ;;  %v18662_v22 = vld [vmem:[#allocation7 + $0x20] ss:$16 sps:$4 sm:$0xff]  }
 0x1bb   :  { %1883 = vmatpush1.bf16.msra.mxu1 %v18525_v23  ;;  %1745 = vmatprep.subr.bf16.mxu0 %v18530_v24  ;;  %v18616_v23 = vld [vmem:[#allocation2 + $0x54c] ss:$16 sps:$4 sm:$0xff]   ;;  %v18670_v24 = vld [vmem:[#allocation7 + $0x44] ss:$16 sps:$4 sm:$0xff]  }
 0x1bc   :  { %1884 = vmatprep.subr.bf16.mxu1 %v18533_v25  ;;  %v18614_v25 = vld [vmem:[#allocation2 + $0x548] ss:$16 sps:$4 sm:$0xff]  }
 0x1be   :  { %1746 = vmatpush1.bf16.msra.mxu0 %v18528_v26  ;;  %v18668_v26 = vld [vmem:[#allocation7 + $0x40] ss:$16 sps:$4 sm:$0xff]  }
 0x1bf   :  { %1885 = vmatpush1.bf16.msra.mxu1 %v18531_v27  ;;  %1747 = vmatprep.subr.bf16.mxu0 %v18536_v28  ;;  %v18676_v27 = vld [vmem:[#allocation7 + $0x64] ss:$16 sps:$4 sm:$0xff]  }
 0x1c0   :  { %1886 = vmatprep.subr.bf16.mxu1 %v18539_v29  ;;  %v18617_v28 = vld [vmem:[#allocation2 + $0x568] ss:$16 sps:$4 sm:$0xff]   ;;  %v18674_v29 = vld [vmem:[#allocation7 + $0x60] ss:$16 sps:$4 sm:$0xff]  }
 0x1c2   :  { %1748 = vmatpush1.bf16.msra.mxu0 %v18534_v30  ;;  %v18622_v30 = vld [vmem:[#allocation2 + $0x58c] ss:$16 sps:$4 sm:$0xff]  }
 0x1c3   :  { %1887 = vmatpush1.bf16.msra.mxu1 %v18537_v31  ;;  %1749 = vmatprep.subr.bf16.mxu0 %v18542_v32  ;;  %v18682_v31 = vld [vmem:[#allocation7 + $0x84] ss:$16 sps:$4 sm:$0xff]  }
 0x1c4   :  { %1888 = vmatprep.subr.bf16.mxu1 %v18545_v33  ;;  %v18620_v32 = vld [vmem:[#allocation2 + $0x588] ss:$16 sps:$4 sm:$0xff]   ;;  %v18680_v33 = vld [vmem:[#allocation7 + $0x80] ss:$16 sps:$4 sm:$0xff]  }
 0x1c6   :  { %1750 = vmatpush1.bf16.msra.mxu0 %v18540_v34  ;;  %v18625_v34 = vld [vmem:[#allocation2 + $0x5ac] ss:$16 sps:$4 sm:$0xff]  }
 0x1c7   :  { %1889 = vmatpush1.bf16.msra.mxu1 %v18543_v35  ;;  %1751 = vmatprep.subr.bf16.mxu0 %v18548_v36  ;;  %v18688_v35 = vld [vmem:[#allocation7 + $0xa4] ss:$16 sps:$4 sm:$0xff]  }
 0x1c8   :  { %1890 = vmatprep.subr.bf16.mxu1 %v18551_v37  ;;  %v18623_v36 = vld [vmem:[#allocation2 + $0x5a8] ss:$16 sps:$4 sm:$0xff]   ;;  %v18686_v37 = vld [vmem:[#allocation7 + $0xa0] ss:$16 sps:$4 sm:$0xff]  }
 0x1ca   :  { %1752 = vmatpush1.bf16.msra.mxu0 %v18546_v38  ;;  %v18628_v38 = vld [vmem:[#allocation2 + $0x5cc] ss:$16 sps:$4 sm:$0xff]  }
 0x1cb   :  { %1891 = vmatpush1.bf16.msra.mxu1 %v18549_v39  ;;  %1753 = vmatprep.subr.bf16.mxu0 %v18554_v40  ;;  %v18694_v39 = vld [vmem:[#allocation7 + $0xc4] ss:$16 sps:$4 sm:$0xff]  }
 0x1cc   :  { %1892 = vmatprep.subr.bf16.mxu1 %v18557_v41  ;;  %v18626_v40 = vld [vmem:[#allocation2 + $0x5c8] ss:$16 sps:$4 sm:$0xff]   ;;  %v18692_v41 = vld [vmem:[#allocation7 + $0xc0] ss:$16 sps:$4 sm:$0xff]  }
 0x1ce   :  { %1754 = vmatpush1.bf16.msra.mxu0 %v18552_v42  ;;  %v18631_v42 = vld [vmem:[#allocation2 + $0x5ec] ss:$16 sps:$4 sm:$0xff]  }
 0x1cf   :  { %1893 = vmatpush1.bf16.msra.mxu1 %v18555_v43  ;;  %1755 = vmatprep.subr.bf16.mxu0 %v18560_v44  ;;  %v18700_v43 = vld [vmem:[#allocation7 + $0xe4] ss:$16 sps:$4 sm:$0xff]  }
 0x1d0   :  { %1903 = vmatprep.subr.bf16.mxu1 %v18563_v45  ;;  %v18629_v44 = vld [vmem:[#allocation2 + $0x5e8] ss:$16 sps:$4 sm:$0xff]   ;;  %v18698_v45 = vld [vmem:[#allocation7 + $0xe0] ss:$16 sps:$4 sm:$0xff]  }
 0x1d2   :  { %1895 = vmatmul.mubr.bf16.vlgmr.msra.gmra.mrb[4].mxu1 %v21042_v11  ;;  %1756 = vmatpush1.bf16.msra.mxu0 %v18558_v46  ;;  %v18600_v11 = vld [vmem:[#allocation2 + $0x5e0] ss:$16 sps:$4 sm:$0xff]   ;;  %v18634_v46 = vld [vmem:[#allocation2 + $0x60c] ss:$16 sps:$4 sm:$0xff]  }
 0x1d3   :  { %1904 = vmatpush1.bf16.msra.mxu1 %v18561_v47  ;;  %1757 = vmatprep.subr.bf16.mxu0 %v18566_v48  ;;  %v18706_v47 = vld [vmem:[#allocation7 + $0x104] ss:$16 sps:$4 sm:$0xff]  }
 0x1d4   :  { %1905 = vmatprep.subr.bf16.mxu1 %v18569_v49  ;;  %1935 = vmatprep.mubr.bf16.mxu1 %v21051_v17  ;;  %v18656_v17 = vld [vmem:[#allocation7] ss:$16 sps:$4 sm:$0xff]   ;;  %v18632_v48 = vld [vmem:[#allocation2 + $0x608] ss:$16 sps:$4 sm:$0xff]   ;;  %v18637_v49 = vld [vmem:[#allocation2 + $0x62c] ss:$16 sps:$4 sm:$0xff]  }
 0x1d6   :  { %1758 = vmatpush1.bf16.msra.mxu0 %v18564_v50  ;;  %v18704_v50 = vld [vmem:[#allocation7 + $0x100] ss:$16 sps:$4 sm:$0xff]  }
 0x1d7   :  { %1906 = vmatpush1.bf16.msra.mxu1 %v18567_v51  ;;  %1759 = vmatprep.subr.bf16.mxu0 %v18572_v52  ;;  %v18712_v51 = vld [vmem:[#allocation7 + $0x124] ss:$16 sps:$4 sm:$0xff]  }
 0x1d8   :  { %1907 = vmatprep.subr.bf16.mxu1 %v18575_v53  ;;  %v18635_v52 = vld [vmem:[#allocation2 + $0x628] ss:$16 sps:$4 sm:$0xff]   ;;  %v18640_v53 = vld [vmem:[#allocation2 + $0x64c] ss:$16 sps:$4 sm:$0xff]  }
 0x1da   :  { %1760 = vmatpush1.bf16.msra.mxu0 %v18570_v54  ;;  %v18710_v54 = vld [vmem:[#allocation7 + $0x120] ss:$16 sps:$4 sm:$0xff]  }
 0x1db   :  { %1908 = vmatpush1.bf16.msra.mxu1 %v18573_v55  ;;  %1761 = vmatprep.subr.bf16.mxu0 %v18578_v56  ;;  %v18718_v55 = vld [vmem:[#allocation7 + $0x144] ss:$16 sps:$4 sm:$0xff]  }
 0x1dc   :  { %1909 = vmatprep.subr.bf16.mxu1 %v18581_v57  ;;  %v18638_v56 = vld [vmem:[#allocation2 + $0x648] ss:$16 sps:$4 sm:$0xff]   ;;  %v18643_v57 = vld [vmem:[#allocation2 + $0x66c] ss:$16 sps:$4 sm:$0xff]  }
 0x1de   :  { %1762 = vmatpush1.bf16.msra.mxu0 %v18576_v58  ;;  %v18716_v58 = vld [vmem:[#allocation7 + $0x140] ss:$16 sps:$4 sm:$0xff]  }
 0x1df   :  { %1910 = vmatpush1.bf16.msra.mxu1 %v18579_v59  ;;  %1763 = vmatprep.subr.bf16.mxu0 %v18584_v60  ;;  %v18724_v59 = vld [vmem:[#allocation7 + $0x164] ss:$16 sps:$4 sm:$0xff]  }
 0x1e0   :  { %1911 = vmatprep.subr.bf16.mxu1 %v18587_v61  ;;  %v18641_v60 = vld [vmem:[#allocation2 + $0x668] ss:$16 sps:$4 sm:$0xff]   ;;  %v18646_v61 = vld [vmem:[#allocation2 + $0x68c] ss:$16 sps:$4 sm:$0xff]  }
 0x1e2   :  { %1764 = vmatpush1.bf16.msra.mxu0 %v18582_v62  ;;  %v18722_v62 = vld [vmem:[#allocation7 + $0x160] ss:$16 sps:$4 sm:$0xff]  }
 0x1e3   :  { %1912 = vmatpush1.bf16.msra.mxu1 %v18585_v63  ;;  %1765 = vmatprep.subr.bf16.mxu0 %v18590_v1  ;;  %v18730_v63 = vld [vmem:[#allocation7 + $0x184] ss:$16 sps:$4 sm:$0xff]  }
 0x1e4   :  { %1913 = vmatprep.subr.bf16.mxu1 %v18593_v2  ;;  %v18644_v1 = vld [vmem:[#allocation2 + $0x688] ss:$16 sps:$4 sm:$0xff]   ;;  %v18649_v2 = vld [vmem:[#allocation2 + $0x6ac] ss:$16 sps:$4 sm:$0xff]  }
 0x1e6   :  { %1766 = vmatpush1.bf16.msra.mxu0 %v18588_v3  ;;  %v18728_v3 = vld [vmem:[#allocation7 + $0x180] ss:$16 sps:$4 sm:$0xff]  }
 0x1e7   :  { %1914 = vmatpush1.bf16.msra.mxu1 %v18591_v4  ;;  %1767 = vmatprep.subr.bf16.mxu0 %v18596_v5  ;;  %v18736_v4 = vld [vmem:[#allocation7 + $0x1a4] ss:$16 sps:$4 sm:$0xff]  }
 0x1e8   :  { %1915 = vmatprep.subr.bf16.mxu1 %v18599_v6  ;;  %v18647_v5 = vld [vmem:[#allocation2 + $0x6a8] ss:$16 sps:$4 sm:$0xff]   ;;  %v18652_v6 = vld [vmem:[#allocation2 + $0x6cc] ss:$16 sps:$4 sm:$0xff]  }
 0x1ea   :  { %1768 = vmatpush1.bf16.msra.mxu0 %v18594_v7  ;;  %v18734_v7 = vld [vmem:[#allocation7 + $0x1a0] ss:$16 sps:$4 sm:$0xff]  }
 0x1eb   :  { %1916 = vmatpush1.bf16.msra.mxu1 %v18597_v8  ;;  %1769 = vmatprep.subr.bf16.mxu0 %v18602_v9  ;;  %v18650_v9 = vld [vmem:[#allocation2 + $0x6c8] ss:$16 sps:$4 sm:$0xff]  }
 0x1ec   :  { %1917 = vmatprep.subr.bf16.mxu1 %v18605_v10 }
 0x1ee   :  { %1770 = vmatpush1.bf16.msra.mxu0 %v18600_v11  ;;  %v18655_v11 = vld [vmem:[#allocation2 + $0x6ec] ss:$16 sps:$4 sm:$0xff]  }
 0x1ef   :  { %1918 = vmatpush1.bf16.msra.mxu1 %v18603_v12  ;;  %2783 = vmatprep.subr.bf16.mxu0 %v18658_v14  ;;  %v18653_v14 = vld [vmem:[#allocation2 + $0x6e8] ss:$16 sps:$4 sm:$0xff]  }
 0x1f0   :  { %1919 = vmatprep.subr.bf16.mxu1 %v18610_v13 }
 0x1f1   :  { %1772 = vmatmul.mubr.bf16.vlgmr.msra.gmra.mrb[0].mxu0 %v21059_v18 }
 0x1f2   :  { %2784 = vmatpush1.bf16.msra.mxu0 %v18656_v17  ;;  %v18659_v17 = vld [vmem:[#allocation7 + $0x8] ss:$16 sps:$4 sm:$0xff]  }
 0x1f3   :  { %1920 = vmatpush1.bf16.msra.mxu1 %v18608_v15  ;;  %2785 = vmatprep.subr.bf16.mxu0 %v18664_v20  ;;  %v18661_v15 = vld [vmem:[#allocation7 + $0xc] ss:$16 sps:$4 sm:$0xff]   ;;  %v20256_v20 = vld [vmem:[%s21423_s22 + $0x18] ss:$0 sps:$4 sm:$0xff]  }
 0x1f4   :  { %1921 = vmatprep.subr.bf16.mxu1 %v18613_v19  ;;  %v18665_v19 = vld [vmem:[#allocation7 + $0x28] ss:$16 sps:$4 sm:$0xff]  }
 0x1f6   :  { %2786 = vmatpush1.bf16.msra.mxu0 %v18662_v22  ;;  %v18671_v22 = vld [vmem:[#allocation7 + $0x48] ss:$16 sps:$4 sm:$0xff]  }
 0x1f7   :  { %1922 = vmatpush1.bf16.msra.mxu1 %v18611_v21  ;;  %2787 = vmatprep.subr.bf16.mxu0 %v18670_v24  ;;  %v18673_v21 = vld [vmem:[#allocation7 + $0x4c] ss:$16 sps:$4 sm:$0xff]   ;;  %v18677_v24 = vld [vmem:[#allocation7 + $0x68] ss:$16 sps:$4 sm:$0xff]  }
 0x1f8   :  { %1923 = vmatprep.subr.bf16.mxu1 %v18616_v23  ;;  %v18679_v23 = vld [vmem:[#allocation7 + $0x6c] ss:$16 sps:$4 sm:$0xff]  }
 0x1fa   :  { %2788 = vmatpush1.bf16.msra.mxu0 %v18668_v26  ;;  %v18683_v26 = vld [vmem:[#allocation7 + $0x88] ss:$16 sps:$4 sm:$0xff]  }
 0x1fb   :  { %1924 = vmatpush1.bf16.msra.mxu1 %v18614_v25  ;;  %2789 = vmatprep.subr.bf16.mxu0 %v18676_v27  ;;  %v18685_v25 = vld [vmem:[#allocation7 + $0x8c] ss:$16 sps:$4 sm:$0xff]   ;;  %v18689_v27 = vld [vmem:[#allocation7 + $0xa8] ss:$16 sps:$4 sm:$0xff]  }
 0x1fc   :  { %1925 = vmatprep.subr.bf16.mxu1 %v18619_v16  ;;  %v18691_v16 = vld [vmem:[#allocation7 + $0xac] ss:$16 sps:$4 sm:$0xff]  }
 0x1fe   :  { %2790 = vmatpush1.bf16.msra.mxu0 %v18674_v29  ;;  %v18695_v29 = vld [vmem:[#allocation7 + $0xc8] ss:$16 sps:$4 sm:$0xff]  }
 0x1ff   :  { %1926 = vmatpush1.bf16.msra.mxu1 %v18617_v28  ;;  %2791 = vmatprep.subr.bf16.mxu0 %v18682_v31  ;;  %v18697_v28 = vld [vmem:[#allocation7 + $0xcc] ss:$16 sps:$4 sm:$0xff]  }
 0x200   :  { %1927 = vmatprep.subr.bf16.mxu1 %v18622_v30  ;;  %v18742_v30 = vld [vmem:[#allocation7 + $0x1c4] ss:$16 sps:$4 sm:$0xff]   ;;  %v18703_v31 = vld [vmem:[#allocation7 + $0xec] ss:$16 sps:$4 sm:$0xff]  }
 0x202   :  { %2792 = vmatpush1.bf16.msra.mxu0 %v18680_v33  ;;  %v18701_v33 = vld [vmem:[#allocation7 + $0xe8] ss:$16 sps:$4 sm:$0xff]  }
 0x203   :  { %1928 = vmatpush1.bf16.msra.mxu1 %v18620_v32  ;;  %2793 = vmatprep.subr.bf16.mxu0 %v18688_v35  ;;  %v18740_v32 = vld [vmem:[#allocation7 + $0x1c0] ss:$16 sps:$4 sm:$0xff]   ;;  %v18709_v35 = vld [vmem:[#allocation7 + $0x10c] ss:$16 sps:$4 sm:$0xff]  }
 0x204   :  { %1929 = vmatprep.subr.bf16.mxu1 %v18625_v34  ;;  %v18748_v34 = vld [vmem:[#allocation7 + $0x1e4] ss:$16 sps:$4 sm:$0xff]  }
 0x206   :  { %2794 = vmatpush1.bf16.msra.mxu0 %v18686_v37  ;;  %v18754_v37 = vld [vmem:[#allocation7 + $0x204] ss:$16 sps:$4 sm:$0xff]  }
 0x207   :  { %1930 = vmatpush1.bf16.msra.mxu1 %v18623_v36  ;;  %2795 = vmatprep.subr.bf16.mxu0 %v18694_v39  ;;  %v18746_v36 = vld [vmem:[#allocation7 + $0x1e0] ss:$16 sps:$4 sm:$0xff]   ;;  %v18715_v39 = vld [vmem:[#allocation7 + $0x12c] ss:$16 sps:$4 sm:$0xff]  }
 0x208   :  { %1931 = vmatprep.subr.bf16.mxu1 %v18628_v38  ;;  %v18707_v38 = vld [vmem:[#allocation7 + $0x108] ss:$16 sps:$4 sm:$0xff]  }
 0x20a   :  { %2796 = vmatpush1.bf16.msra.mxu0 %v18692_v41  ;;  %v18721_v41 = vld [vmem:[#allocation7 + $0x14c] ss:$16 sps:$4 sm:$0xff]  }
 0x20b   :  { %1932 = vmatpush1.bf16.msra.mxu1 %v18626_v40  ;;  %2797 = vmatprep.subr.bf16.mxu0 %v18700_v43  ;;  %v18713_v40 = vld [vmem:[#allocation7 + $0x128] ss:$16 sps:$4 sm:$0xff]   ;;  %v18727_v43 = vld [vmem:[#allocation7 + $0x16c] ss:$16 sps:$4 sm:$0xff]  }
 0x20c   :  { %1933 = vmatprep.subr.bf16.mxu1 %v18631_v42  ;;  %v18719_v42 = vld [vmem:[#allocation7 + $0x148] ss:$16 sps:$4 sm:$0xff]  }
 0x20e   :  { %2798 = vmatpush1.bf16.msra.mxu0 %v18698_v45  ;;  %v18733_v45 = vld [vmem:[#allocation7 + $0x18c] ss:$16 sps:$4 sm:$0xff]  }
 0x20f   :  { %1934 = vmatpush1.bf16.msra.mxu1 %v18629_v44  ;;  %2799 = vmatprep.subr.bf16.mxu0 %v18706_v47  ;;  %v18725_v44 = vld [vmem:[#allocation7 + $0x168] ss:$16 sps:$4 sm:$0xff]   ;;  %v18739_v47 = vld [vmem:[#allocation7 + $0x1ac] ss:$16 sps:$4 sm:$0xff]  }
 0x210   :  { %1944 = vmatprep.subr.bf16.mxu1 %v18634_v46  ;;  %v18731_v46 = vld [vmem:[#allocation7 + $0x188] ss:$16 sps:$4 sm:$0xff]  }
 0x212   :  { %1936 = vmatmul.mubr.bf16.vlgmr.msra.gmra.mrb[4].mxu1 %v21059_v18  ;;  %2800 = vmatpush1.bf16.msra.mxu0 %v18704_v50  ;;  %v18667_v18 = vld [vmem:[#allocation7 + $0x2c] ss:$16 sps:$4 sm:$0xff]   ;;  %v18743_v50 = vld [vmem:[#allocation7 + $0x1c8] ss:$16 sps:$4 sm:$0xff]  }
 0x213   :  { %1945 = vmatpush1.bf16.msra.mxu1 %v18632_v48  ;;  %1976 = vmatprep.mubr.bf16.mxu1 %v20698_v0  ;;  %v18737_v48 = vld [vmem:[#allocation7 + $0x1a8] ss:$16 sps:$4 sm:$0xff]  }
 0x214   :  { %1946 = vmatprep.subr.bf16.mxu1 %v18637_v49  ;;  %2801 = vmatprep.subr.bf16.mxu0 %v18712_v51  ;;  %v18745_v49 = vld [vmem:[#allocation7 + $0x1cc] ss:$16 sps:$4 sm:$0xff]  }
 0x215   :  { %v18751_v51 = vld [vmem:[#allocation7 + $0x1ec] ss:$16 sps:$4 sm:$0xff]  }
 0x216   :  { %2802 = vmatpush1.bf16.msra.mxu0 %v18710_v54  ;;  %v492_v54 = vlaneseq }
 0x217   :  { %1947 = vmatpush1.bf16.msra.mxu1 %v18635_v52  ;;  %2803 = vmatprep.subr.bf16.mxu0 %v18718_v55  ;;  %v18749_v52 = vld [vmem:[#allocation7 + $0x1e8] ss:$16 sps:$4 sm:$0xff]  }
 0x218   :  { %1948 = vmatprep.subr.bf16.mxu1 %v18640_v53  ;;  %v18757_v53 = vld [vmem:[#allocation7 + $0x20c] ss:$16 sps:$4 sm:$0xff]   ;;  %v21071_v55 = vshrl.u32 %v492_v54, 7  ;;  %v18818_v54 = vld [vmem:[#allocation7 + $0x360] ss:$16 sps:$4 sm:$0xff]  }
 0x21a   :  { %2804 = vmatpush1.bf16.msra.mxu0 %v18716_v58  ;;  %v21079_v58 = vsub.s32 1, %v21071_v55 }
 0x21b   :  { %1949 = vmatpush1.bf16.msra.mxu1 %v18638_v56  ;;  %2805 = vmatprep.subr.bf16.mxu0 %v18724_v59  ;;  %v21073_v56 = vld [vmem:[#allocation5] sm:$0xf] }
 0x21c   :  { %1950 = vmatprep.subr.bf16.mxu1 %v18643_v57  ;;  %v21076_v57 = vsub.s32 0, %v21071_v55 }
 0x21e   :  { %2806 = vmatpush1.bf16.msra.mxu0 %v18722_v62  ;;  %v495_v59 = vrot.slane %v21073_v56, %v21076_v57 }
 0x21f   :  { %1951 = vmatpush1.bf16.msra.mxu1 %v18641_v60  ;;  %2807 = vmatprep.subr.bf16.mxu0 %v18730_v63  ;;  %v499_v60 = vrot.slane %v21073_v56, %v21079_v58 }
 0x220   :  { %1952 = vmatprep.subr.bf16.mxu1 %v18646_v61 }
 0x222   :  { %2808 = vmatpush1.bf16.msra.mxu0 %v18728_v3 }
 0x223   :  { %1953 = vmatpush1.bf16.msra.mxu1 %v18644_v1  ;;  %2809 = vmatprep.subr.bf16.mxu0 %v18736_v4 }
 0x224   :  { %1954 = vmatprep.subr.bf16.mxu1 %v18649_v2 }
 0x225   :  { %v21064_v8 = vpop.f32.mrb[0].mxu1 }
 0x226   :  { %v21066_v10 = vpop.f32.mrb[1].mxu1  ;;  %2810 = vmatpush1.bf16.msra.mxu0 %v18734_v7 }
 0x227   :  { %v1818_v12 = vpop.f32.mrb[2].mxu1  ;;  %1955 = vmatpush1.bf16.msra.mxu1 %v18647_v5  ;;  %2811 = vmatprep.subr.bf16.mxu0 %v18742_v30  ;;  %v18782_v30 = vld [vmem:[#allocation7 + $0x2a0] ss:$16 sps:$4 sm:$0xff]  }
 0x228   :  { %v1819_v13 = vpop.f32.mrb[3].mxu1  ;;  %1956 = vmatprep.subr.bf16.mxu1 %v18652_v6  ;;  %v18760_v12 = vld [vmem:[#allocation7 + $0x224] ss:$16 sps:$4 sm:$0xff]  }
 0x229   :  { %v18763_v13 = vld [vmem:[#allocation7 + $0x22c] ss:$16 sps:$4 sm:$0xff]  }
 0x22a   :  { %2812 = vmatpush1.bf16.msra.mxu0 %v18740_v32  ;;  %v18790_v32 = vld [vmem:[#allocation7 + $0x2c4] ss:$16 sps:$4 sm:$0xff]  }
 0x22b   :  { %1957 = vmatpush1.bf16.msra.mxu1 %v18650_v9  ;;  %2813 = vmatprep.subr.bf16.mxu0 %v18748_v34  ;;  %v18752_v9 = vld [vmem:[#allocation7 + $0x200] ss:$16 sps:$4 sm:$0xff]  }
 0x22c   :  { %1958 = vmatprep.subr.bf16.mxu1 %v18655_v11  ;;  %v18755_v11 = vld [vmem:[#allocation7 + $0x208] ss:$16 sps:$4 sm:$0xff]   ;;  %v18788_v34 = vld [vmem:[#allocation7 + $0x2c0] ss:$16 sps:$4 sm:$0xff]  }
 0x22e   :  { %2814 = vmatpush1.bf16.msra.mxu0 %v18746_v36  ;;  %v18796_v36 = vld [vmem:[#allocation7 + $0x2e4] ss:$16 sps:$4 sm:$0xff]  }
 0x22f   :  { %1959 = vmatpush1.bf16.msra.mxu1 %v18653_v14  ;;  %2824 = vmatprep.subr.bf16.mxu0 %v18754_v37  ;;  %v18799_v37 = vld [vmem:[#allocation7 + $0x2ec] ss:$16 sps:$4 sm:$0xff]  }
 0x230   :  { %2865 = vmatprep.subr.bf16.mxu1 %v18661_v15 }
 0x232   :  { %1977 = vmatmul.mubr.bf16.vlgmr.msra.gmra.mrb[4].mxu1 %v20256_v20  ;;  %v18769_v20 = vld [vmem:[#allocation7 + $0x24c] ss:$16 sps:$4 sm:$0xff]  }
 0x233   :  { %2866 = vmatpush1.bf16.msra.mxu1 %v18659_v17  ;;  %v18758_v17 = vld [vmem:[#allocation7 + $0x220] ss:$16 sps:$4 sm:$0xff]  }
 0x234   :  { %2867 = vmatprep.subr.bf16.mxu1 %v18667_v18  ;;  %v18761_v18 = vld [vmem:[#allocation7 + $0x228] ss:$16 sps:$4 sm:$0xff]  }
 0x237   :  { %2868 = vmatpush1.bf16.msra.mxu1 %v18665_v19  ;;  %v18766_v19 = vld [vmem:[#allocation7 + $0x244] ss:$16 sps:$4 sm:$0xff]  }
 0x238   :  { %2869 = vmatprep.subr.bf16.mxu1 %v18673_v21  ;;  %v18772_v21 = vld [vmem:[#allocation7 + $0x264] ss:$16 sps:$4 sm:$0xff]  }
 0x23b   :  { %2870 = vmatpush1.bf16.msra.mxu1 %v18671_v22  ;;  %v18775_v22 = vld [vmem:[#allocation7 + $0x26c] ss:$16 sps:$4 sm:$0xff]  }
 0x23c   :  { %2871 = vmatprep.subr.bf16.mxu1 %v18679_v23  ;;  %v18770_v23 = vld [vmem:[#allocation7 + $0x260] ss:$16 sps:$4 sm:$0xff]  }
 0x23f   :  { %2872 = vmatpush1.bf16.msra.mxu1 %v18677_v24  ;;  %v18773_v24 = vld [vmem:[#allocation7 + $0x268] ss:$16 sps:$4 sm:$0xff]  }
 0x240   :  { %2873 = vmatprep.subr.bf16.mxu1 %v18685_v25  ;;  %v18778_v25 = vld [vmem:[#allocation7 + $0x284] ss:$16 sps:$4 sm:$0xff]  }
 0x243   :  { %2874 = vmatpush1.bf16.msra.mxu1 %v18683_v26  ;;  %v18781_v26 = vld [vmem:[#allocation7 + $0x28c] ss:$16 sps:$4 sm:$0xff]  }
 0x244   :  { %2875 = vmatprep.subr.bf16.mxu1 %v18691_v16  ;;  %v18776_v16 = vld [vmem:[#allocation7 + $0x280] ss:$16 sps:$4 sm:$0xff]  }
 0x247   :  { %2876 = vmatpush1.bf16.msra.mxu1 %v18689_v27  ;;  %v18779_v27 = vld [vmem:[#allocation7 + $0x288] ss:$16 sps:$4 sm:$0xff]  }
 0x248   :  { %2877 = vmatprep.subr.bf16.mxu1 %v18697_v28  ;;  %v18784_v28 = vld [vmem:[#allocation7 + $0x2a4] ss:$16 sps:$4 sm:$0xff]  }
 0x24b   :  { %2878 = vmatpush1.bf16.msra.mxu1 %v18695_v29  ;;  %v18787_v29 = vld [vmem:[#allocation7 + $0x2ac] ss:$16 sps:$4 sm:$0xff]  }
 0x24c   :  { %2879 = vmatprep.subr.bf16.mxu1 %v18703_v31  ;;  %v18785_v31 = vld [vmem:[#allocation7 + $0x2a8] ss:$16 sps:$4 sm:$0xff]  }
 0x24f   :  { %2880 = vmatpush1.bf16.msra.mxu1 %v18701_v33  ;;  %v18793_v33 = vld [vmem:[#allocation7 + $0x2cc] ss:$16 sps:$4 sm:$0xff]  }
 0x250   :  { %2881 = vmatprep.subr.bf16.mxu1 %v18709_v35  ;;  %v18791_v35 = vld [vmem:[#allocation7 + $0x2c8] ss:$16 sps:$4 sm:$0xff]  }
 0x253   :  { %2882 = vmatpush1.bf16.msra.mxu1 %v18707_v38  ;;  %v18794_v38 = vld [vmem:[#allocation7 + $0x2e0] ss:$16 sps:$4 sm:$0xff]  }
 0x254   :  { %2883 = vmatprep.subr.bf16.mxu1 %v18715_v39  ;;  %v18797_v39 = vld [vmem:[#allocation7 + $0x2e8] ss:$16 sps:$4 sm:$0xff]  }
 0x257   :  { %2884 = vmatpush1.bf16.msra.mxu1 %v18713_v40  ;;  %v18802_v40 = vld [vmem:[#allocation7 + $0x304] ss:$16 sps:$4 sm:$0xff]  }
 0x258   :  { %2885 = vmatprep.subr.bf16.mxu1 %v18721_v41  ;;  %v18805_v41 = vld [vmem:[#allocation7 + $0x30c] ss:$16 sps:$4 sm:$0xff]  }
 0x25b   :  { %2886 = vmatpush1.bf16.msra.mxu1 %v18719_v42  ;;  %v18800_v42 = vld [vmem:[#allocation7 + $0x300] ss:$16 sps:$4 sm:$0xff]  }
 0x25c   :  { %2887 = vmatprep.subr.bf16.mxu1 %v18727_v43  ;;  %v18803_v43 = vld [vmem:[#allocation7 + $0x308] ss:$16 sps:$4 sm:$0xff]  }
 0x25f   :  { %2888 = vmatpush1.bf16.msra.mxu1 %v18725_v44  ;;  %v18808_v44 = vld [vmem:[#allocation7 + $0x324] ss:$16 sps:$4 sm:$0xff]  }
 0x260   :  { %2889 = vmatprep.subr.bf16.mxu1 %v18733_v45  ;;  %v18811_v45 = vld [vmem:[#allocation7 + $0x32c] ss:$16 sps:$4 sm:$0xff]  }
 0x263   :  { %2890 = vmatpush1.bf16.msra.mxu1 %v18731_v46  ;;  %v18806_v46 = vld [vmem:[#allocation7 + $0x320] ss:$16 sps:$4 sm:$0xff]  }
 0x264   :  { %2891 = vmatprep.subr.bf16.mxu1 %v18739_v47  ;;  %v18809_v47 = vld [vmem:[#allocation7 + $0x328] ss:$16 sps:$4 sm:$0xff]  }
 0x267   :  { %2892 = vmatpush1.bf16.msra.mxu1 %v18737_v48  ;;  %v18814_v48 = vld [vmem:[#allocation7 + $0x344] ss:$16 sps:$4 sm:$0xff]  }
 0x268   :  { %2893 = vmatprep.subr.bf16.mxu1 %v18745_v49  ;;  %v18817_v49 = vld [vmem:[#allocation7 + $0x34c] ss:$16 sps:$4 sm:$0xff]  }
 0x26b   :  { %2894 = vmatpush1.bf16.msra.mxu1 %v18743_v50  ;;  %v18812_v50 = vld [vmem:[#allocation7 + $0x340] ss:$16 sps:$4 sm:$0xff]  }
 0x26c   :  { %2895 = vmatprep.subr.bf16.mxu1 %v18751_v51  ;;  %v18815_v51 = vld [vmem:[#allocation7 + $0x348] ss:$16 sps:$4 sm:$0xff]  }
 0x26f   :  { %2896 = vmatpush1.bf16.msra.mxu1 %v18749_v52  ;;  %v18820_v52 = vld [vmem:[#allocation7 + $0x364] ss:$16 sps:$4 sm:$0xff]  }
 0x270   :  { %2906 = vmatprep.subr.bf16.mxu1 %v18757_v53  ;;  %v18823_v53 = vld [vmem:[#allocation7 + $0x36c] ss:$16 sps:$4 sm:$0xff]  }
 0x2c4   :  { %v1773_v61 = vpop.f32.mrb[0].mxu0 }
 0x2c5   :  { %v18111_v62 = vadd.f32 %v1773_v61, %v495_v59  ;;  %v1775_v63 = vpop.f32.mrb[1].mxu0  ;;  %v18821_v59 = vld [vmem:[#allocation7 + $0x368] ss:$16 sps:$4 sm:$0xff]   ;;  %v18829_v61 = vld [vmem:[#allocation7 + $0x38c] ss:$16 sps:$4 sm:$0xff]  }
 0x2c6   :  { %v18113_v1 = vadd.f32 %v1775_v63, %v499_v60  ;;  %v1777_v2 = vpop.f32.mrb[2].mxu0  ;;  %v18826_v60 = vld [vmem:[#allocation7 + $0x384] ss:$16 sps:$4 sm:$0xff]   ;;  %v18827_v63 = vld [vmem:[#allocation7 + $0x388] ss:$16 sps:$4 sm:$0xff]  }
 0x2c7   :  { %v18112_v3 = vadd.f32 %v18111_v62, %v21064_v8  ;;  %v1778_v4 = vpop.f32.mrb[3].mxu0  ;;  %v18764_v8 = vld [vmem:[#allocation7 + $0x240] ss:$16 sps:$4 sm:$0xff]   ;;  %v18835_v2 = vld [vmem:[#allocation7 + $0x3ac] ss:$16 sps:$4 sm:$0xff]  }
 0x2c8   :  { %v18114_v5 = vadd.f32 %v18113_v1, %v21066_v10  ;;  %v18767_v10 = vld [vmem:[#allocation7 + $0x248] ss:$16 sps:$4 sm:$0xff]   ;;  %v18824_v62 = vld [vmem:[#allocation7 + $0x380] ss:$16 sps:$4 sm:$0xff]   ;;  %v18832_v1 = vld [vmem:[#allocation7 + $0x3a4] ss:$16 sps:$4 sm:$0xff]  }
 0x2c9   :  { %v1985_v6 = vmax.f32 %v18112_v3, 0.0  ;;  %v21088_v3 = vsub.s32 2, %v21071_v55  ;;  %v18830_v4 = vld [vmem:[#allocation7 + $0x3a0] ss:$16 sps:$4 sm:$0xff]  }
 0x2ca   :  { %v1986_v7 = vmax.f32 %v18114_v5, 0.0  ;;  %v18833_v5 = vld [vmem:[#allocation7 + $0x3a8] ss:$16 sps:$4 sm:$0xff]  }
 0x2cb   :  { %v1989_v15 = vpack.c.bf16 %v1985_v6, %v1985_v6  ;;  %v21091_v6 = vsub.s32 3, %v21071_v55 }
 0x2cc   :  { %v1990_v14 = vpack.c.bf16 %v1986_v7, %v1986_v7  ;;  %v18838_v7 = vld [vmem:[#allocation7 + $0x3c4] ss:$16 sps:$4 sm:$0xff]  }
 0x2ce   :  { %2815 = vmatprep.mubr.bf16.mxu0 %v1990_v14  ;;  %2897 = vmatprep.mubr.bf16.mxu1 %v1990_v14  ;;  %v18839_v14 = vld [vmem:[#allocation7 + $0x3c8] ss:$16 sps:$4 sm:$0xff]  }
 0x2cf   :  { %2816 = vmatmul.mubr.bf16.vlgmr.msra.gmra.mrb[4].mxu0 %v1989_v15  ;;  %2898 = vmatmul.mubr.bf16.vlgmr.msra.gmra.mrb[8].mxu1 %v1989_v15  ;;  %v18844_v15 = vld [vmem:[#allocation7 + $0x3e4] ss:$16 sps:$4 sm:$0xff]  }
 0x2d0   :  { %2825 = vmatpush1.bf16.msra.mxu0 %v18752_v9  ;;  %2907 = vmatpush1.bf16.msra.mxu1 %v18755_v11  ;;  %v18841_v9 = vld [vmem:[#allocation7 + $0x3cc] ss:$16 sps:$4 sm:$0xff]   ;;  %v503_v11 = vrot.slane %v21073_v56, %v21088_v3 }
 0x2d1   :  { %2826 = vmatprep.subr.bf16.mxu0 %v18760_v12  ;;  %2908 = vmatprep.subr.bf16.mxu1 %v18763_v13  ;;  %v507_v12 = vrot.slane %v21073_v56, %v21091_v6  ;;  %v18836_v13 = vld [vmem:[#allocation7 + $0x3c0] ss:$16 sps:$4 sm:$0xff]  }
 0x2d4   :  { %2827 = vmatpush1.bf16.msra.mxu0 %v18758_v17  ;;  %2909 = vmatpush1.bf16.msra.mxu1 %v18761_v18  ;;  %v18847_v17 = vld [vmem:[#allocation7 + $0x3ec] ss:$16 sps:$4 sm:$0xff]  }
 0x2d5   :  { %2828 = vmatprep.subr.bf16.mxu0 %v18766_v19  ;;  %2910 = vmatprep.subr.bf16.mxu1 %v18769_v20 }
 0x2d8   :  { %2829 = vmatpush1.bf16.msra.mxu0 %v18764_v8  ;;  %2911 = vmatpush1.bf16.msra.mxu1 %v18767_v10  ;;  %v2955_v8 = vld [vmem:[#allocation10] sm:$0xff] }
 0x2d9   :  { %2830 = vmatprep.subr.bf16.mxu0 %v18772_v21  ;;  %2912 = vmatprep.subr.bf16.mxu1 %v18775_v22  ;;  %v2963_v10 = vld [vmem:[#allocation10 + $0x40] sm:$0xff]  ;;  %v2956_v21 = vld [vmem:[#allocation10 + $0x8] sm:$0xff] }
 0x2da   :  { %v2964_v22 = vld [vmem:[#allocation10 + $0x48] sm:$0xff] }
 0x2dc   :  { %2831 = vmatpush1.bf16.msra.mxu0 %v18770_v23  ;;  %2913 = vmatpush1.bf16.msra.mxu1 %v18773_v24 }
 0x2dd   :  { %2832 = vmatprep.subr.bf16.mxu0 %v18778_v25  ;;  %2914 = vmatprep.subr.bf16.mxu1 %v18781_v26  ;;  %v18842_v25 = vld [vmem:[#allocation7 + $0x3e0] ss:$16 sps:$4 sm:$0xff]   ;;  %v18845_v26 = vld [vmem:[#allocation7 + $0x3e8] ss:$16 sps:$4 sm:$0xff]  }
 0x2e0   :  { %2833 = vmatpush1.bf16.msra.mxu0 %v18776_v16  ;;  %2915 = vmatpush1.bf16.msra.mxu1 %v18779_v27  ;;  %v2971_v27 = vld [vmem:[#allocation10 + $0x80] sm:$0xff] }
 0x2e1   :  { %2834 = vmatprep.subr.bf16.mxu0 %v18784_v28  ;;  %2916 = vmatprep.subr.bf16.mxu1 %v18787_v29  ;;  %v2979_v28 = vld [vmem:[#allocation10 + $0xc0] sm:$0xff]  ;;  %v2972_v29 = vld [vmem:[#allocation10 + $0x88] sm:$0xff] }
 0x2e4   :  { %2835 = vmatpush1.bf16.msra.mxu0 %v18782_v30  ;;  %2917 = vmatpush1.bf16.msra.mxu1 %v18785_v31  ;;  %v2980_v30 = vld [vmem:[#allocation10 + $0xc8] sm:$0xff] }
 0x2e5   :  { %2836 = vmatprep.subr.bf16.mxu0 %v18790_v32  ;;  %2918 = vmatprep.subr.bf16.mxu1 %v18793_v33  ;;  %v16259_v33 = vcombine.high %v2955_v8, %v2963_v10 }
 0x2e8   :  { %2837 = vmatpush1.bf16.msra.mxu0 %v18788_v34  ;;  %2919 = vmatpush1.bf16.msra.mxu1 %v18791_v35  ;;  %v16261_v34 = vcombine.high %v2956_v21, %v2964_v22  ;;  %v16258_v35 = vcombine.low %v2955_v8, %v2963_v10 }
 0x2e9   :  { %2838 = vmatprep.subr.bf16.mxu0 %v18796_v36  ;;  %2920 = vmatprep.subr.bf16.mxu1 %v18799_v37  ;;  %v16260_v36 = vcombine.low %v2956_v21, %v2964_v22  ;;  %v2987_v37 = vld [vmem:[#allocation10 + $0x100] sm:$0xff] }
 0x2ea   :  { %v3067_v22 = vld [vmem:[#allocation10 + $0x380] sm:$0xff] }
 0x2ec   :  { %2839 = vmatpush1.bf16.msra.mxu0 %v18794_v38  ;;  %2921 = vmatpush1.bf16.msra.mxu1 %v18797_v39  ;;  %v2995_v38 = vld [vmem:[#allocation10 + $0x140] sm:$0xff]  ;;  %v2988_v39 = vld [vmem:[#allocation10 + $0x108] sm:$0xff] }
 0x2ed   :  { %2840 = vmatprep.subr.bf16.mxu0 %v18802_v40  ;;  %2922 = vmatprep.subr.bf16.mxu1 %v18805_v41  ;;  %v2996_v40 = vld [vmem:[#allocation10 + $0x148] sm:$0xff] }
 0x2f0   :  { %2841 = vmatpush1.bf16.msra.mxu0 %v18800_v42  ;;  %2923 = vmatpush1.bf16.msra.mxu1 %v18803_v43  ;;  %v16275_v42 = vcombine.high %v2971_v27, %v2979_v28  ;;  %v16277_v43 = vcombine.high %v2972_v29, %v2980_v30 }
 0x2f1   :  { %2842 = vmatprep.subr.bf16.mxu0 %v18808_v44  ;;  %2924 = vmatprep.subr.bf16.mxu1 %v18811_v45  ;;  %v16274_v44 = vcombine.low %v2971_v27, %v2979_v28  ;;  %v16276_v45 = vcombine.low %v2972_v29, %v2980_v30  ;;  %v3083_v28 = vld [vmem:[#allocation10 + $0x400] sm:$0xff]  ;;  %v3084_v30 = vld [vmem:[#allocation10 + $0x408] sm:$0xff] }
 0x2f2   :  { %v3091_v29 = vld [vmem:[#allocation10 + $0x440] sm:$0xff] }
 0x2f4   :  { %2843 = vmatpush1.bf16.msra.mxu0 %v18806_v46  ;;  %2925 = vmatpush1.bf16.msra.mxu1 %v18809_v47  ;;  %v3003_v46 = vld [vmem:[#allocation10 + $0x180] sm:$0xff] }
 0x2f5   :  { %2844 = vmatprep.subr.bf16.mxu0 %v18814_v48  ;;  %2926 = vmatprep.subr.bf16.mxu1 %v18817_v49  ;;  %v3011_v47 = vld [vmem:[#allocation10 + $0x1c0] sm:$0xff]  ;;  %v3004_v48 = vld [vmem:[#allocation10 + $0x188] sm:$0xff] }
 0x2f6   :  { %v3012_v49 = vld [vmem:[#allocation10 + $0x1c8] sm:$0xff] }
 0x2f8   :  { %2845 = vmatpush1.bf16.msra.mxu0 %v18812_v50  ;;  %2927 = vmatpush1.bf16.msra.mxu1 %v18815_v51  ;;  %v16291_v50 = vcombine.high %v2987_v37, %v2995_v38  ;;  %v16293_v51 = vcombine.high %v2988_v39, %v2996_v40 }
 0x2f9   :  { %2846 = vmatprep.subr.bf16.mxu0 %v18820_v52  ;;  %2928 = vmatprep.subr.bf16.mxu1 %v18823_v53  ;;  %v16290_v52 = vcombine.low %v2987_v37, %v2995_v38  ;;  %v16292_v53 = vcombine.low %v2988_v39, %v2996_v40  ;;  %v3107_v37 = vld [vmem:[#allocation10 + $0x4c0] sm:$0xff]  ;;  %v3100_v38 = vld [vmem:[#allocation10 + $0x488] sm:$0xff]  ;;  %v16387_v40 = vcombine.high %v3083_v28, %v3091_v29 }
 0x2fa   :  { %v3108_v39 = vld [vmem:[#allocation10 + $0x4c8] sm:$0xff] }
 0x2fc   :  { %2847 = vmatpush1.bf16.msra.mxu0 %v18818_v54  ;;  %2929 = vmatpush1.bf16.msra.mxu1 %v18821_v59  ;;  %v3019_v54 = vld [vmem:[#allocation10 + $0x200] sm:$0xff] }
 0x2fd   :  { %2848 = vmatprep.subr.bf16.mxu0 %v18826_v60  ;;  %2930 = vmatprep.subr.bf16.mxu1 %v18829_v61  ;;  %v3027_v59 = vld [vmem:[#allocation10 + $0x240] sm:$0xff]  ;;  %v3020_v60 = vld [vmem:[#allocation10 + $0x208] sm:$0xff] }
 0x2fe   :  { %v3028_v61 = vld [vmem:[#allocation10 + $0x248] sm:$0xff] }
 0x300   :  { %2849 = vmatpush1.bf16.msra.mxu0 %v18824_v62  ;;  %2931 = vmatpush1.bf16.msra.mxu1 %v18827_v63  ;;  %v16307_v62 = vcombine.high %v3003_v46, %v3011_v47  ;;  %v16309_v63 = vcombine.high %v3004_v48, %v3012_v49 }
 0x301   :  { %2850 = vmatprep.subr.bf16.mxu0 %v18832_v1  ;;  %2932 = vmatprep.subr.bf16.mxu1 %v18835_v2  ;;  %v16306_v1 = vcombine.low %v3003_v46, %v3011_v47  ;;  %v16308_v2 = vcombine.low %v3004_v48, %v3012_v49  ;;  %v3116_v46 = vld [vmem:[#allocation10 + $0x508] sm:$0xff]  ;;  %v16405_v49 = vcombine.high %v3100_v38, %v3108_v39 }
 0x302   :  { %v3124_v47 = vld [vmem:[#allocation10 + $0x548] sm:$0xff] }
 0x304   :  { %2851 = vmatpush1.bf16.msra.mxu0 %v18830_v4  ;;  %2933 = vmatpush1.bf16.msra.mxu1 %v18833_v5  ;;  %v3035_v4 = vld [vmem:[#allocation10 + $0x280] sm:$0xff] }
 0x305   :  { %v1978_v18 = vpop.f32.mrb[4].mxu1  ;;  %2852 = vmatprep.subr.bf16.mxu0 %v18838_v7  ;;  %2934 = vmatprep.subr.bf16.mxu1 %v18841_v9  ;;  %v3043_v5 = vld [vmem:[#allocation10 + $0x2c0] sm:$0xff]  ;;  %v3036_v7 = vld [vmem:[#allocation10 + $0x288] sm:$0xff] }
 0x306   :  { %v18115_v19 = vadd.f32 %v1978_v18, %v503_v11  ;;  %v1980_v20 = vpop.f32.mrb[5].mxu1  ;;  %v3044_v9 = vld [vmem:[#allocation10 + $0x2c8] sm:$0xff]  ;;  %v16323_v11 = vcombine.high %v3019_v54, %v3027_v59  ;;  %v16338_v10 = vcombine.low %v3035_v4, %v3043_v5 }
 0x307   :  { %v18116_v23 = vadd.f32 %v1980_v20, %v507_v12  ;;  %v1982_v24 = vpop.f32.mrb[6].mxu1  ;;  %v16325_v12 = vcombine.high %v3020_v60, %v3028_v61  ;;  %v3052_v18 = vld [vmem:[#allocation10 + $0x308] sm:$0xff]  ;;  %v16339_v20 = vcombine.high %v3035_v4, %v3043_v5  ;;  %v16341_v8 = vcombine.high %v3036_v7, %v3044_v9 }
 0x308   :  { %v1983_v56 = vpop.f32.mrb[7].mxu1  ;;  %2853 = vmatpush1.bf16.msra.mxu0 %v18836_v13  ;;  %2935 = vmatpush1.bf16.msra.mxu1 %v18839_v14  ;;  %v1987_v31 = vmax.f32 %v18115_v19, 0.0  ;;  %v16322_v13 = vcombine.low %v3019_v54, %v3027_v59  ;;  %v16324_v14 = vcombine.low %v3020_v60, %v3028_v61  ;;  %v3060_v19 = vld [vmem:[#allocation10 + $0x348] sm:$0xff]  ;;  %v16340_v21 = vcombine.low %v3036_v7, %v3044_v9 }
 0x309   :  { %v1988_v16 = vmax.f32 %v18116_v23, 0.0  ;;  %2854 = vmatprep.subr.bf16.mxu0 %v18844_v15  ;;  %2936 = vmatprep.subr.bf16.mxu1 %v18847_v17  ;;  %v3051_v15 = vld [vmem:[#allocation10 + $0x300] sm:$0xff]  ;;  %v3068_v24 = vld [vmem:[#allocation10 + $0x388] sm:$0xff]  ;;  %v16357_v56 = vcombine.high %v3052_v18, %v3060_v19  ;;  %v16356_v27 = vcombine.low %v3052_v18, %v3060_v19  ;;  %v16421_v61 = vcombine.high %v3116_v46, %v3124_v47 }
 0x30a   :  { %v1991_v41 = vpack.c.bf16 %v1987_v31, %v1987_v31  ;;  %v3059_v17 = vld [vmem:[#allocation10 + $0x340] sm:$0xff]  ;;  %v3092_v31 = vld [vmem:[#allocation10 + $0x448] sm:$0xff] }
 0x30b   :  { %v1992_v32 = vpack.c.bf16 %v1988_v16, %v1988_v16  ;;  %v3075_v23 = vld [vmem:[#allocation10 + $0x3c0] sm:$0xff]  ;;  %v16354_v16 = vcombine.low %v3051_v15, %v3059_v17  ;;  %v3132_v54 = vld [vmem:[#allocation10 + $0x588] sm:$0xff] }
 0x30c   :  { %2855 = vmatpush1.bf16.msra.mxu0 %v18842_v25  ;;  %2937 = vmatpush1.bf16.msra.mxu1 %v18845_v26  ;;  %v3076_v25 = vld [vmem:[#allocation10 + $0x3c8] sm:$0xff]  ;;  %v16355_v26 = vcombine.high %v3051_v15, %v3059_v17 }
 0x30d   :  { %2856 = vmatprep.mubr.bf16.mxu0 %v1992_v32  ;;  %2938 = vmatprep.mubr.bf16.mxu1 %v1992_v32  ;;  %v16371_v32 = vcombine.high %v3067_v22, %v3075_v23  ;;  %v3140_v59 = vld [vmem:[#allocation10 + $0x5c8] sm:$0xff] }
 0x30e   :  { %6111 = vmatprep.subr.bf16.mxu0 %v16259_v33  ;;  %6193 = vmatprep.subr.bf16.mxu1 %v16261_v34  ;;  %v16373_v33 = vcombine.high %v3068_v24, %v3076_v25  ;;  %v16370_v34 = vcombine.low %v3067_v22, %v3075_v23  ;;  %v3148_v4 = vld [vmem:[#allocation10 + $0x608] sm:$0xff]  ;;  %v16437_v9 = vcombine.high %v3132_v54, %v3140_v59 }
 0x30f   :  { %2857 = vmatmul.mubr.bf16.vlgmr.msra.gmra.mrb[4].mxu0 %v1991_v41  ;;  %2939 = vmatmul.mubr.bf16.vlgmr.msra.gmra.mrb[8].mxu1 %v1991_v41  ;;  %v16389_v41 = vcombine.high %v3084_v30, %v3092_v31  ;;  %v3156_v5 = vld [vmem:[#allocation10 + $0x648] sm:$0xff] }
 0x310   :  { %6112 = vmatpush1.bf16.msra.mxu0 %v16258_v35  ;;  %6194 = vmatpush1.bf16.msra.mxu1 %v16260_v36  ;;  %v16372_v35 = vcombine.low %v3068_v24, %v3076_v25  ;;  %v3099_v36 = vld [vmem:[#allocation10 + $0x480] sm:$0xff]  ;;  %v3164_v15 = vld [vmem:[#allocation10 + $0x688] sm:$0xff]  ;;  %v16453_v19 = vcombine.high %v3148_v4, %v3156_v5 }
 0x311   :  { %6113 = vmatprep.subr.bf16.mxu0 %v16275_v42  ;;  %6195 = vmatprep.subr.bf16.mxu1 %v16277_v43  ;;  %v16386_v42 = vcombine.low %v3083_v28, %v3091_v29  ;;  %v16388_v43 = vcombine.low %v3084_v30, %v3092_v31  ;;  %v16403_v48 = vcombine.high %v3099_v36, %v3107_v37  ;;  %v3172_v17 = vld [vmem:[#allocation10 + $0x6c8] sm:$0xff]  ;;  %v3179_v24 = vld [vmem:[#allocation10 + $0x700] sm:$0xff] }
 0x312   :  { %v16468_v23 = vcombine.low %v3164_v15, %v3172_v17  ;;  %v3187_v25 = vld [vmem:[#allocation10 + $0x740] sm:$0xff] }
 0x313   :  { %v3195_v30 = vld [vmem:[#allocation10 + $0x780] sm:$0xff] }
 0x314   :  { %6114 = vmatpush1.bf16.msra.mxu0 %v16274_v44  ;;  %6196 = vmatpush1.bf16.msra.mxu1 %v16276_v45  ;;  %v3115_v44 = vld [vmem:[#allocation10 + $0x500] sm:$0xff] }
 0x315   :  { %6115 = vmatprep.subr.bf16.mxu0 %v16291_v50  ;;  %6197 = vmatprep.subr.bf16.mxu1 %v16293_v51  ;;  %v3123_v45 = vld [vmem:[#allocation10 + $0x540] sm:$0xff]  ;;  %v16402_v50 = vcombine.low %v3099_v36, %v3107_v37  ;;  %v16404_v51 = vcombine.low %v3100_v38, %v3108_v39 }
 0x316   :  { %v16419_v60 = vcombine.high %v3115_v44, %v3123_v45  ;;  %v3203_v31 = vld [vmem:[#allocation10 + $0x7c0] sm:$0xff] }
 0x317   :  { %v3211_v38 = vld [vmem:[#allocation10 + $0x800] sm:$0xff] }
 0x318   :  { %6116 = vmatpush1.bf16.msra.mxu0 %v16290_v52  ;;  %6198 = vmatpush1.bf16.msra.mxu1 %v16292_v53  ;;  %v3131_v52 = vld [vmem:[#allocation10 + $0x580] sm:$0xff] }
 0x319   :  { %6117 = vmatprep.subr.bf16.mxu0 %v16307_v62  ;;  %6199 = vmatprep.subr.bf16.mxu1 %v16309_v63  ;;  %v3139_v53 = vld [vmem:[#allocation10 + $0x5c0] sm:$0xff]  ;;  %v16418_v62 = vcombine.low %v3115_v44, %v3123_v45  ;;  %v16420_v63 = vcombine.low %v3116_v46, %v3124_v47  ;;  %v21097_v46 = vld [vmem:[#allocation8] sm:$0xf] }
 0x31a   :  { %v16435_v7 = vcombine.high %v3131_v52, %v3139_v53  ;;  %v3219_v39 = vld [vmem:[#allocation10 + $0x840] sm:$0xff]  ;;  %v2126_v47 = vrot.slane %v21097_v46, %v21076_v57 }
 0x31c   :  { %6118 = vmatpush1.bf16.msra.mxu0 %v16306_v1  ;;  %6200 = vmatpush1.bf16.msra.mxu1 %v16308_v2  ;;  %v3147_v1 = vld [vmem:[#allocation10 + $0x600] sm:$0xff] }
 0x31d   :  { %6119 = vmatprep.subr.bf16.mxu0 %v16323_v11  ;;  %6201 = vmatprep.subr.bf16.mxu1 %v16325_v12  ;;  %v3155_v2 = vld [vmem:[#allocation10 + $0x640] sm:$0xff]  ;;  %v16434_v11 = vcombine.low %v3131_v52, %v3139_v53  ;;  %v16436_v12 = vcombine.low %v3132_v54, %v3140_v59 }
 0x31e   :  { %v16451_v18 = vcombine.high %v3147_v1, %v3155_v2 }
 0x320   :  { %6120 = vmatpush1.bf16.msra.mxu0 %v16322_v13  ;;  %6202 = vmatpush1.bf16.msra.mxu1 %v16324_v14  ;;  %v3163_v13 = vld [vmem:[#allocation10 + $0x680] sm:$0xff] }
 0x321   :  { %6121 = vmatprep.subr.bf16.mxu0 %v16339_v20  ;;  %6203 = vmatprep.subr.bf16.mxu1 %v16341_v8  ;;  %v3171_v14 = vld [vmem:[#allocation10 + $0x6c0] sm:$0xff]  ;;  %v16450_v20 = vcombine.low %v3147_v1, %v3155_v2  ;;  %v16452_v8 = vcombine.low %v3148_v4, %v3156_v5 }
 0x322   :  { %v16466_v22 = vcombine.low %v3163_v13, %v3171_v14  ;;  %v3227_v5 = vld [vmem:[#allocation10 + $0x880] sm:$0xff] }
 0x324   :  { %6122 = vmatpush1.bf16.msra.mxu0 %v16338_v10  ;;  %6204 = vmatpush1.bf16.msra.mxu1 %v16340_v21  ;;  %v16467_v10 = vcombine.high %v3163_v13, %v3171_v14  ;;  %v16469_v21 = vcombine.high %v3164_v15, %v3172_v17  ;;  %v3243_v15 = vld [vmem:[#allocation10 + $0x900] sm:$0xff] }
 0x325   :  { %6123 = vmatprep.subr.bf16.mxu0 %v16355_v26  ;;  %6205 = vmatprep.subr.bf16.mxu1 %v16357_v56  ;;  %v3180_v26 = vld [vmem:[#allocation10 + $0x708] sm:$0xff]  ;;  %v16483_v56 = vcombine.high %v3179_v24, %v3187_v25 }
 0x328   :  { %6124 = vmatpush1.bf16.msra.mxu0 %v16354_v16  ;;  %6206 = vmatpush1.bf16.msra.mxu1 %v16356_v27  ;;  %v3188_v16 = vld [vmem:[#allocation10 + $0x748] sm:$0xff]  ;;  %v16482_v27 = vcombine.low %v3179_v24, %v3187_v25  ;;  %v3259_v25 = vld [vmem:[#allocation10 + $0x980] sm:$0xff] }
 0x329   :  { %6125 = vmatprep.subr.bf16.mxu0 %v16371_v32  ;;  %6207 = vmatprep.subr.bf16.mxu1 %v16373_v33  ;;  %v16484_v28 = vcombine.low %v3180_v26, %v3188_v16  ;;  %v16485_v29 = vcombine.high %v3180_v26, %v3188_v16  ;;  %v3196_v32 = vld [vmem:[#allocation10 + $0x788] sm:$0xff]  ;;  %v16499_v33 = vcombine.high %v3195_v30, %v3203_v31  ;;  %v3267_v26 = vld [vmem:[#allocation10 + $0x9c0] sm:$0xff] }
 0x32a   :  { %v3268_v16 = vld [vmem:[#allocation10 + $0x9c8] sm:$0xff] }
 0x32c   :  { %6126 = vmatpush1.bf16.msra.mxu0 %v16370_v34  ;;  %6208 = vmatpush1.bf16.msra.mxu1 %v16372_v35  ;;  %v3204_v34 = vld [vmem:[#allocation10 + $0x7c8] sm:$0xff]  ;;  %v16498_v35 = vcombine.low %v3195_v30, %v3203_v31  ;;  %v3275_v31 = vld [vmem:[#allocation10 + $0xa00] sm:$0xff] }
 0x32d   :  { %6127 = vmatprep.subr.bf16.mxu0 %v16387_v40  ;;  %6209 = vmatprep.subr.bf16.mxu1 %v16389_v41  ;;  %v16500_v36 = vcombine.low %v3196_v32, %v3204_v34  ;;  %v16501_v37 = vcombine.high %v3196_v32, %v3204_v34  ;;  %v3212_v40 = vld [vmem:[#allocation10 + $0x808] sm:$0xff]  ;;  %v16515_v41 = vcombine.high %v3211_v38, %v3219_v39  ;;  %v3283_v32 = vld [vmem:[#allocation10 + $0xa40] sm:$0xff] }
 0x32e   :  { %v3284_v34 = vld [vmem:[#allocation10 + $0xa48] sm:$0xff] }
 0x330   :  { %6128 = vmatpush1.bf16.msra.mxu0 %v16386_v42  ;;  %6210 = vmatpush1.bf16.msra.mxu1 %v16388_v43  ;;  %v3220_v42 = vld [vmem:[#allocation10 + $0x848] sm:$0xff]  ;;  %v16514_v43 = vcombine.low %v3211_v38, %v3219_v39  ;;  %v3291_v39 = vld [vmem:[#allocation10 + $0xa80] sm:$0xff] }
 0x331   :  { %6129 = vmatprep.subr.bf16.mxu0 %v16403_v48  ;;  %6211 = vmatprep.subr.bf16.mxu1 %v16405_v49  ;;  %v16516_v44 = vcombine.low %v3212_v40, %v3220_v42  ;;  %v16517_v45 = vcombine.high %v3212_v40, %v3220_v42  ;;  %v2130_v48 = vrot.slane %v21097_v46, %v21079_v58  ;;  %v3299_v40 = vld [vmem:[#allocation10 + $0xac0] sm:$0xff]  ;;  %v3300_v42 = vld [vmem:[#allocation10 + $0xac8] sm:$0xff] }
 0x332   :  { %v2138_v49 = vrot.slane %v21097_v46, %v21091_v6 }
 0x334   :  { %6130 = vmatpush1.bf16.msra.mxu0 %v16402_v50  ;;  %6212 = vmatpush1.bf16.msra.mxu1 %v16404_v51 }
 0x335   :  { %6131 = vmatprep.subr.bf16.mxu0 %v16419_v60  ;;  %6213 = vmatprep.subr.bf16.mxu1 %v16421_v61 }
 0x338   :  { %6132 = vmatpush1.bf16.msra.mxu0 %v16418_v62  ;;  %6214 = vmatpush1.bf16.msra.mxu1 %v16420_v63 }
 0x339   :  { %6133 = vmatprep.subr.bf16.mxu0 %v16435_v7  ;;  %6215 = vmatprep.subr.bf16.mxu1 %v16437_v9  ;;  %v3235_v9 = vld [vmem:[#allocation10 + $0x8c0] sm:$0xff] }
 0x33a   :  { %v16531_v17 = vcombine.high %v3227_v5, %v3235_v9 }
 0x33c   :  { %6134 = vmatpush1.bf16.msra.mxu0 %v16434_v11  ;;  %6216 = vmatpush1.bf16.msra.mxu1 %v16436_v12  ;;  %v3228_v11 = vld [vmem:[#allocation10 + $0x888] sm:$0xff] }
 0x33d   :  { %6135 = vmatprep.subr.bf16.mxu0 %v16451_v18  ;;  %6217 = vmatprep.subr.bf16.mxu1 %v16453_v19  ;;  %v3236_v12 = vld [vmem:[#allocation10 + $0x8c8] sm:$0xff]  ;;  %v3251_v19 = vld [vmem:[#allocation10 + $0x940] sm:$0xff] }
 0x33e   :  { %v16533_v18 = vcombine.high %v3228_v11, %v3236_v12 }
 0x340   :  { %6136 = vmatpush1.bf16.msra.mxu0 %v16450_v20  ;;  %6218 = vmatpush1.bf16.msra.mxu1 %v16452_v8  ;;  %v3244_v20 = vld [vmem:[#allocation10 + $0x908] sm:$0xff] }
 0x341   :  { %6137 = vmatprep.subr.bf16.mxu0 %v16467_v10  ;;  %6219 = vmatprep.subr.bf16.mxu1 %v16469_v21  ;;  %v3252_v8 = vld [vmem:[#allocation10 + $0x948] sm:$0xff]  ;;  %v16530_v21 = vcombine.low %v3227_v5, %v3235_v9  ;;  %v3339_v9 = vld [vmem:[#allocation10 + $0xc00] sm:$0xff] }
 0x342   :  { %v16549_v24 = vcombine.high %v3244_v20, %v3252_v8 }
 0x344   :  { %6138 = vmatpush1.bf16.msra.mxu0 %v16466_v22  ;;  %6220 = vmatpush1.bf16.msra.mxu1 %v16468_v23  ;;  %v16532_v22 = vcombine.low %v3228_v11, %v3236_v12  ;;  %v16547_v23 = vcombine.high %v3243_v15, %v3251_v19  ;;  %v3347_v11 = vld [vmem:[#allocation10 + $0xc40] sm:$0xff]  ;;  %v3340_v12 = vld [vmem:[#allocation10 + $0xc08] sm:$0xff] }
 0x345   :  { %6139 = vmatprep.subr.bf16.mxu0 %v16483_v56  ;;  %6221 = vmatprep.subr.bf16.mxu1 %v16485_v29  ;;  %v3260_v56 = vld [vmem:[#allocation10 + $0x988] sm:$0xff]  ;;  %v16563_v29 = vcombine.high %v3259_v25, %v3267_v26 }
 0x346   :  { %v16565_v30 = vcombine.high %v3260_v56, %v3268_v16 }
 0x348   :  { %6140 = vmatpush1.bf16.msra.mxu0 %v16482_v27  ;;  %6222 = vmatpush1.bf16.msra.mxu1 %v16484_v28  ;;  %v16546_v27 = vcombine.low %v3243_v15, %v3251_v19  ;;  %v16548_v28 = vcombine.low %v3244_v20, %v3252_v8  ;;  %v3348_v15 = vld [vmem:[#allocation10 + $0xc48] sm:$0xff]  ;;  %v16643_v19 = vcombine.high %v3339_v9, %v3347_v11  ;;  %v3355_v8 = vld [vmem:[#allocation10 + $0xc80] sm:$0xff] }
 0x349   :  { %6141 = vmatprep.subr.bf16.mxu0 %v16499_v33  ;;  %6223 = vmatprep.subr.bf16.mxu1 %v16501_v37  ;;  %v3276_v33 = vld [vmem:[#allocation10 + $0xa08] sm:$0xff]  ;;  %v16579_v37 = vcombine.high %v3275_v31, %v3283_v32  ;;  %v16645_v20 = vcombine.high %v3340_v12, %v3348_v15 }
 0x34a   :  { %v16581_v38 = vcombine.high %v3276_v33, %v3284_v34 }
 0x34c   :  { %6142 = vmatpush1.bf16.msra.mxu0 %v16498_v35  ;;  %6224 = vmatpush1.bf16.msra.mxu1 %v16500_v36  ;;  %v16562_v35 = vcombine.low %v3259_v25, %v3267_v26  ;;  %v16564_v36 = vcombine.low %v3260_v56, %v3268_v16  ;;  %v16644_v25 = vcombine.low %v3340_v12, %v3348_v15  ;;  %v3371_v16 = vld [vmem:[#allocation10 + $0xd00] sm:$0xff] }
 0x34d   :  { %6152 = vmatprep.subr.bf16.mxu0 %v16515_v41  ;;  %6234 = vmatprep.subr.bf16.mxu1 %v16517_v45  ;;  %v3292_v41 = vld [vmem:[#allocation10 + $0xa88] sm:$0xff]  ;;  %v16595_v45 = vcombine.high %v3291_v39, %v3299_v40 }
 0x3e2   :  { %v2858_v50 = vpop.f32.mrb[4].mxu0  ;;  %v21105_v51 = vpop.f32.mrb[8].mxu1 }
 0x3e3   :  { %v18117_v52 = vadd.f32 %v2858_v50, %v2126_v47  ;;  %v2860_v53 = vpop.f32.mrb[5].mxu0  ;;  %v2942_v54 = vpop.f32.mrb[9].mxu1  ;;  %v16597_v47 = vcombine.high %v3292_v41, %v3300_v42  ;;  %v3308_v50 = vld [vmem:[#allocation10 + $0xb08] sm:$0xff] }
 0x3e4   :  { %v18118_v59 = vadd.f32 %v2860_v53, %v2130_v48  ;;  %v18120_v60 = vadd.f32 %v2942_v54, %v2138_v49  ;;  %v2862_v61 = vpop.f32.mrb[6].mxu0  ;;  %v2944_v62 = vpop.f32.mrb[10].mxu1  ;;  %v3307_v48 = vld [vmem:[#allocation10 + $0xb00] sm:$0xff]  ;;  %v16594_v53 = vcombine.low %v3291_v39, %v3299_v40  ;;  %v16596_v54 = vcombine.low %v3292_v41, %v3300_v42 }
 0x3e5   :  { %v2947_v63 = vmax.f32 %v18117_v52, 0.0  ;;  %v2863_v1 = vpop.f32.mrb[7].mxu0  ;;  %v2945_v2 = vpop.f32.mrb[11].mxu1  ;;  %v3315_v49 = vld [vmem:[#allocation10 + $0xb40] sm:$0xff]  ;;  %v3316_v52 = vld [vmem:[#allocation10 + $0xb48] sm:$0xff] }
 0x3e6   :  { %v2948_v4 = vmax.f32 %v18118_v59, 0.0  ;;  %v2950_v7 = vmax.f32 %v18120_v60, 0.0  ;;  %v16611_v59 = vcombine.high %v3307_v48, %v3315_v49  ;;  %v16613_v60 = vcombine.high %v3308_v50, %v3316_v52  ;;  %v3323_v61 = vld [vmem:[#allocation10 + $0xb80] sm:$0xff]  ;;  %v3332_v1 = vld [vmem:[#allocation10 + $0xbc8] sm:$0xff] }
 0x3e7   :  { %v21109_v14 = vpack.c.bf16 %v2947_v63, %v2947_v63  ;;  %v3331_v62 = vld [vmem:[#allocation10 + $0xbc0] sm:$0xff]  ;;  %v3324_v63 = vld [vmem:[#allocation10 + $0xb88] sm:$0xff]  ;;  %v16610_v2 = vcombine.low %v3307_v48, %v3315_v49 }
 0x3e8   :  { %v21107_v13 = vpack.c.bf16 %v2948_v4, %v2948_v4  ;;  %v21113_v10 = vpack.c.bf16 %v2950_v7, %v2950_v7  ;;  %v16612_v4 = vcombine.low %v3308_v50, %v3316_v52  ;;  %v16627_v5 = vcombine.high %v3323_v61, %v3331_v62  ;;  %v3403_v42 = vld [vmem:[#allocation10 + $0xe00] sm:$0xff] }
 0x3e9   :  { %v16629_v7 = vcombine.high %v3324_v63, %v3332_v1  ;;  %v3419_v52 = vld [vmem:[#allocation10 + $0xe80] sm:$0xff] }
 0x3ea   :  { %6143 = vmatprep.mubr.bf16.mxu0 %v21107_v13  ;;  %6225 = vmatprep.mubr.bf16.mxu1 %v21107_v13 }
 0x3eb   :  { %6144 = vmatmul.mubr.bf16.vlgmr.msra.gmra.mrb[8].mxu0 %v21109_v14  ;;  %6226 = vmatmul.mubr.bf16.vlgmr.msra.gmra.mrb[12].mxu1 %v21109_v14 }
 0x3ec   :  { %6153 = vmatpush1.bf16.msra.mxu0 %v16514_v43  ;;  %6235 = vmatpush1.bf16.msra.mxu1 %v16516_v44  ;;  %v16578_v43 = vcombine.low %v3275_v31, %v3283_v32  ;;  %v16580_v44 = vcombine.low %v3276_v33, %v3284_v34  ;;  %v3387_v34 = vld [vmem:[#allocation10 + $0xd80] sm:$0xff] }
 0x3ed   :  { %6184 = vmatprep.mubr.bf16.mxu0 %v21113_v10  ;;  %6266 = vmatprep.mubr.bf16.mxu1 %v21113_v10 }
 0x3ee   :  { %6154 = vmatprep.subr.bf16.mxu0 %v16531_v17  ;;  %6236 = vmatprep.subr.bf16.mxu1 %v16533_v18  ;;  %v16626_v17 = vcombine.low %v3323_v61, %v3331_v62  ;;  %v16628_v18 = vcombine.low %v3324_v63, %v3332_v1  ;;  %v3435_v1 = vld [vmem:[#allocation10 + $0xf00] sm:$0xff] }
 0x3f0   :  { %6155 = vmatpush1.bf16.msra.mxu0 %v16530_v21  ;;  %6237 = vmatpush1.bf16.msra.mxu1 %v16532_v22  ;;  %v3363_v21 = vld [vmem:[#allocation10 + $0xcc0] sm:$0xff]  ;;  %v3356_v22 = vld [vmem:[#allocation10 + $0xc88] sm:$0xff] }
 0x3f1   :  { %6156 = vmatprep.subr.bf16.mxu0 %v16547_v23  ;;  %6238 = vmatprep.subr.bf16.mxu1 %v16549_v24  ;;  %v3364_v23 = vld [vmem:[#allocation10 + $0xcc8] sm:$0xff]  ;;  %v16642_v24 = vcombine.low %v3339_v9, %v3347_v11  ;;  %v16659_v26 = vcombine.high %v3355_v8, %v3363_v21  ;;  %v2134_v11 = vrot.slane %v21097_v46, %v21088_v3  ;;  %v2965_v46 = vld [vmem:[#allocation10 + $0x50] sm:$0xff] }
 0x3f2   :  { %v16661_v56 = vcombine.high %v3356_v22, %v3364_v23  ;;  %v16660_v31 = vcombine.low %v3356_v22, %v3364_v23 }
 0x3f3   :  { %v18119_v22 = vadd.f32 %v21105_v51, %v2134_v11  ;;  %v2974_v51 = vld [vmem:[#allocation10 + $0x98] sm:$0xff]  ;;  %v3045_v11 = vld [vmem:[#allocation10 + $0x2d0] sm:$0xff] }
 0x3f4   :  { %6157 = vmatpush1.bf16.msra.mxu0 %v16546_v27  ;;  %6239 = vmatpush1.bf16.msra.mxu1 %v16548_v28  ;;  %v3379_v27 = vld [vmem:[#allocation10 + $0xd40] sm:$0xff]  ;;  %v3372_v28 = vld [vmem:[#allocation10 + $0xd08] sm:$0xff] }
 0x3f5   :  { %6158 = vmatprep.subr.bf16.mxu0 %v16563_v29  ;;  %6240 = vmatprep.subr.bf16.mxu1 %v16565_v30  ;;  %v3380_v29 = vld [vmem:[#allocation10 + $0xd48] sm:$0xff]  ;;  %v16658_v30 = vcombine.low %v3355_v8, %v3363_v21  ;;  %v16675_v32 = vcombine.high %v3371_v16, %v3379_v27 }
 0x3f6   :  { %v16677_v33 = vcombine.high %v3372_v28, %v3380_v29  ;;  %v16676_v39 = vcombine.low %v3372_v28, %v3380_v29  ;;  %v2949_v28 = vmax.f32 %v18119_v22, 0.0  ;;  %v3054_v22 = vld [vmem:[#allocation10 + $0x318] sm:$0xff] }
 0x3f8   :  { %6159 = vmatpush1.bf16.msra.mxu0 %v16562_v35  ;;  %6241 = vmatpush1.bf16.msra.mxu1 %v16564_v36  ;;  %v3395_v35 = vld [vmem:[#allocation10 + $0xdc0] sm:$0xff]  ;;  %v3388_v36 = vld [vmem:[#allocation10 + $0xd88] sm:$0xff] }
 0x3f9   :  { %6160 = vmatprep.subr.bf16.mxu0 %v16579_v37  ;;  %6242 = vmatprep.subr.bf16.mxu1 %v16581_v38  ;;  %v3396_v37 = vld [vmem:[#allocation10 + $0xdc8] sm:$0xff]  ;;  %v16674_v38 = vcombine.low %v3371_v16, %v3379_v27  ;;  %v16691_v40 = vcombine.high %v3387_v34, %v3395_v35 }
 0x3fa   :  { %v16693_v41 = vcombine.high %v3388_v36, %v3396_v37  ;;  %v16692_v48 = vcombine.low %v3388_v36, %v3396_v37 }
 0x3fc   :  { %6161 = vmatpush1.bf16.msra.mxu0 %v16578_v43  ;;  %6243 = vmatpush1.bf16.msra.mxu1 %v16580_v44  ;;  %v3411_v43 = vld [vmem:[#allocation10 + $0xe40] sm:$0xff]  ;;  %v3404_v44 = vld [vmem:[#allocation10 + $0xe08] sm:$0xff] }
 0x3fd   :  { %6162 = vmatprep.subr.bf16.mxu0 %v16595_v45  ;;  %6244 = vmatprep.subr.bf16.mxu1 %v16597_v47  ;;  %v3412_v45 = vld [vmem:[#allocation10 + $0xe48] sm:$0xff]  ;;  %v16690_v47 = vcombine.low %v3387_v34, %v3395_v35  ;;  %v16707_v49 = vcombine.high %v3403_v42, %v3411_v43  ;;  %v21122_v35 = vpack.c.bf16 %v2949_v28, %v2949_v28  ;;  %v3078_v28 = vld [vmem:[#allocation10 + $0x3d8] sm:$0xff] }
 0x3fe   :  { %v16709_v50 = vcombine.high %v3404_v44, %v3412_v45  ;;  %v16708_v61 = vcombine.low %v3404_v44, %v3412_v45 }
 0x400   :  { %6163 = vmatpush1.bf16.msra.mxu0 %v16594_v53  ;;  %6245 = vmatpush1.bf16.msra.mxu1 %v16596_v54  ;;  %v3427_v53 = vld [vmem:[#allocation10 + $0xec0] sm:$0xff]  ;;  %v3420_v54 = vld [vmem:[#allocation10 + $0xe88] sm:$0xff] }
 0x401   :  { %6164 = vmatprep.subr.bf16.mxu0 %v16611_v59  ;;  %6246 = vmatprep.subr.bf16.mxu1 %v16613_v60  ;;  %v3428_v59 = vld [vmem:[#allocation10 + $0xec8] sm:$0xff]  ;;  %v16706_v60 = vcombine.low %v3403_v42, %v3411_v43  ;;  %v16723_v62 = vcombine.high %v3419_v52, %v3427_v53  ;;  %v2998_v42 = vld [vmem:[#allocation10 + $0x158] sm:$0xff] }
 0x402   :  { %v16725_v63 = vcombine.high %v3420_v54, %v3428_v59  ;;  %v16724_v9 = vcombine.low %v3420_v54, %v3428_v59 }
 0x404   :  { %6165 = vmatpush1.bf16.msra.mxu0 %v16610_v2  ;;  %6247 = vmatpush1.bf16.msra.mxu1 %v16612_v4  ;;  %v3443_v2 = vld [vmem:[#allocation10 + $0xf40] sm:$0xff]  ;;  %v3436_v4 = vld [vmem:[#allocation10 + $0xf08] sm:$0xff] }
 0x405   :  { %6166 = vmatprep.subr.bf16.mxu0 %v16627_v5  ;;  %6248 = vmatprep.subr.bf16.mxu1 %v16629_v7  ;;  %v3444_v5 = vld [vmem:[#allocation10 + $0xf48] sm:$0xff]  ;;  %v16722_v7 = vcombine.low %v3419_v52, %v3427_v53  ;;  %v16739_v12 = vcombine.high %v3435_v1, %v3443_v2  ;;  %v16738_v8 = vcombine.low %v3435_v1, %v3443_v2  ;;  %v3014_v52 = vld [vmem:[#allocation10 + $0x1d8] sm:$0xff] }
 0x406   :  { %v16741_v15 = vcombine.high %v3436_v4, %v3444_v5  ;;  %v16740_v21 = vcombine.low %v3436_v4, %v3444_v5  ;;  %v3030_v1 = vld [vmem:[#allocation10 + $0x258] sm:$0xff] }
 0x408   :  { %6167 = vmatpush1.bf16.msra.mxu0 %v16626_v17  ;;  %6249 = vmatpush1.bf16.msra.mxu1 %v16628_v18  ;;  %v3451_v17 = vld [vmem:[#allocation10 + $0xf80] sm:$0xff] }
 0x409   :  { %6168 = vmatprep.subr.bf16.mxu0 %v16643_v19  ;;  %6250 = vmatprep.subr.bf16.mxu1 %v16645_v20  ;;  %v3459_v18 = vld [vmem:[#allocation10 + $0xfc0] sm:$0xff]  ;;  %v3452_v19 = vld [vmem:[#allocation10 + $0xf88] sm:$0xff] }
 0x40a   :  { %v3460_v20 = vld [vmem:[#allocation10 + $0xfc8] sm:$0xff]  ;;  %v16755_v23 = vcombine.high %v3451_v17, %v3459_v18  ;;  %v16754_v16 = vcombine.low %v3451_v17, %v3459_v18 }
 0x40b   :  { %v16756_v27 = vcombine.low %v3452_v19, %v3460_v20 }
 0x40c   :  { %6169 = vmatpush1.bf16.msra.mxu0 %v16642_v24  ;;  %6251 = vmatpush1.bf16.msra.mxu1 %v16644_v25  ;;  %v16757_v24 = vcombine.high %v3452_v19, %v3460_v20  ;;  %v2957_v25 = vld [vmem:[#allocation10 + $0x10] sm:$0xff] }
 0x40d   :  { %6170 = vmatprep.subr.bf16.mxu0 %v16659_v26  ;;  %6252 = vmatprep.subr.bf16.mxu1 %v16661_v56  ;;  %v2958_v26 = vld [vmem:[#allocation10 + $0x18] sm:$0xff]  ;;  %v16263_v29 = vcombine.high %v2957_v25, %v2965_v46  ;;  %v16262_v34 = vcombine.low %v2957_v25, %v2965_v46 }
 0x40e   :  { %v2966_v56 = vld [vmem:[#allocation10 + $0x58] sm:$0xff] }
 0x40f   :  { %v16264_v36 = vcombine.low %v2958_v26, %v2966_v56 }
 0x410   :  { %6171 = vmatpush1.bf16.msra.mxu0 %v16658_v30  ;;  %6253 = vmatpush1.bf16.msra.mxu1 %v16660_v31  ;;  %v16265_v30 = vcombine.high %v2958_v26, %v2966_v56  ;;  %v2973_v31 = vld [vmem:[#allocation10 + $0x90] sm:$0xff] }
 0x411   :  { %6172 = vmatprep.subr.bf16.mxu0 %v16675_v32  ;;  %6254 = vmatprep.subr.bf16.mxu1 %v16677_v33  ;;  %v2981_v32 = vld [vmem:[#allocation10 + $0xd0] sm:$0xff]  ;;  %v2982_v33 = vld [vmem:[#allocation10 + $0xd8] sm:$0xff] }
 0x412   :  { %v16279_v37 = vcombine.high %v2973_v31, %v2981_v32  ;;  %v16278_v43 = vcombine.low %v2973_v31, %v2981_v32  ;;  %v16280_v44 = vcombine.low %v2974_v51, %v2982_v33  ;;  %v3069_v56 = vld [vmem:[#allocation10 + $0x390] sm:$0xff] }
 0x414   :  { %6173 = vmatpush1.bf16.msra.mxu0 %v16674_v38  ;;  %6255 = vmatpush1.bf16.msra.mxu1 %v16676_v39  ;;  %v16281_v38 = vcombine.high %v2974_v51, %v2982_v33  ;;  %v2989_v39 = vld [vmem:[#allocation10 + $0x110] sm:$0xff] }
 0x415   :  { %6174 = vmatprep.subr.bf16.mxu0 %v16691_v40  ;;  %6256 = vmatprep.subr.bf16.mxu1 %v16693_v41  ;;  %v2997_v40 = vld [vmem:[#allocation10 + $0x150] sm:$0xff]  ;;  %v2990_v41 = vld [vmem:[#allocation10 + $0x118] sm:$0xff] }
 0x416   :  { %v16295_v45 = vcombine.high %v2989_v39, %v2997_v40  ;;  %v16294_v53 = vcombine.low %v2989_v39, %v2997_v40  ;;  %v16296_v54 = vcombine.low %v2990_v41, %v2998_v42  ;;  %v3085_v51 = vld [vmem:[#allocation10 + $0x410] sm:$0xff] }
 0x417   :  { %v3093_v33 = vld [vmem:[#allocation10 + $0x450] sm:$0xff] }
 0x418   :  { %6175 = vmatpush1.bf16.msra.mxu0 %v16690_v47  ;;  %6257 = vmatpush1.bf16.msra.mxu1 %v16692_v48  ;;  %v16297_v47 = vcombine.high %v2990_v41, %v2998_v42  ;;  %v3005_v48 = vld [vmem:[#allocation10 + $0x190] sm:$0xff]  ;;  %v16391_v39 = vcombine.high %v3085_v51, %v3093_v33 }
 0x419   :  { %6176 = vmatprep.subr.bf16.mxu0 %v16707_v49  ;;  %6258 = vmatprep.subr.bf16.mxu1 %v16709_v50  ;;  %v3013_v49 = vld [vmem:[#allocation10 + $0x1d0] sm:$0xff]  ;;  %v3006_v50 = vld [vmem:[#allocation10 + $0x198] sm:$0xff] }
 0x41a   :  { %v16311_v59 = vcombine.high %v3005_v48, %v3013_v49  ;;  %v16310_v2 = vcombine.low %v3005_v48, %v3013_v49  ;;  %v16312_v4 = vcombine.low %v3006_v50, %v3014_v52  ;;  %v3101_v41 = vld [vmem:[#allocation10 + $0x490] sm:$0xff] }
 0x41b   :  { %v3109_v42 = vld [vmem:[#allocation10 + $0x4d0] sm:$0xff] }
 0x41c   :  { %6177 = vmatpush1.bf16.msra.mxu0 %v16706_v60  ;;  %6259 = vmatpush1.bf16.msra.mxu1 %v16708_v61  ;;  %v16313_v60 = vcombine.high %v3006_v50, %v3014_v52  ;;  %v3021_v61 = vld [vmem:[#allocation10 + $0x210] sm:$0xff]  ;;  %v16407_v48 = vcombine.high %v3101_v41, %v3109_v42 }
 0x41d   :  { %6178 = vmatprep.subr.bf16.mxu0 %v16723_v62  ;;  %6260 = vmatprep.subr.bf16.mxu1 %v16725_v63  ;;  %v3029_v62 = vld [vmem:[#allocation10 + $0x250] sm:$0xff]  ;;  %v3022_v63 = vld [vmem:[#allocation10 + $0x218] sm:$0xff] }
 0x41e   :  { %v16327_v5 = vcombine.high %v3021_v61, %v3029_v62  ;;  %v16326_v17 = vcombine.low %v3021_v61, %v3029_v62  ;;  %v16328_v18 = vcombine.low %v3022_v63, %v3030_v1  ;;  %v3117_v50 = vld [vmem:[#allocation10 + $0x510] sm:$0xff] }
 0x41f   :  { %v3125_v52 = vld [vmem:[#allocation10 + $0x550] sm:$0xff] }
 0x420   :  { %6179 = vmatpush1.bf16.msra.mxu0 %v16722_v7  ;;  %6261 = vmatpush1.bf16.msra.mxu1 %v16724_v9  ;;  %v16329_v7 = vcombine.high %v3022_v63, %v3030_v1  ;;  %v3037_v9 = vld [vmem:[#allocation10 + $0x290] sm:$0xff]  ;;  %v16423_v61 = vcombine.high %v3117_v50, %v3125_v52 }
 0x421   :  { %6180 = vmatprep.subr.bf16.mxu0 %v16739_v12  ;;  %6262 = vmatprep.subr.bf16.mxu1 %v16741_v15  ;;  %v3038_v12 = vld [vmem:[#allocation10 + $0x298] sm:$0xff]  ;;  %v16343_v19 = vcombine.high %v3037_v9, %v3045_v11  ;;  %v3133_v63 = vld [vmem:[#allocation10 + $0x590] sm:$0xff] }
 0x422   :  { %v3046_v15 = vld [vmem:[#allocation10 + $0x2d8] sm:$0xff]  ;;  %v3141_v1 = vld [vmem:[#allocation10 + $0x5d0] sm:$0xff] }
 0x423   :  { %v16345_v20 = vcombine.high %v3038_v12, %v3046_v15  ;;  %v16344_v25 = vcombine.low %v3038_v12, %v3046_v15  ;;  %v3149_v12 = vld [vmem:[#allocation10 + $0x610] sm:$0xff] }
 0x424   :  { %6181 = vmatpush1.bf16.msra.mxu0 %v16738_v8  ;;  %6263 = vmatpush1.bf16.msra.mxu1 %v16740_v21  ;;  %v3053_v8 = vld [vmem:[#allocation10 + $0x310] sm:$0xff] }
 0x425   :  { %6182 = vmatprep.subr.bf16.mxu0 %v16755_v23  ;;  %6264 = vmatprep.subr.bf16.mxu1 %v16757_v24  ;;  %v3061_v21 = vld [vmem:[#allocation10 + $0x350] sm:$0xff]  ;;  %v3062_v23 = vld [vmem:[#allocation10 + $0x358] sm:$0xff]  ;;  %v16342_v24 = vcombine.low %v3037_v9, %v3045_v11  ;;  %v16439_v9 = vcombine.high %v3133_v63, %v3141_v1 }
 0x426   :  { %v16359_v46 = vcombine.high %v3053_v8, %v3061_v21  ;;  %v16361_v26 = vcombine.high %v3054_v22, %v3062_v23  ;;  %v3157_v15 = vld [vmem:[#allocation10 + $0x650] sm:$0xff] }
 0x428   :  { %6183 = vmatpush1.bf16.msra.mxu0 %v16754_v16  ;;  %6265 = vmatpush1.bf16.msra.mxu1 %v16756_v27  ;;  %v3077_v16 = vld [vmem:[#allocation10 + $0x3d0] sm:$0xff]  ;;  %v3070_v27 = vld [vmem:[#allocation10 + $0x398] sm:$0xff] }
 0x429   :  { %6275 = vmatprep.subr.bf16.mxu0 %v16263_v29  ;;  %6357 = vmatprep.subr.bf16.mxu1 %v16265_v30  ;;  %v16358_v29 = vcombine.low %v3053_v8, %v3061_v21  ;;  %v16360_v30 = vcombine.low %v3054_v22, %v3062_v23  ;;  %v16375_v31 = vcombine.high %v3069_v56, %v3077_v16  ;;  %v3165_v22 = vld [vmem:[#allocation10 + $0x690] sm:$0xff] }
 0x42a   :  { %v16377_v32 = vcombine.high %v3070_v27, %v3078_v28  ;;  %v16455_v8 = vcombine.high %v3149_v12, %v3157_v15  ;;  %v3173_v23 = vld [vmem:[#allocation10 + $0x6d0] sm:$0xff] }
 0x42b   :  { %6185 = vmatmul.mubr.bf16.vlgmr.msra.gmra.mrb[8].mxu0 %v21122_v35  ;;  %6267 = vmatmul.mubr.bf16.vlgmr.msra.gmra.mrb[12].mxu1 %v21122_v35 }
 0x42c   :  { %6276 = vmatpush1.bf16.msra.mxu0 %v16262_v34  ;;  %6307 = vmatprep.mubr.bf16.mxu0 %v21107_v13  ;;  %v3086_v34 = vld [vmem:[#allocation10 + $0x418] sm:$0xff] }
 0x42d   :  { %6358 = vmatpush1.bf16.msra.mxu1 %v16264_v36  ;;  %6389 = vmatprep.mubr.bf16.mxu1 %v21107_v13  ;;  %v3094_v36 = vld [vmem:[#allocation10 + $0x458] sm:$0xff] }
 0x42e   :  { %6277 = vmatprep.subr.bf16.mxu0 %v16279_v37  ;;  %6359 = vmatprep.subr.bf16.mxu1 %v16281_v38  ;;  %v16374_v37 = vcombine.low %v3069_v56, %v3077_v16  ;;  %v16376_v38 = vcombine.low %v3070_v27, %v3078_v28  ;;  %v16393_v40 = vcombine.high %v3086_v34, %v3094_v36  ;;  %v3181_v27 = vld [vmem:[#allocation10 + $0x710] sm:$0xff] }
 0x42f   :  { %v16471_v56 = vcombine.high %v3165_v22, %v3173_v23  ;;  %v3189_v28 = vld [vmem:[#allocation10 + $0x750] sm:$0xff] }
 0x430   :  { %6278 = vmatpush1.bf16.msra.mxu0 %v16278_v43  ;;  %v3102_v43 = vld [vmem:[#allocation10 + $0x498] sm:$0xff] }
 0x431   :  { %6360 = vmatpush1.bf16.msra.mxu1 %v16280_v44  ;;  %6279 = vmatprep.subr.bf16.mxu0 %v16295_v45  ;;  %v3110_v44 = vld [vmem:[#allocation10 + $0x4d8] sm:$0xff]  ;;  %v16390_v45 = vcombine.low %v3085_v51, %v3093_v33  ;;  %v16487_v51 = vcombine.high %v3181_v27, %v3189_v28 }
 0x432   :  { %6361 = vmatprep.subr.bf16.mxu1 %v16297_v47  ;;  %v16392_v47 = vcombine.low %v3086_v34, %v3094_v36  ;;  %v16409_v49 = vcombine.high %v3102_v43, %v3110_v44  ;;  %v3197_v34 = vld [vmem:[#allocation10 + $0x790] sm:$0xff] }
 0x433   :  { %v3205_v36 = vld [vmem:[#allocation10 + $0x7d0] sm:$0xff] }
 0x434   :  { %6280 = vmatpush1.bf16.msra.mxu0 %v16294_v53  ;;  %v3118_v53 = vld [vmem:[#allocation10 + $0x518] sm:$0xff] }
 0x435   :  { %6362 = vmatpush1.bf16.msra.mxu1 %v16296_v54  ;;  %6281 = vmatprep.subr.bf16.mxu0 %v16311_v59  ;;  %v3126_v54 = vld [vmem:[#allocation10 + $0x558] sm:$0xff]  ;;  %v16406_v59 = vcombine.low %v3101_v41, %v3109_v42  ;;  %v16503_v41 = vcombine.high %v3197_v34, %v3205_v36 }
 0x436   :  { %6363 = vmatprep.subr.bf16.mxu1 %v16313_v60  ;;  %v16408_v60 = vcombine.low %v3102_v43, %v3110_v44  ;;  %v16425_v62 = vcombine.high %v3118_v53, %v3126_v54  ;;  %v3213_v43 = vld [vmem:[#allocation10 + $0x810] sm:$0xff] }
 0x437   :  { %v3221_v44 = vld [vmem:[#allocation10 + $0x850] sm:$0xff] }
 0x438   :  { %6282 = vmatpush1.bf16.msra.mxu0 %v16310_v2  ;;  %v3134_v2 = vld [vmem:[#allocation10 + $0x598] sm:$0xff] }
 0x439   :  { %6364 = vmatpush1.bf16.msra.mxu1 %v16312_v4  ;;  %6283 = vmatprep.subr.bf16.mxu0 %v16327_v5  ;;  %v3142_v4 = vld [vmem:[#allocation10 + $0x5d8] sm:$0xff]  ;;  %v16422_v5 = vcombine.low %v3117_v50, %v3125_v52  ;;  %v16519_v50 = vcombine.high %v3213_v43, %v3221_v44 }
 0x43a   :  { %6365 = vmatprep.subr.bf16.mxu1 %v16329_v7  ;;  %v16424_v7 = vcombine.low %v3118_v53, %v3126_v54  ;;  %v16441_v11 = vcombine.high %v3134_v2, %v3142_v4  ;;  %v3229_v53 = vld [vmem:[#allocation10 + $0x890] sm:$0xff] }
 0x43b   :  { %v3237_v54 = vld [vmem:[#allocation10 + $0x8d0] sm:$0xff] }
 0x43c   :  { %6284 = vmatpush1.bf16.msra.mxu0 %v16326_v17  ;;  %v3150_v17 = vld [vmem:[#allocation10 + $0x618] sm:$0xff] }
 0x43d   :  { %6366 = vmatpush1.bf16.msra.mxu1 %v16328_v18  ;;  %6285 = vmatprep.subr.bf16.mxu0 %v16343_v19  ;;  %v3158_v18 = vld [vmem:[#allocation10 + $0x658] sm:$0xff]  ;;  %v16438_v19 = vcombine.low %v3133_v63, %v3141_v1  ;;  %v16535_v63 = vcombine.high %v3229_v53, %v3237_v54  ;;  %v3245_v1 = vld [vmem:[#allocation10 + $0x910] sm:$0xff] }
 0x43e   :  { %6367 = vmatprep.subr.bf16.mxu1 %v16345_v20  ;;  %v16440_v20 = vcombine.low %v3134_v2, %v3142_v4  ;;  %v16457_v21 = vcombine.high %v3150_v17, %v3158_v18  ;;  %v3253_v2 = vld [vmem:[#allocation10 + $0x950] sm:$0xff] }
 0x440   :  { %6286 = vmatpush1.bf16.msra.mxu0 %v16342_v24  ;;  %v3166_v24 = vld [vmem:[#allocation10 + $0x698] sm:$0xff] }
 0x441   :  { %6368 = vmatpush1.bf16.msra.mxu1 %v16344_v25  ;;  %6287 = vmatprep.subr.bf16.mxu0 %v16359_v46  ;;  %v3174_v25 = vld [vmem:[#allocation10 + $0x6d8] sm:$0xff]  ;;  %v16454_v46 = vcombine.low %v3149_v12, %v3157_v15  ;;  %v16551_v12 = vcombine.high %v3245_v1, %v3253_v2 }
 0x442   :  { %6369 = vmatprep.subr.bf16.mxu1 %v16361_v26  ;;  %v16456_v26 = vcombine.low %v3150_v17, %v3158_v18  ;;  %v16473_v16 = vcombine.high %v3166_v24, %v3174_v25  ;;  %v3261_v17 = vld [vmem:[#allocation10 + $0x990] sm:$0xff] }
 0x443   :  { %v3269_v18 = vld [vmem:[#allocation10 + $0x9d0] sm:$0xff] }
 0x444   :  { %6288 = vmatpush1.bf16.msra.mxu0 %v16358_v29  ;;  %v3182_v29 = vld [vmem:[#allocation10 + $0x718] sm:$0xff] }
 0x445   :  { %6370 = vmatpush1.bf16.msra.mxu1 %v16360_v30  ;;  %6289 = vmatprep.subr.bf16.mxu0 %v16375_v31  ;;  %v3190_v30 = vld [vmem:[#allocation10 + $0x758] sm:$0xff]  ;;  %v16470_v31 = vcombine.low %v3165_v22, %v3173_v23  ;;  %v16567_v22 = vcombine.high %v3261_v17, %v3269_v18 }
 0x446   :  { %6371 = vmatprep.subr.bf16.mxu1 %v16377_v32  ;;  %v16472_v32 = vcombine.low %v3166_v24, %v3174_v25  ;;  %v16489_v33 = vcombine.high %v3182_v29, %v3190_v30  ;;  %v3277_v24 = vld [vmem:[#allocation10 + $0xa10] sm:$0xff] }
 0x447   :  { %v3285_v25 = vld [vmem:[#allocation10 + $0xa50] sm:$0xff] }
 0x448   :  { %6290 = vmatpush1.bf16.msra.mxu0 %v16374_v37  ;;  %v3198_v37 = vld [vmem:[#allocation10 + $0x798] sm:$0xff] }
 0x449   :  { %6372 = vmatpush1.bf16.msra.mxu1 %v16376_v38  ;;  %6291 = vmatprep.subr.bf16.mxu0 %v16391_v39  ;;  %v3206_v38 = vld [vmem:[#allocation10 + $0x7d8] sm:$0xff]  ;;  %v16486_v39 = vcombine.low %v3181_v27, %v3189_v28  ;;  %v16583_v27 = vcombine.high %v3277_v24, %v3285_v25 }
 0x44a   :  { %6373 = vmatprep.subr.bf16.mxu1 %v16393_v40  ;;  %v16488_v40 = vcombine.low %v3182_v29, %v3190_v30  ;;  %v16505_v42 = vcombine.high %v3198_v37, %v3206_v38  ;;  %v3293_v29 = vld [vmem:[#allocation10 + $0xa90] sm:$0xff] }
 0x44b   :  { %v3301_v30 = vld [vmem:[#allocation10 + $0xad0] sm:$0xff] }
 0x44c   :  { %6292 = vmatpush1.bf16.msra.mxu0 %v16390_v45  ;;  %v3214_v45 = vld [vmem:[#allocation10 + $0x818] sm:$0xff] }
 0x44d   :  { %6374 = vmatpush1.bf16.msra.mxu1 %v16392_v47  ;;  %6293 = vmatprep.subr.bf16.mxu0 %v16407_v48  ;;  %v3222_v47 = vld [vmem:[#allocation10 + $0x858] sm:$0xff]  ;;  %v16502_v48 = vcombine.low %v3197_v34, %v3205_v36  ;;  %v16599_v34 = vcombine.high %v3293_v29, %v3301_v30 }
 0x44e   :  { %6375 = vmatprep.subr.bf16.mxu1 %v16409_v49  ;;  %v16504_v49 = vcombine.low %v3198_v37, %v3206_v38  ;;  %v16521_v52 = vcombine.high %v3214_v45, %v3222_v47  ;;  %v3309_v37 = vld [vmem:[#allocation10 + $0xb10] sm:$0xff] }
 0x44f   :  { %v3317_v38 = vld [vmem:[#allocation10 + $0xb50] sm:$0xff] }
 0x450   :  { %6294 = vmatpush1.bf16.msra.mxu0 %v16406_v59  ;;  %v16518_v59 = vcombine.low %v3213_v43, %v3221_v44  ;;  %v16615_v43 = vcombine.high %v3309_v37, %v3317_v38 }
 0x451   :  { %6376 = vmatpush1.bf16.msra.mxu1 %v16408_v60  ;;  %6295 = vmatprep.subr.bf16.mxu0 %v16423_v61  ;;  %v3230_v60 = vld [vmem:[#allocation10 + $0x898] sm:$0xff] }
 0x452   :  { %6377 = vmatprep.subr.bf16.mxu1 %v16425_v62  ;;  %v3238_v61 = vld [vmem:[#allocation10 + $0x8d8] sm:$0xff]  ;;  %v16520_v62 = vcombine.low %v3214_v45, %v3222_v47  ;;  %v3325_v45 = vld [vmem:[#allocation10 + $0xb90] sm:$0xff] }
 0x453   :  { %v16537_v4 = vcombine.high %v3230_v60, %v3238_v61  ;;  %v3333_v47 = vld [vmem:[#allocation10 + $0xbd0] sm:$0xff] }
 0x454   :  { %6296 = vmatpush1.bf16.msra.mxu0 %v16422_v5  ;;  %v3246_v5 = vld [vmem:[#allocation10 + $0x918] sm:$0xff] }
 0x455   :  { %6378 = vmatpush1.bf16.msra.mxu1 %v16424_v7  ;;  %6297 = vmatprep.subr.bf16.mxu0 %v16439_v9  ;;  %v3254_v7 = vld [vmem:[#allocation10 + $0x958] sm:$0xff]  ;;  %v16534_v9 = vcombine.low %v3229_v53, %v3237_v54  ;;  %v16631_v53 = vcombine.high %v3325_v45, %v3333_v47 }
 0x456   :  { %6379 = vmatprep.subr.bf16.mxu1 %v16441_v11  ;;  %v16536_v11 = vcombine.low %v3230_v60, %v3238_v61  ;;  %v16553_v15 = vcombine.high %v3246_v5, %v3254_v7  ;;  %v3349_v60 = vld [vmem:[#allocation10 + $0xc50] sm:$0xff]  ;;  %v3342_v61 = vld [vmem:[#allocation10 + $0xc18] sm:$0xff] }
 0x458   :  { %6298 = vmatpush1.bf16.msra.mxu0 %v16438_v19  ;;  %v3262_v19 = vld [vmem:[#allocation10 + $0x998] sm:$0xff] }
 0x459   :  { %6380 = vmatpush1.bf16.msra.mxu1 %v16440_v20  ;;  %6299 = vmatprep.subr.bf16.mxu0 %v16455_v8  ;;  %v3270_v20 = vld [vmem:[#allocation10 + $0x9d8] sm:$0xff]  ;;  %v16550_v8 = vcombine.low %v3245_v1, %v3253_v2 }
 0x45a   :  { %6381 = vmatprep.subr.bf16.mxu1 %v16457_v21  ;;  %v16552_v21 = vcombine.low %v3246_v5, %v3254_v7  ;;  %v16569_v23 = vcombine.high %v3262_v19, %v3270_v20  ;;  %v3357_v5 = vld [vmem:[#allocation10 + $0xc90] sm:$0xff] }
 0x45b   :  { %v3365_v7 = vld [vmem:[#allocation10 + $0xcd0] sm:$0xff] }
 0x45c   :  { %6300 = vmatpush1.bf16.msra.mxu0 %v16454_v46  ;;  %v3278_v46 = vld [vmem:[#allocation10 + $0xa18] sm:$0xff] }
 0x45d   :  { %6382 = vmatpush1.bf16.msra.mxu1 %v16456_v26  ;;  %6301 = vmatprep.subr.bf16.mxu0 %v16471_v56  ;;  %v3286_v26 = vld [vmem:[#allocation10 + $0xa58] sm:$0xff]  ;;  %v16566_v56 = vcombine.low %v3261_v17, %v3269_v18  ;;  %v16663_v17 = vcombine.high %v3357_v5, %v3365_v7 }
 0x45e   :  { %6383 = vmatprep.subr.bf16.mxu1 %v16473_v16  ;;  %v16568_v16 = vcombine.low %v3262_v19, %v3270_v20  ;;  %v16585_v28 = vcombine.high %v3278_v46, %v3286_v26  ;;  %v3373_v19 = vld [vmem:[#allocation10 + $0xd10] sm:$0xff] }
 0x45f   :  { %v3381_v20 = vld [vmem:[#allocation10 + $0xd50] sm:$0xff] }
 0x460   :  { %6302 = vmatpush1.bf16.msra.mxu0 %v16470_v31  ;;  %v3294_v31 = vld [vmem:[#allocation10 + $0xa98] sm:$0xff] }
 0x461   :  { %6384 = vmatpush1.bf16.msra.mxu1 %v16472_v32  ;;  %6303 = vmatprep.subr.bf16.mxu0 %v16487_v51  ;;  %v3302_v32 = vld [vmem:[#allocation10 + $0xad8] sm:$0xff]  ;;  %v16582_v51 = vcombine.low %v3277_v24, %v3285_v25  ;;  %v16679_v24 = vcombine.high %v3373_v19, %v3381_v20 }
 0x462   :  { %6385 = vmatprep.subr.bf16.mxu1 %v16489_v33  ;;  %v16584_v33 = vcombine.low %v3278_v46, %v3286_v26  ;;  %v16601_v36 = vcombine.high %v3294_v31, %v3302_v32  ;;  %v3389_v46 = vld [vmem:[#allocation10 + $0xd90] sm:$0xff] }
 0x463   :  { %v3397_v26 = vld [vmem:[#allocation10 + $0xdd0] sm:$0xff] }
 0x464   :  { %6304 = vmatpush1.bf16.msra.mxu0 %v16486_v39  ;;  %v3310_v39 = vld [vmem:[#allocation10 + $0xb18] sm:$0xff] }
 0x465   :  { %6386 = vmatpush1.bf16.msra.mxu1 %v16488_v40  ;;  %6305 = vmatprep.subr.bf16.mxu0 %v16503_v41  ;;  %v3318_v40 = vld [vmem:[#allocation10 + $0xb58] sm:$0xff]  ;;  %v16598_v41 = vcombine.low %v3293_v29, %v3301_v30  ;;  %v16695_v29 = vcombine.high %v3389_v46, %v3397_v26 }
 0x466   :  { %6387 = vmatprep.subr.bf16.mxu1 %v16505_v42  ;;  %v16600_v42 = vcombine.low %v3294_v31, %v3302_v32  ;;  %v16617_v44 = vcombine.high %v3310_v39, %v3318_v40  ;;  %v3405_v31 = vld [vmem:[#allocation10 + $0xe10] sm:$0xff] }
 0x467   :  { %v3413_v32 = vld [vmem:[#allocation10 + $0xe50] sm:$0xff] }
 0x468   :  { %6306 = vmatpush1.bf16.msra.mxu0 %v16502_v48  ;;  %v3326_v48 = vld [vmem:[#allocation10 + $0xb98] sm:$0xff] }
 0x469   :  { %6388 = vmatpush1.bf16.msra.mxu1 %v16504_v49  ;;  %6316 = vmatprep.subr.bf16.mxu0 %v16519_v50  ;;  %v3334_v49 = vld [vmem:[#allocation10 + $0xbd8] sm:$0xff]  ;;  %v16614_v50 = vcombine.low %v3309_v37, %v3317_v38  ;;  %v16711_v37 = vcombine.high %v3405_v31, %v3413_v32 }
 0x46a   :  { %6398 = vmatprep.subr.bf16.mxu1 %v16521_v52  ;;  %v16616_v52 = vcombine.low %v3310_v39, %v3318_v40  ;;  %v16633_v54 = vcombine.high %v3326_v48, %v3334_v49  ;;  %v16632_v1 = vcombine.low %v3326_v48, %v3334_v49  ;;  %v3421_v39 = vld [vmem:[#allocation10 + $0xe90] sm:$0xff] }
 0x46b   :  { %6308 = vmatmul.mubr.bf16.vlgmr.msra.gmra.mrb[12].mxu0 %v21109_v14  ;;  %v3429_v40 = vld [vmem:[#allocation10 + $0xed0] sm:$0xff] }
 0x46c   :  { %6390 = vmatmul.mubr.bf16.vlgmr.msra.gmra.mrb[16].mxu1 %v21109_v14  ;;  %6317 = vmatpush1.bf16.msra.mxu0 %v16518_v59  ;;  %v3341_v59 = vld [vmem:[#allocation10 + $0xc10] sm:$0xff] }
 0x46d   :  { %6348 = vmatprep.mubr.bf16.mxu0 %v21113_v10  ;;  %6399 = vmatpush1.bf16.msra.mxu1 %v16520_v62  ;;  %v3350_v62 = vld [vmem:[#allocation10 + $0xc58] sm:$0xff]  ;;  %v16647_v2 = vcombine.high %v3341_v59, %v3349_v60  ;;  %v3437_v48 = vld [vmem:[#allocation10 + $0xf10] sm:$0xff] }
 0x46e   :  { %6430 = vmatprep.mubr.bf16.mxu1 %v21113_v10  ;;  %6318 = vmatprep.subr.bf16.mxu0 %v16535_v63  ;;  %v16630_v63 = vcombine.low %v3325_v45, %v3333_v47  ;;  %v16727_v45 = vcombine.high %v3421_v39, %v3429_v40  ;;  %v3445_v49 = vld [vmem:[#allocation10 + $0xf50] sm:$0xff] }
 0x46f   :  { %6400 = vmatprep.subr.bf16.mxu1 %v16537_v4  ;;  %v16649_v4 = vcombine.high %v3342_v61, %v3350_v62 }
 0x470   :  { %6319 = vmatpush1.bf16.msra.mxu0 %v16534_v9  ;;  %v3358_v9 = vld [vmem:[#allocation10 + $0xc98] sm:$0xff] }
 0x471   :  { %6401 = vmatpush1.bf16.msra.mxu1 %v16536_v11  ;;  %6320 = vmatprep.subr.bf16.mxu0 %v16551_v12  ;;  %v3366_v11 = vld [vmem:[#allocation10 + $0xcd8] sm:$0xff]  ;;  %v16646_v12 = vcombine.low %v3341_v59, %v3349_v60  ;;  %v16743_v59 = vcombine.high %v3437_v48, %v3445_v49 }
 0x472   :  { %6402 = vmatprep.subr.bf16.mxu1 %v16553_v15  ;;  %v16648_v15 = vcombine.low %v3342_v61, %v3350_v62  ;;  %v16665_v18 = vcombine.high %v3358_v9, %v3366_v11  ;;  %v3453_v61 = vld [vmem:[#allocation10 + $0xf90] sm:$0xff] }
 0x473   :  { %v3461_v62 = vld [vmem:[#allocation10 + $0xfd0] sm:$0xff] }
 0x474   :  { %6321 = vmatpush1.bf16.msra.mxu0 %v16550_v8  ;;  %v3374_v8 = vld [vmem:[#allocation10 + $0xd18] sm:$0xff] }
 0x475   :  { %6403 = vmatpush1.bf16.msra.mxu1 %v16552_v21  ;;  %6322 = vmatprep.subr.bf16.mxu0 %v16567_v22  ;;  %v3382_v21 = vld [vmem:[#allocation10 + $0xd58] sm:$0xff]  ;;  %v16662_v22 = vcombine.low %v3357_v5, %v3365_v7  ;;  %v16759_v5 = vcombine.high %v3453_v61, %v3461_v62 }
 0x476   :  { %6404 = vmatprep.subr.bf16.mxu1 %v16569_v23  ;;  %v16664_v23 = vcombine.low %v3358_v9, %v3366_v11  ;;  %v16681_v25 = vcombine.high %v3374_v8, %v3382_v21  ;;  %v2959_v9 = vld [vmem:[#allocation10 + $0x20] sm:$0xff] }
 0x477   :  { %v2967_v11 = vld [vmem:[#allocation10 + $0x60] sm:$0xff] }
 0x478   :  { %6323 = vmatpush1.bf16.msra.mxu0 %v16566_v56  ;;  %v3390_v56 = vld [vmem:[#allocation10 + $0xd98] sm:$0xff] }
 0x479   :  { %6405 = vmatpush1.bf16.msra.mxu1 %v16568_v16  ;;  %6324 = vmatprep.subr.bf16.mxu0 %v16583_v27  ;;  %v3398_v16 = vld [vmem:[#allocation10 + $0xdd8] sm:$0xff]  ;;  %v16678_v27 = vcombine.low %v3373_v19, %v3381_v20  ;;  %v16267_v19 = vcombine.high %v2959_v9, %v2967_v11 }
 0x47a   :  { %6406 = vmatprep.subr.bf16.mxu1 %v16585_v28  ;;  %v16680_v28 = vcombine.low %v3374_v8, %v3382_v21  ;;  %v16697_v30 = vcombine.high %v3390_v56, %v3398_v16  ;;  %v2975_v8 = vld [vmem:[#allocation10 + $0xa0] sm:$0xff] }
 0x47b   :  { %v2983_v21 = vld [vmem:[#allocation10 + $0xe0] sm:$0xff] }
 0x47c   :  { %6325 = vmatpush1.bf16.msra.mxu0 %v16582_v51  ;;  %v3406_v51 = vld [vmem:[#allocation10 + $0xe18] sm:$0xff] }
 0x47d   :  { %6407 = vmatpush1.bf16.msra.mxu1 %v16584_v33  ;;  %6326 = vmatprep.subr.bf16.mxu0 %v16599_v34  ;;  %v3414_v33 = vld [vmem:[#allocation10 + $0xe58] sm:$0xff]  ;;  %v16694_v34 = vcombine.low %v3389_v46, %v3397_v26  ;;  %v16283_v46 = vcombine.high %v2975_v8, %v2983_v21  ;;  %v2991_v26 = vld [vmem:[#allocation10 + $0x120] sm:$0xff] }
 0x47e   :  { %6408 = vmatprep.subr.bf16.mxu1 %v16601_v36  ;;  %v16696_v36 = vcombine.low %v3390_v56, %v3398_v16  ;;  %v16713_v38 = vcombine.high %v3406_v51, %v3414_v33  ;;  %v2999_v56 = vld [vmem:[#allocation10 + $0x160] sm:$0xff] }
 0x480   :  { %6327 = vmatpush1.bf16.msra.mxu0 %v16598_v41  ;;  %v3422_v41 = vld [vmem:[#allocation10 + $0xe98] sm:$0xff] }
 0x481   :  { %6409 = vmatpush1.bf16.msra.mxu1 %v16600_v42  ;;  %6328 = vmatprep.subr.bf16.mxu0 %v16615_v43  ;;  %v3430_v42 = vld [vmem:[#allocation10 + $0xed8] sm:$0xff]  ;;  %v16710_v43 = vcombine.low %v3405_v31, %v3413_v32  ;;  %v16299_v31 = vcombine.high %v2991_v26, %v2999_v56 }
 0x482   :  { %6410 = vmatprep.subr.bf16.mxu1 %v16617_v44  ;;  %v16712_v44 = vcombine.low %v3406_v51, %v3414_v33  ;;  %v16729_v47 = vcombine.high %v3422_v41, %v3430_v42  ;;  %v3007_v51 = vld [vmem:[#allocation10 + $0x1a0] sm:$0xff] }
 0x483   :  { %v3015_v33 = vld [vmem:[#allocation10 + $0x1e0] sm:$0xff] }
 0x484   :  { %6329 = vmatpush1.bf16.msra.mxu0 %v16614_v50  ;;  %v3438_v50 = vld [vmem:[#allocation10 + $0xf18] sm:$0xff] }
 0x485   :  { %6411 = vmatpush1.bf16.msra.mxu1 %v16616_v52  ;;  %6330 = vmatprep.subr.bf16.mxu0 %v16631_v53  ;;  %v3446_v52 = vld [vmem:[#allocation10 + $0xf58] sm:$0xff]  ;;  %v16726_v53 = vcombine.low %v3421_v39, %v3429_v40  ;;  %v16315_v39 = vcombine.high %v3007_v51, %v3015_v33 }
 0x486   :  { %6412 = vmatprep.subr.bf16.mxu1 %v16633_v54  ;;  %v16728_v54 = vcombine.low %v3422_v41, %v3430_v42  ;;  %v16745_v60 = vcombine.high %v3438_v50, %v3446_v52  ;;  %v3023_v41 = vld [vmem:[#allocation10 + $0x220] sm:$0xff] }
 0x487   :  { %v3031_v42 = vld [vmem:[#allocation10 + $0x260] sm:$0xff] }
 0x488   :  { %6331 = vmatpush1.bf16.msra.mxu0 %v16630_v63  ;;  %v3454_v63 = vld [vmem:[#allocation10 + $0xf98] sm:$0xff] }
 0x489   :  { %6413 = vmatpush1.bf16.msra.mxu1 %v16632_v1  ;;  %6332 = vmatprep.subr.bf16.mxu0 %v16647_v2  ;;  %v3462_v1 = vld [vmem:[#allocation10 + $0xfd8] sm:$0xff]  ;;  %v16742_v2 = vcombine.low %v3437_v48, %v3445_v49  ;;  %v16331_v48 = vcombine.high %v3023_v41, %v3031_v42 }
 0x48a   :  { %6414 = vmatprep.subr.bf16.mxu1 %v16649_v4  ;;  %v16744_v4 = vcombine.low %v3438_v50, %v3446_v52  ;;  %v16761_v7 = vcombine.high %v3454_v63, %v3462_v1  ;;  %v3039_v50 = vld [vmem:[#allocation10 + $0x2a0] sm:$0xff] }
 0x48b   :  { %v3047_v52 = vld [vmem:[#allocation10 + $0x2e0] sm:$0xff] }
 0x48c   :  { %6333 = vmatpush1.bf16.msra.mxu0 %v16646_v12  ;;  %v2960_v12 = vld [vmem:[#allocation10 + $0x28] sm:$0xff] }
 0x48d   :  { %6415 = vmatpush1.bf16.msra.mxu1 %v16648_v15  ;;  %6334 = vmatprep.subr.bf16.mxu0 %v16663_v17  ;;  %v2968_v15 = vld [vmem:[#allocation10 + $0x68] sm:$0xff]  ;;  %v16758_v17 = vcombine.low %v3453_v61, %v3461_v62  ;;  %v16347_v61 = vcombine.high %v3039_v50, %v3047_v52 }
 0x48e   :  { %6416 = vmatprep.subr.bf16.mxu1 %v16665_v18  ;;  %v16760_v18 = vcombine.low %v3454_v63, %v3462_v1  ;;  %v16269_v20 = vcombine.high %v2960_v12, %v2968_v15  ;;  %v3055_v63 = vld [vmem:[#allocation10 + $0x320] sm:$0xff] }
 0x48f   :  { %v3063_v1 = vld [vmem:[#allocation10 + $0x360] sm:$0xff] }
 0x490   :  { %6335 = vmatpush1.bf16.msra.mxu0 %v16662_v22  ;;  %v16266_v22 = vcombine.low %v2959_v9, %v2967_v11  ;;  %v16363_v9 = vcombine.high %v3055_v63, %v3063_v1 }
 0x491   :  { %6417 = vmatpush1.bf16.msra.mxu1 %v16664_v23  ;;  %6336 = vmatprep.subr.bf16.mxu0 %v16679_v24  ;;  %v2976_v23 = vld [vmem:[#allocation10 + $0xa8] sm:$0xff] }
 0x492   :  { %6418 = vmatprep.subr.bf16.mxu1 %v16681_v25  ;;  %v2984_v24 = vld [vmem:[#allocation10 + $0xe8] sm:$0xff]  ;;  %v16268_v25 = vcombine.low %v2960_v12, %v2968_v15  ;;  %v3071_v12 = vld [vmem:[#allocation10 + $0x3a0] sm:$0xff] }
 0x493   :  { %v16285_v16 = vcombine.high %v2976_v23, %v2984_v24  ;;  %v3079_v15 = vld [vmem:[#allocation10 + $0x3e0] sm:$0xff] }
 0x494   :  { %6337 = vmatpush1.bf16.msra.mxu0 %v16678_v27  ;;  %v2992_v27 = vld [vmem:[#allocation10 + $0x128] sm:$0xff] }
 0x495   :  { %6419 = vmatpush1.bf16.msra.mxu1 %v16680_v28  ;;  %6338 = vmatprep.subr.bf16.mxu0 %v16695_v29  ;;  %v3000_v28 = vld [vmem:[#allocation10 + $0x168] sm:$0xff]  ;;  %v16282_v29 = vcombine.low %v2975_v8, %v2983_v21  ;;  %v16379_v8 = vcombine.high %v3071_v12, %v3079_v15 }
 0x496   :  { %6420 = vmatprep.subr.bf16.mxu1 %v16697_v30  ;;  %v16284_v30 = vcombine.low %v2976_v23, %v2984_v24  ;;  %v16301_v32 = vcombine.high %v2992_v27, %v3000_v28  ;;  %v3095_v23 = vld [vmem:[#allocation10 + $0x460] sm:$0xff]  ;;  %v3088_v24 = vld [vmem:[#allocation10 + $0x428] sm:$0xff] }
 0x498   :  { %6339 = vmatpush1.bf16.msra.mxu0 %v16694_v34  ;;  %v3008_v34 = vld [vmem:[#allocation10 + $0x1a8] sm:$0xff] }
 0x499   :  { %6421 = vmatpush1.bf16.msra.mxu1 %v16696_v36  ;;  %6340 = vmatprep.subr.bf16.mxu0 %v16711_v37  ;;  %v3016_v36 = vld [vmem:[#allocation10 + $0x1e8] sm:$0xff]  ;;  %v16298_v37 = vcombine.low %v2991_v26, %v2999_v56 }
 0x49a   :  { %6422 = vmatprep.subr.bf16.mxu1 %v16713_v38  ;;  %v16300_v38 = vcombine.low %v2992_v27, %v3000_v28  ;;  %v16317_v40 = vcombine.high %v3008_v34, %v3016_v36  ;;  %v3103_v27 = vld [vmem:[#allocation10 + $0x4a0] sm:$0xff] }
 0x49b   :  { %v3111_v28 = vld [vmem:[#allocation10 + $0x4e0] sm:$0xff] }
 0x49c   :  { %6341 = vmatpush1.bf16.msra.mxu0 %v16710_v43  ;;  %v3024_v43 = vld [vmem:[#allocation10 + $0x228] sm:$0xff] }
 0x49d   :  { %6423 = vmatpush1.bf16.msra.mxu1 %v16712_v44  ;;  %6342 = vmatprep.subr.bf16.mxu0 %v16727_v45  ;;  %v3032_v44 = vld [vmem:[#allocation10 + $0x268] sm:$0xff]  ;;  %v16314_v45 = vcombine.low %v3007_v51, %v3015_v33  ;;  %v16411_v51 = vcombine.high %v3103_v27, %v3111_v28 }
 0x49e   :  { %6424 = vmatprep.subr.bf16.mxu1 %v16729_v47  ;;  %v16316_v47 = vcombine.low %v3008_v34, %v3016_v36  ;;  %v16333_v49 = vcombine.high %v3024_v43, %v3032_v44  ;;  %v3119_v34 = vld [vmem:[#allocation10 + $0x520] sm:$0xff] }
 0x49f   :  { %v3127_v36 = vld [vmem:[#allocation10 + $0x560] sm:$0xff] }
 0x4a0   :  { %6343 = vmatpush1.bf16.msra.mxu0 %v16726_v53  ;;  %v3040_v53 = vld [vmem:[#allocation10 + $0x2a8] sm:$0xff] }
 0x4a1   :  { %6425 = vmatpush1.bf16.msra.mxu1 %v16728_v54  ;;  %6344 = vmatprep.subr.bf16.mxu0 %v16743_v59  ;;  %v3048_v54 = vld [vmem:[#allocation10 + $0x2e8] sm:$0xff]  ;;  %v16330_v59 = vcombine.low %v3023_v41, %v3031_v42  ;;  %v16427_v41 = vcombine.high %v3119_v34, %v3127_v36 }
 0x4a2   :  { %6426 = vmatprep.subr.bf16.mxu1 %v16745_v60  ;;  %v16332_v60 = vcombine.low %v3024_v43, %v3032_v44  ;;  %v16349_v62 = vcombine.high %v3040_v53, %v3048_v54  ;;  %v3135_v43 = vld [vmem:[#allocation10 + $0x5a0] sm:$0xff] }
 0x4a3   :  { %v3143_v44 = vld [vmem:[#allocation10 + $0x5e0] sm:$0xff] }
 0x4a4   :  { %6345 = vmatpush1.bf16.msra.mxu0 %v16742_v2  ;;  %v3056_v2 = vld [vmem:[#allocation10 + $0x328] sm:$0xff] }
 0x4a5   :  { %6427 = vmatpush1.bf16.msra.mxu1 %v16744_v4  ;;  %6346 = vmatprep.subr.bf16.mxu0 %v16759_v5  ;;  %v3064_v4 = vld [vmem:[#allocation10 + $0x368] sm:$0xff]  ;;  %v16346_v5 = vcombine.low %v3039_v50, %v3047_v52  ;;  %v16443_v50 = vcombine.high %v3135_v43, %v3143_v44 }
 0x4a6   :  { %6428 = vmatprep.subr.bf16.mxu1 %v16761_v7  ;;  %v16348_v7 = vcombine.low %v3040_v53, %v3048_v54  ;;  %v16365_v11 = vcombine.high %v3056_v2, %v3064_v4  ;;  %v3151_v53 = vld [vmem:[#allocation10 + $0x620] sm:$0xff] }
 0x4a7   :  { %v3159_v54 = vld [vmem:[#allocation10 + $0x660] sm:$0xff] }
 0x4a8   :  { %6347 = vmatpush1.bf16.msra.mxu0 %v16758_v17  ;;  %v3072_v17 = vld [vmem:[#allocation10 + $0x3a8] sm:$0xff] }
 0x4a9   :  { %6429 = vmatpush1.bf16.msra.mxu1 %v16760_v18  ;;  %6439 = vmatprep.subr.bf16.mxu0 %v16267_v19  ;;  %v3080_v18 = vld [vmem:[#allocation10 + $0x3e8] sm:$0xff]  ;;  %v16362_v19 = vcombine.low %v3055_v63, %v3063_v1  ;;  %v16459_v63 = vcombine.high %v3151_v53, %v3159_v54 }
 0x4aa   :  { %6521 = vmatprep.subr.bf16.mxu1 %v16269_v20  ;;  %v16364_v20 = vcombine.low %v3056_v2, %v3064_v4  ;;  %v16381_v21 = vcombine.high %v3072_v17, %v3080_v18  ;;  %v16380_v26 = vcombine.low %v3072_v17, %v3080_v18  ;;  %v3167_v2 = vld [vmem:[#allocation10 + $0x6a0] sm:$0xff] }
 0x4ab   :  { %6349 = vmatmul.mubr.bf16.vlgmr.msra.gmra.mrb[12].mxu0 %v21122_v35  ;;  %v3175_v4 = vld [vmem:[#allocation10 + $0x6e0] sm:$0xff] }
 0x4ac   :  { %6431 = vmatmul.mubr.bf16.vlgmr.msra.gmra.mrb[16].mxu1 %v21122_v35  ;;  %6440 = vmatpush1.bf16.msra.mxu0 %v16266_v22  ;;  %v3087_v22 = vld [vmem:[#allocation10 + $0x420] sm:$0xff] }
 0x4ad   :  { %6471 = vmatprep.mubr.bf16.mxu0 %v21107_v13  ;;  %6522 = vmatpush1.bf16.msra.mxu1 %v16268_v25  ;;  %v3096_v25 = vld [vmem:[#allocation10 + $0x468] sm:$0xff]  ;;  %v16395_v56 = vcombine.high %v3087_v22, %v3095_v23  ;;  %v3183_v17 = vld [vmem:[#allocation10 + $0x720] sm:$0xff] }
 0x4ae   :  { %6553 = vmatprep.mubr.bf16.mxu1 %v21107_v13  ;;  %6441 = vmatprep.subr.bf16.mxu0 %v16283_v46  ;;  %v16378_v46 = vcombine.low %v3071_v12, %v3079_v15  ;;  %v16475_v12 = vcombine.high %v3167_v2, %v3175_v4  ;;  %v3191_v18 = vld [vmem:[#allocation10 + $0x760] sm:$0xff] }
 0x4af   :  { %6523 = vmatprep.subr.bf16.mxu1 %v16285_v16  ;;  %v16397_v16 = vcombine.high %v3088_v24, %v3096_v25 }
 0x4b0   :  { %6442 = vmatpush1.bf16.msra.mxu0 %v16282_v29  ;;  %v3104_v29 = vld [vmem:[#allocation10 + $0x4a8] sm:$0xff] }
 0x4b1   :  { %6524 = vmatpush1.bf16.msra.mxu1 %v16284_v30  ;;  %6443 = vmatprep.subr.bf16.mxu0 %v16299_v31  ;;  %v3112_v30 = vld [vmem:[#allocation10 + $0x4e8] sm:$0xff]  ;;  %v16394_v31 = vcombine.low %v3087_v22, %v3095_v23  ;;  %v16491_v22 = vcombine.high %v3183_v17, %v3191_v18 }
 0x4b2   :  { %6525 = vmatprep.subr.bf16.mxu1 %v16301_v32  ;;  %v16396_v32 = vcombine.low %v3088_v24, %v3096_v25  ;;  %v16413_v33 = vcombine.high %v3104_v29, %v3112_v30  ;;  %v3199_v24 = vld [vmem:[#allocation10 + $0x7a0] sm:$0xff] }
 0x4b3   :  { %v3207_v25 = vld [vmem:[#allocation10 + $0x7e0] sm:$0xff] }
 0x4b4   :  { %6444 = vmatpush1.bf16.msra.mxu0 %v16298_v37  ;;  %v3120_v37 = vld [vmem:[#allocation10 + $0x528] sm:$0xff] }
 0x4b5   :  { %6526 = vmatpush1.bf16.msra.mxu1 %v16300_v38  ;;  %6445 = vmatprep.subr.bf16.mxu0 %v16315_v39  ;;  %v3128_v38 = vld [vmem:[#allocation10 + $0x568] sm:$0xff]  ;;  %v16410_v39 = vcombine.low %v3103_v27, %v3111_v28  ;;  %v16507_v27 = vcombine.high %v3199_v24, %v3207_v25 }
 0x4b6   :  { %6527 = vmatprep.subr.bf16.mxu1 %v16317_v40  ;;  %v16412_v40 = vcombine.low %v3104_v29, %v3112_v30  ;;  %v16429_v42 = vcombine.high %v3120_v37, %v3128_v38  ;;  %v3215_v29 = vld [vmem:[#allocation10 + $0x820] sm:$0xff] }
 0x4b7   :  { %v3223_v30 = vld [vmem:[#allocation10 + $0x860] sm:$0xff] }
 0x4b8   :  { %6446 = vmatpush1.bf16.msra.mxu0 %v16314_v45  ;;  %v3136_v45 = vld [vmem:[#allocation10 + $0x5a8] sm:$0xff] }
 0x4b9   :  { %6528 = vmatpush1.bf16.msra.mxu1 %v16316_v47  ;;  %6447 = vmatprep.subr.bf16.mxu0 %v16331_v48  ;;  %v3144_v47 = vld [vmem:[#allocation10 + $0x5e8] sm:$0xff]  ;;  %v16426_v48 = vcombine.low %v3119_v34, %v3127_v36  ;;  %v16523_v34 = vcombine.high %v3215_v29, %v3223_v30 }
 0x4ba   :  { %6529 = vmatprep.subr.bf16.mxu1 %v16333_v49  ;;  %v16428_v49 = vcombine.low %v3120_v37, %v3128_v38  ;;  %v16445_v52 = vcombine.high %v3136_v45, %v3144_v47  ;;  %v3231_v37 = vld [vmem:[#allocation10 + $0x8a0] sm:$0xff] }
 0x4bb   :  { %v3239_v38 = vld [vmem:[#allocation10 + $0x8e0] sm:$0xff] }
 0x4bc   :  { %6448 = vmatpush1.bf16.msra.mxu0 %v16330_v59  ;;  %v3152_v59 = vld [vmem:[#allocation10 + $0x628] sm:$0xff] }
 0x4bd   :  { %6530 = vmatpush1.bf16.msra.mxu1 %v16332_v60  ;;  %6449 = vmatprep.subr.bf16.mxu0 %v16347_v61  ;;  %v3160_v60 = vld [vmem:[#allocation10 + $0x668] sm:$0xff]  ;;  %v16442_v61 = vcombine.low %v3135_v43, %v3143_v44  ;;  %v16539_v43 = vcombine.high %v3231_v37, %v3239_v38  ;;  %v3247_v44 = vld [vmem:[#allocation10 + $0x920] sm:$0xff] }
 0x4be   :  { %6531 = vmatprep.subr.bf16.mxu1 %v16349_v62  ;;  %v16444_v62 = vcombine.low %v3136_v45, %v3144_v47  ;;  %v16461_v1 = vcombine.high %v3152_v59, %v3160_v60  ;;  %v3255_v45 = vld [vmem:[#allocation10 + $0x960] sm:$0xff] }
 0x4c0   :  { %6450 = vmatpush1.bf16.msra.mxu0 %v16346_v5  ;;  %v3168_v5 = vld [vmem:[#allocation10 + $0x6a8] sm:$0xff] }
 0x4c1   :  { %6532 = vmatpush1.bf16.msra.mxu1 %v16348_v7  ;;  %6451 = vmatprep.subr.bf16.mxu0 %v16363_v9  ;;  %v3176_v7 = vld [vmem:[#allocation10 + $0x6e8] sm:$0xff]  ;;  %v16458_v9 = vcombine.low %v3151_v53, %v3159_v54  ;;  %v16555_v53 = vcombine.high %v3247_v44, %v3255_v45 }
 0x4c2   :  { %6533 = vmatprep.subr.bf16.mxu1 %v16365_v11  ;;  %v16460_v11 = vcombine.low %v3152_v59, %v3160_v60  ;;  %v16477_v15 = vcombine.high %v3168_v5, %v3176_v7  ;;  %v3263_v59 = vld [vmem:[#allocation10 + $0x9a0] sm:$0xff] }
 0x4c3   :  { %v3271_v60 = vld [vmem:[#allocation10 + $0x9e0] sm:$0xff] }
 0x4c4   :  { %6452 = vmatpush1.bf16.msra.mxu0 %v16362_v19  ;;  %v3184_v19 = vld [vmem:[#allocation10 + $0x728] sm:$0xff] }
 0x4c5   :  { %6534 = vmatpush1.bf16.msra.mxu1 %v16364_v20  ;;  %6453 = vmatprep.subr.bf16.mxu0 %v16379_v8  ;;  %v3192_v20 = vld [vmem:[#allocation10 + $0x768] sm:$0xff]  ;;  %v16474_v8 = vcombine.low %v3167_v2, %v3175_v4  ;;  %v16571_v2 = vcombine.high %v3263_v59, %v3271_v60 }
 0x4c6   :  { %6535 = vmatprep.subr.bf16.mxu1 %v16381_v21  ;;  %v16476_v21 = vcombine.low %v3168_v5, %v3176_v7  ;;  %v16493_v23 = vcombine.high %v3184_v19, %v3192_v20  ;;  %v3279_v5 = vld [vmem:[#allocation10 + $0xa20] sm:$0xff] }
 0x4c7   :  { %v3287_v7 = vld [vmem:[#allocation10 + $0xa60] sm:$0xff] }
 0x4c8   :  { %6454 = vmatpush1.bf16.msra.mxu0 %v16378_v46  ;;  %v3200_v46 = vld [vmem:[#allocation10 + $0x7a8] sm:$0xff] }
 0x4c9   :  { %6536 = vmatpush1.bf16.msra.mxu1 %v16380_v26  ;;  %6455 = vmatprep.subr.bf16.mxu0 %v16395_v56  ;;  %v3208_v26 = vld [vmem:[#allocation10 + $0x7e8] sm:$0xff]  ;;  %v16490_v56 = vcombine.low %v3183_v17, %v3191_v18  ;;  %v16587_v17 = vcombine.high %v3279_v5, %v3287_v7 }
 0x4ca   :  { %6537 = vmatprep.subr.bf16.mxu1 %v16397_v16  ;;  %v16492_v16 = vcombine.low %v3184_v19, %v3192_v20  ;;  %v16509_v28 = vcombine.high %v3200_v46, %v3208_v26  ;;  %v3295_v19 = vld [vmem:[#allocation10 + $0xaa0] sm:$0xff] }
 0x4cb   :  { %v3303_v20 = vld [vmem:[#allocation10 + $0xae0] sm:$0xff] }
 0x4cc   :  { %6456 = vmatpush1.bf16.msra.mxu0 %v16394_v31  ;;  %v3216_v31 = vld [vmem:[#allocation10 + $0x828] sm:$0xff] }
 0x4cd   :  { %6538 = vmatpush1.bf16.msra.mxu1 %v16396_v32  ;;  %6457 = vmatprep.subr.bf16.mxu0 %v16411_v51  ;;  %v3224_v32 = vld [vmem:[#allocation10 + $0x868] sm:$0xff]  ;;  %v16506_v51 = vcombine.low %v3199_v24, %v3207_v25  ;;  %v16603_v24 = vcombine.high %v3295_v19, %v3303_v20 }
 0x4ce   :  { %6539 = vmatprep.subr.bf16.mxu1 %v16413_v33  ;;  %v16508_v33 = vcombine.low %v3200_v46, %v3208_v26  ;;  %v16525_v36 = vcombine.high %v3216_v31, %v3224_v32  ;;  %v3311_v46 = vld [vmem:[#allocation10 + $0xb20] sm:$0xff] }
 0x4cf   :  { %v3319_v26 = vld [vmem:[#allocation10 + $0xb60] sm:$0xff] }
 0x4d0   :  { %6458 = vmatpush1.bf16.msra.mxu0 %v16410_v39  ;;  %v16522_v39 = vcombine.low %v3215_v29, %v3223_v30  ;;  %v16619_v29 = vcombine.high %v3311_v46, %v3319_v26 }
 0x4d1   :  { %6540 = vmatpush1.bf16.msra.mxu1 %v16412_v40  ;;  %6459 = vmatprep.subr.bf16.mxu0 %v16427_v41  ;;  %v3232_v40 = vld [vmem:[#allocation10 + $0x8a8] sm:$0xff] }
 0x4d2   :  { %6541 = vmatprep.subr.bf16.mxu1 %v16429_v42  ;;  %v3240_v41 = vld [vmem:[#allocation10 + $0x8e8] sm:$0xff]  ;;  %v16524_v42 = vcombine.low %v3216_v31, %v3224_v32 }
 0x4d3   :  { %v16541_v47 = vcombine.high %v3232_v40, %v3240_v41 }
 0x4d4   :  { %6460 = vmatpush1.bf16.msra.mxu0 %v16426_v48  ;;  %v3248_v48 = vld [vmem:[#allocation10 + $0x928] sm:$0xff] }
 0x4d5   :  { %6542 = vmatpush1.bf16.msra.mxu1 %v16428_v49  ;;  %6461 = vmatprep.subr.bf16.mxu0 %v16443_v50  ;;  %v3256_v49 = vld [vmem:[#allocation10 + $0x968] sm:$0xff]  ;;  %v16538_v50 = vcombine.low %v3231_v37, %v3239_v38 }
 0x4d6   :  { %6543 = vmatprep.subr.bf16.mxu1 %v16445_v52  ;;  %v16540_v52 = vcombine.low %v3232_v40, %v3240_v41  ;;  %v16557_v54 = vcombine.high %v3248_v48, %v3256_v49  ;;  %v3328_v37 = vld [vmem:[#allocation10 + $0xba8] sm:$0xff]  ;;  %v16618_v41 = vcombine.low %v3311_v46, %v3319_v26 }
 0x4d7   :  { %v3336_v38 = vld [vmem:[#allocation10 + $0xbe8] sm:$0xff] }
 0x4d8   :  { %6462 = vmatpush1.bf16.msra.mxu0 %v16442_v61  ;;  %v3264_v61 = vld [vmem:[#allocation10 + $0x9a8] sm:$0xff] }
 0x4d9   :  { %6544 = vmatpush1.bf16.msra.mxu1 %v16444_v62  ;;  %6463 = vmatprep.subr.bf16.mxu0 %v16459_v63  ;;  %v3272_v62 = vld [vmem:[#allocation10 + $0x9e8] sm:$0xff]  ;;  %v16554_v63 = vcombine.low %v3247_v44, %v3255_v45 }
 0x4da   :  { %6545 = vmatprep.subr.bf16.mxu1 %v16461_v1  ;;  %v16556_v1 = vcombine.low %v3248_v48, %v3256_v49  ;;  %v16573_v4 = vcombine.high %v3264_v61, %v3272_v62  ;;  %v3343_v48 = vld [vmem:[#allocation10 + $0xc20] sm:$0xff] }
 0x4db   :  { %v3351_v49 = vld [vmem:[#allocation10 + $0xc60] sm:$0xff] }
 0x4dc   :  { %6464 = vmatpush1.bf16.msra.mxu0 %v16458_v9  ;;  %v3280_v9 = vld [vmem:[#allocation10 + $0xa28] sm:$0xff] }
 0x4dd   :  { %6546 = vmatpush1.bf16.msra.mxu1 %v16460_v11  ;;  %6465 = vmatprep.subr.bf16.mxu0 %v16475_v12  ;;  %v3288_v11 = vld [vmem:[#allocation10 + $0xa68] sm:$0xff]  ;;  %v16570_v12 = vcombine.low %v3263_v59, %v3271_v60  ;;  %v16651_v59 = vcombine.high %v3343_v48, %v3351_v49 }
 0x4de   :  { %6547 = vmatprep.subr.bf16.mxu1 %v16477_v15  ;;  %v16572_v15 = vcombine.low %v3264_v61, %v3272_v62  ;;  %v16589_v18 = vcombine.high %v3280_v9, %v3288_v11  ;;  %v3359_v61 = vld [vmem:[#allocation10 + $0xca0] sm:$0xff] }
 0x4df   :  { %v3367_v62 = vld [vmem:[#allocation10 + $0xce0] sm:$0xff] }
 0x4e0   :  { %6466 = vmatpush1.bf16.msra.mxu0 %v16474_v8  ;;  %v3296_v8 = vld [vmem:[#allocation10 + $0xaa8] sm:$0xff] }
 0x4e1   :  { %6548 = vmatpush1.bf16.msra.mxu1 %v16476_v21  ;;  %6467 = vmatprep.subr.bf16.mxu0 %v16491_v22  ;;  %v3304_v21 = vld [vmem:[#allocation10 + $0xae8] sm:$0xff]  ;;  %v16586_v22 = vcombine.low %v3279_v5, %v3287_v7  ;;  %v16667_v5 = vcombine.high %v3359_v61, %v3367_v62 }
 0x4e2   :  { %6549 = vmatprep.subr.bf16.mxu1 %v16493_v23  ;;  %v16588_v23 = vcombine.low %v3280_v9, %v3288_v11  ;;  %v16605_v25 = vcombine.high %v3296_v8, %v3304_v21  ;;  %v3375_v9 = vld [vmem:[#allocation10 + $0xd20] sm:$0xff] }
 0x4e3   :  { %v3383_v11 = vld [vmem:[#allocation10 + $0xd60] sm:$0xff] }
 0x4e4   :  { %6468 = vmatpush1.bf16.msra.mxu0 %v16490_v56  ;;  %v3312_v56 = vld [vmem:[#allocation10 + $0xb28] sm:$0xff] }
 0x4e5   :  { %6550 = vmatpush1.bf16.msra.mxu1 %v16492_v16  ;;  %6469 = vmatprep.subr.bf16.mxu0 %v16507_v27  ;;  %v3320_v16 = vld [vmem:[#allocation10 + $0xb68] sm:$0xff]  ;;  %v16602_v27 = vcombine.low %v3295_v19, %v3303_v20  ;;  %v16683_v19 = vcombine.high %v3375_v9, %v3383_v11 }
 0x4e6   :  { %6551 = vmatprep.subr.bf16.mxu1 %v16509_v28  ;;  %v16604_v28 = vcombine.low %v3296_v8, %v3304_v21  ;;  %v16621_v32 = vcombine.high %v3312_v56, %v3320_v16  ;;  %v16620_v44 = vcombine.low %v3312_v56, %v3320_v16  ;;  %v3391_v8 = vld [vmem:[#allocation10 + $0xda0] sm:$0xff] }
 0x4e7   :  { %v3399_v21 = vld [vmem:[#allocation10 + $0xde0] sm:$0xff] }
 0x4e8   :  { %6470 = vmatpush1.bf16.msra.mxu0 %v16506_v51  ;;  %v3327_v51 = vld [vmem:[#allocation10 + $0xba0] sm:$0xff]  ;;  %v16699_v46 = vcombine.high %v3391_v8, %v3399_v21 }
 0x4e9   :  { %6552 = vmatpush1.bf16.msra.mxu1 %v16508_v33  ;;  %6480 = vmatprep.subr.bf16.mxu0 %v16523_v34  ;;  %v3335_v33 = vld [vmem:[#allocation10 + $0xbe0] sm:$0xff] }
 0x4ea   :  { %6562 = vmatprep.subr.bf16.mxu1 %v16525_v36  ;;  %v16635_v45 = vcombine.high %v3327_v51, %v3335_v33  ;;  %v3407_v56 = vld [vmem:[#allocation10 + $0xe20] sm:$0xff] }
 0x4eb   :  { %6472 = vmatmul.mubr.bf16.vlgmr.msra.gmra.mrb[16].mxu0 %v21109_v14  ;;  %v3415_v16 = vld [vmem:[#allocation10 + $0xe60] sm:$0xff] }
 0x4ec   :  { %6554 = vmatmul.mubr.bf16.vlgmr.msra.gmra.mrb[20].mxu1 %v21109_v14  ;;  %6481 = vmatpush1.bf16.msra.mxu0 %v16522_v39 }
 0x4ed   :  { %6512 = vmatprep.mubr.bf16.mxu0 %v21113_v10  ;;  %6563 = vmatpush1.bf16.msra.mxu1 %v16524_v42 }
 0x4ee   :  { %6594 = vmatprep.mubr.bf16.mxu1 %v21113_v10  ;;  %6482 = vmatprep.subr.bf16.mxu0 %v16539_v43 }
 0x4ef   :  { %6564 = vmatprep.subr.bf16.mxu1 %v16541_v47  ;;  %v16637_v47 = vcombine.high %v3328_v37, %v3336_v38 }
 0x4f0   :  { %6483 = vmatpush1.bf16.msra.mxu0 %v16538_v50  ;;  %v3344_v50 = vld [vmem:[#allocation10 + $0xc28] sm:$0xff] }
 0x4f1   :  { %6565 = vmatpush1.bf16.msra.mxu1 %v16540_v52  ;;  %6484 = vmatprep.subr.bf16.mxu0 %v16555_v53  ;;  %v3352_v52 = vld [vmem:[#allocation10 + $0xc68] sm:$0xff]  ;;  %v16634_v53 = vcombine.low %v3327_v51, %v3335_v33  ;;  %v16715_v51 = vcombine.high %v3407_v56, %v3415_v16 }
 0x4f2   :  { %6566 = vmatprep.subr.bf16.mxu1 %v16557_v54  ;;  %v16636_v54 = vcombine.low %v3328_v37, %v3336_v38  ;;  %v16653_v60 = vcombine.high %v3344_v50, %v3352_v52  ;;  %v3423_v37 = vld [vmem:[#allocation10 + $0xea0] sm:$0xff] }
 0x4f3   :  { %v3431_v38 = vld [vmem:[#allocation10 + $0xee0] sm:$0xff] }
 0x4f4   :  { %6485 = vmatpush1.bf16.msra.mxu0 %v16554_v63  ;;  %v3360_v63 = vld [vmem:[#allocation10 + $0xca8] sm:$0xff] }
 0x4f5   :  { %6567 = vmatpush1.bf16.msra.mxu1 %v16556_v1  ;;  %6486 = vmatprep.subr.bf16.mxu0 %v16571_v2  ;;  %v3368_v1 = vld [vmem:[#allocation10 + $0xce8] sm:$0xff]  ;;  %v16650_v2 = vcombine.low %v3343_v48, %v3351_v49 }
 0x4f6   :  { %6568 = vmatprep.subr.bf16.mxu1 %v16573_v4  ;;  %v16652_v4 = vcombine.low %v3344_v50, %v3352_v52  ;;  %v16669_v7 = vcombine.high %v3360_v63, %v3368_v1  ;;  %v3440_v48 = vld [vmem:[#allocation10 + $0xf28] sm:$0xff]  ;;  %v16730_v50 = vcombine.low %v3423_v37, %v3431_v38 }
 0x4f7   :  { %v3448_v49 = vld [vmem:[#allocation10 + $0xf68] sm:$0xff] }
 0x4f8   :  { %6487 = vmatpush1.bf16.msra.mxu0 %v16570_v12  ;;  %v3376_v12 = vld [vmem:[#allocation10 + $0xd28] sm:$0xff] }
 0x4f9   :  { %6569 = vmatpush1.bf16.msra.mxu1 %v16572_v15  ;;  %6488 = vmatprep.subr.bf16.mxu0 %v16587_v17  ;;  %v3384_v15 = vld [vmem:[#allocation10 + $0xd68] sm:$0xff]  ;;  %v16666_v17 = vcombine.low %v3359_v61, %v3367_v62 }
 0x4fa   :  { %6570 = vmatprep.subr.bf16.mxu1 %v16589_v18  ;;  %v16668_v18 = vcombine.low %v3360_v63, %v3368_v1  ;;  %v16685_v20 = vcombine.high %v3376_v12, %v3384_v15  ;;  %v3456_v61 = vld [vmem:[#allocation10 + $0xfa8] sm:$0xff]  ;;  %v16748_v1 = vcombine.low %v3440_v48, %v3448_v49 }
 0x4fb   :  { %v3464_v62 = vld [vmem:[#allocation10 + $0xfe8] sm:$0xff] }
 0x4fc   :  { %6489 = vmatpush1.bf16.msra.mxu0 %v16586_v22  ;;  %v3392_v22 = vld [vmem:[#allocation10 + $0xda8] sm:$0xff] }
 0x4fd   :  { %6571 = vmatpush1.bf16.msra.mxu1 %v16588_v23  ;;  %6490 = vmatprep.subr.bf16.mxu0 %v16603_v24  ;;  %v3400_v23 = vld [vmem:[#allocation10 + $0xde8] sm:$0xff]  ;;  %v16682_v24 = vcombine.low %v3375_v9, %v3383_v11  ;;  %v2962_v9 = vld [vmem:[#allocation10 + $0x38] sm:$0xff] }
 0x4fe   :  { %v21140_v30 = vpop.f32.mrb[8].mxu0  ;;  %v21142_v31 = vpop.f32.mrb[12].mxu1  ;;  %6572 = vmatprep.subr.bf16.mxu1 %v16605_v25  ;;  %v16684_v25 = vcombine.low %v3376_v12, %v3384_v15  ;;  %v16701_v26 = vcombine.high %v3392_v22, %v3400_v23  ;;  %v2970_v11 = vld [vmem:[#allocation10 + $0x78] sm:$0xff]  ;;  %v16764_v15 = vcombine.low %v3456_v61, %v3464_v62 }
 0x4ff   :  { %v21144_v34 = vpop.f32.mrb[9].mxu0  ;;  %v21146_v36 = vpop.f32.mrb[13].mxu1 }
 0x500   :  { %v6190_v39 = vpop.f32.mrb[10].mxu0  ;;  %v6272_v40 = vpop.f32.mrb[14].mxu1  ;;  %6491 = vmatpush1.bf16.msra.mxu0 %v16602_v27  ;;  %v3408_v27 = vld [vmem:[#allocation10 + $0xe28] sm:$0xff] }
 0x501   :  { %6573 = vmatpush1.bf16.msra.mxu1 %v16604_v28  ;;  %v6191_v42 = vpop.f32.mrb[11].mxu0  ;;  %v6273_v43 = vpop.f32.mrb[15].mxu1  ;;  %6492 = vmatprep.subr.bf16.mxu0 %v16619_v29  ;;  %v3416_v28 = vld [vmem:[#allocation10 + $0xe68] sm:$0xff]  ;;  %v16698_v29 = vcombine.low %v3391_v8, %v3399_v21  ;;  %v2978_v21 = vld [vmem:[#allocation10 + $0xb8] sm:$0xff] }
 0x502   :  { %6574 = vmatprep.subr.bf16.mxu1 %v16621_v32  ;;  %v16700_v32 = vcombine.low %v3392_v22, %v3400_v23  ;;  %v16717_v33 = vcombine.high %v3408_v27, %v3416_v28  ;;  %v3424_v39 = vld [vmem:[#allocation10 + $0xea8] sm:$0xff]  ;;  %v16716_v42 = vcombine.low %v3408_v27, %v3416_v28  ;;  %v16731_v43 = vcombine.high %v3423_v37, %v3431_v38  ;;  %v2986_v22 = vld [vmem:[#allocation10 + $0xf8] sm:$0xff] }
 0x503   :  { %v3432_v40 = vld [vmem:[#allocation10 + $0xee8] sm:$0xff]  ;;  %v16272_v23 = vcombine.low %v2962_v9, %v2970_v11  ;;  %v16288_v28 = vcombine.low %v2978_v21, %v2986_v22  ;;  %v3010_v37 = vld [vmem:[#allocation10 + $0x1b8] sm:$0xff] }
 0x504   :  { %6493 = vmatpush1.bf16.msra.mxu0 %v16618_v41  ;;  %v16714_v41 = vcombine.low %v3407_v56, %v3415_v16  ;;  %v16732_v52 = vcombine.low %v3424_v39, %v3432_v40  ;;  %v2994_v56 = vld [vmem:[#allocation10 + $0x138] sm:$0xff] }
 0x505   :  { %6575 = vmatpush1.bf16.msra.mxu1 %v16620_v44  ;;  %6494 = vmatprep.subr.bf16.mxu0 %v16635_v45  ;;  %v16733_v44 = vcombine.high %v3424_v39, %v3432_v40  ;;  %v3439_v45 = vld [vmem:[#allocation10 + $0xf20] sm:$0xff]  ;;  %v3002_v16 = vld [vmem:[#allocation10 + $0x178] sm:$0xff] }
 0x506   :  { %6576 = vmatprep.subr.bf16.mxu1 %v16637_v47  ;;  %v3447_v47 = vld [vmem:[#allocation10 + $0xf60] sm:$0xff]  ;;  %v3018_v38 = vld [vmem:[#allocation10 + $0x1f8] sm:$0xff]  ;;  %v16304_v40 = vcombine.low %v2994_v56, %v3002_v16 }
 0x507   :  { %v16746_v63 = vcombine.low %v3439_v45, %v3447_v47 }
 0x508   :  { %6495 = vmatpush1.bf16.msra.mxu0 %v16634_v53  ;;  %v16747_v53 = vcombine.high %v3439_v45, %v3447_v47  ;;  %v3026_v45 = vld [vmem:[#allocation10 + $0x238] sm:$0xff] }
 0x509   :  { %6577 = vmatpush1.bf16.msra.mxu1 %v16636_v54  ;;  %6496 = vmatprep.subr.bf16.mxu0 %v16651_v59  ;;  %v16749_v54 = vcombine.high %v3440_v48, %v3448_v49  ;;  %v3455_v59 = vld [vmem:[#allocation10 + $0xfa0] sm:$0xff]  ;;  %v3034_v47 = vld [vmem:[#allocation10 + $0x278] sm:$0xff]  ;;  %v16320_v48 = vcombine.low %v3010_v37, %v3018_v38 }
 0x50a   :  { %6578 = vmatprep.subr.bf16.mxu1 %v16653_v60  ;;  %v3463_v60 = vld [vmem:[#allocation10 + $0xfe0] sm:$0xff] }
 0x50b   :  { %v16762_v12 = vcombine.low %v3455_v59, %v3463_v60 }
 0x50c   :  { %6497 = vmatpush1.bf16.msra.mxu0 %v16650_v2  ;;  %v16763_v2 = vcombine.high %v3455_v59, %v3463_v60  ;;  %v3050_v59 = vld [vmem:[#allocation10 + $0x2f8] sm:$0xff] }
 0x50d   :  { %6579 = vmatpush1.bf16.msra.mxu1 %v16652_v4  ;;  %6498 = vmatprep.subr.bf16.mxu0 %v16667_v5  ;;  %v16765_v4 = vcombine.high %v3456_v61, %v3464_v62  ;;  %v2961_v5 = vld [vmem:[#allocation10 + $0x30] sm:$0xff]  ;;  %v16336_v61 = vcombine.low %v3026_v45, %v3034_v47 }
 0x50e   :  { %6580 = vmatprep.subr.bf16.mxu1 %v16669_v7  ;;  %v2969_v7 = vld [vmem:[#allocation10 + $0x70] sm:$0xff] }
 0x50f   :  { %v16270_v8 = vcombine.low %v2961_v5, %v2969_v7 }
 0x510   :  { %6499 = vmatpush1.bf16.msra.mxu0 %v16666_v17  ;;  %v16271_v17 = vcombine.high %v2961_v5, %v2969_v7  ;;  %v3066_v5 = vld [vmem:[#allocation10 + $0x378] sm:$0xff] }
 0x511   :  { %6581 = vmatpush1.bf16.msra.mxu1 %v16668_v18  ;;  %6500 = vmatprep.subr.bf16.mxu0 %v16683_v19  ;;  %v16273_v18 = vcombine.high %v2962_v9, %v2970_v11  ;;  %v2977_v19 = vld [vmem:[#allocation10 + $0xb0] sm:$0xff] }
 0x512   :  { %6582 = vmatprep.subr.bf16.mxu1 %v16685_v20  ;;  %v2985_v20 = vld [vmem:[#allocation10 + $0xf0] sm:$0xff] }
 0x513   :  { %v16286_v27 = vcombine.low %v2977_v19, %v2985_v20 }
 0x514   :  { %6501 = vmatpush1.bf16.msra.mxu0 %v16682_v24  ;;  %v16287_v24 = vcombine.high %v2977_v19, %v2985_v20  ;;  %v3082_v19 = vld [vmem:[#allocation10 + $0x3f8] sm:$0xff] }
 0x515   :  { %6583 = vmatpush1.bf16.msra.mxu1 %v16684_v25  ;;  %6502 = vmatprep.subr.bf16.mxu0 %v16699_v46  ;;  %v2993_v25 = vld [vmem:[#allocation10 + $0x130] sm:$0xff] }
 0x516   :  { %6584 = vmatprep.subr.bf16.mxu1 %v16701_v26  ;;  %v3001_v46 = vld [vmem:[#allocation10 + $0x170] sm:$0xff]  ;;  %v16289_v26 = vcombine.high %v2978_v21, %v2986_v22 }
 0x517   :  { %v16302_v39 = vcombine.low %v2993_v25, %v3001_v46 }
 0x518   :  { %6503 = vmatpush1.bf16.msra.mxu0 %v16698_v29  ;;  %v16303_v29 = vcombine.high %v2993_v25, %v3001_v46  ;;  %v3090_v25 = vld [vmem:[#allocation10 + $0x438] sm:$0xff] }
 0x519   :  { %6585 = vmatpush1.bf16.msra.mxu1 %v16700_v32  ;;  %6504 = vmatprep.subr.bf16.mxu0 %v16715_v51  ;;  %v16305_v32 = vcombine.high %v2994_v56, %v3002_v16  ;;  %v3009_v51 = vld [vmem:[#allocation10 + $0x1b0] sm:$0xff]  ;;  %v3098_v46 = vld [vmem:[#allocation10 + $0x478] sm:$0xff] }
 0x51a   :  { %6586 = vmatprep.subr.bf16.mxu1 %v16717_v33  ;;  %v3017_v33 = vld [vmem:[#allocation10 + $0x1f0] sm:$0xff] }
 0x51c   :  { %6505 = vmatpush1.bf16.msra.mxu0 %v16714_v41  ;;  %v16319_v41 = vcombine.high %v3009_v51, %v3017_v33 }
 0x51d   :  { %6587 = vmatpush1.bf16.msra.mxu1 %v16716_v42  ;;  %6506 = vmatprep.subr.bf16.mxu0 %v16731_v43  ;;  %v16321_v42 = vcombine.high %v3010_v37, %v3018_v38  ;;  %v3025_v43 = vld [vmem:[#allocation10 + $0x230] sm:$0xff]  ;;  %v16400_v37 = vcombine.low %v3090_v25, %v3098_v46 }
 0x51e   :  { %6588 = vmatprep.subr.bf16.mxu1 %v16733_v44  ;;  %v3033_v44 = vld [vmem:[#allocation10 + $0x270] sm:$0xff] }
 0x51f   :  { %v16335_v49 = vcombine.high %v3025_v43, %v3033_v44  ;;  %v16334_v60 = vcombine.low %v3025_v43, %v3033_v44  ;;  %v3130_v43 = vld [vmem:[#allocation10 + $0x578] sm:$0xff] }
 0x520   :  { %6507 = vmatpush1.bf16.msra.mxu0 %v16730_v50  ;;  %v16337_v50 = vcombine.high %v3026_v45, %v3034_v47 }
 0x521   :  { %6589 = vmatpush1.bf16.msra.mxu1 %v16732_v52  ;;  %6508 = vmatprep.subr.bf16.mxu0 %v16747_v53  ;;  %v3041_v52 = vld [vmem:[#allocation10 + $0x2b0] sm:$0xff] }
 0x522   :  { %6590 = vmatprep.subr.bf16.mxu1 %v16749_v54  ;;  %v3049_v53 = vld [vmem:[#allocation10 + $0x2f0] sm:$0xff]  ;;  %v3042_v54 = vld [vmem:[#allocation10 + $0x2b8] sm:$0xff] }
 0x523   :  { %v16351_v62 = vcombine.high %v3041_v52, %v3049_v53  ;;  %v16350_v7 = vcombine.low %v3041_v52, %v3049_v53  ;;  %v16352_v9 = vcombine.low %v3042_v54, %v3050_v59  ;;  %v3146_v52 = vld [vmem:[#allocation10 + $0x5f8] sm:$0xff] }
 0x524   :  { %6509 = vmatpush1.bf16.msra.mxu0 %v16746_v63  ;;  %v16353_v63 = vcombine.high %v3042_v54, %v3050_v59 }
 0x525   :  { %6591 = vmatpush1.bf16.msra.mxu1 %v16748_v1  ;;  %6510 = vmatprep.subr.bf16.mxu0 %v16763_v2  ;;  %v3057_v1 = vld [vmem:[#allocation10 + $0x330] sm:$0xff] }
 0x526   :  { %6592 = vmatprep.subr.bf16.mxu1 %v16765_v4  ;;  %v3065_v2 = vld [vmem:[#allocation10 + $0x370] sm:$0xff]  ;;  %v3058_v4 = vld [vmem:[#allocation10 + $0x338] sm:$0xff] }
 0x527   :  { %v16367_v11 = vcombine.high %v3057_v1, %v3065_v2  ;;  %v16366_v20 = vcombine.low %v3057_v1, %v3065_v2  ;;  %v3162_v1 = vld [vmem:[#allocation10 + $0x678] sm:$0xff] }
 0x528   :  { %6511 = vmatpush1.bf16.msra.mxu0 %v16762_v12  ;;  %v16369_v12 = vcombine.high %v3058_v4, %v3066_v5 }
 0x529   :  { %6593 = vmatpush1.bf16.msra.mxu1 %v16764_v15  ;;  %6603 = vmatprep.subr.bf16.mxu0 %v16271_v17  ;;  %v3073_v15 = vld [vmem:[#allocation10 + $0x3b0] sm:$0xff] }
 0x52a   :  { %6685 = vmatprep.subr.bf16.mxu1 %v16273_v18  ;;  %v3081_v17 = vld [vmem:[#allocation10 + $0x3f0] sm:$0xff]  ;;  %v3074_v18 = vld [vmem:[#allocation10 + $0x3b8] sm:$0xff] }
 0x52b   :  { %6513 = vmatmul.mubr.bf16.vlgmr.msra.gmra.mrb[16].mxu0 %v21122_v35  ;;  %v16383_v21 = vcombine.high %v3073_v15, %v3081_v17  ;;  %v16385_v22 = vcombine.high %v3074_v18, %v3082_v19  ;;  %v16384_v56 = vcombine.low %v3074_v18, %v3082_v19 }
 0x52c   :  { %6595 = vmatmul.mubr.bf16.vlgmr.msra.gmra.mrb[20].mxu1 %v21122_v35  ;;  %6604 = vmatpush1.bf16.msra.mxu0 %v16270_v8  ;;  %v16368_v8 = vcombine.low %v3058_v4, %v3066_v5 }
 0x52d   :  { %6635 = vmatprep.mubr.bf16.mxu0 %v21107_v13  ;;  %6686 = vmatpush1.bf16.msra.mxu1 %v16272_v23  ;;  %v3089_v23 = vld [vmem:[#allocation10 + $0x430] sm:$0xff] }
 0x52e   :  { %6717 = vmatprep.mubr.bf16.mxu1 %v21107_v13  ;;  %6605 = vmatprep.subr.bf16.mxu0 %v16287_v24  ;;  %v16318_v13 = vcombine.low %v3009_v51, %v3017_v33  ;;  %v3097_v24 = vld [vmem:[#allocation10 + $0x470] sm:$0xff]  ;;  %v3114_v51 = vld [vmem:[#allocation10 + $0x4f8] sm:$0xff] }
 0x52f   :  { %6687 = vmatprep.subr.bf16.mxu1 %v16289_v26  ;;  %v16382_v26 = vcombine.low %v3073_v15, %v3081_v17  ;;  %v16399_v16 = vcombine.high %v3089_v23, %v3097_v24  ;;  %v16398_v33 = vcombine.low %v3089_v23, %v3097_v24  ;;  %v3178_v15 = vld [vmem:[#allocation10 + $0x6f8] sm:$0xff] }
 0x530   :  { %6606 = vmatpush1.bf16.msra.mxu0 %v16286_v27  ;;  %v16401_v27 = vcombine.high %v3090_v25, %v3098_v46  ;;  %v3194_v23 = vld [vmem:[#allocation10 + $0x778] sm:$0xff] }
 0x531   :  { %6688 = vmatpush1.bf16.msra.mxu1 %v16288_v28  ;;  %6607 = vmatprep.subr.bf16.mxu0 %v16303_v29  ;;  %v3105_v28 = vld [vmem:[#allocation10 + $0x4b0] sm:$0xff] }
 0x532   :  { %6689 = vmatprep.subr.bf16.mxu1 %v16305_v32  ;;  %v3113_v29 = vld [vmem:[#allocation10 + $0x4f0] sm:$0xff]  ;;  %v3106_v32 = vld [vmem:[#allocation10 + $0x4b8] sm:$0xff] }
 0x533   :  { %v16415_v38 = vcombine.high %v3105_v28, %v3113_v29  ;;  %v16414_v44 = vcombine.low %v3105_v28, %v3113_v29  ;;  %v16416_v45 = vcombine.low %v3106_v32, %v3114_v51  ;;  %v3210_v28 = vld [vmem:[#allocation10 + $0x7f8] sm:$0xff] }
 0x534   :  { %6608 = vmatpush1.bf16.msra.mxu0 %v16302_v39  ;;  %v16417_v39 = vcombine.high %v3106_v32, %v3114_v51 }
 0x535   :  { %6690 = vmatpush1.bf16.msra.mxu1 %v16304_v40  ;;  %6609 = vmatprep.subr.bf16.mxu0 %v16319_v41  ;;  %v3121_v40 = vld [vmem:[#allocation10 + $0x530] sm:$0xff] }
 0x536   :  { %6691 = vmatprep.subr.bf16.mxu1 %v16321_v42  ;;  %v3129_v41 = vld [vmem:[#allocation10 + $0x570] sm:$0xff]  ;;  %v3122_v42 = vld [vmem:[#allocation10 + $0x538] sm:$0xff] }
 0x537   :  { %v16431_v47 = vcombine.high %v3121_v40, %v3129_v41  ;;  %v16430_v53 = vcombine.low %v3121_v40, %v3129_v41  ;;  %v16432_v54 = vcombine.low %v3122_v42, %v3130_v43  ;;  %v3226_v40 = vld [vmem:[#allocation10 + $0x878] sm:$0xff] }
 0x538   :  { %6610 = vmatpush1.bf16.msra.mxu0 %v16318_v13  ;;  %v16433_v13 = vcombine.high %v3122_v42, %v3130_v43 }
 0x539   :  { %6692 = vmatpush1.bf16.msra.mxu1 %v16320_v48  ;;  %6611 = vmatprep.subr.bf16.mxu0 %v16335_v49  ;;  %v3137_v48 = vld [vmem:[#allocation10 + $0x5b0] sm:$0xff] }
 0x53a   :  { %6693 = vmatprep.subr.bf16.mxu1 %v16337_v50  ;;  %v3145_v49 = vld [vmem:[#allocation10 + $0x5f0] sm:$0xff]  ;;  %v3138_v50 = vld [vmem:[#allocation10 + $0x5b8] sm:$0xff] }
 0x53b   :  { %v16447_v59 = vcombine.high %v3137_v48, %v3145_v49  ;;  %v16446_v2 = vcombine.low %v3137_v48, %v3145_v49  ;;  %v16448_v4 = vcombine.low %v3138_v50, %v3146_v52  ;;  %v3234_v48 = vld [vmem:[#allocation10 + $0x8b8] sm:$0xff] }
 0x53c   :  { %6612 = vmatpush1.bf16.msra.mxu0 %v16334_v60  ;;  %v16449_v60 = vcombine.high %v3138_v50, %v3146_v52  ;;  %v3242_v49 = vld [vmem:[#allocation10 + $0x8f8] sm:$0xff] }
 0x53d   :  { %6694 = vmatpush1.bf16.msra.mxu1 %v16336_v61  ;;  %6613 = vmatprep.subr.bf16.mxu0 %v16351_v62  ;;  %v3153_v61 = vld [vmem:[#allocation10 + $0x630] sm:$0xff] }
 0x53e   :  { %6695 = vmatprep.subr.bf16.mxu1 %v16353_v63  ;;  %v3161_v62 = vld [vmem:[#allocation10 + $0x670] sm:$0xff]  ;;  %v3154_v63 = vld [vmem:[#allocation10 + $0x638] sm:$0xff] }
 0x53f   :  { %v16463_v5 = vcombine.high %v3153_v61, %v3161_v62  ;;  %v16462_v17 = vcombine.low %v3153_v61, %v3161_v62  ;;  %v16464_v18 = vcombine.low %v3154_v63, %v3162_v1  ;;  %v3258_v61 = vld [vmem:[#allocation10 + $0x978] sm:$0xff] }
 0x540   :  { %6614 = vmatpush1.bf16.msra.mxu0 %v16350_v7  ;;  %v16465_v7 = vcombine.high %v3154_v63, %v3162_v1  ;;  %v16544_v63 = vcombine.low %v3234_v48, %v3242_v49 }
 0x541   :  { %6696 = vmatpush1.bf16.msra.mxu1 %v16352_v9  ;;  %6615 = vmatprep.subr.bf16.mxu0 %v16367_v11  ;;  %v3169_v9 = vld [vmem:[#allocation10 + $0x6b0] sm:$0xff] }
 0x542   :  { %6697 = vmatprep.subr.bf16.mxu1 %v16369_v12  ;;  %v3177_v11 = vld [vmem:[#allocation10 + $0x6f0] sm:$0xff]  ;;  %v3170_v12 = vld [vmem:[#allocation10 + $0x6b8] sm:$0xff] }
 0x543   :  { %v16479_v19 = vcombine.high %v3169_v9, %v3177_v11  ;;  %v16478_v24 = vcombine.low %v3169_v9, %v3177_v11  ;;  %v16480_v25 = vcombine.low %v3170_v12, %v3178_v15  ;;  %v3274_v9 = vld [vmem:[#allocation10 + $0x9f8] sm:$0xff] }
 0x544   :  { %6616 = vmatpush1.bf16.msra.mxu0 %v16366_v20  ;;  %v16481_v20 = vcombine.high %v3170_v12, %v3178_v15 }
 0x545   :  { %6698 = vmatpush1.bf16.msra.mxu1 %v16368_v8  ;;  %6617 = vmatprep.subr.bf16.mxu0 %v16383_v21  ;;  %v3185_v8 = vld [vmem:[#allocation10 + $0x730] sm:$0xff] }
 0x546   :  { %6699 = vmatprep.subr.bf16.mxu1 %v16385_v22  ;;  %v3193_v21 = vld [vmem:[#allocation10 + $0x770] sm:$0xff]  ;;  %v3186_v22 = vld [vmem:[#allocation10 + $0x738] sm:$0xff] }
 0x547   :  { %v16495_v46 = vcombine.high %v3185_v8, %v3193_v21  ;;  %v16494_v29 = vcombine.low %v3185_v8, %v3193_v21  ;;  %v16496_v32 = vcombine.low %v3186_v22, %v3194_v23 }
 0x548   :  { %6618 = vmatpush1.bf16.msra.mxu0 %v16382_v26  ;;  %v16497_v26 = vcombine.high %v3186_v22, %v3194_v23  ;;  %v3297_v23 = vld [vmem:[#allocation10 + $0xab0] sm:$0xff] }
 0x549   :  { %6700 = vmatpush1.bf16.msra.mxu1 %v16384_v56  ;;  %6619 = vmatprep.subr.bf16.mxu0 %v16399_v16  ;;  %v3201_v56 = vld [vmem:[#allocation10 + $0x7b0] sm:$0xff] }
 0x54a   :  { %6701 = vmatprep.subr.bf16.mxu1 %v16401_v27  ;;  %v3209_v16 = vld [vmem:[#allocation10 + $0x7f0] sm:$0xff]  ;;  %v3202_v27 = vld [vmem:[#allocation10 + $0x7b8] sm:$0xff] }
 0x54b   :  { %v16511_v51 = vcombine.high %v3201_v56, %v3209_v16  ;;  %v16510_v41 = vcombine.low %v3201_v56, %v3209_v16  ;;  %v16512_v42 = vcombine.low %v3202_v27, %v3210_v28 }
 0x54c   :  { %6620 = vmatpush1.bf16.msra.mxu0 %v16398_v33  ;;  %v16513_v33 = vcombine.high %v3202_v27, %v3210_v28  ;;  %v3313_v28 = vld [vmem:[#allocation10 + $0xb30] sm:$0xff] }
 0x54d   :  { %6702 = vmatpush1.bf16.msra.mxu1 %v16400_v37  ;;  %6621 = vmatprep.subr.bf16.mxu0 %v16415_v38  ;;  %v3217_v37 = vld [vmem:[#allocation10 + $0x830] sm:$0xff] }
 0x54e   :  { %6703 = vmatprep.subr.bf16.mxu1 %v16417_v39  ;;  %v3225_v38 = vld [vmem:[#allocation10 + $0x870] sm:$0xff]  ;;  %v3218_v39 = vld [vmem:[#allocation10 + $0x838] sm:$0xff] }
 0x54f   :  { %v16527_v43 = vcombine.high %v3217_v37, %v3225_v38  ;;  %v16528_v50 = vcombine.low %v3218_v39, %v3226_v40 }
 0x550   :  { %6622 = vmatpush1.bf16.msra.mxu0 %v16414_v44  ;;  %v16529_v44 = vcombine.high %v3218_v39, %v3226_v40 }
 0x551   :  { %6704 = vmatpush1.bf16.msra.mxu1 %v16416_v45  ;;  %6623 = vmatprep.subr.bf16.mxu0 %v16431_v47  ;;  %v3233_v45 = vld [vmem:[#allocation10 + $0x8b0] sm:$0xff] }
 0x552   :  { %6705 = vmatprep.subr.bf16.mxu1 %v16433_v13  ;;  %v3241_v47 = vld [vmem:[#allocation10 + $0x8f0] sm:$0xff]  ;;  %v16526_v13 = vcombine.low %v3217_v37, %v3225_v38 }
 0x553   :  { %v16543_v52 = vcombine.high %v3233_v45, %v3241_v47  ;;  %v16542_v62 = vcombine.low %v3233_v45, %v3241_v47  ;;  %v3330_v45 = vld [vmem:[#allocation10 + $0xbb8] sm:$0xff] }
 0x554   :  { %6624 = vmatpush1.bf16.msra.mxu0 %v16430_v53  ;;  %v3249_v53 = vld [vmem:[#allocation10 + $0x930] sm:$0xff]  ;;  %v3338_v47 = vld [vmem:[#allocation10 + $0xbf8] sm:$0xff] }
 0x555   :  { %6706 = vmatpush1.bf16.msra.mxu1 %v16432_v54  ;;  %6625 = vmatprep.subr.bf16.mxu0 %v16447_v59  ;;  %v3257_v54 = vld [vmem:[#allocation10 + $0x970] sm:$0xff]  ;;  %v16545_v59 = vcombine.high %v3234_v48, %v3242_v49 }
 0x556   :  { %6707 = vmatprep.subr.bf16.mxu1 %v16449_v60  ;;  %v3250_v60 = vld [vmem:[#allocation10 + $0x938] sm:$0xff]  ;;  %v16559_v1 = vcombine.high %v3249_v53, %v3257_v54  ;;  %v16558_v11 = vcombine.low %v3249_v53, %v3257_v54 }
 0x558   :  { %6626 = vmatpush1.bf16.msra.mxu0 %v16446_v2  ;;  %v16561_v2 = vcombine.high %v3250_v60, %v3258_v61 }
 0x559   :  { %6708 = vmatpush1.bf16.msra.mxu1 %v16448_v4  ;;  %6627 = vmatprep.subr.bf16.mxu0 %v16463_v5  ;;  %v3265_v4 = vld [vmem:[#allocation10 + $0x9b0] sm:$0xff] }
 0x55a   :  { %6709 = vmatprep.subr.bf16.mxu1 %v16465_v7  ;;  %v3273_v5 = vld [vmem:[#allocation10 + $0x9f0] sm:$0xff]  ;;  %v3266_v7 = vld [vmem:[#allocation10 + $0x9b8] sm:$0xff] }
 0x55b   :  { %v16575_v12 = vcombine.high %v3265_v4, %v3273_v5  ;;  %v16577_v15 = vcombine.high %v3266_v7, %v3274_v9  ;;  %v16576_v8 = vcombine.low %v3266_v7, %v3274_v9  ;;  %v3361_v9 = vld [vmem:[#allocation10 + $0xcb0] sm:$0xff] }
 0x55c   :  { %6628 = vmatpush1.bf16.msra.mxu0 %v16462_v17  ;;  %v3281_v17 = vld [vmem:[#allocation10 + $0xa30] sm:$0xff] }
 0x55d   :  { %6710 = vmatpush1.bf16.msra.mxu1 %v16464_v18  ;;  %6629 = vmatprep.subr.bf16.mxu0 %v16479_v19  ;;  %v3289_v18 = vld [vmem:[#allocation10 + $0xa70] sm:$0xff]  ;;  %v3282_v19 = vld [vmem:[#allocation10 + $0xa38] sm:$0xff] }
 0x55e   :  { %6711 = vmatprep.subr.bf16.mxu1 %v16481_v20  ;;  %v3290_v20 = vld [vmem:[#allocation10 + $0xa78] sm:$0xff]  ;;  %v16591_v21 = vcombine.high %v3281_v17, %v3289_v18 }
 0x55f   :  { %v16593_v22 = vcombine.high %v3282_v19, %v3290_v20  ;;  %v16592_v56 = vcombine.low %v3282_v19, %v3290_v20  ;;  %v3377_v20 = vld [vmem:[#allocation10 + $0xd30] sm:$0xff] }
 0x560   :  { %6630 = vmatpush1.bf16.msra.mxu0 %v16478_v24  ;;  %v3305_v24 = vld [vmem:[#allocation10 + $0xaf0] sm:$0xff] }
 0x561   :  { %6712 = vmatpush1.bf16.msra.mxu1 %v16480_v25  ;;  %6631 = vmatprep.subr.bf16.mxu0 %v16495_v46  ;;  %v3298_v25 = vld [vmem:[#allocation10 + $0xab8] sm:$0xff]  ;;  %v16607_v16 = vcombine.high %v3297_v23, %v3305_v24 }
 0x562   :  { %6713 = vmatprep.subr.bf16.mxu1 %v16497_v26  ;;  %v3306_v46 = vld [vmem:[#allocation10 + $0xaf8] sm:$0xff]  ;;  %v16590_v26 = vcombine.low %v3281_v17, %v3289_v18 }
 0x563   :  { %v16609_v27 = vcombine.high %v3298_v25, %v3306_v46  ;;  %v16608_v37 = vcombine.low %v3298_v25, %v3306_v46  ;;  %v3393_v46 = vld [vmem:[#allocation10 + $0xdb0] sm:$0xff] }
 0x564   :  { %6632 = vmatpush1.bf16.msra.mxu0 %v16494_v29  ;;  %v3321_v29 = vld [vmem:[#allocation10 + $0xb70] sm:$0xff] }
 0x565   :  { %6714 = vmatpush1.bf16.msra.mxu1 %v16496_v32  ;;  %6633 = vmatprep.subr.bf16.mxu0 %v16511_v51  ;;  %v3314_v32 = vld [vmem:[#allocation10 + $0xb38] sm:$0xff]  ;;  %v16623_v38 = vcombine.high %v3313_v28, %v3321_v29  ;;  %v16622_v49 = vcombine.low %v3313_v28, %v3321_v29 }
 0x566   :  { %6715 = vmatprep.subr.bf16.mxu1 %v16513_v33  ;;  %v3322_v51 = vld [vmem:[#allocation10 + $0xb78] sm:$0xff]  ;;  %v16606_v33 = vcombine.low %v3297_v23, %v3305_v24 }
 0x567   :  { %v16625_v40 = vcombine.high %v3314_v32, %v3322_v51  ;;  %v16624_v53 = vcombine.low %v3314_v32, %v3322_v51  ;;  %v3409_v51 = vld [vmem:[#allocation10 + $0xe30] sm:$0xff] }
 0x568   :  { %6634 = vmatpush1.bf16.msra.mxu0 %v16510_v41  ;;  %v3329_v41 = vld [vmem:[#allocation10 + $0xbb0] sm:$0xff] }
 0x569   :  { %6716 = vmatpush1.bf16.msra.mxu1 %v16512_v42  ;;  %6644 = vmatprep.subr.bf16.mxu0 %v16527_v43  ;;  %v3337_v42 = vld [vmem:[#allocation10 + $0xbf0] sm:$0xff] }
 0x56a   :  { %6726 = vmatprep.subr.bf16.mxu1 %v16529_v44  ;;  %v16639_v54 = vcombine.high %v3329_v41, %v3337_v42 }
 0x56b   :  { %6636 = vmatmul.mubr.bf16.vlgmr.msra.gmra.mrb[20].mxu0 %v21109_v14 }
 0x56c   :  { %6718 = vmatmul.mubr.bf16.vlgmr.msra.gmra.mrb[24].mxu1 %v21109_v14  ;;  %6645 = vmatpush1.bf16.msra.mxu0 %v16526_v13  ;;  %v16560_v14 = vcombine.low %v3250_v60, %v3258_v61  ;;  %v16641_v60 = vcombine.high %v3330_v45, %v3338_v47  ;;  %v3345_v61 = vld [vmem:[#allocation10 + $0xc30] sm:$0xff] }
 0x56d   :  { %6676 = vmatprep.mubr.bf16.mxu0 %v21113_v10  ;;  %6727 = vmatpush1.bf16.msra.mxu1 %v16528_v50 }
 0x56e   :  { %6758 = vmatprep.mubr.bf16.mxu1 %v21113_v10  ;;  %6646 = vmatprep.subr.bf16.mxu0 %v16543_v52  ;;  %v16574_v10 = vcombine.low %v3265_v4, %v3273_v5  ;;  %v16640_v4 = vcombine.low %v3330_v45, %v3338_v47  ;;  %v3425_v47 = vld [vmem:[#allocation10 + $0xeb0] sm:$0xff] }
 0x56f   :  { %6728 = vmatprep.subr.bf16.mxu1 %v16545_v59 }
 0x570   :  { %6647 = vmatpush1.bf16.msra.mxu0 %v16542_v62  ;;  %v3353_v62 = vld [vmem:[#allocation10 + $0xc70] sm:$0xff] }
 0x571   :  { %6729 = vmatpush1.bf16.msra.mxu1 %v16544_v63  ;;  %6648 = vmatprep.subr.bf16.mxu0 %v16559_v1  ;;  %v3346_v63 = vld [vmem:[#allocation10 + $0xc38] sm:$0xff]  ;;  %v16655_v5 = vcombine.high %v3345_v61, %v3353_v62 }
 0x572   :  { %6730 = vmatprep.subr.bf16.mxu1 %v16561_v2  ;;  %v3354_v1 = vld [vmem:[#allocation10 + $0xc78] sm:$0xff]  ;;  %v16638_v2 = vcombine.low %v3329_v41, %v3337_v42 }
 0x573   :  { %v16657_v7 = vcombine.high %v3346_v63, %v3354_v1  ;;  %v16656_v17 = vcombine.low %v3346_v63, %v3354_v1  ;;  %v3450_v63 = vld [vmem:[#allocation10 + $0xf78] sm:$0xff]  ;;  %v21164_v1 = vld [vmem:[#allocation11] sm:$0xff] }
 0x574   :  { %6649 = vmatpush1.bf16.msra.mxu0 %v16558_v11  ;;  %v3369_v11 = vld [vmem:[#allocation10 + $0xcf0] sm:$0xff] }
 0x575   :  { %6731 = vmatpush1.bf16.msra.mxu1 %v16560_v14  ;;  %6650 = vmatprep.subr.bf16.mxu0 %v16575_v12  ;;  %v3362_v14 = vld [vmem:[#allocation10 + $0xcb8] sm:$0xff]  ;;  %v16671_v18 = vcombine.high %v3361_v9, %v3369_v11 }
 0x576   :  { %6732 = vmatprep.subr.bf16.mxu1 %v16577_v15  ;;  %v3370_v12 = vld [vmem:[#allocation10 + $0xcf8] sm:$0xff]  ;;  %v16654_v15 = vcombine.low %v3345_v61, %v3353_v62  ;;  %v3449_v61 = vld [vmem:[#allocation10 + $0xf70] sm:$0xff] }
 0x577   :  { %v16673_v19 = vcombine.high %v3362_v14, %v3370_v12  ;;  %v16672_v23 = vcombine.low %v3362_v14, %v3370_v12  ;;  %v3442_v62 = vld [vmem:[#allocation10 + $0xf38] sm:$0xff]  ;;  %v3478_v14 = vrot.slane %v21164_v1, %v21079_v58 }
 0x578   :  { %6651 = vmatpush1.bf16.msra.mxu0 %v16574_v10  ;;  %v3385_v10 = vld [vmem:[#allocation10 + $0xd70] sm:$0xff]  ;;  %v3458_v12 = vld [vmem:[#allocation10 + $0xfb8] sm:$0xff] }
 0x579   :  { %6733 = vmatpush1.bf16.msra.mxu1 %v16576_v8  ;;  %6652 = vmatprep.subr.bf16.mxu0 %v16591_v21  ;;  %v3378_v8 = vld [vmem:[#allocation10 + $0xd38] sm:$0xff]  ;;  %v16687_v24 = vcombine.high %v3377_v20, %v3385_v10 }
 0x57a   :  { %6734 = vmatprep.subr.bf16.mxu1 %v16593_v22  ;;  %v3386_v21 = vld [vmem:[#allocation10 + $0xd78] sm:$0xff]  ;;  %v16670_v22 = vcombine.low %v3361_v9, %v3369_v11  ;;  %v3457_v9 = vld [vmem:[#allocation10 + $0xfb0] sm:$0xff] }
 0x57b   :  { %v16689_v25 = vcombine.high %v3378_v8, %v3386_v21  ;;  %v16688_v28 = vcombine.low %v3378_v8, %v3386_v21  ;;  %v3465_v11 = vld [vmem:[#allocation10 + $0xff0] sm:$0xff]  ;;  %v18122_v8 = vadd.f32 %v21144_v34, %v3478_v14  ;;  %v18876_v14 = vld [vmem:[#allocation13 + $0x78] sm:$0xff]  }
 0x57c   :  { %6653 = vmatpush1.bf16.msra.mxu0 %v16590_v26  ;;  %v3401_v26 = vld [vmem:[#allocation10 + $0xdf0] sm:$0xff] }
 0x57d   :  { %6735 = vmatpush1.bf16.msra.mxu1 %v16592_v56  ;;  %6654 = vmatprep.subr.bf16.mxu0 %v16607_v16  ;;  %v3394_v56 = vld [vmem:[#allocation10 + $0xdb8] sm:$0xff]  ;;  %v16703_v29 = vcombine.high %v3393_v46, %v3401_v26 }
 0x57e   :  { %v21156_v39 = vpop.f32.mrb[12].mxu0  ;;  %6736 = vmatprep.subr.bf16.mxu1 %v16609_v27  ;;  %v3402_v16 = vld [vmem:[#allocation10 + $0xdf8] sm:$0xff]  ;;  %v16686_v27 = vcombine.low %v3377_v20, %v3385_v10  ;;  %v16767_v20 = vcombine.high %v3457_v9, %v3465_v11 }
 0x57f   :  { %v21158_v43 = vpop.f32.mrb[16].mxu1  ;;  %v21160_v44 = vpop.f32.mrb[13].mxu0  ;;  %v16705_v32 = vcombine.high %v3394_v56, %v3402_v16  ;;  %v16704_v41 = vcombine.low %v3394_v56, %v3402_v16  ;;  %v18850_v56 = vld [vmem:[#allocation13] sm:$0xff]  }
 0x580   :  { %v21162_v13 = vpop.f32.mrb[17].mxu1  ;;  %v6354_v48 = vpop.f32.mrb[14].mxu0  ;;  %6655 = vmatpush1.bf16.msra.mxu0 %v16606_v33  ;;  %v3417_v33 = vld [vmem:[#allocation10 + $0xe70] sm:$0xff] }
 0x581   :  { %v6436_v50 = vpop.f32.mrb[18].mxu1  ;;  %6737 = vmatpush1.bf16.msra.mxu1 %v16608_v37  ;;  %v6355_v52 = vpop.f32.mrb[15].mxu0  ;;  %6656 = vmatprep.subr.bf16.mxu0 %v16623_v38  ;;  %v3410_v37 = vld [vmem:[#allocation10 + $0xe38] sm:$0xff]  ;;  %v16719_v42 = vcombine.high %v3409_v51, %v3417_v33  ;;  %v3433_v48 = vld [vmem:[#allocation10 + $0xef0] sm:$0xff] }
 0x582   :  { %v6437_v59 = vpop.f32.mrb[19].mxu1  ;;  %6738 = vmatprep.subr.bf16.mxu1 %v16625_v40  ;;  %v3418_v38 = vld [vmem:[#allocation10 + $0xe78] sm:$0xff]  ;;  %v16702_v40 = vcombine.low %v3393_v46, %v3401_v26  ;;  %v16718_v52 = vcombine.low %v3409_v51, %v3417_v33  ;;  %v6768_v46 = vmax.f32 %v18122_v8, 0.0  ;;  %v18851_v16 = vld [vmem:[#allocation13 + $0x80] sm:$0xff]   ;;  %v18856_v51 = vld [vmem:[#allocation13 + $0x50] sm:$0xff]  }
 0x583   :  { %v16721_v45 = vcombine.high %v3410_v37, %v3418_v38  ;;  %v3434_v50 = vld [vmem:[#allocation10 + $0xef8] sm:$0xff]  ;;  %v18857_v33 = vld [vmem:[#allocation13 + $0xd0] sm:$0xff]   ;;  %v18880_v8 = vld [vmem:[#allocation13 + $0x140] sm:$0xff]  }
 0x584   :  { %6657 = vmatpush1.bf16.msra.mxu0 %v16622_v49  ;;  %v3426_v49 = vld [vmem:[#allocation10 + $0xeb8] sm:$0xff]  ;;  %v6784_v34 = vpack.c.bf16 %v6768_v46, %v6768_v46 }
 0x585   :  { %6739 = vmatpush1.bf16.msra.mxu1 %v16624_v53  ;;  %6658 = vmatprep.subr.bf16.mxu0 %v16639_v54  ;;  %v16720_v53 = vcombine.low %v3410_v37, %v3418_v38  ;;  %v16735_v54 = vcombine.high %v3425_v47, %v3433_v48  ;;  %v16737_v59 = vcombine.high %v3426_v49, %v3434_v50  ;;  %v18858_v37 = vld [vmem:[#allocation13 + $0x10] sm:$0xff]  }
 0x586   :  { %6740 = vmatprep.subr.bf16.mxu1 %v16641_v60  ;;  %v3441_v60 = vld [vmem:[#allocation10 + $0xf30] sm:$0xff]  ;;  %v18859_v38 = vld [vmem:[#allocation13 + $0x90] sm:$0xff]  }
 0x588   :  { %6659 = vmatpush1.bf16.msra.mxu0 %v16638_v2  ;;  %v16734_v2 = vcombine.low %v3425_v47, %v3433_v48  ;;  %v18865_v47 = vld [vmem:[#allocation13 + $0xe0] sm:$0xff]  }
 0x589   :  { %6741 = vmatpush1.bf16.msra.mxu1 %v16640_v4  ;;  %6660 = vmatprep.subr.bf16.mxu0 %v16655_v5  ;;  %v16736_v4 = vcombine.low %v3426_v49, %v3434_v50  ;;  %v16751_v5 = vcombine.high %v3441_v60, %v3449_v61  ;;  %v18866_v48 = vld [vmem:[#allocation13 + $0x20] sm:$0xff]   ;;  %v18868_v50 = vld [vmem:[#allocation13 + $0x68] sm:$0xff]  }
 0x58a   :  { %6742 = vmatprep.subr.bf16.mxu1 %v16657_v7  ;;  %v16753_v7 = vcombine.high %v3442_v62, %v3450_v63  ;;  %v18867_v49 = vld [vmem:[#allocation13 + $0xa0] sm:$0xff]  }
 0x58c   :  { %6661 = vmatpush1.bf16.msra.mxu0 %v16654_v15  ;;  %v3466_v15 = vld [vmem:[#allocation10 + $0xff8] sm:$0xff] }
 0x58d   :  { %6743 = vmatpush1.bf16.msra.mxu1 %v16656_v17  ;;  %6662 = vmatprep.subr.bf16.mxu0 %v16671_v18  ;;  %v3486_v17 = vrot.slane %v21164_v1, %v21091_v6  ;;  %v16750_v18 = vcombine.low %v3441_v60, %v3449_v61  ;;  %v16769_v10 = vcombine.high %v3458_v12, %v3466_v15  ;;  %v18871_v61 = vld [vmem:[#allocation13 + $0xa8] sm:$0xff]  }
 0x58e   :  { %6744 = vmatprep.subr.bf16.mxu1 %v16673_v19  ;;  %v16752_v19 = vcombine.low %v3442_v62, %v3450_v63  ;;  %v3474_v60 = vrot.slane %v21164_v1, %v21076_v57  ;;  %v18872_v62 = vld [vmem:[#allocation13 + $0x70] sm:$0xff]   ;;  %v3482_v63 = vrot.slane %v21164_v1, %v21088_v3 }
 0x58f   :  { %v18124_v21 = vadd.f32 %v21146_v36, %v3486_v17  ;;  %v18853_v36 = vld [vmem:[#allocation13 + $0xc8] sm:$0xff]  }
 0x590   :  { %6663 = vmatpush1.bf16.msra.mxu0 %v16670_v22  ;;  %v16766_v22 = vcombine.low %v3457_v9, %v3465_v11  ;;  %v18121_v9 = vadd.f32 %v21140_v30, %v3474_v60  ;;  %v18875_v11 = vld [vmem:[#allocation13 + $0xb0] sm:$0xff]  }
 0x591   :  { %6745 = vmatpush1.bf16.msra.mxu1 %v16672_v23  ;;  %6664 = vmatprep.subr.bf16.mxu0 %v16687_v24  ;;  %v16768_v23 = vcombine.low %v3458_v12, %v3466_v15  ;;  %v18848_v24 = vld [vmem:[#allocation13 + $0x40] sm:$0xff]   ;;  %v6770_v26 = vmax.f32 %v18124_v21, 0.0  ;;  %v18123_v12 = vadd.f32 %v21142_v31, %v3482_v63  ;;  %v18877_v15 = vld [vmem:[#allocation13 + $0xf8] sm:$0xff]   ;;  %v18907_v63 = vld [vmem:[#allocation13 + $0x1b0] sm:$0xff]  }
 0x592   :  { %6746 = vmatprep.subr.bf16.mxu1 %v16689_v25  ;;  %v18849_v25 = vld [vmem:[#allocation13 + $0xc0] sm:$0xff]  }
 0x593   :  { %v6769_v30 = vmax.f32 %v18123_v12, 0.0  ;;  %v18881_v21 = vld [vmem:[#allocation13 + $0x1c0] sm:$0xff]  }
 0x594   :  { %6665 = vmatpush1.bf16.msra.mxu0 %v16686_v27  ;;  %v18852_v27 = vld [vmem:[#allocation13 + $0x48] sm:$0xff]   ;;  %v18882_v31 = vld [vmem:[#allocation13 + $0x100] sm:$0xff]  }
 0x595   :  { %6747 = vmatpush1.bf16.msra.mxu1 %v16688_v28  ;;  %6666 = vmatprep.subr.bf16.mxu0 %v16703_v29  ;;  %v6786_v28 = vpack.c.bf16 %v6770_v26, %v6770_v26  ;;  %v18854_v29 = vld [vmem:[#allocation13 + $0x8] sm:$0xff]   ;;  %v18913_v12 = vld [vmem:[#allocation13 + $0x2c0] sm:$0xff]  }
 0x596   :  { %6748 = vmatprep.subr.bf16.mxu1 %v16705_v32  ;;  %v18855_v32 = vld [vmem:[#allocation13 + $0x88] sm:$0xff]  }
 0x597   :  { %v18885_v26 = vld [vmem:[#allocation13 + $0x1c8] sm:$0xff]  }
 0x598   :  { %6667 = vmatpush1.bf16.msra.mxu0 %v16702_v40  ;;  %v18860_v40 = vld [vmem:[#allocation13 + $0x58] sm:$0xff]  }
 0x599   :  { %6749 = vmatpush1.bf16.msra.mxu1 %v16704_v41  ;;  %6668 = vmatprep.subr.bf16.mxu0 %v16719_v42  ;;  %v18861_v41 = vld [vmem:[#allocation13 + $0xd8] sm:$0xff]  }
 0x59a   :  { %6750 = vmatprep.subr.bf16.mxu1 %v16721_v45  ;;  %v18863_v42 = vld [vmem:[#allocation13 + $0x98] sm:$0xff]   ;;  %v18864_v45 = vld [vmem:[#allocation13 + $0x60] sm:$0xff]  }
 0x59c   :  { %6669 = vmatpush1.bf16.msra.mxu0 %v16718_v52  ;;  %v18869_v52 = vld [vmem:[#allocation13 + $0xe8] sm:$0xff]  }
 0x59d   :  { %6751 = vmatpush1.bf16.msra.mxu1 %v16720_v53  ;;  %6670 = vmatprep.subr.bf16.mxu0 %v16735_v54  ;;  %v21175_v53 = vsub.s32 5, %v21071_v55  ;;  %v21178_v54 = vsub.s32 7, %v21071_v55 }
 0x59e   :  { %6752 = vmatprep.subr.bf16.mxu1 %v16737_v59  ;;  %v18870_v59 = vld [vmem:[#allocation13 + $0x28] sm:$0xff]  }
 0x5a0   :  { %6671 = vmatpush1.bf16.msra.mxu0 %v16734_v2  ;;  %v18873_v2 = vld [vmem:[#allocation13 + $0xf0] sm:$0xff]  }
 0x5a1   :  { %6753 = vmatpush1.bf16.msra.mxu1 %v16736_v4  ;;  %6672 = vmatprep.subr.bf16.mxu0 %v16751_v5  ;;  %v3494_v4 = vrot.slane %v21164_v1, %v21175_v53  ;;  %v3502_v5 = vrot.slane %v21164_v1, %v21178_v54 }
 0x5a2   :  { %6754 = vmatprep.subr.bf16.mxu1 %v16753_v7  ;;  %v18874_v7 = vld [vmem:[#allocation13 + $0x30] sm:$0xff]  }
 0x5a3   :  { %v18126_v17 = vadd.f32 %v21160_v44, %v3494_v4  ;;  %v18883_v44 = vld [vmem:[#allocation13 + $0x180] sm:$0xff]  }
 0x5a4   :  { %6673 = vmatpush1.bf16.msra.mxu0 %v16750_v18  ;;  %v18128_v18 = vadd.f32 %v21162_v13, %v3502_v5  ;;  %v18884_v13 = vld [vmem:[#allocation13 + $0x148] sm:$0xff]   ;;  %v18909_v5 = vld [vmem:[#allocation13 + $0x1f8] sm:$0xff]  }
 0x5a5   :  { %6755 = vmatpush1.bf16.msra.mxu1 %v16752_v19  ;;  %6674 = vmatprep.subr.bf16.mxu0 %v16767_v20  ;;  %v18878_v19 = vld [vmem:[#allocation13 + $0x38] sm:$0xff]   ;;  %v6767_v20 = vmax.f32 %v18121_v9, 0.0 }
 0x5a6   :  { %6756 = vmatprep.subr.bf16.mxu1 %v16769_v10  ;;  %v18879_v10 = vld [vmem:[#allocation13 + $0xb8] sm:$0xff]  }
 0x5a8   :  { %6675 = vmatpush1.bf16.msra.mxu0 %v16766_v22  ;;  %v6772_v22 = vmax.f32 %v18126_v17, 0.0  ;;  %v18915_v17 = vld [vmem:[#allocation13 + $0x280] sm:$0xff]  }
 0x5a9   :  { %6757 = vmatpush1.bf16.msra.mxu1 %v16768_v23  ;;  %17891 = vmatprep.subr.bf16.mxu0 %v18848_v24  ;;  %v6774_v23 = vmax.f32 %v18128_v18, 0.0  ;;  %v6783_v24 = vpack.c.bf16 %v6767_v20, %v6767_v20  ;;  %v18916_v18 = vld [vmem:[#allocation13 + $0x248] sm:$0xff]  }
 0x5aa   :  { %17913 = vmatprep.subr.bf16.mxu1 %v18849_v25  ;;  %v6785_v25 = vpack.c.bf16 %v6769_v30, %v6769_v30  ;;  %v6788_v46 = vpack.c.bf16 %v6772_v22, %v6772_v22  ;;  %v18918_v20 = vld [vmem:[#allocation13 + $0x208] sm:$0xff]   ;;  %v18921_v30 = vld [vmem:[#allocation13 + $0x2d0] sm:$0xff]  }
 0x5ab   :  { %6677 = vmatmul.mubr.bf16.vlgmr.msra.gmra.mrb[20].mxu0 %v21122_v35  ;;  %v18923_v22 = vld [vmem:[#allocation13 + $0x290] sm:$0xff]  }
 0x5ac   :  { %6759 = vmatmul.mubr.bf16.vlgmr.msra.gmra.mrb[24].mxu1 %v21122_v35  ;;  %17892 = vmatpush3.bf16.msra.mxu0 %v18850_v56  ;;  %v18862_v35 = vld [vmem:[#allocation13 + $0x18] sm:$0xff]   ;;  %v6790_v56 = vpack.c.bf16 %v6774_v23, %v6774_v23 }
 0x5ad   :  { %7862 = vmatprep.mubr.bf16.mxu0 %v6784_v34  ;;  %17914 = vmatpush3.bf16.msra.mxu1 %v18851_v16  ;;  %v18886_v16 = vld [vmem:[#allocation13 + $0x108] sm:$0xff]   ;;  %v18888_v34 = vld [vmem:[#allocation13 + $0x150] sm:$0xff]   ;;  %v18924_v23 = vld [vmem:[#allocation13 + $0x258] sm:$0xff]  }
 0x5ae   :  { %7902 = vmatprep.mubr.bf16.mxu1 %v6786_v28  ;;  %17893 = vmatprep.subr.bf16.mxu0 %v18852_v27  ;;  %v18887_v27 = vld [vmem:[#allocation13 + $0x188] sm:$0xff]   ;;  %v18890_v28 = vld [vmem:[#allocation13 + $0x110] sm:$0xff]  }
 0x5af   :  { %17915 = vmatprep.subr.bf16.mxu1 %v18853_v36  ;;  %v18889_v36 = vld [vmem:[#allocation13 + $0x1d0] sm:$0xff]  }
 0x5b0   :  { %17894 = vmatpush3.bf16.msra.mxu0 %v18854_v29  ;;  %v18891_v29 = vld [vmem:[#allocation13 + $0x190] sm:$0xff]  }
 0x5b1   :  { %17916 = vmatpush3.bf16.msra.mxu1 %v18855_v32  ;;  %17895 = vmatprep.subr.bf16.mxu0 %v18856_v51  ;;  %v18892_v32 = vld [vmem:[#allocation13 + $0x158] sm:$0xff]  }
 0x5b2   :  { %17917 = vmatprep.subr.bf16.mxu1 %v18857_v33  ;;  %v18893_v51 = vld [vmem:[#allocation13 + $0x1d8] sm:$0xff]  }
 0x5b3   :  { %v18894_v33 = vld [vmem:[#allocation13 + $0x118] sm:$0xff]  }
 0x5b4   :  { %17896 = vmatpush3.bf16.msra.mxu0 %v18858_v37  ;;  %v18895_v37 = vld [vmem:[#allocation13 + $0x198] sm:$0xff]  }
 0x5b5   :  { %17918 = vmatpush3.bf16.msra.mxu1 %v18859_v38  ;;  %17897 = vmatprep.subr.bf16.mxu0 %v18860_v40  ;;  %v18896_v38 = vld [vmem:[#allocation13 + $0x160] sm:$0xff]  }
 0x5b6   :  { %17919 = vmatprep.subr.bf16.mxu1 %v18861_v41  ;;  %v18897_v40 = vld [vmem:[#allocation13 + $0x1e0] sm:$0xff]  }
 0x5b7   :  { %v18898_v41 = vld [vmem:[#allocation13 + $0x120] sm:$0xff]  }
 0x5b8   :  { %17898 = vmatpush3.bf16.msra.mxu0 %v18862_v35  ;;  %v21193_v35 = vsub.s32 4, %v21071_v55 }
 0x5b9   :  { %17920 = vmatpush3.bf16.msra.mxu1 %v18863_v42  ;;  %17899 = vmatprep.subr.bf16.mxu0 %v18864_v45  ;;  %v18899_v42 = vld [vmem:[#allocation13 + $0x1a0] sm:$0xff]   ;;  %v18900_v45 = vld [vmem:[#allocation13 + $0x168] sm:$0xff]  }
 0x5ba   :  { %17921 = vmatprep.subr.bf16.mxu1 %v18865_v47  ;;  %v21196_v47 = vsub.s32 6, %v21071_v55 }
 0x5bc   :  { %17900 = vmatpush3.bf16.msra.mxu0 %v18866_v48  ;;  %v18901_v48 = vld [vmem:[#allocation13 + $0x1e8] sm:$0xff]   ;;  %v3498_v60 = vrot.slane %v21164_v1, %v21196_v47 }
 0x5bd   :  { %17922 = vmatpush3.bf16.msra.mxu1 %v18867_v49  ;;  %17901 = vmatprep.subr.bf16.mxu0 %v18868_v50  ;;  %v18902_v49 = vld [vmem:[#allocation13 + $0x128] sm:$0xff]   ;;  %v3490_v50 = vrot.slane %v21164_v1, %v21193_v35  ;;  %v18911_v1 = vld [vmem:[#allocation13 + $0x1b8] sm:$0xff]  }
 0x5be   :  { %17923 = vmatprep.subr.bf16.mxu1 %v18869_v52  ;;  %v18903_v52 = vld [vmem:[#allocation13 + $0x1a8] sm:$0xff]   ;;  %v18127_v4 = vadd.f32 %v21158_v43, %v3498_v60 }
 0x5bf   :  { %v18125_v55 = vadd.f32 %v21156_v39, %v3490_v50  ;;  %v18914_v39 = vld [vmem:[#allocation13 + $0x200] sm:$0xff]  }
 0x5c0   :  { %17902 = vmatpush3.bf16.msra.mxu0 %v18870_v59  ;;  %v18904_v59 = vld [vmem:[#allocation13 + $0x170] sm:$0xff]  }
 0x5c1   :  { %17924 = vmatpush3.bf16.msra.mxu1 %v18871_v61  ;;  %17903 = vmatprep.subr.bf16.mxu0 %v18872_v62  ;;  %v18905_v61 = vld [vmem:[#allocation13 + $0x1f0] sm:$0xff]   ;;  %v6771_v9 = vmax.f32 %v18125_v55, 0.0 }
 0x5c2   :  { %17925 = vmatprep.subr.bf16.mxu1 %v18873_v2  ;;  %v18906_v62 = vld [vmem:[#allocation13 + $0x130] sm:$0xff]   ;;  %v18908_v2 = vld [vmem:[#allocation13 + $0x178] sm:$0xff]  }
 0x5c4   :  { %17904 = vmatpush3.bf16.msra.mxu0 %v18874_v7  ;;  %v18910_v7 = vld [vmem:[#allocation13 + $0x138] sm:$0xff]  }
 0x5c5   :  { %17926 = vmatpush3.bf16.msra.mxu1 %v18875_v11  ;;  %17905 = vmatprep.subr.bf16.mxu0 %v18876_v14  ;;  %v18912_v11 = vld [vmem:[#allocation13 + $0x240] sm:$0xff]   ;;  %v6773_v14 = vmax.f32 %v18127_v4, 0.0  ;;  %v18941_v4 = vld [vmem:[#allocation13 + $0x2f8] sm:$0xff]  }
 0x5c6   :  { %17927 = vmatprep.subr.bf16.mxu1 %v18877_v15  ;;  %v6787_v15 = vpack.c.bf16 %v6771_v9, %v6771_v9  ;;  %v18942_v9 = vld [vmem:[#allocation13 + $0x238] sm:$0xff]  }
 0x5c7   :  { %v6789_v43 = vpack.c.bf16 %v6773_v14, %v6773_v14  ;;  %v18943_v14 = vld [vmem:[#allocation13 + $0x2b8] sm:$0xff]  }
 0x5c8   :  { %17906 = vmatpush3.bf16.msra.mxu0 %v18878_v19  ;;  %v18917_v19 = vld [vmem:[#allocation13 + $0x2c8] sm:$0xff]  }
 0x5c9   :  { %17928 = vmatpush3.bf16.msra.mxu1 %v18879_v10  ;;  %17935 = vmatprep.subr.bf16.mxu0 %v18880_v8  ;;  %v18919_v10 = vld [vmem:[#allocation13 + $0x288] sm:$0xff]   ;;  %v18920_v8 = vld [vmem:[#allocation13 + $0x250] sm:$0xff]  }
 0x5ca   :  { %17957 = vmatprep.subr.bf16.mxu1 %v18881_v21  ;;  %v18922_v21 = vld [vmem:[#allocation13 + $0x210] sm:$0xff]  }
 0x5cb   :  { %7863 = vmatmul.mubr.bf16.vlgmr.msra.gmra.mrb[24].mxu0 %v6783_v24  ;;  %v18926_v24 = vld [vmem:[#allocation13 + $0x218] sm:$0xff]  }
 0x5cc   :  { %7903 = vmatmul.mubr.bf16.vlgmr.msra.gmra.mrb[28].mxu1 %v6785_v25  ;;  %17936 = vmatpush3.bf16.msra.mxu0 %v18882_v31  ;;  %v18925_v31 = vld [vmem:[#allocation13 + $0x2d8] sm:$0xff]   ;;  %v18928_v25 = vld [vmem:[#allocation13 + $0x260] sm:$0xff]  }
 0x5cd   :  { %7942 = vmatprep.mubr.bf16.mxu0 %v6788_v46  ;;  %17958 = vmatpush3.bf16.msra.mxu1 %v18883_v44  ;;  %v18927_v44 = vld [vmem:[#allocation13 + $0x298] sm:$0xff]   ;;  %v18930_v46 = vld [vmem:[#allocation13 + $0x220] sm:$0xff]  }
 0x5ce   :  { %7982 = vmatprep.mubr.bf16.mxu1 %v6790_v56  ;;  %17937 = vmatprep.subr.bf16.mxu0 %v18884_v13  ;;  %v18929_v13 = vld [vmem:[#allocation13 + $0x2e0] sm:$0xff]   ;;  %v21204_v56 = vld [vmem:[#allocation11 + $0x8] sm:$0xff] }
 0x5cf   :  { %17959 = vmatprep.subr.bf16.mxu1 %v18885_v26  ;;  %v18931_v26 = vld [vmem:[#allocation13 + $0x2a0] sm:$0xff]  }
 0x5d0   :  { %17938 = vmatpush3.bf16.msra.mxu0 %v18886_v16  ;;  %v18932_v16 = vld [vmem:[#allocation13 + $0x268] sm:$0xff]  }
 0x5d1   :  { %17960 = vmatpush3.bf16.msra.mxu1 %v18887_v27  ;;  %17939 = vmatprep.subr.bf16.mxu0 %v18888_v34  ;;  %v18933_v27 = vld [vmem:[#allocation13 + $0x2e8] sm:$0xff]   ;;  %v3510_v34 = vrot.slane %v21204_v56, %v21079_v58 }
 0x5d2   :  { %17961 = vmatprep.subr.bf16.mxu1 %v18889_v36  ;;  %v18934_v36 = vld [vmem:[#allocation13 + $0x228] sm:$0xff]  }
 0x5d4   :  { %17940 = vmatpush3.bf16.msra.mxu0 %v18890_v28  ;;  %v3506_v28 = vrot.slane %v21204_v56, %v21076_v57 }
 0x5d5   :  { %17962 = vmatpush3.bf16.msra.mxu1 %v18891_v29  ;;  %17941 = vmatprep.subr.bf16.mxu0 %v18892_v32  ;;  %v3518_v29 = vrot.slane %v21204_v56, %v21091_v6  ;;  %v18935_v32 = vld [vmem:[#allocation13 + $0x2a8] sm:$0xff]  }
 0x5d6   :  { %17963 = vmatprep.subr.bf16.mxu1 %v18893_v51  ;;  %v18936_v51 = vld [vmem:[#allocation13 + $0x270] sm:$0xff]  }
 0x5d8   :  { %17942 = vmatpush3.bf16.msra.mxu0 %v18894_v33 }
 0x5d9   :  { %17964 = vmatpush3.bf16.msra.mxu1 %v18895_v37  ;;  %17943 = vmatprep.subr.bf16.mxu0 %v18896_v38  ;;  %v3514_v37 = vrot.slane %v21204_v56, %v21088_v3  ;;  %v18937_v38 = vld [vmem:[#allocation13 + $0x2f0] sm:$0xff]  }
 0x5da   :  { %17965 = vmatprep.subr.bf16.mxu1 %v18897_v40 }
 0x5dc   :  { %17944 = vmatpush3.bf16.msra.mxu0 %v18898_v41 }
 0x5dd   :  { %17966 = vmatpush3.bf16.msra.mxu1 %v18899_v42  ;;  %17945 = vmatprep.subr.bf16.mxu0 %v18900_v45 }
 0x5de   :  { %17967 = vmatprep.subr.bf16.mxu1 %v18901_v48 }
 0x5e0   :  { %17946 = vmatpush3.bf16.msra.mxu0 %v18902_v49  ;;  %v18938_v49 = vld [vmem:[#allocation13 + $0x230] sm:$0xff]  }
 0x5e1   :  { %17968 = vmatpush3.bf16.msra.mxu1 %v18903_v52  ;;  %17947 = vmatprep.subr.bf16.mxu0 %v18904_v59 }
 0x5e2   :  { %17969 = vmatprep.subr.bf16.mxu1 %v18905_v61  ;;  %v18939_v61 = vld [vmem:[#allocation13 + $0x2b0] sm:$0xff]  }
 0x5e4   :  { %17948 = vmatpush3.bf16.msra.mxu0 %v18906_v62  ;;  %v18940_v62 = vld [vmem:[#allocation13 + $0x278] sm:$0xff]  }
 0x5e5   :  { %17970 = vmatpush3.bf16.msra.mxu1 %v18907_v63  ;;  %17949 = vmatprep.subr.bf16.mxu0 %v18908_v2 }
 0x5e6   :  { %17971 = vmatprep.subr.bf16.mxu1 %v18909_v5 }
 0x5e8   :  { %17950 = vmatpush3.bf16.msra.mxu0 %v18910_v7 }
 0x5e9   :  { %17972 = vmatpush3.bf16.msra.mxu1 %v18911_v1  ;;  %17979 = vmatprep.subr.bf16.mxu0 %v18912_v11 }
 0x5ea   :  { %18001 = vmatprep.subr.bf16.mxu1 %v18913_v12  ;;  %v18944_v12 = vld [vmem:[#allocation13 + $0x340] sm:$0xff]  }
 0x5eb   :  { %7943 = vmatmul.mubr.bf16.vlgmr.msra.gmra.mrb[28].mxu0 %v6787_v15  ;;  %v18945_v15 = vld [vmem:[#allocation13 + $0x3c0] sm:$0xff]  }
 0x5ec   :  { %7983 = vmatmul.mubr.bf16.vlgmr.msra.gmra.mrb[32].mxu1 %v6789_v43  ;;  %17980 = vmatpush3.bf16.msra.mxu0 %v18914_v39  ;;  %v18947_v43 = vld [vmem:[#allocation13 + $0x380] sm:$0xff]  }
 0x5ed   :  { %18002 = vmatpush3.bf16.msra.mxu1 %v18915_v17  ;;  %17981 = vmatprep.subr.bf16.mxu0 %v18916_v18  ;;  %v18946_v17 = vld [vmem:[#allocation13 + $0x300] sm:$0xff]  }
 0x5ee   :  { %18003 = vmatprep.subr.bf16.mxu1 %v18917_v19  ;;  %v18948_v19 = vld [vmem:[#allocation13 + $0x348] sm:$0xff]  }
 0x5f0   :  { %17982 = vmatpush3.bf16.msra.mxu0 %v18918_v20 }
 0x5f1   :  { %18004 = vmatpush3.bf16.msra.mxu1 %v18919_v10  ;;  %17983 = vmatprep.subr.bf16.mxu0 %v18920_v8  ;;  %v18949_v10 = vld [vmem:[#allocation13 + $0x3c8] sm:$0xff]  }
 0x5f2   :  { %18005 = vmatprep.subr.bf16.mxu1 %v18921_v30  ;;  %v18950_v8 = vld [vmem:[#allocation13 + $0x308] sm:$0xff]  }
 0x5f3   :  { %v18951_v30 = vld [vmem:[#allocation13 + $0x388] sm:$0xff]  }
 0x5f4   :  { %17984 = vmatpush3.bf16.msra.mxu0 %v18922_v21  ;;  %v18952_v21 = vld [vmem:[#allocation13 + $0x350] sm:$0xff]  }
 0x5f5   :  { %18006 = vmatpush3.bf16.msra.mxu1 %v18923_v22  ;;  %17985 = vmatprep.subr.bf16.mxu0 %v18924_v23  ;;  %v18953_v22 = vld [vmem:[#allocation13 + $0x3d0] sm:$0xff]  }
 0x5f6   :  { %18007 = vmatprep.subr.bf16.mxu1 %v18925_v31  ;;  %v18954_v23 = vld [vmem:[#allocation13 + $0x310] sm:$0xff]  }
 0x5f7   :  { %v18955_v31 = vld [vmem:[#allocation13 + $0x390] sm:$0xff]  }
 0x5f8   :  { %17986 = vmatpush3.bf16.msra.mxu0 %v18926_v24  ;;  %v18956_v24 = vld [vmem:[#allocation13 + $0x358] sm:$0xff]  }
 0x5f9   :  { %18008 = vmatpush3.bf16.msra.mxu1 %v18927_v44  ;;  %17987 = vmatprep.subr.bf16.mxu0 %v18928_v25  ;;  %v18957_v44 = vld [vmem:[#allocation13 + $0x3d8] sm:$0xff]  }
 0x5fa   :  { %18009 = vmatprep.subr.bf16.mxu1 %v18929_v13  ;;  %v18958_v25 = vld [vmem:[#allocation13 + $0x318] sm:$0xff]  }
 0x5fb   :  { %v18959_v13 = vld [vmem:[#allocation13 + $0x398] sm:$0xff]  }
 0x5fc   :  { %17988 = vmatpush3.bf16.msra.mxu0 %v18930_v46  ;;  %v18960_v46 = vld [vmem:[#allocation13 + $0x360] sm:$0xff]  }
 0x5fd   :  { %18010 = vmatpush3.bf16.msra.mxu1 %v18931_v26  ;;  %17989 = vmatprep.subr.bf16.mxu0 %v18932_v16  ;;  %v18961_v26 = vld [vmem:[#allocation13 + $0x3e0] sm:$0xff]  }
 0x5fe   :  { %v6514_v33 = vpop.f32.mrb[16].mxu0  ;;  %18011 = vmatprep.subr.bf16.mxu1 %v18933_v27  ;;  %v18962_v16 = vld [vmem:[#allocation13 + $0x320] sm:$0xff]  }
 0x5ff   :  { %v6596_v40 = vpop.f32.mrb[20].mxu1  ;;  %v6516_v41 = vpop.f32.mrb[17].mxu0  ;;  %v18129_v50 = vadd.f32 %v6514_v33, %v3506_v28  ;;  %v18963_v27 = vld [vmem:[#allocation13 + $0x3a0] sm:$0xff]   ;;  %v18966_v28 = vld [vmem:[#allocation13 + $0x328] sm:$0xff]   ;;  %v18970_v33 = vld [vmem:[#allocation13 + $0x330] sm:$0xff]  }
 0x600   :  { %v18130_v42 = vadd.f32 %v6516_v41, %v3510_v34  ;;  %v6598_v45 = vpop.f32.mrb[21].mxu1  ;;  %v6518_v48 = vpop.f32.mrb[18].mxu0  ;;  %17990 = vmatpush3.bf16.msra.mxu0 %v18934_v36  ;;  %v18131_v55 = vadd.f32 %v6596_v40, %v3514_v37  ;;  %v18964_v34 = vld [vmem:[#allocation13 + $0x368] sm:$0xff]   ;;  %v18971_v37 = vld [vmem:[#allocation13 + $0x3b0] sm:$0xff]   ;;  %v18973_v40 = vld [vmem:[#allocation13 + $0x3f8] sm:$0xff]  }
 0x601   :  { %v18132_v52 = vadd.f32 %v6598_v45, %v3518_v29  ;;  %v6600_v59 = vpop.f32.mrb[22].mxu1  ;;  %18012 = vmatpush3.bf16.msra.mxu1 %v18935_v32  ;;  %v6519_v60 = vpop.f32.mrb[19].mxu0  ;;  %17991 = vmatprep.subr.bf16.mxu0 %v18936_v51  ;;  %v6775_v1 = vmax.f32 %v18129_v50, 0.0  ;;  %v18965_v36 = vld [vmem:[#allocation13 + $0x3e8] sm:$0xff]   ;;  %v18968_v32 = vld [vmem:[#allocation13 + $0x370] sm:$0xff]   ;;  %v18974_v41 = vld [vmem:[#allocation13 + $0x338] sm:$0xff]  }
 0x602   :  { %v6776_v63 = vmax.f32 %v18130_v42, 0.0  ;;  %v6601_v2 = vpop.f32.mrb[23].mxu1  ;;  %18013 = vmatprep.subr.bf16.mxu1 %v18937_v38  ;;  %v6777_v39 = vmax.f32 %v18131_v55, 0.0  ;;  %v18967_v29 = vld [vmem:[#allocation13 + $0x3a8] sm:$0xff]   ;;  %v18969_v51 = vld [vmem:[#allocation13 + $0x3f0] sm:$0xff]   ;;  %v18972_v38 = vld [vmem:[#allocation13 + $0x378] sm:$0xff]   ;;  %v3522_v60 = vrot.slane %v21204_v56, %v21193_v35  ;;  %v3534_v55 = vrot.slane %v21204_v56, %v21178_v54 }
 0x603   :  { %v6778_v5 = vmax.f32 %v18132_v52, 0.0  ;;  %v6791_v18 = vpack.c.bf16 %v6775_v1, %v6775_v1  ;;  %v18975_v42 = vld [vmem:[#allocation13 + $0x3b8] sm:$0xff]   ;;  %v8152_v45 = vld [vmem:[#allocation16] sm:$0xff]  ;;  %v8161_v52 = vld [vmem:[#allocation16 + $0x48] sm:$0xff] }
 0x604   :  { %v6792_v7 = vpack.c.bf16 %v6776_v63, %v6776_v63  ;;  %17992 = vmatpush3.bf16.msra.mxu0 %v18938_v49  ;;  %v6793_v20 = vpack.c.bf16 %v6777_v39, %v6777_v39  ;;  %v8160_v48 = vld [vmem:[#allocation16 + $0x40] sm:$0xff]  ;;  %v8153_v49 = vld [vmem:[#allocation16 + $0x8] sm:$0xff] }
 0x605   :  { %v6794_v11 = vpack.c.bf16 %v6778_v5, %v6778_v5  ;;  %18014 = vmatpush3.bf16.msra.mxu1 %v18939_v61  ;;  %17993 = vmatprep.subr.bf16.mxu0 %v18940_v62  ;;  %v16900_v50 = vcombine.high %v8152_v45, %v8160_v48  ;;  %v16902_v59 = vcombine.high %v8153_v49, %v8161_v52 }
 0x606   :  { %8022 = vmatprep.mubr.bf16.mxu0 %v6792_v7  ;;  %18015 = vmatprep.subr.bf16.mxu1 %v18941_v4  ;;  %v3530_v61 = vrot.slane %v21204_v56, %v21196_v47  ;;  %v3526_v62 = vrot.slane %v21204_v56, %v21175_v53  ;;  %v8177_v56 = vld [vmem:[#allocation16 + $0xc8] sm:$0xff] }
 0x607   :  { %8062 = vmatprep.mubr.bf16.mxu1 %v6794_v11 }
 0x608   :  { %17994 = vmatpush3.bf16.msra.mxu0 %v18942_v9 }
 0x609   :  { %18016 = vmatpush3.bf16.msra.mxu1 %v18943_v14  ;;  %18023 = vmatprep.subr.bf16.mxu0 %v18944_v12 }
 0x60a   :  { %18045 = vmatprep.subr.bf16.mxu1 %v18945_v15 }
 0x60b   :  { %8023 = vmatmul.mubr.bf16.vlgmr.msra.gmra.mrb[32].mxu0 %v6791_v18 }
 0x60c   :  { %8063 = vmatmul.mubr.bf16.vlgmr.msra.gmra.mrb[36].mxu1 %v6793_v20  ;;  %18024 = vmatpush3.bf16.msra.mxu0 %v18946_v17  ;;  %v8176_v20 = vld [vmem:[#allocation16 + $0xc0] sm:$0xff] }
 0x60d   :  { %18046 = vmatpush3.bf16.msra.mxu1 %v18947_v43  ;;  %18025 = vmatprep.subr.bf16.mxu0 %v18948_v19  ;;  %v8168_v19 = vld [vmem:[#allocation16 + $0x80] sm:$0xff] }
 0x60e   :  { %18047 = vmatprep.subr.bf16.mxu1 %v18949_v10 }
 0x610   :  { %18026 = vmatpush3.bf16.msra.mxu0 %v18950_v8  ;;  %v8169_v8 = vld [vmem:[#allocation16 + $0x88] sm:$0xff] }
 0x611   :  { %18048 = vmatpush3.bf16.msra.mxu1 %v18951_v30  ;;  %18027 = vmatprep.subr.bf16.mxu0 %v18952_v21  ;;  %v16899_v21 = vcombine.low %v8152_v45, %v8160_v48  ;;  %v8224_v45 = vld [vmem:[#allocation16 + $0x240] sm:$0xff]  ;;  %v8217_v48 = vld [vmem:[#allocation16 + $0x208] sm:$0xff] }
 0x612   :  { %18049 = vmatprep.subr.bf16.mxu1 %v18953_v22 }
 0x614   :  { %18028 = vmatpush3.bf16.msra.mxu0 %v18954_v23 }
 0x615   :  { %18050 = vmatpush3.bf16.msra.mxu1 %v18955_v31  ;;  %18029 = vmatprep.subr.bf16.mxu0 %v18956_v24  ;;  %v16901_v31 = vcombine.low %v8153_v49, %v8161_v52  ;;  %v16916_v24 = vcombine.high %v8168_v19, %v8176_v20  ;;  %v8225_v49 = vld [vmem:[#allocation16 + $0x248] sm:$0xff] }
 0x616   :  { %18051 = vmatprep.subr.bf16.mxu1 %v18957_v44 }
 0x618   :  { %18030 = vmatpush3.bf16.msra.mxu0 %v18958_v25  ;;  %v16918_v25 = vcombine.high %v8169_v8, %v8177_v56 }
 0x619   :  { %18052 = vmatpush3.bf16.msra.mxu1 %v18959_v13  ;;  %18031 = vmatprep.subr.bf16.mxu0 %v18960_v46  ;;  %v8184_v13 = vld [vmem:[#allocation16 + $0x100] sm:$0xff] }
 0x61a   :  { %18053 = vmatprep.subr.bf16.mxu1 %v18961_v26  ;;  %v8192_v46 = vld [vmem:[#allocation16 + $0x140] sm:$0xff]  ;;  %v8185_v26 = vld [vmem:[#allocation16 + $0x108] sm:$0xff] }
 0x61c   :  { %18032 = vmatpush3.bf16.msra.mxu0 %v18962_v16  ;;  %v8193_v16 = vld [vmem:[#allocation16 + $0x148] sm:$0xff] }
 0x61d   :  { %18054 = vmatpush3.bf16.msra.mxu1 %v18963_v27  ;;  %18033 = vmatprep.subr.bf16.mxu0 %v18964_v34  ;;  %v16915_v27 = vcombine.low %v8168_v19, %v8176_v20  ;;  %v16917_v34 = vcombine.low %v8169_v8, %v8177_v56 }
 0x61e   :  { %18055 = vmatprep.subr.bf16.mxu1 %v18965_v36  ;;  %v16932_v36 = vcombine.high %v8184_v13, %v8192_v46 }
 0x620   :  { %18034 = vmatpush3.bf16.msra.mxu0 %v18966_v28  ;;  %v16934_v28 = vcombine.high %v8185_v26, %v8193_v16 }
 0x621   :  { %18056 = vmatpush3.bf16.msra.mxu1 %v18967_v29  ;;  %18035 = vmatprep.subr.bf16.mxu0 %v18968_v32  ;;  %v8200_v29 = vld [vmem:[#allocation16 + $0x180] sm:$0xff] }
 0x622   :  { %18057 = vmatprep.subr.bf16.mxu1 %v18969_v51  ;;  %v8208_v32 = vld [vmem:[#allocation16 + $0x1c0] sm:$0xff]  ;;  %v8201_v51 = vld [vmem:[#allocation16 + $0x188] sm:$0xff] }
 0x624   :  { %18036 = vmatpush3.bf16.msra.mxu0 %v18970_v33  ;;  %v8209_v33 = vld [vmem:[#allocation16 + $0x1c8] sm:$0xff] }
 0x625   :  { %18058 = vmatpush3.bf16.msra.mxu1 %v18971_v37  ;;  %18037 = vmatprep.subr.bf16.mxu0 %v18972_v38  ;;  %v16931_v37 = vcombine.low %v8184_v13, %v8192_v46  ;;  %v16933_v38 = vcombine.low %v8185_v26, %v8193_v16  ;;  %v16949_v52 = vcombine.low %v8201_v51, %v8209_v33 }
 0x626   :  { %18059 = vmatprep.subr.bf16.mxu1 %v18973_v40  ;;  %v16948_v40 = vcombine.high %v8200_v29, %v8208_v32 }
 0x628   :  { %18038 = vmatpush3.bf16.msra.mxu0 %v18974_v41  ;;  %v16950_v41 = vcombine.high %v8201_v51, %v8209_v33 }
 0x629   :  { %18060 = vmatpush3.bf16.msra.mxu1 %v18975_v42  ;;  %9004 = vmatprep.subr.bf16.mxu0 %v16900_v50  ;;  %v8216_v42 = vld [vmem:[#allocation16 + $0x200] sm:$0xff]  ;;  %v16947_v50 = vcombine.low %v8200_v29, %v8208_v32  ;;  %v8257_v29 = vld [vmem:[#allocation16 + $0x348] sm:$0xff] }
 0x62a   :  { %9045 = vmatprep.subr.bf16.mxu1 %v16902_v59  ;;  %v16964_v59 = vcombine.high %v8216_v42, %v8224_v45 }
 0x67e   :  { %v6678_v63 = vpop.f32.mrb[20].mxu0 }
 0x67f   :  { %v18133_v2 = vadd.f32 %v6678_v63, %v3522_v60  ;;  %v6760_v4 = vpop.f32.mrb[24].mxu1  ;;  %v6680_v5 = vpop.f32.mrb[21].mxu0  ;;  %v16966_v60 = vcombine.high %v8217_v48, %v8225_v49  ;;  %v8241_v63 = vld [vmem:[#allocation16 + $0x2c8] sm:$0xff] }
 0x680   :  { %v18135_v7 = vadd.f32 %v6760_v4, %v3530_v61  ;;  %v18134_v9 = vadd.f32 %v6680_v5, %v3526_v62  ;;  %v6762_v1 = vpop.f32.mrb[25].mxu1  ;;  %v6682_v11 = vpop.f32.mrb[22].mxu0  ;;  %v8232_v61 = vld [vmem:[#allocation16 + $0x280] sm:$0xff]  ;;  %v16965_v4 = vcombine.low %v8217_v48, %v8225_v49  ;;  %v8273_v49 = vld [vmem:[#allocation16 + $0x3c8] sm:$0xff] }
 0x681   :  { %v6779_v14 = vmax.f32 %v18133_v2, 0.0  ;;  %v18136_v12 = vadd.f32 %v6762_v1, %v3534_v55  ;;  %v6764_v39 = vpop.f32.mrb[26].mxu1  ;;  %v6683_v15 = vpop.f32.mrb[23].mxu0  ;;  %v8240_v62 = vld [vmem:[#allocation16 + $0x2c0] sm:$0xff]  ;;  %v8233_v55 = vld [vmem:[#allocation16 + $0x288] sm:$0xff]  ;;  %v16963_v2 = vcombine.low %v8216_v42, %v8224_v45 }
 0x682   :  { %v6781_v17 = vmax.f32 %v18135_v7, 0.0  ;;  %v6780_v18 = vmax.f32 %v18134_v9, 0.0  ;;  %v6765_v43 = vpop.f32.mrb[27].mxu1  ;;  %v16980_v5 = vcombine.high %v8232_v61, %v8240_v62  ;;  %v16982_v7 = vcombine.high %v8233_v55, %v8241_v63 }
 0x683   :  { %v6782_v10 = vmax.f32 %v18136_v12, 0.0  ;;  %v6795_v22 = vpack.c.bf16 %v6779_v14, %v6779_v14  ;;  %v16979_v9 = vcombine.low %v8232_v61, %v8240_v62  ;;  %v16981_v1 = vcombine.low %v8233_v55, %v8241_v63  ;;  %v16770_v12 = vld [vmem:[#allocation14] ss:$0 sm:$0xff] }
 0x684   :  { %v6796_v30 = vpack.c.bf16 %v6780_v18, %v6780_v18  ;;  %v6797_v44 = vpack.c.bf16 %v6781_v17, %v6781_v17 }
 0x685   :  { %v6798_v23 = vpack.c.bf16 %v6782_v10, %v6782_v10 }
 0x686   :  { %8102 = vmatprep.mubr.bf16.mxu0 %v6796_v30 }
 0x687   :  { %8142 = vmatprep.mubr.bf16.mxu1 %v6798_v23  ;;  %8103 = vmatmul.mubr.bf16.vlgmr.msra.gmra.mrb[36].mxu0 %v6795_v22 }
 0x688   :  { %8143 = vmatmul.mubr.bf16.vlgmr.msra.gmra.mrb[40].mxu1 %v6797_v44  ;;  %9005 = vmatpush1.bf16.msra.mxu0 %v16899_v21 }
 0x689   :  { %9046 = vmatpush1.bf16.msra.mxu1 %v16901_v31  ;;  %9006 = vmatprep.subr.bf16.mxu0 %v16916_v24 }
 0x68a   :  { %9047 = vmatprep.subr.bf16.mxu1 %v16918_v25  ;;  %9036 = vmatprep.mubr.bf16.mxu0 %v20698_v0 }
 0x68b   :  { %9077 = vmatprep.mubr.bf16.mxu1 %v20698_v0 }
 0x68c   :  { %9007 = vmatpush1.bf16.msra.mxu0 %v16915_v27  ;;  %v8248_v27 = vld [vmem:[#allocation16 + $0x300] sm:$0xff] }
 0x68d   :  { %9048 = vmatpush1.bf16.msra.mxu1 %v16917_v34  ;;  %9008 = vmatprep.subr.bf16.mxu0 %v16932_v36  ;;  %v8256_v34 = vld [vmem:[#allocation16 + $0x340] sm:$0xff]  ;;  %v8249_v36 = vld [vmem:[#allocation16 + $0x308] sm:$0xff] }
 0x68e   :  { %9049 = vmatprep.subr.bf16.mxu1 %v16934_v28  ;;  %v16996_v28 = vcombine.high %v8248_v27, %v8256_v34  ;;  %v16995_v32 = vcombine.low %v8248_v27, %v8256_v34  ;;  %v16997_v51 = vcombine.low %v8249_v36, %v8257_v29  ;;  %v16998_v33 = vcombine.high %v8249_v36, %v8257_v29  ;;  %v8186_v27 = vld [vmem:[#allocation16 + $0x110] sm:$0xff]  ;;  %v8187_v36 = vld [vmem:[#allocation16 + $0x118] sm:$0xff] }
 0x68f   :  { %v8194_v34 = vld [vmem:[#allocation16 + $0x150] sm:$0xff] }
 0x690   :  { %9009 = vmatpush1.bf16.msra.mxu0 %v16931_v37 }
 0x691   :  { %9050 = vmatpush1.bf16.msra.mxu1 %v16933_v38  ;;  %9010 = vmatprep.subr.bf16.mxu0 %v16948_v40  ;;  %v8264_v38 = vld [vmem:[#allocation16 + $0x380] sm:$0xff] }
 0x692   :  { %9051 = vmatprep.subr.bf16.mxu1 %v16950_v41  ;;  %v8272_v40 = vld [vmem:[#allocation16 + $0x3c0] sm:$0xff]  ;;  %v8265_v41 = vld [vmem:[#allocation16 + $0x388] sm:$0xff] }
 0x693   :  { %v17012_v48 = vcombine.high %v8264_v38, %v8272_v40  ;;  %v17013_v61 = vcombine.low %v8265_v41, %v8273_v49  ;;  %v17014_v62 = vcombine.high %v8265_v41, %v8273_v49  ;;  %v8211_v41 = vld [vmem:[#allocation16 + $0x1d8] sm:$0xff] }
 0x694   :  { %9011 = vmatpush1.bf16.msra.mxu0 %v16947_v50 }
 0x695   :  { %9052 = vmatpush1.bf16.msra.mxu1 %v16949_v52  ;;  %9012 = vmatprep.subr.bf16.mxu0 %v16964_v59 }
 0x696   :  { %9053 = vmatprep.subr.bf16.mxu1 %v16966_v60  ;;  %v17011_v60 = vcombine.low %v8264_v38, %v8272_v40  ;;  %v8210_v38 = vld [vmem:[#allocation16 + $0x1d0] sm:$0xff]  ;;  %v8203_v40 = vld [vmem:[#allocation16 + $0x198] sm:$0xff] }
 0x697   :  { %v16954_v49 = vcombine.high %v8203_v40, %v8211_v41 }
 0x698   :  { %9013 = vmatpush1.bf16.msra.mxu0 %v16963_v2 }
 0x699   :  { %9054 = vmatpush1.bf16.msra.mxu1 %v16965_v4  ;;  %9014 = vmatprep.subr.bf16.mxu0 %v16980_v5 }
 0x69a   :  { %9055 = vmatprep.subr.bf16.mxu1 %v16982_v7  ;;  %v8154_v7 = vld [vmem:[#allocation16 + $0x10] sm:$0xff] }
 0x69c   :  { %9015 = vmatpush1.bf16.msra.mxu0 %v16979_v9  ;;  %v8162_v9 = vld [vmem:[#allocation16 + $0x50] sm:$0xff] }
 0x69d   :  { %9056 = vmatpush1.bf16.msra.mxu1 %v16981_v1  ;;  %9016 = vmatprep.subr.bf16.mxu0 %v16996_v28  ;;  %v8155_v1 = vld [vmem:[#allocation16 + $0x18] sm:$0xff] }
 0x69e   :  { %v17907_v11 = vpop.f32.mrb[24].mxu0  ;;  %9057 = vmatprep.subr.bf16.mxu1 %v16998_v33  ;;  %v8195_v28 = vld [vmem:[#allocation16 + $0x158] sm:$0xff] }
 0x69f   :  { %v17929_v14 = vpop.f32.mrb[28].mxu1  ;;  %v17908_v39 = vpop.f32.mrb[25].mxu0  ;;  %v16938_v33 = vcombine.high %v8187_v36, %v8195_v28 }
 0x6a0   :  { %v17909_v15 = vadd.f32 %v17908_v39, %v17907_v11  ;;  %v17930_v17 = vpop.f32.mrb[29].mxu1  ;;  %v17910_v18 = vpop.f32.mrb[26].mxu0  ;;  %9017 = vmatpush1.bf16.msra.mxu0 %v16995_v32  ;;  %v16903_v11 = vcombine.low %v8154_v7, %v8162_v9 }
 0x6a1   :  { %v17931_v43 = vadd.f32 %v17930_v17, %v17929_v14  ;;  %v17932_v19 = vpop.f32.mrb[30].mxu1  ;;  %v17911_v20 = vpop.f32.mrb[27].mxu0  ;;  %9058 = vmatpush1.bf16.msra.mxu1 %v16997_v51  ;;  %9018 = vmatprep.subr.bf16.mxu0 %v17012_v48  ;;  %v16904_v14 = vcombine.high %v8154_v7, %v8162_v9  ;;  %v16936_v51 = vcombine.high %v8186_v27, %v8194_v34  ;;  %v8243_v7 = vld [vmem:[#allocation16 + $0x2d8] sm:$0xff] }
 0x6a2   :  { %v7865_v10 = vadd.f32 %v17909_v15, %v16770_v12  ;;  %v17933_v8 = vpop.f32.mrb[31].mxu1  ;;  %9059 = vmatprep.subr.bf16.mxu1 %v17014_v62  ;;  %v8163_v12 = vld [vmem:[#allocation16 + $0x58] sm:$0xff]  ;;  %v16953_v62 = vcombine.low %v8203_v40, %v8211_v41  ;;  %v8188_v40 = vld [vmem:[#allocation16 + $0x120] sm:$0xff] }
 0x6a3   :  { %v16905_v15 = vcombine.low %v8155_v1, %v8163_v12  ;;  %v16906_v17 = vcombine.high %v8155_v1, %v8163_v12  ;;  %v8250_v12 = vld [vmem:[#allocation16 + $0x310] sm:$0xff]  ;;  %v8196_v41 = vld [vmem:[#allocation16 + $0x160] sm:$0xff] }
 0x6a4   :  { %v7905_v56 = vadd.f32 %v17931_v43, %v7865_v10  ;;  %9019 = vmatpush1.bf16.msra.mxu0 %v17011_v60  ;;  %v8227_v60 = vld [vmem:[#allocation16 + $0x258] sm:$0xff] }
 0x6a5   :  { %9060 = vmatpush1.bf16.msra.mxu1 %v17013_v61  ;;  %9086 = vmatprep.subr.bf16.mxu0 %v16904_v14 }
 0x6a6   :  { %9127 = vmatprep.subr.bf16.mxu1 %v16906_v17  ;;  %v8259_v17 = vld [vmem:[#allocation16 + $0x358] sm:$0xff] }
 0x6be   :  { %v17951_v30 = vpop.f32.mrb[28].mxu0 }
 0x6bf   :  { %v17973_v21 = vpop.f32.mrb[32].mxu1  ;;  %v17952_v22 = vpop.f32.mrb[29].mxu0 }
 0x6c0   :  { %v17953_v23 = vadd.f32 %v17952_v22, %v17951_v30  ;;  %v17974_v31 = vpop.f32.mrb[33].mxu1  ;;  %v17954_v24 = vpop.f32.mrb[30].mxu0 }
 0x6c1   :  { %v17975_v44 = vadd.f32 %v17974_v31, %v17973_v21  ;;  %v17976_v25 = vpop.f32.mrb[34].mxu1  ;;  %v17955_v13 = vpop.f32.mrb[31].mxu0  ;;  %v8170_v31 = vld [vmem:[#allocation16 + $0x90] sm:$0xff] }
 0x6c2   :  { %v7945_v46 = vadd.f32 %v17953_v23, %v7905_v56  ;;  %v17977_v26 = vpop.f32.mrb[35].mxu1  ;;  %v8178_v24 = vld [vmem:[#allocation16 + $0xd0] sm:$0xff]  ;;  %v8179_v25 = vld [vmem:[#allocation16 + $0xd8] sm:$0xff] }
 0x6c3   :  { %v16920_v26 = vcombine.high %v8170_v31, %v8178_v24  ;;  %v16919_v29 = vcombine.low %v8170_v31, %v8178_v24  ;;  %v8156_v24 = vld [vmem:[#allocation16 + $0x20] sm:$0xff] }
 0x6c4   :  { %v7985_v16 = vadd.f32 %v17975_v44, %v7945_v46  ;;  %v8171_v44 = vld [vmem:[#allocation16 + $0x98] sm:$0xff] }
 0x6c5   :  { %v16921_v32 = vcombine.low %v8171_v44, %v8179_v25 }
 0x6de   :  { %v17995_v37 = vpop.f32.mrb[32].mxu0 }
 0x6df   :  { %v18017_v42 = vpop.f32.mrb[36].mxu1  ;;  %v17996_v45 = vpop.f32.mrb[33].mxu0 }
 0x6e0   :  { %v17997_v50 = vadd.f32 %v17996_v45, %v17995_v37  ;;  %v18018_v52 = vpop.f32.mrb[37].mxu1  ;;  %v17998_v59 = vpop.f32.mrb[34].mxu0  ;;  %v8202_v37 = vld [vmem:[#allocation16 + $0x190] sm:$0xff]  ;;  %v16937_v45 = vcombine.low %v8187_v36, %v8195_v28  ;;  %v8172_v36 = vld [vmem:[#allocation16 + $0xa0] sm:$0xff] }
 0x6e1   :  { %v18019_v55 = vadd.f32 %v18018_v52, %v18017_v42  ;;  %v18020_v63 = vpop.f32.mrb[38].mxu1  ;;  %v17999_v2 = vpop.f32.mrb[35].mxu0  ;;  %v16935_v42 = vcombine.low %v8186_v27, %v8194_v34  ;;  %v16952_v48 = vcombine.high %v8202_v37, %v8210_v38  ;;  %v8226_v52 = vld [vmem:[#allocation16 + $0x250] sm:$0xff]  ;;  %v8219_v59 = vld [vmem:[#allocation16 + $0x218] sm:$0xff]  ;;  %v16951_v61 = vcombine.low %v8202_v37, %v8210_v38  ;;  %v8180_v28 = vld [vmem:[#allocation16 + $0xe0] sm:$0xff] }
 0x6e2   :  { %v8025_v4 = vadd.f32 %v17997_v50, %v7985_v16  ;;  %v18021_v5 = vpop.f32.mrb[39].mxu1  ;;  %v16922_v16 = vcombine.high %v8171_v44, %v8179_v25  ;;  %v8218_v50 = vld [vmem:[#allocation16 + $0x210] sm:$0xff]  ;;  %v16970_v63 = vcombine.high %v8219_v59, %v8227_v60  ;;  %v16969_v1 = vcombine.low %v8219_v59, %v8227_v60  ;;  %v8164_v44 = vld [vmem:[#allocation16 + $0x60] sm:$0xff]  ;;  %v8157_v25 = vld [vmem:[#allocation16 + $0x28] sm:$0xff] }
 0x6e3   :  { %v8234_v2 = vld [vmem:[#allocation16 + $0x290] sm:$0xff]  ;;  %v8235_v5 = vld [vmem:[#allocation16 + $0x298] sm:$0xff]  ;;  %v16967_v9 = vcombine.low %v8218_v50, %v8226_v52  ;;  %v16908_v27 = vcombine.high %v8156_v24, %v8164_v44  ;;  %v16924_v37 = vcombine.high %v8172_v36, %v8180_v28  ;;  %v8204_v59 = vld [vmem:[#allocation16 + $0x1a0] sm:$0xff] }
 0x6e4   :  { %v8065_v39 = vadd.f32 %v18019_v55, %v8025_v4  ;;  %v16968_v55 = vcombine.high %v8218_v50, %v8226_v52  ;;  %v8242_v4 = vld [vmem:[#allocation16 + $0x2d0] sm:$0xff]  ;;  %v16986_v14 = vcombine.high %v8235_v5, %v8243_v7  ;;  %v16940_v50 = vcombine.high %v8188_v40, %v8196_v41  ;;  %v8212_v60 = vld [vmem:[#allocation16 + $0x1e0] sm:$0xff] }
 0x75a   :  { %v18039_v18 = vpop.f32.mrb[36].mxu0 }
 0x75b   :  { %v18061_v43 = vpop.f32.mrb[40].mxu1  ;;  %v18040_v19 = vpop.f32.mrb[37].mxu0 }
 0x75c   :  { %v18041_v20 = vadd.f32 %v18040_v19, %v18039_v18  ;;  %v18062_v10 = vpop.f32.mrb[41].mxu1  ;;  %v18042_v8 = vpop.f32.mrb[38].mxu0  ;;  %v16983_v18 = vcombine.low %v8234_v2, %v8242_v4 }
 0x75d   :  { %v18063_v56 = vadd.f32 %v18062_v10, %v18061_v43  ;;  %v18064_v30 = vpop.f32.mrb[42].mxu1  ;;  %v18043_v21 = vpop.f32.mrb[39].mxu0  ;;  %v16985_v43 = vcombine.low %v8235_v5, %v8243_v7  ;;  %v8266_v10 = vld [vmem:[#allocation16 + $0x390] sm:$0xff]  ;;  %v8220_v5 = vld [vmem:[#allocation16 + $0x220] sm:$0xff] }
 0x75e   :  { %v8105_v22 = vadd.f32 %v18041_v20, %v8065_v39  ;;  %v18065_v23 = vpop.f32.mrb[43].mxu1  ;;  %v8258_v39 = vld [vmem:[#allocation16 + $0x350] sm:$0xff]  ;;  %v8275_v30 = vld [vmem:[#allocation16 + $0x3d8] sm:$0xff]  ;;  %v8228_v7 = vld [vmem:[#allocation16 + $0x260] sm:$0xff] }
 0x75f   :  { %v17000_v19 = vcombine.high %v8250_v12, %v8258_v39  ;;  %v8274_v8 = vld [vmem:[#allocation16 + $0x3d0] sm:$0xff]  ;;  %v16999_v21 = vcombine.low %v8250_v12, %v8258_v39  ;;  %v16972_v12 = vcombine.high %v8220_v5, %v8228_v7 }
 0x760   :  { %v8145_v13 = vadd.f32 %v18063_v56, %v8105_v22  ;;  %v8267_v56 = vld [vmem:[#allocation16 + $0x398] sm:$0xff]  ;;  %v17016_v23 = vcombine.high %v8266_v10, %v8274_v8 }
 0x761   :  { %v17018_v31 = vcombine.high %v8267_v56, %v8275_v30 }
 0x762   :  { %v21224_v46 = vpack.c.bf16 %v8145_v13, %v8145_v13  ;;  %8150 = vst [vmem:[#allocation28] sm:$0xff] %v8145_v13  ;;  %v8165_v13 = vld [vmem:[#allocation16 + $0x68] sm:$0xff] }
 0x763   :  { %v16910_v34 = vcombine.high %v8157_v25, %v8165_v13 }
 0x764   :  { %9037 = vmatmul.mubr.bf16.vlgmr.msra.gmra.mrb[40].mxu0 %v21224_v46  ;;  %9078 = vmatmul.mubr.bf16.vlgmr.msra.gmra.mrb[44].mxu1 %v21224_v46 }
 0x765   :  { %9087 = vmatpush1.bf16.msra.mxu0 %v16903_v11  ;;  %9128 = vmatpush1.bf16.msra.mxu1 %v16905_v15  ;;  %v16984_v11 = vcombine.high %v8234_v2, %v8242_v4  ;;  %v8251_v15 = vld [vmem:[#allocation16 + $0x318] sm:$0xff]  ;;  %v16956_v2 = vcombine.high %v8204_v59, %v8212_v60 }
 0x766   :  { %9088 = vmatprep.subr.bf16.mxu0 %v16920_v26  ;;  %9129 = vmatprep.subr.bf16.mxu1 %v16922_v16  ;;  %v17002_v20 = vcombine.high %v8251_v15, %v8259_v17  ;;  %v17001_v22 = vcombine.low %v8251_v15, %v8259_v17  ;;  %v17015_v26 = vcombine.low %v8266_v10, %v8274_v8  ;;  %v8236_v15 = vld [vmem:[#allocation16 + $0x2a0] sm:$0xff] }
 0x767   :  { %9118 = vmatprep.mubr.bf16.mxu0 %v20698_v0  ;;  %9159 = vmatprep.mubr.bf16.mxu1 %v20698_v0  ;;  %v17017_v16 = vcombine.low %v8267_v56, %v8275_v30  ;;  %v8244_v17 = vld [vmem:[#allocation16 + $0x2e0] sm:$0xff] }
 0x768   :  { %v16988_v10 = vcombine.high %v8236_v15, %v8244_v17  ;;  %v8252_v56 = vld [vmem:[#allocation16 + $0x320] sm:$0xff] }
 0x769   :  { %9089 = vmatpush1.bf16.msra.mxu0 %v16919_v29  ;;  %9130 = vmatpush1.bf16.msra.mxu1 %v16921_v32  ;;  %v8173_v29 = vld [vmem:[#allocation16 + $0xa8] sm:$0xff]  ;;  %v8260_v30 = vld [vmem:[#allocation16 + $0x360] sm:$0xff] }
 0x76a   :  { %9090 = vmatprep.subr.bf16.mxu0 %v16936_v51  ;;  %9131 = vmatprep.subr.bf16.mxu1 %v16938_v33  ;;  %v8181_v32 = vld [vmem:[#allocation16 + $0xe8] sm:$0xff]  ;;  %v16907_v51 = vcombine.low %v8156_v24, %v8164_v44  ;;  %v16909_v33 = vcombine.low %v8157_v25, %v8165_v13  ;;  %v17004_v24 = vcombine.high %v8252_v56, %v8260_v30  ;;  %v8268_v25 = vld [vmem:[#allocation16 + $0x3a0] sm:$0xff] }
 0x76b   :  { %v16926_v38 = vcombine.high %v8173_v29, %v8181_v32  ;;  %v8276_v13 = vld [vmem:[#allocation16 + $0x3e0] sm:$0xff] }
 0x76d   :  { %9091 = vmatpush1.bf16.msra.mxu0 %v16935_v42  ;;  %9132 = vmatpush1.bf16.msra.mxu1 %v16937_v45  ;;  %v8189_v42 = vld [vmem:[#allocation16 + $0x128] sm:$0xff] }
 0x76e   :  { %9092 = vmatprep.subr.bf16.mxu0 %v16952_v48  ;;  %9133 = vmatprep.subr.bf16.mxu1 %v16954_v49  ;;  %v8197_v45 = vld [vmem:[#allocation16 + $0x168] sm:$0xff]  ;;  %v16923_v48 = vcombine.low %v8172_v36, %v8180_v28  ;;  %v16925_v49 = vcombine.low %v8173_v29, %v8181_v32  ;;  %v17020_v36 = vcombine.high %v8268_v25, %v8276_v13  ;;  %v8158_v29 = vld [vmem:[#allocation16 + $0x30] sm:$0xff] }
 0x76f   :  { %v16942_v52 = vcombine.high %v8189_v42, %v8197_v45  ;;  %v8166_v32 = vld [vmem:[#allocation16 + $0x70] sm:$0xff] }
 0x771   :  { %9093 = vmatpush1.bf16.msra.mxu0 %v16951_v61  ;;  %9134 = vmatpush1.bf16.msra.mxu1 %v16953_v62  ;;  %v8205_v61 = vld [vmem:[#allocation16 + $0x1a8] sm:$0xff] }
 0x772   :  { %9094 = vmatprep.subr.bf16.mxu0 %v16968_v55  ;;  %9135 = vmatprep.subr.bf16.mxu1 %v16970_v63  ;;  %v8213_v62 = vld [vmem:[#allocation16 + $0x1e8] sm:$0xff]  ;;  %v16939_v55 = vcombine.low %v8188_v40, %v8196_v41  ;;  %v16941_v63 = vcombine.low %v8189_v42, %v8197_v45  ;;  %v16912_v40 = vcombine.high %v8158_v29, %v8166_v32  ;;  %v8174_v42 = vld [vmem:[#allocation16 + $0xb0] sm:$0xff] }
 0x773   :  { %v16958_v4 = vcombine.high %v8205_v61, %v8213_v62  ;;  %v8182_v45 = vld [vmem:[#allocation16 + $0xf0] sm:$0xff] }
 0x775   :  { %9095 = vmatpush1.bf16.msra.mxu0 %v16967_v9  ;;  %9136 = vmatpush1.bf16.msra.mxu1 %v16969_v1  ;;  %v8221_v9 = vld [vmem:[#allocation16 + $0x228] sm:$0xff] }
 0x776   :  { %9096 = vmatprep.subr.bf16.mxu0 %v16984_v11  ;;  %9137 = vmatprep.subr.bf16.mxu1 %v16986_v14  ;;  %v8229_v1 = vld [vmem:[#allocation16 + $0x268] sm:$0xff]  ;;  %v16955_v11 = vcombine.low %v8204_v59, %v8212_v60  ;;  %v16957_v14 = vcombine.low %v8205_v61, %v8213_v62  ;;  %v16928_v59 = vcombine.high %v8174_v42, %v8182_v45  ;;  %v8190_v61 = vld [vmem:[#allocation16 + $0x130] sm:$0xff] }
 0x777   :  { %v16974_v39 = vcombine.high %v8221_v9, %v8229_v1  ;;  %v8198_v62 = vld [vmem:[#allocation16 + $0x170] sm:$0xff] }
 0x779   :  { %9097 = vmatpush1.bf16.msra.mxu0 %v16983_v18  ;;  %9138 = vmatpush1.bf16.msra.mxu1 %v16985_v43  ;;  %v8237_v18 = vld [vmem:[#allocation16 + $0x2a8] sm:$0xff] }
 0x77a   :  { %9098 = vmatprep.subr.bf16.mxu0 %v17000_v19  ;;  %9139 = vmatprep.subr.bf16.mxu1 %v17002_v20  ;;  %v8245_v43 = vld [vmem:[#allocation16 + $0x2e8] sm:$0xff]  ;;  %v16971_v19 = vcombine.low %v8220_v5, %v8228_v7  ;;  %v16973_v20 = vcombine.low %v8221_v9, %v8229_v1  ;;  %v16944_v5 = vcombine.high %v8190_v61, %v8198_v62  ;;  %v8206_v9 = vld [vmem:[#allocation16 + $0x1b0] sm:$0xff] }
 0x77b   :  { %v16990_v8 = vcombine.high %v8237_v18, %v8245_v43  ;;  %v8214_v1 = vld [vmem:[#allocation16 + $0x1f0] sm:$0xff] }
 0x77d   :  { %9099 = vmatpush1.bf16.msra.mxu0 %v16999_v21  ;;  %9140 = vmatpush1.bf16.msra.mxu1 %v17001_v22  ;;  %v8253_v21 = vld [vmem:[#allocation16 + $0x328] sm:$0xff] }
 0x77e   :  { %9100 = vmatprep.subr.bf16.mxu0 %v17016_v23  ;;  %9141 = vmatprep.subr.bf16.mxu1 %v17018_v31  ;;  %v8261_v22 = vld [vmem:[#allocation16 + $0x368] sm:$0xff]  ;;  %v16987_v23 = vcombine.low %v8236_v15, %v8244_v17  ;;  %v16989_v31 = vcombine.low %v8237_v18, %v8245_v43  ;;  %v16960_v15 = vcombine.high %v8206_v9, %v8214_v1  ;;  %v8222_v18 = vld [vmem:[#allocation16 + $0x230] sm:$0xff] }
 0x77f   :  { %v17006_v44 = vcombine.high %v8253_v21, %v8261_v22  ;;  %v8230_v43 = vld [vmem:[#allocation16 + $0x270] sm:$0xff] }
 0x781   :  { %9101 = vmatpush1.bf16.msra.mxu0 %v17015_v26  ;;  %9142 = vmatpush1.bf16.msra.mxu1 %v17017_v16  ;;  %v8269_v26 = vld [vmem:[#allocation16 + $0x3a8] sm:$0xff] }
 0x782   :  { %9168 = vmatprep.subr.bf16.mxu0 %v16908_v27  ;;  %9209 = vmatprep.subr.bf16.mxu1 %v16910_v34  ;;  %v8277_v16 = vld [vmem:[#allocation16 + $0x3e8] sm:$0xff]  ;;  %v17003_v27 = vcombine.low %v8252_v56, %v8260_v30  ;;  %v17005_v34 = vcombine.low %v8253_v21, %v8261_v22  ;;  %v16976_v56 = vcombine.high %v8222_v18, %v8230_v43  ;;  %v8238_v30 = vld [vmem:[#allocation16 + $0x2b0] sm:$0xff]  ;;  %v8239_v22 = vld [vmem:[#allocation16 + $0x2b8] sm:$0xff] }
 0x783   :  { %v17022_v28 = vcombine.high %v8269_v26, %v8277_v16  ;;  %v8246_v21 = vld [vmem:[#allocation16 + $0x2f0] sm:$0xff] }
 0x784   :  { %9119 = vmatmul.mubr.bf16.vlgmr.msra.gmra.mrb[44].mxu0 %v21224_v46  ;;  %9160 = vmatmul.mubr.bf16.vlgmr.msra.gmra.mrb[48].mxu1 %v21224_v46 }
 0x785   :  { %9169 = vmatpush1.bf16.msra.mxu0 %v16907_v51  ;;  %9210 = vmatpush1.bf16.msra.mxu1 %v16909_v33  ;;  %v8159_v51 = vld [vmem:[#allocation16 + $0x38] sm:$0xff] }
 0x786   :  { %9170 = vmatprep.subr.bf16.mxu0 %v16924_v37  ;;  %9211 = vmatprep.subr.bf16.mxu1 %v16926_v38  ;;  %v8167_v33 = vld [vmem:[#allocation16 + $0x78] sm:$0xff]  ;;  %v17019_v37 = vcombine.low %v8268_v25, %v8276_v13  ;;  %v17021_v38 = vcombine.low %v8269_v26, %v8277_v16  ;;  %v8254_v13 = vld [vmem:[#allocation16 + $0x330] sm:$0xff] }
 0x787   :  { %9200 = vmatprep.mubr.bf16.mxu0 %v20698_v0  ;;  %9241 = vmatprep.mubr.bf16.mxu1 %v20698_v0  ;;  %v16914_v41 = vcombine.high %v8159_v51, %v8167_v33  ;;  %v8262_v26 = vld [vmem:[#allocation16 + $0x370] sm:$0xff]  ;;  %v8255_v16 = vld [vmem:[#allocation16 + $0x338] sm:$0xff] }
 0x789   :  { %9171 = vmatpush1.bf16.msra.mxu0 %v16923_v48  ;;  %9212 = vmatpush1.bf16.msra.mxu1 %v16925_v49  ;;  %v8175_v48 = vld [vmem:[#allocation16 + $0xb8] sm:$0xff] }
 0x78a   :  { %9172 = vmatprep.subr.bf16.mxu0 %v16940_v50  ;;  %9213 = vmatprep.subr.bf16.mxu1 %v16942_v52  ;;  %v8183_v49 = vld [vmem:[#allocation16 + $0xf8] sm:$0xff]  ;;  %v16911_v50 = vcombine.low %v8158_v29, %v8166_v32  ;;  %v16913_v52 = vcombine.low %v8159_v51, %v8167_v33  ;;  %v8270_v32 = vld [vmem:[#allocation16 + $0x3b0] sm:$0xff] }
 0x78b   :  { %v16930_v60 = vcombine.high %v8175_v48, %v8183_v49  ;;  %v8278_v51 = vld [vmem:[#allocation16 + $0x3f0] sm:$0xff]  ;;  %v8271_v33 = vld [vmem:[#allocation16 + $0x3b8] sm:$0xff] }
 0x78d   :  { %9173 = vmatpush1.bf16.msra.mxu0 %v16939_v55  ;;  %9214 = vmatpush1.bf16.msra.mxu1 %v16941_v63  ;;  %v8191_v55 = vld [vmem:[#allocation16 + $0x138] sm:$0xff] }
 0x78e   :  { %9174 = vmatprep.subr.bf16.mxu0 %v16956_v2  ;;  %9215 = vmatprep.subr.bf16.mxu1 %v16958_v4  ;;  %v8199_v63 = vld [vmem:[#allocation16 + $0x178] sm:$0xff]  ;;  %v16927_v2 = vcombine.low %v8174_v42, %v8182_v45  ;;  %v16929_v4 = vcombine.low %v8175_v48, %v8183_v49  ;;  %v17023_v45 = vcombine.low %v8270_v32, %v8278_v51  ;;  %v18978_v49 = vld [vmem:[#allocation19 + $0x4] ss:$16 sps:$4 sm:$0xff]  }
 0x78f   :  { %v16946_v7 = vcombine.high %v8191_v55, %v8199_v63 }
 0x791   :  { %9175 = vmatpush1.bf16.msra.mxu0 %v16955_v11  ;;  %9216 = vmatpush1.bf16.msra.mxu1 %v16957_v14  ;;  %v8207_v11 = vld [vmem:[#allocation16 + $0x1b8] sm:$0xff] }
 0x792   :  { %9176 = vmatprep.subr.bf16.mxu0 %v16972_v12  ;;  %9217 = vmatprep.subr.bf16.mxu1 %v16974_v39  ;;  %v8215_v14 = vld [vmem:[#allocation16 + $0x1f8] sm:$0xff]  ;;  %v16943_v12 = vcombine.low %v8190_v61, %v8198_v62  ;;  %v16945_v39 = vcombine.low %v8191_v55, %v8199_v63  ;;  %v18982_v62 = vld [vmem:[#allocation19 + $0x20] ss:$16 sps:$4 sm:$0xff]   ;;  %v18990_v63 = vld [vmem:[#allocation19 + $0x44] ss:$16 sps:$4 sm:$0xff]  }
 0x793   :  { %v16962_v17 = vcombine.high %v8207_v11, %v8215_v14  ;;  %v18987_v61 = vld [vmem:[#allocation19 + $0x2c] ss:$16 sps:$4 sm:$0xff]   ;;  %v18985_v55 = vld [vmem:[#allocation19 + $0x28] ss:$16 sps:$4 sm:$0xff]  }
 0x795   :  { %9177 = vmatpush1.bf16.msra.mxu0 %v16971_v19  ;;  %9218 = vmatpush1.bf16.msra.mxu1 %v16973_v20  ;;  %v8223_v19 = vld [vmem:[#allocation16 + $0x238] sm:$0xff] }
 0x796   :  { %9178 = vmatprep.subr.bf16.mxu0 %v16988_v10  ;;  %9219 = vmatprep.subr.bf16.mxu1 %v16990_v8  ;;  %v8231_v20 = vld [vmem:[#allocation16 + $0x278] sm:$0xff]  ;;  %v16959_v10 = vcombine.low %v8206_v9, %v8214_v1  ;;  %v16961_v8 = vcombine.low %v8207_v11, %v8215_v14  ;;  %v18994_v1 = vld [vmem:[#allocation19 + $0x60] ss:$16 sps:$4 sm:$0xff]   ;;  %v19002_v11 = vld [vmem:[#allocation19 + $0x84] ss:$16 sps:$4 sm:$0xff]  }
 0x797   :  { %v18999_v9 = vld [vmem:[#allocation19 + $0x6c] ss:$16 sps:$4 sm:$0xff]  }
 0x798   :  { %v19005_v14 = vld [vmem:[#allocation19 + $0x8c] ss:$16 sps:$4 sm:$0xff]  }
 0x799   :  { %9179 = vmatpush1.bf16.msra.mxu0 %v16987_v23  ;;  %9220 = vmatpush1.bf16.msra.mxu1 %v16989_v31  ;;  %v8247_v23 = vld [vmem:[#allocation16 + $0x2f8] sm:$0xff]  ;;  %v16975_v31 = vcombine.low %v8222_v18, %v8230_v43  ;;  %v19006_v18 = vld [vmem:[#allocation19 + $0xa0] ss:$16 sps:$4 sm:$0xff]  }
 0x79a   :  { %9180 = vmatprep.subr.bf16.mxu0 %v17004_v24  ;;  %9221 = vmatprep.subr.bf16.mxu1 %v17006_v44  ;;  %v16977_v24 = vcombine.low %v8223_v19, %v8231_v20  ;;  %v16992_v44 = vcombine.high %v8238_v30, %v8246_v21  ;;  %v16994_v25 = vcombine.high %v8239_v22, %v8247_v23  ;;  %v19009_v43 = vld [vmem:[#allocation19 + $0xa8] ss:$16 sps:$4 sm:$0xff]  }
 0x79d   :  { %9181 = vmatpush1.bf16.msra.mxu0 %v17003_v27  ;;  %9222 = vmatpush1.bf16.msra.mxu1 %v17005_v34  ;;  %v8263_v27 = vld [vmem:[#allocation16 + $0x378] sm:$0xff]  ;;  %v16991_v34 = vcombine.low %v8238_v30, %v8246_v21  ;;  %v19018_v30 = vld [vmem:[#allocation19 + $0xe0] ss:$16 sps:$4 sm:$0xff]  }
 0x79e   :  { %9182 = vmatprep.subr.bf16.mxu0 %v17020_v36  ;;  %9223 = vmatprep.subr.bf16.mxu1 %v17022_v28  ;;  %v16993_v36 = vcombine.low %v8239_v22, %v8247_v23  ;;  %v17008_v28 = vcombine.high %v8254_v13, %v8262_v26  ;;  %v17010_v29 = vcombine.high %v8255_v16, %v8263_v27  ;;  %v19021_v21 = vld [vmem:[#allocation19 + $0xe8] ss:$16 sps:$4 sm:$0xff]   ;;  %v19026_v22 = vld [vmem:[#allocation19 + $0x104] ss:$16 sps:$4 sm:$0xff]   ;;  %v19029_v23 = vld [vmem:[#allocation19 + $0x10c] ss:$16 sps:$4 sm:$0xff]  }
 0x7a1   :  { %9183 = vmatpush1.bf16.msra.mxu0 %v17019_v37  ;;  %9224 = vmatpush1.bf16.msra.mxu1 %v17021_v38  ;;  %v8279_v37 = vld [vmem:[#allocation16 + $0x3f8] sm:$0xff]  ;;  %v17007_v38 = vcombine.low %v8254_v13, %v8262_v26  ;;  %v19030_v13 = vld [vmem:[#allocation19 + $0x120] ss:$16 sps:$4 sm:$0xff]  }
 0x7a2   :  { %9250 = vmatprep.subr.bf16.mxu0 %v16912_v40  ;;  %9291 = vmatprep.subr.bf16.mxu1 %v16914_v41  ;;  %v17009_v40 = vcombine.low %v8255_v16, %v8263_v27  ;;  %v17024_v41 = vcombine.high %v8270_v32, %v8278_v51  ;;  %v17026_v42 = vcombine.high %v8271_v33, %v8279_v37  ;;  %v19033_v26 = vld [vmem:[#allocation19 + $0x128] ss:$16 sps:$4 sm:$0xff]   ;;  %v19038_v16 = vld [vmem:[#allocation19 + $0x144] ss:$16 sps:$4 sm:$0xff]   ;;  %v19041_v27 = vld [vmem:[#allocation19 + $0x14c] ss:$16 sps:$4 sm:$0xff]  }
 0x7a3   :  { %v17025_v48 = vcombine.low %v8271_v33, %v8279_v37  ;;  %v19042_v32 = vld [vmem:[#allocation19 + $0x160] ss:$16 sps:$4 sm:$0xff]   ;;  %v19045_v51 = vld [vmem:[#allocation19 + $0x168] ss:$16 sps:$4 sm:$0xff]   ;;  %v19050_v33 = vld [vmem:[#allocation19 + $0x184] ss:$16 sps:$4 sm:$0xff]  }
 0x7a4   :  { %9201 = vmatmul.mubr.bf16.vlgmr.msra.gmra.mrb[48].mxu0 %v21224_v46  ;;  %9242 = vmatmul.mubr.bf16.vlgmr.msra.gmra.mrb[52].mxu1 %v21224_v46  ;;  %v19053_v37 = vld [vmem:[#allocation19 + $0x18c] ss:$16 sps:$4 sm:$0xff]  }
 0x7a5   :  { %9251 = vmatpush1.bf16.msra.mxu0 %v16911_v50  ;;  %9292 = vmatpush1.bf16.msra.mxu1 %v16913_v52  ;;  %v18981_v50 = vld [vmem:[#allocation19 + $0xc] ss:$16 sps:$4 sm:$0xff]   ;;  %v18976_v52 = vld [vmem:[#allocation19] ss:$16 sps:$4 sm:$0xff]  }
 0x7a6   :  { %9252 = vmatprep.subr.bf16.mxu0 %v16928_v59  ;;  %9293 = vmatprep.subr.bf16.mxu1 %v16930_v60  ;;  %v18979_v59 = vld [vmem:[#allocation19 + $0x8] ss:$16 sps:$4 sm:$0xff]   ;;  %v18984_v60 = vld [vmem:[#allocation19 + $0x24] ss:$16 sps:$4 sm:$0xff]  }
 0x7a7   :  { %9282 = vmatprep.mubr.bf16.mxu0 %v20698_v0  ;;  %9323 = vmatprep.mubr.bf16.mxu1 %v20698_v0  ;;  %v16978_v0 = vcombine.high %v8223_v19, %v8231_v20  ;;  %v19014_v19 = vld [vmem:[#allocation19 + $0xc4] ss:$16 sps:$4 sm:$0xff]   ;;  %v19017_v20 = vld [vmem:[#allocation19 + $0xcc] ss:$16 sps:$4 sm:$0xff]  }
 0x7a9   :  { %9253 = vmatpush1.bf16.msra.mxu0 %v16927_v2  ;;  %9294 = vmatpush1.bf16.msra.mxu1 %v16929_v4  ;;  %v18993_v2 = vld [vmem:[#allocation19 + $0x4c] ss:$16 sps:$4 sm:$0xff]   ;;  %v18988_v4 = vld [vmem:[#allocation19 + $0x40] ss:$16 sps:$4 sm:$0xff]  }
 0x7aa   :  { %9254 = vmatprep.subr.bf16.mxu0 %v16944_v5  ;;  %9295 = vmatprep.subr.bf16.mxu1 %v16946_v7  ;;  %v18991_v5 = vld [vmem:[#allocation19 + $0x48] ss:$16 sps:$4 sm:$0xff]   ;;  %v18996_v7 = vld [vmem:[#allocation19 + $0x64] ss:$16 sps:$4 sm:$0xff]  }
 0x7ad   :  { %9255 = vmatpush1.bf16.msra.mxu0 %v16943_v12  ;;  %9296 = vmatpush1.bf16.msra.mxu1 %v16945_v39  ;;  %v19000_v12 = vld [vmem:[#allocation19 + $0x80] ss:$16 sps:$4 sm:$0xff]   ;;  %v19003_v39 = vld [vmem:[#allocation19 + $0x88] ss:$16 sps:$4 sm:$0xff]  }
 0x7ae   :  { %9256 = vmatprep.subr.bf16.mxu0 %v16960_v15  ;;  %9297 = vmatprep.subr.bf16.mxu1 %v16962_v17  ;;  %v19008_v15 = vld [vmem:[#allocation19 + $0xa4] ss:$16 sps:$4 sm:$0xff]   ;;  %v19011_v17 = vld [vmem:[#allocation19 + $0xac] ss:$16 sps:$4 sm:$0xff]  }
 0x7b1   :  { %9257 = vmatpush1.bf16.msra.mxu0 %v16959_v10  ;;  %9298 = vmatpush1.bf16.msra.mxu1 %v16961_v8  ;;  %v19012_v10 = vld [vmem:[#allocation19 + $0xc0] ss:$16 sps:$4 sm:$0xff]   ;;  %v19015_v8 = vld [vmem:[#allocation19 + $0xc8] ss:$16 sps:$4 sm:$0xff]  }
 0x7b2   :  { %9258 = vmatprep.subr.bf16.mxu0 %v16976_v56  ;;  %9299 = vmatprep.subr.bf16.mxu1 %v16978_v0  ;;  %v19020_v56 = vld [vmem:[#allocation19 + $0xe4] ss:$16 sps:$4 sm:$0xff]   ;;  %v19023_v0 = vld [vmem:[#allocation19 + $0xec] ss:$16 sps:$4 sm:$0xff]  }
 0x7b5   :  { %9259 = vmatpush1.bf16.msra.mxu0 %v16975_v31  ;;  %9300 = vmatpush1.bf16.msra.mxu1 %v16977_v24  ;;  %v19024_v31 = vld [vmem:[#allocation19 + $0x100] ss:$16 sps:$4 sm:$0xff]   ;;  %v19027_v24 = vld [vmem:[#allocation19 + $0x108] ss:$16 sps:$4 sm:$0xff]  }
 0x7b6   :  { %9260 = vmatprep.subr.bf16.mxu0 %v16992_v44  ;;  %9301 = vmatprep.subr.bf16.mxu1 %v16994_v25  ;;  %v19032_v44 = vld [vmem:[#allocation19 + $0x124] ss:$16 sps:$4 sm:$0xff]   ;;  %v19035_v25 = vld [vmem:[#allocation19 + $0x12c] ss:$16 sps:$4 sm:$0xff]  }
 0x7b9   :  { %9261 = vmatpush1.bf16.msra.mxu0 %v16991_v34  ;;  %9302 = vmatpush1.bf16.msra.mxu1 %v16993_v36  ;;  %v19036_v34 = vld [vmem:[#allocation19 + $0x140] ss:$16 sps:$4 sm:$0xff]   ;;  %v19039_v36 = vld [vmem:[#allocation19 + $0x148] ss:$16 sps:$4 sm:$0xff]  }
 0x7ba   :  { %9262 = vmatprep.subr.bf16.mxu0 %v17008_v28  ;;  %9303 = vmatprep.subr.bf16.mxu1 %v17010_v29  ;;  %v19044_v28 = vld [vmem:[#allocation19 + $0x164] ss:$16 sps:$4 sm:$0xff]   ;;  %v19047_v29 = vld [vmem:[#allocation19 + $0x16c] ss:$16 sps:$4 sm:$0xff]  }
 0x7bd   :  { %9263 = vmatpush1.bf16.msra.mxu0 %v17007_v38  ;;  %9304 = vmatpush1.bf16.msra.mxu1 %v17009_v40  ;;  %v19048_v38 = vld [vmem:[#allocation19 + $0x180] ss:$16 sps:$4 sm:$0xff]   ;;  %v19051_v40 = vld [vmem:[#allocation19 + $0x188] ss:$16 sps:$4 sm:$0xff]  }
 0x7be   :  { %9264 = vmatprep.subr.bf16.mxu0 %v17024_v41  ;;  %9305 = vmatprep.subr.bf16.mxu1 %v17026_v42  ;;  %v19056_v41 = vld [vmem:[#allocation19 + $0x1a4] ss:$16 sps:$4 sm:$0xff]   ;;  %v19059_v42 = vld [vmem:[#allocation19 + $0x1ac] ss:$16 sps:$4 sm:$0xff]  }
 0x7c1   :  { %9265 = vmatpush1.bf16.msra.mxu0 %v17023_v45  ;;  %9306 = vmatpush1.bf16.msra.mxu1 %v17025_v48  ;;  %v19054_v45 = vld [vmem:[#allocation19 + $0x1a0] ss:$16 sps:$4 sm:$0xff]   ;;  %v19057_v48 = vld [vmem:[#allocation19 + $0x1a8] ss:$16 sps:$4 sm:$0xff]  }
 0x7c2   :  { %12458 = vmatprep.subr.bf16.mxu0 %v18978_v49  ;;  %12786 = vmatprep.subr.bf16.mxu1 %v18981_v50  ;;  %v19062_v49 = vld [vmem:[#allocation19 + $0x1c4] ss:$16 sps:$4 sm:$0xff]   ;;  %v19065_v50 = vld [vmem:[#allocation19 + $0x1cc] ss:$16 sps:$4 sm:$0xff]  }
 0x7c4   :  { %9283 = vmatmul.mubr.bf16.vlgmr.msra.gmra.mrb[52].mxu0 %v21224_v46  ;;  %9324 = vmatmul.mubr.bf16.vlgmr.msra.gmra.mrb[56].mxu1 %v21224_v46  ;;  %v18997_v46 = vld [vmem:[#allocation19 + $0x68] ss:$16 sps:$4 sm:$0xff]  }
 0x7c5   :  { %12459 = vmatpush1.bf16.msra.mxu0 %v18976_v52  ;;  %12787 = vmatpush1.bf16.msra.mxu1 %v18979_v59  ;;  %v19060_v52 = vld [vmem:[#allocation19 + $0x1c0] ss:$16 sps:$4 sm:$0xff]   ;;  %v19063_v59 = vld [vmem:[#allocation19 + $0x1c8] ss:$16 sps:$4 sm:$0xff]  }
 0x7c6   :  { %12460 = vmatprep.subr.bf16.mxu0 %v18984_v60  ;;  %12788 = vmatprep.subr.bf16.mxu1 %v18987_v61  ;;  %v19068_v60 = vld [vmem:[#allocation19 + $0x1e4] ss:$16 sps:$4 sm:$0xff]   ;;  %v19071_v61 = vld [vmem:[#allocation19 + $0x1ec] ss:$16 sps:$4 sm:$0xff]  }
 0x7c9   :  { %12461 = vmatpush1.bf16.msra.mxu0 %v18982_v62  ;;  %12789 = vmatpush1.bf16.msra.mxu1 %v18985_v55  ;;  %v19066_v62 = vld [vmem:[#allocation19 + $0x1e0] ss:$16 sps:$4 sm:$0xff]   ;;  %v19069_v55 = vld [vmem:[#allocation19 + $0x1e8] ss:$16 sps:$4 sm:$0xff]  }
 0x7ca   :  { %12462 = vmatprep.subr.bf16.mxu0 %v18990_v63  ;;  %12790 = vmatprep.subr.bf16.mxu1 %v18993_v2  ;;  %v19074_v63 = vld [vmem:[#allocation19 + $0x204] ss:$16 sps:$4 sm:$0xff]   ;;  %v19077_v2 = vld [vmem:[#allocation19 + $0x20c] ss:$16 sps:$4 sm:$0xff]  }
 0x7cd   :  { %12463 = vmatpush1.bf16.msra.mxu0 %v18988_v4  ;;  %12791 = vmatpush1.bf16.msra.mxu1 %v18991_v5  ;;  %v21240_v4 = vld [vmem:[#allocation17] sm:$0xff] }
 0x7ce   :  { %12464 = vmatprep.subr.bf16.mxu0 %v18996_v7  ;;  %12792 = vmatprep.subr.bf16.mxu1 %v18999_v9  ;;  %v8287_v5 = vrot.slane %v21240_v4, %v21076_v57  ;;  %v8291_v7 = vrot.slane %v21240_v4, %v21079_v58  ;;  %v8299_v9 = vrot.slane %v21240_v4, %v21091_v6 }
 0x7d1   :  { %12465 = vmatpush1.bf16.msra.mxu0 %v18994_v1  ;;  %12793 = vmatpush1.bf16.msra.mxu1 %v18997_v46 }
 0x7d2   :  { %12466 = vmatprep.subr.bf16.mxu0 %v19002_v11  ;;  %12794 = vmatprep.subr.bf16.mxu1 %v19005_v14 }
 0x7d5   :  { %12467 = vmatpush1.bf16.msra.mxu0 %v19000_v12  ;;  %12795 = vmatpush1.bf16.msra.mxu1 %v19003_v39 }
 0x7d6   :  { %12468 = vmatprep.subr.bf16.mxu0 %v19008_v15  ;;  %12796 = vmatprep.subr.bf16.mxu1 %v19011_v17 }
 0x7d9   :  { %12469 = vmatpush1.bf16.msra.mxu0 %v19006_v18  ;;  %12797 = vmatpush1.bf16.msra.mxu1 %v19009_v43 }
 0x7da   :  { %12470 = vmatprep.subr.bf16.mxu0 %v19014_v19  ;;  %12798 = vmatprep.subr.bf16.mxu1 %v19017_v20 }
 0x7dd   :  { %12471 = vmatpush1.bf16.msra.mxu0 %v19012_v10  ;;  %12799 = vmatpush1.bf16.msra.mxu1 %v19015_v8 }
 0x7de   :  { %12472 = vmatprep.subr.bf16.mxu0 %v19020_v56  ;;  %12800 = vmatprep.subr.bf16.mxu1 %v19023_v0  ;;  %v19072_v0 = vld [vmem:[#allocation19 + $0x200] ss:$16 sps:$4 sm:$0xff]  }
 0x7e1   :  { %12473 = vmatpush1.bf16.msra.mxu0 %v19018_v30  ;;  %12801 = vmatpush1.bf16.msra.mxu1 %v19021_v21  ;;  %v19075_v30 = vld [vmem:[#allocation19 + $0x208] ss:$16 sps:$4 sm:$0xff]  }
 0x7e2   :  { %12474 = vmatprep.subr.bf16.mxu0 %v19026_v22  ;;  %12802 = vmatprep.subr.bf16.mxu1 %v19029_v23  ;;  %v19080_v22 = vld [vmem:[#allocation19 + $0x224] ss:$16 sps:$4 sm:$0xff]   ;;  %v19083_v23 = vld [vmem:[#allocation19 + $0x22c] ss:$16 sps:$4 sm:$0xff]  }
 0x7e5   :  { %12475 = vmatpush1.bf16.msra.mxu0 %v19024_v31  ;;  %12803 = vmatpush1.bf16.msra.mxu1 %v19027_v24  ;;  %v19078_v24 = vld [vmem:[#allocation19 + $0x220] ss:$16 sps:$4 sm:$0xff]  }
 0x7e6   :  { %12476 = vmatprep.subr.bf16.mxu0 %v19032_v44  ;;  %12804 = vmatprep.subr.bf16.mxu1 %v19035_v25  ;;  %v19081_v44 = vld [vmem:[#allocation19 + $0x228] ss:$16 sps:$4 sm:$0xff]   ;;  %v19086_v25 = vld [vmem:[#allocation19 + $0x244] ss:$16 sps:$4 sm:$0xff]  }
 0x7e9   :  { %12477 = vmatpush1.bf16.msra.mxu0 %v19030_v13  ;;  %12805 = vmatpush1.bf16.msra.mxu1 %v19033_v26  ;;  %v19089_v13 = vld [vmem:[#allocation19 + $0x24c] ss:$16 sps:$4 sm:$0xff]   ;;  %v19084_v26 = vld [vmem:[#allocation19 + $0x240] ss:$16 sps:$4 sm:$0xff]  }
 0x7ea   :  { %12478 = vmatprep.subr.bf16.mxu0 %v19038_v16  ;;  %12806 = vmatprep.subr.bf16.mxu1 %v19041_v27  ;;  %v19087_v16 = vld [vmem:[#allocation19 + $0x248] ss:$16 sps:$4 sm:$0xff]   ;;  %v19092_v27 = vld [vmem:[#allocation19 + $0x264] ss:$16 sps:$4 sm:$0xff]  }
 0x7ed   :  { %12479 = vmatpush1.bf16.msra.mxu0 %v19036_v34  ;;  %12807 = vmatpush1.bf16.msra.mxu1 %v19039_v36  ;;  %v19095_v34 = vld [vmem:[#allocation19 + $0x26c] ss:$16 sps:$4 sm:$0xff]   ;;  %v19090_v36 = vld [vmem:[#allocation19 + $0x260] ss:$16 sps:$4 sm:$0xff]  }
 0x7ee   :  { %12480 = vmatprep.subr.bf16.mxu0 %v19044_v28  ;;  %12808 = vmatprep.subr.bf16.mxu1 %v19047_v29  ;;  %v19093_v28 = vld [vmem:[#allocation19 + $0x268] ss:$16 sps:$4 sm:$0xff]   ;;  %v19098_v29 = vld [vmem:[#allocation19 + $0x284] ss:$16 sps:$4 sm:$0xff]  }
 0x7f1   :  { %12481 = vmatpush1.bf16.msra.mxu0 %v19042_v32  ;;  %12809 = vmatpush1.bf16.msra.mxu1 %v19045_v51  ;;  %v19101_v32 = vld [vmem:[#allocation19 + $0x28c] ss:$16 sps:$4 sm:$0xff]   ;;  %v19096_v51 = vld [vmem:[#allocation19 + $0x280] ss:$16 sps:$4 sm:$0xff]  }
 0x7f2   :  { %12482 = vmatprep.subr.bf16.mxu0 %v19050_v33  ;;  %12810 = vmatprep.subr.bf16.mxu1 %v19053_v37  ;;  %v19099_v33 = vld [vmem:[#allocation19 + $0x288] ss:$16 sps:$4 sm:$0xff]   ;;  %v19104_v37 = vld [vmem:[#allocation19 + $0x2a4] ss:$16 sps:$4 sm:$0xff]  }
 0x7f5   :  { %12483 = vmatpush1.bf16.msra.mxu0 %v19048_v38  ;;  %12811 = vmatpush1.bf16.msra.mxu1 %v19051_v40  ;;  %v19107_v38 = vld [vmem:[#allocation19 + $0x2ac] ss:$16 sps:$4 sm:$0xff]   ;;  %v19102_v40 = vld [vmem:[#allocation19 + $0x2a0] ss:$16 sps:$4 sm:$0xff]  }
 0x7f6   :  { %12484 = vmatprep.subr.bf16.mxu0 %v19056_v41  ;;  %12812 = vmatprep.subr.bf16.mxu1 %v19059_v42  ;;  %v19105_v41 = vld [vmem:[#allocation19 + $0x2a8] ss:$16 sps:$4 sm:$0xff]   ;;  %v19110_v42 = vld [vmem:[#allocation19 + $0x2c4] ss:$16 sps:$4 sm:$0xff]  }
 0x7f9   :  { %12485 = vmatpush1.bf16.msra.mxu0 %v19054_v45  ;;  %12813 = vmatpush1.bf16.msra.mxu1 %v19057_v48  ;;  %v19113_v45 = vld [vmem:[#allocation19 + $0x2cc] ss:$16 sps:$4 sm:$0xff]   ;;  %v19108_v48 = vld [vmem:[#allocation19 + $0x2c0] ss:$16 sps:$4 sm:$0xff]  }
 0x7fa   :  { %12486 = vmatprep.subr.bf16.mxu0 %v19062_v49  ;;  %12814 = vmatprep.subr.bf16.mxu1 %v19065_v50  ;;  %v19111_v49 = vld [vmem:[#allocation19 + $0x2c8] ss:$16 sps:$4 sm:$0xff]   ;;  %v19116_v50 = vld [vmem:[#allocation19 + $0x2e4] ss:$16 sps:$4 sm:$0xff]  }
 0x7fd   :  { %12487 = vmatpush1.bf16.msra.mxu0 %v19060_v52  ;;  %12815 = vmatpush1.bf16.msra.mxu1 %v19063_v59  ;;  %v19119_v52 = vld [vmem:[#allocation19 + $0x2ec] ss:$16 sps:$4 sm:$0xff]  }
 0x7fe   :  { %12488 = vmatprep.subr.bf16.mxu0 %v19068_v60  ;;  %12816 = vmatprep.subr.bf16.mxu1 %v19071_v61 }
 0x801   :  { %12489 = vmatpush1.bf16.msra.mxu0 %v19066_v62  ;;  %12817 = vmatpush1.bf16.msra.mxu1 %v19069_v55 }
 0x802   :  { %12499 = vmatprep.subr.bf16.mxu0 %v19074_v63  ;;  %12827 = vmatprep.subr.bf16.mxu1 %v19077_v2  ;;  %v19114_v2 = vld [vmem:[#allocation19 + $0x2e0] ss:$16 sps:$4 sm:$0xff]  }
 0x837   :  { %v9038_v1 = vpop.f32.mrb[40].mxu0  ;;  %v21248_v46 = vpop.f32.mrb[44].mxu1 }
 0x838   :  { %v9039_v11 = vadd.f32 %v9038_v1, %v8287_v5  ;;  %v9040_v14 = vpop.f32.mrb[41].mxu0  ;;  %v9081_v12 = vpop.f32.mrb[45].mxu1  ;;  %v19117_v5 = vld [vmem:[#allocation19 + $0x2e8] ss:$16 sps:$4 sm:$0xff]   ;;  %v19122_v1 = vld [vmem:[#allocation19 + $0x304] ss:$16 sps:$4 sm:$0xff]  }
 0x839   :  { %v9041_v39 = vadd.f32 %v9040_v14, %v8291_v7  ;;  %v9082_v15 = vadd.f32 %v9081_v12, %v8299_v9  ;;  %v9042_v17 = vpop.f32.mrb[42].mxu0  ;;  %v9083_v18 = vpop.f32.mrb[46].mxu1  ;;  %v19120_v14 = vld [vmem:[#allocation19 + $0x300] ss:$16 sps:$4 sm:$0xff]   ;;  %v19123_v12 = vld [vmem:[#allocation19 + $0x308] ss:$16 sps:$4 sm:$0xff]  }
 0x83a   :  { %v9332_v43 = vmax.f32 %v9039_v11, 0.0  ;;  %v9043_v19 = vpop.f32.mrb[43].mxu0  ;;  %v9084_v20 = vpop.f32.mrb[47].mxu1  ;;  %v19125_v11 = vld [vmem:[#allocation19 + $0x30c] ss:$16 sps:$4 sm:$0xff]  }
 0x83b   :  { %v9333_v10 = vmax.f32 %v9041_v39, 0.0  ;;  %v9335_v8 = vmax.f32 %v9082_v15, 0.0  ;;  %v19128_v39 = vld [vmem:[#allocation19 + $0x324] ss:$16 sps:$4 sm:$0xff]   ;;  %v19131_v15 = vld [vmem:[#allocation19 + $0x32c] ss:$16 sps:$4 sm:$0xff]  }
 0x83c   :  { %v9348_v21 = vpack.c.bf16 %v9332_v43, %v9332_v43  ;;  %v19126_v17 = vld [vmem:[#allocation19 + $0x320] ss:$16 sps:$4 sm:$0xff]   ;;  %v19129_v18 = vld [vmem:[#allocation19 + $0x328] ss:$16 sps:$4 sm:$0xff]   ;;  %v19134_v43 = vld [vmem:[#allocation19 + $0x344] ss:$16 sps:$4 sm:$0xff]  }
 0x83d   :  { %v9349_v56 = vpack.c.bf16 %v9333_v10, %v9333_v10  ;;  %v9351_v31 = vpack.c.bf16 %v9335_v8, %v9335_v8  ;;  %v19137_v19 = vld [vmem:[#allocation19 + $0x34c] ss:$16 sps:$4 sm:$0xff]   ;;  %v19132_v20 = vld [vmem:[#allocation19 + $0x340] ss:$16 sps:$4 sm:$0xff]   ;;  %v19135_v10 = vld [vmem:[#allocation19 + $0x348] ss:$16 sps:$4 sm:$0xff]  }
 0x83e   :  { %v19140_v8 = vld [vmem:[#allocation19 + $0x364] ss:$16 sps:$4 sm:$0xff]  }
 0x83f   :  { %12490 = vmatprep.mubr.bf16.mxu0 %v9349_v56  ;;  %12818 = vmatprep.mubr.bf16.mxu1 %v9349_v56  ;;  %v19143_v56 = vld [vmem:[#allocation19 + $0x36c] ss:$16 sps:$4 sm:$0xff]  }
 0x840   :  { %12491 = vmatmul.mubr.bf16.vlgmr.msra.gmra.mrb[56].mxu0 %v9348_v21  ;;  %12819 = vmatmul.mubr.bf16.vlgmr.msra.gmra.mrb[60].mxu1 %v9348_v21  ;;  %v19146_v21 = vld [vmem:[#allocation19 + $0x384] ss:$16 sps:$4 sm:$0xff]  }
 0x841   :  { %12500 = vmatpush1.bf16.msra.mxu0 %v19072_v0  ;;  %12828 = vmatpush1.bf16.msra.mxu1 %v19075_v30  ;;  %v19138_v0 = vld [vmem:[#allocation19 + $0x360] ss:$16 sps:$4 sm:$0xff]   ;;  %v19141_v30 = vld [vmem:[#allocation19 + $0x368] ss:$16 sps:$4 sm:$0xff]  }
 0x842   :  { %12531 = vmatprep.mubr.bf16.mxu0 %v9351_v31  ;;  %12859 = vmatprep.mubr.bf16.mxu1 %v9351_v31  ;;  %v19147_v31 = vld [vmem:[#allocation19 + $0x388] ss:$16 sps:$4 sm:$0xff]  }
 0x843   :  { %12501 = vmatprep.subr.bf16.mxu0 %v19080_v22  ;;  %12829 = vmatprep.subr.bf16.mxu1 %v19083_v23  ;;  %v19149_v22 = vld [vmem:[#allocation19 + $0x38c] ss:$16 sps:$4 sm:$0xff]   ;;  %v19144_v23 = vld [vmem:[#allocation19 + $0x380] ss:$16 sps:$4 sm:$0xff]  }
 0x845   :  { %12502 = vmatpush1.bf16.msra.mxu0 %v19078_v24  ;;  %12830 = vmatpush1.bf16.msra.mxu1 %v19081_v44  ;;  %v19152_v24 = vld [vmem:[#allocation19 + $0x3a4] ss:$16 sps:$4 sm:$0xff]   ;;  %v19155_v44 = vld [vmem:[#allocation19 + $0x3ac] ss:$16 sps:$4 sm:$0xff]  }
 0x846   :  { %12503 = vmatprep.subr.bf16.mxu0 %v19086_v25  ;;  %12831 = vmatprep.subr.bf16.mxu1 %v19089_v13  ;;  %v19150_v25 = vld [vmem:[#allocation19 + $0x3a0] ss:$16 sps:$4 sm:$0xff]   ;;  %v19153_v13 = vld [vmem:[#allocation19 + $0x3a8] ss:$16 sps:$4 sm:$0xff]  }
 0x849   :  { %12504 = vmatpush1.bf16.msra.mxu0 %v19084_v26  ;;  %12832 = vmatpush1.bf16.msra.mxu1 %v19087_v16  ;;  %v21258_v26 = vld [vmem:[#allocation17 + $0x8] sm:$0xff]  ;;  %v8295_v16 = vrot.slane %v21240_v4, %v21088_v3 }
 0x84a   :  { %12505 = vmatprep.subr.bf16.mxu0 %v19092_v27  ;;  %12833 = vmatprep.subr.bf16.mxu1 %v19095_v34  ;;  %v19158_v27 = vld [vmem:[#allocation19 + $0x3c4] ss:$16 sps:$4 sm:$0xff]   ;;  %v19161_v34 = vld [vmem:[#allocation19 + $0x3cc] ss:$16 sps:$4 sm:$0xff]  }
 0x84d   :  { %12506 = vmatpush1.bf16.msra.mxu0 %v19090_v36  ;;  %12834 = vmatpush1.bf16.msra.mxu1 %v19093_v28  ;;  %v8307_v36 = vrot.slane %v21240_v4, %v21175_v53  ;;  %v8327_v28 = vrot.slane %v21258_v26, %v21088_v3 }
 0x84e   :  { %12507 = vmatprep.subr.bf16.mxu0 %v19098_v29  ;;  %12835 = vmatprep.subr.bf16.mxu1 %v19101_v32  ;;  %v8331_v29 = vrot.slane %v21258_v26, %v21091_v6  ;;  %v19156_v32 = vld [vmem:[#allocation19 + $0x3c0] ss:$16 sps:$4 sm:$0xff]  }
 0x851   :  { %12508 = vmatpush1.bf16.msra.mxu0 %v19096_v51  ;;  %12836 = vmatpush1.bf16.msra.mxu1 %v19099_v33  ;;  %v19159_v51 = vld [vmem:[#allocation19 + $0x3c8] ss:$16 sps:$4 sm:$0xff]   ;;  %v9080_v33 = vadd.f32 %v21248_v46, %v8295_v16 }
 0x852   :  { %12509 = vmatprep.subr.bf16.mxu0 %v19104_v37  ;;  %12837 = vmatprep.subr.bf16.mxu1 %v19107_v38  ;;  %v19164_v37 = vld [vmem:[#allocation19 + $0x3e4] ss:$16 sps:$4 sm:$0xff]   ;;  %v19167_v38 = vld [vmem:[#allocation19 + $0x3ec] ss:$16 sps:$4 sm:$0xff]   ;;  %v19165_v46 = vld [vmem:[#allocation19 + $0x3e8] ss:$16 sps:$4 sm:$0xff]  }
 0x853   :  { %v19201_v16 = vld [vmem:[#allocation19 + $0x4a8] ss:$16 sps:$4 sm:$0xff]  }
 0x855   :  { %12510 = vmatpush1.bf16.msra.mxu0 %v19102_v40  ;;  %12838 = vmatpush1.bf16.msra.mxu1 %v19105_v41 }
 0x856   :  { %12511 = vmatprep.subr.bf16.mxu0 %v19110_v42  ;;  %12839 = vmatprep.subr.bf16.mxu1 %v19113_v45 }
 0x857   :  { %v21250_v59 = vpop.f32.mrb[44].mxu0  ;;  %v21252_v60 = vpop.f32.mrb[48].mxu1 }
 0x858   :  { %v21254_v61 = vpop.f32.mrb[45].mxu0  ;;  %v21256_v62 = vpop.f32.mrb[49].mxu1 }
 0x859   :  { %v9124_v55 = vpop.f32.mrb[46].mxu0  ;;  %v9165_v63 = vpop.f32.mrb[50].mxu1  ;;  %12512 = vmatpush1.bf16.msra.mxu0 %v19108_v48  ;;  %12840 = vmatpush1.bf16.msra.mxu1 %v19111_v49  ;;  %v9123_v40 = vadd.f32 %v21254_v61, %v8307_v36  ;;  %v8335_v36 = vrot.slane %v21258_v26, %v21193_v35 }
 0x85a   :  { %v9125_v7 = vpop.f32.mrb[47].mxu0  ;;  %v9166_v9 = vpop.f32.mrb[51].mxu1  ;;  %12513 = vmatprep.subr.bf16.mxu0 %v19116_v50  ;;  %12841 = vmatprep.subr.bf16.mxu1 %v19119_v52  ;;  %v19162_v50 = vld [vmem:[#allocation19 + $0x3e0] ss:$16 sps:$4 sm:$0xff]  }
 0x85b   :  { %v19173_v9 = vld [vmem:[#allocation19 + $0x40c] ss:$16 sps:$4 sm:$0xff]  }
 0x85d   :  { %12514 = vmatpush1.bf16.msra.mxu0 %v19114_v2  ;;  %12842 = vmatpush1.bf16.msra.mxu1 %v19117_v5  ;;  %v19170_v2 = vld [vmem:[#allocation19 + $0x404] ss:$16 sps:$4 sm:$0xff]   ;;  %v9334_v5 = vmax.f32 %v9080_v33, 0.0  ;;  %v19207_v33 = vld [vmem:[#allocation19 + $0x4c8] ss:$16 sps:$4 sm:$0xff]  }
 0x85e   :  { %12515 = vmatprep.subr.bf16.mxu0 %v19122_v1  ;;  %12843 = vmatprep.subr.bf16.mxu1 %v19125_v11  ;;  %v9337_v1 = vmax.f32 %v9123_v40, 0.0  ;;  %v19168_v11 = vld [vmem:[#allocation19 + $0x400] ss:$16 sps:$4 sm:$0xff]  }
 0x861   :  { %12516 = vmatpush1.bf16.msra.mxu0 %v19120_v14  ;;  %12844 = vmatpush1.bf16.msra.mxu1 %v19123_v12  ;;  %v9350_v14 = vpack.c.bf16 %v9334_v5, %v9334_v5  ;;  %v19171_v12 = vld [vmem:[#allocation19 + $0x408] ss:$16 sps:$4 sm:$0xff]  }
 0x862   :  { %12517 = vmatprep.subr.bf16.mxu0 %v19128_v39  ;;  %12845 = vmatprep.subr.bf16.mxu1 %v19131_v15  ;;  %v9353_v39 = vpack.c.bf16 %v9337_v1, %v9337_v1  ;;  %v19176_v15 = vld [vmem:[#allocation19 + $0x424] ss:$16 sps:$4 sm:$0xff]  }
 0x865   :  { %12518 = vmatpush1.bf16.msra.mxu0 %v19126_v17  ;;  %12846 = vmatpush1.bf16.msra.mxu1 %v19129_v18  ;;  %v19179_v17 = vld [vmem:[#allocation19 + $0x42c] ss:$16 sps:$4 sm:$0xff]   ;;  %v19174_v18 = vld [vmem:[#allocation19 + $0x420] ss:$16 sps:$4 sm:$0xff]  }
 0x866   :  { %12519 = vmatprep.subr.bf16.mxu0 %v19134_v43  ;;  %12847 = vmatprep.subr.bf16.mxu1 %v19137_v19  ;;  %v19177_v43 = vld [vmem:[#allocation19 + $0x428] ss:$16 sps:$4 sm:$0xff]   ;;  %v19182_v19 = vld [vmem:[#allocation19 + $0x444] ss:$16 sps:$4 sm:$0xff]  }
 0x869   :  { %12520 = vmatpush1.bf16.msra.mxu0 %v19132_v20  ;;  %12848 = vmatpush1.bf16.msra.mxu1 %v19135_v10  ;;  %v19185_v20 = vld [vmem:[#allocation19 + $0x44c] ss:$16 sps:$4 sm:$0xff]   ;;  %v19180_v10 = vld [vmem:[#allocation19 + $0x440] ss:$16 sps:$4 sm:$0xff]  }
 0x86a   :  { %12521 = vmatprep.subr.bf16.mxu0 %v19140_v8  ;;  %12849 = vmatprep.subr.bf16.mxu1 %v19143_v56  ;;  %v19183_v8 = vld [vmem:[#allocation19 + $0x448] ss:$16 sps:$4 sm:$0xff]   ;;  %v19188_v56 = vld [vmem:[#allocation19 + $0x464] ss:$16 sps:$4 sm:$0xff]  }
 0x86d   :  { %12522 = vmatpush1.bf16.msra.mxu0 %v19138_v0  ;;  %12850 = vmatpush1.bf16.msra.mxu1 %v19141_v30  ;;  %v19191_v0 = vld [vmem:[#allocation19 + $0x46c] ss:$16 sps:$4 sm:$0xff]   ;;  %v19186_v30 = vld [vmem:[#allocation19 + $0x460] ss:$16 sps:$4 sm:$0xff]  }
 0x86e   :  { %12523 = vmatprep.subr.bf16.mxu0 %v19146_v21  ;;  %12851 = vmatprep.subr.bf16.mxu1 %v19149_v22  ;;  %v19189_v21 = vld [vmem:[#allocation19 + $0x468] ss:$16 sps:$4 sm:$0xff]   ;;  %v19194_v22 = vld [vmem:[#allocation19 + $0x484] ss:$16 sps:$4 sm:$0xff]  }
 0x871   :  { %12524 = vmatpush1.bf16.msra.mxu0 %v19144_v23  ;;  %12852 = vmatpush1.bf16.msra.mxu1 %v19147_v31  ;;  %v19197_v23 = vld [vmem:[#allocation19 + $0x48c] ss:$16 sps:$4 sm:$0xff]   ;;  %v19192_v31 = vld [vmem:[#allocation19 + $0x480] ss:$16 sps:$4 sm:$0xff]  }
 0x872   :  { %12525 = vmatprep.subr.bf16.mxu0 %v19152_v24  ;;  %12853 = vmatprep.subr.bf16.mxu1 %v19155_v44  ;;  %v19195_v24 = vld [vmem:[#allocation19 + $0x488] ss:$16 sps:$4 sm:$0xff]   ;;  %v19200_v44 = vld [vmem:[#allocation19 + $0x4a4] ss:$16 sps:$4 sm:$0xff]  }
 0x875   :  { %12526 = vmatpush1.bf16.msra.mxu0 %v19150_v25  ;;  %12854 = vmatpush1.bf16.msra.mxu1 %v19153_v13  ;;  %v19203_v25 = vld [vmem:[#allocation19 + $0x4ac] ss:$16 sps:$4 sm:$0xff]   ;;  %v19198_v13 = vld [vmem:[#allocation19 + $0x4a0] ss:$16 sps:$4 sm:$0xff]  }
 0x876   :  { %12527 = vmatprep.subr.bf16.mxu0 %v19158_v27  ;;  %12855 = vmatprep.subr.bf16.mxu1 %v19161_v34  ;;  %v19206_v27 = vld [vmem:[#allocation19 + $0x4c4] ss:$16 sps:$4 sm:$0xff]   ;;  %v19209_v34 = vld [vmem:[#allocation19 + $0x4cc] ss:$16 sps:$4 sm:$0xff]  }
 0x877   :  { %v21270_v41 = vpop.f32.mrb[48].mxu0  ;;  %v9243_v42 = vpop.f32.mrb[52].mxu1 }
 0x878   :  { %v21272_v45 = vadd.f32 %v9243_v42, %v8327_v28  ;;  %v21274_v48 = vpop.f32.mrb[49].mxu0  ;;  %v9245_v49 = vpop.f32.mrb[53].mxu1  ;;  %v8343_v28 = vrot.slane %v21258_v26, %v21196_v47  ;;  %v19215_v42 = vld [vmem:[#allocation19 + $0x4ec] ss:$16 sps:$4 sm:$0xff]  }
 0x879   :  { %v21276_v52 = vadd.f32 %v9245_v49, %v8331_v29  ;;  %v9206_v55 = vpop.f32.mrb[50].mxu0  ;;  %v9247_v63 = vpop.f32.mrb[54].mxu1  ;;  %12528 = vmatpush1.bf16.msra.mxu0 %v19156_v32  ;;  %12856 = vmatpush1.bf16.msra.mxu1 %v19159_v51  ;;  %v8339_v29 = vrot.slane %v21258_v26, %v21175_v53  ;;  %v8347_v32 = vrot.slane %v21258_v26, %v21178_v54  ;;  %v19204_v51 = vld [vmem:[#allocation19 + $0x4c0] ss:$16 sps:$4 sm:$0xff]  }
 0x87a   :  { %v9207_v7 = vpop.f32.mrb[51].mxu0  ;;  %v9248_v61 = vpop.f32.mrb[55].mxu1  ;;  %12529 = vmatprep.subr.bf16.mxu0 %v19164_v37  ;;  %12857 = vmatprep.subr.bf16.mxu1 %v19167_v38  ;;  %v19212_v37 = vld [vmem:[#allocation19 + $0x4e4] ss:$16 sps:$4 sm:$0xff]  }
 0x87b   :  { %v19210_v61 = vld [vmem:[#allocation19 + $0x4e0] ss:$16 sps:$4 sm:$0xff]  }
 0x87d   :  { %12530 = vmatpush1.bf16.msra.mxu0 %v19162_v50  ;;  %12858 = vmatpush1.bf16.msra.mxu1 %v19165_v46 }
 0x87e   :  { %12540 = vmatprep.subr.bf16.mxu0 %v19170_v2  ;;  %12868 = vmatprep.subr.bf16.mxu1 %v19173_v9 }
 0x880   :  { %12532 = vmatmul.mubr.bf16.vlgmr.msra.gmra.mrb[56].mxu0 %v9350_v14  ;;  %12860 = vmatmul.mubr.bf16.vlgmr.msra.gmra.mrb[60].mxu1 %v9350_v14  ;;  %v19218_v14 = vld [vmem:[#allocation19 + $0x504] ss:$16 sps:$4 sm:$0xff]  }
 0x881   :  { %12541 = vmatpush1.bf16.msra.mxu0 %v19168_v11  ;;  %12572 = vmatprep.mubr.bf16.mxu0 %v9353_v39  ;;  %v19213_v11 = vld [vmem:[#allocation19 + $0x4e8] ss:$16 sps:$4 sm:$0xff]  }
 0x882   :  { %12869 = vmatpush1.bf16.msra.mxu1 %v19171_v12  ;;  %12900 = vmatprep.mubr.bf16.mxu1 %v9353_v39  ;;  %v19221_v12 = vld [vmem:[#allocation19 + $0x50c] ss:$16 sps:$4 sm:$0xff]   ;;  %v19216_v39 = vld [vmem:[#allocation19 + $0x500] ss:$16 sps:$4 sm:$0xff]  }
 0x883   :  { %12542 = vmatprep.subr.bf16.mxu0 %v19176_v15  ;;  %12870 = vmatprep.subr.bf16.mxu1 %v19179_v17  ;;  %v19219_v15 = vld [vmem:[#allocation19 + $0x508] ss:$16 sps:$4 sm:$0xff]   ;;  %v19224_v17 = vld [vmem:[#allocation19 + $0x524] ss:$16 sps:$4 sm:$0xff]  }
 0x885   :  { %12543 = vmatpush1.bf16.msra.mxu0 %v19174_v18  ;;  %v19227_v18 = vld [vmem:[#allocation19 + $0x52c] ss:$16 sps:$4 sm:$0xff]  }
 0x886   :  { %12871 = vmatpush1.bf16.msra.mxu1 %v19177_v43  ;;  %12544 = vmatprep.subr.bf16.mxu0 %v19182_v19  ;;  %v19222_v43 = vld [vmem:[#allocation19 + $0x520] ss:$16 sps:$4 sm:$0xff]   ;;  %v19225_v19 = vld [vmem:[#allocation19 + $0x528] ss:$16 sps:$4 sm:$0xff]  }
 0x887   :  { %12872 = vmatprep.subr.bf16.mxu1 %v19185_v20  ;;  %v19230_v20 = vld [vmem:[#allocation19 + $0x544] ss:$16 sps:$4 sm:$0xff]  }
 0x889   :  { %12545 = vmatpush1.bf16.msra.mxu0 %v19180_v10  ;;  %v19233_v10 = vld [vmem:[#allocation19 + $0x54c] ss:$16 sps:$4 sm:$0xff]  }
 0x88a   :  { %12873 = vmatpush1.bf16.msra.mxu1 %v19183_v8  ;;  %12546 = vmatprep.subr.bf16.mxu0 %v19188_v56  ;;  %v19228_v8 = vld [vmem:[#allocation19 + $0x540] ss:$16 sps:$4 sm:$0xff]   ;;  %v19231_v56 = vld [vmem:[#allocation19 + $0x548] ss:$16 sps:$4 sm:$0xff]  }
 0x88b   :  { %12874 = vmatprep.subr.bf16.mxu1 %v19191_v0  ;;  %v19236_v0 = vld [vmem:[#allocation19 + $0x564] ss:$16 sps:$4 sm:$0xff]  }
 0x88d   :  { %12547 = vmatpush1.bf16.msra.mxu0 %v19186_v30  ;;  %v19239_v30 = vld [vmem:[#allocation19 + $0x56c] ss:$16 sps:$4 sm:$0xff]  }
 0x88e   :  { %12875 = vmatpush1.bf16.msra.mxu1 %v19189_v21  ;;  %12548 = vmatprep.subr.bf16.mxu0 %v19194_v22  ;;  %v19234_v21 = vld [vmem:[#allocation19 + $0x560] ss:$16 sps:$4 sm:$0xff]   ;;  %v19237_v22 = vld [vmem:[#allocation19 + $0x568] ss:$16 sps:$4 sm:$0xff]  }
 0x88f   :  { %12876 = vmatprep.subr.bf16.mxu1 %v19197_v23  ;;  %v19242_v23 = vld [vmem:[#allocation19 + $0x584] ss:$16 sps:$4 sm:$0xff]  }
 0x891   :  { %12549 = vmatpush1.bf16.msra.mxu0 %v19192_v31  ;;  %v19245_v31 = vld [vmem:[#allocation19 + $0x58c] ss:$16 sps:$4 sm:$0xff]  }
 0x892   :  { %12877 = vmatpush1.bf16.msra.mxu1 %v19195_v24  ;;  %12550 = vmatprep.subr.bf16.mxu0 %v19200_v44  ;;  %v19240_v24 = vld [vmem:[#allocation19 + $0x580] ss:$16 sps:$4 sm:$0xff]   ;;  %v19243_v44 = vld [vmem:[#allocation19 + $0x588] ss:$16 sps:$4 sm:$0xff]  }
 0x893   :  { %12878 = vmatprep.subr.bf16.mxu1 %v19203_v25  ;;  %v19248_v25 = vld [vmem:[#allocation19 + $0x5a4] ss:$16 sps:$4 sm:$0xff]  }
 0x895   :  { %12551 = vmatpush1.bf16.msra.mxu0 %v19198_v13  ;;  %v19251_v13 = vld [vmem:[#allocation19 + $0x5ac] ss:$16 sps:$4 sm:$0xff]  }
 0x896   :  { %12879 = vmatpush1.bf16.msra.mxu1 %v19201_v16  ;;  %12552 = vmatprep.subr.bf16.mxu0 %v19206_v27  ;;  %v19246_v16 = vld [vmem:[#allocation19 + $0x5a0] ss:$16 sps:$4 sm:$0xff]   ;;  %v8303_v27 = vrot.slane %v21240_v4, %v21193_v35 }
 0x897   :  { %v9284_v38 = vpop.f32.mrb[52].mxu0  ;;  %v9325_v40 = vpop.f32.mrb[56].mxu1  ;;  %12880 = vmatprep.subr.bf16.mxu1 %v19209_v34  ;;  %v19249_v34 = vld [vmem:[#allocation19 + $0x5a8] ss:$16 sps:$4 sm:$0xff]  }
 0x898   :  { %v21286_v49 = vadd.f32 %v9284_v38, %v8335_v36  ;;  %v21288_v50 = vadd.f32 %v9325_v40, %v8343_v28  ;;  %v9286_v55 = vpop.f32.mrb[53].mxu0  ;;  %v9327_v63 = vpop.f32.mrb[57].mxu1  ;;  %v19254_v36 = vld [vmem:[#allocation19 + $0x5c4] ss:$16 sps:$4 sm:$0xff]   ;;  %v19257_v28 = vld [vmem:[#allocation19 + $0x5cc] ss:$16 sps:$4 sm:$0xff]  }
 0x899   :  { %v21290_v46 = vadd.f32 %v9286_v55, %v8339_v29  ;;  %v21292_v2 = vadd.f32 %v9327_v63, %v8347_v32  ;;  %v9288_v5 = vpop.f32.mrb[54].mxu0  ;;  %v9329_v7 = vpop.f32.mrb[58].mxu1  ;;  %12553 = vmatpush1.bf16.msra.mxu0 %v19204_v51  ;;  %v8315_v29 = vrot.slane %v21240_v4, %v21178_v54  ;;  %v19252_v32 = vld [vmem:[#allocation19 + $0x5c0] ss:$16 sps:$4 sm:$0xff]   ;;  %v9121_v51 = vadd.f32 %v21250_v59, %v8303_v27  ;;  %v19263_v38 = vld [vmem:[#allocation19 + $0x5ec] ss:$16 sps:$4 sm:$0xff]  }
 0x89a   :  { %12881 = vmatpush1.bf16.msra.mxu1 %v19207_v33  ;;  %v9289_v9 = vpop.f32.mrb[55].mxu0  ;;  %v9330_v1 = vpop.f32.mrb[59].mxu1  ;;  %12554 = vmatprep.subr.bf16.mxu0 %v19212_v37  ;;  %v19255_v33 = vld [vmem:[#allocation19 + $0x5c8] ss:$16 sps:$4 sm:$0xff]   ;;  %v19260_v37 = vld [vmem:[#allocation19 + $0x5e4] ss:$16 sps:$4 sm:$0xff]  }
 0x89b   :  { %12882 = vmatprep.subr.bf16.mxu1 %v19215_v42  ;;  %v9164_v40 = vadd.f32 %v21256_v62, %v8315_v29  ;;  %v19258_v42 = vld [vmem:[#allocation19 + $0x5e0] ss:$16 sps:$4 sm:$0xff]   ;;  %v9336_v55 = vmax.f32 %v9121_v51, 0.0  ;;  %v19261_v63 = vld [vmem:[#allocation19 + $0x5e8] ss:$16 sps:$4 sm:$0xff]  }
 0x89c   :  { %v19266_v5 = vld [vmem:[#allocation19 + $0x604] ss:$16 sps:$4 sm:$0xff]   ;;  %v19269_v54 = vld [vmem:[#allocation19 + $0x60c] ss:$16 sps:$4 sm:$0xff]   ;;  %v19264_v59 = vld [vmem:[#allocation19 + $0x600] ss:$16 sps:$4 sm:$0xff]  }
 0x89d   :  { %12555 = vmatpush1.bf16.msra.mxu0 %v19210_v61  ;;  %v9339_v7 = vmax.f32 %v9164_v40, 0.0  ;;  %v9352_v61 = vpack.c.bf16 %v9336_v55, %v9336_v55  ;;  %v19267_v9 = vld [vmem:[#allocation19 + $0x608] ss:$16 sps:$4 sm:$0xff]   ;;  %v19272_v1 = vld [vmem:[#allocation19 + $0x624] ss:$16 sps:$4 sm:$0xff]  }
 0x89e   :  { %12883 = vmatpush1.bf16.msra.mxu1 %v19213_v11  ;;  %12556 = vmatprep.subr.bf16.mxu0 %v19218_v14  ;;  %v19275_v62 = vld [vmem:[#allocation19 + $0x62c] ss:$16 sps:$4 sm:$0xff]   ;;  %v19270_v14 = vld [vmem:[#allocation19 + $0x620] ss:$16 sps:$4 sm:$0xff]   ;;  %v19315_v51 = vld [vmem:[#allocation19 + $0x708] ss:$16 sps:$4 sm:$0xff]  }
 0x89f   :  { %12884 = vmatprep.subr.bf16.mxu1 %v19221_v12  ;;  %v9355_v11 = vpack.c.bf16 %v9339_v7, %v9339_v7  ;;  %v19273_v12 = vld [vmem:[#allocation19 + $0x628] ss:$16 sps:$4 sm:$0xff]   ;;  %v19311_v27 = vld [vmem:[#allocation19 + $0x6ec] ss:$16 sps:$4 sm:$0xff]  }
 0x8a0   :  { %v19317_v29 = vld [vmem:[#allocation19 + $0x70c] ss:$16 sps:$4 sm:$0xff]   ;;  %v19321_v40 = vld [vmem:[#allocation19 + $0x728] ss:$16 sps:$4 sm:$0xff]  }
 0x8a1   :  { %12557 = vmatpush1.bf16.msra.mxu0 %v19216_v39  ;;  %v19278_v39 = vld [vmem:[#allocation19 + $0x644] ss:$16 sps:$4 sm:$0xff]   ;;  %v19329_v55 = vld [vmem:[#allocation19 + $0x74c] ss:$16 sps:$4 sm:$0xff]  }
 0x8a2   :  { %12885 = vmatpush1.bf16.msra.mxu1 %v19219_v15  ;;  %12558 = vmatprep.subr.bf16.mxu0 %v19224_v17  ;;  %v19281_v15 = vld [vmem:[#allocation19 + $0x64c] ss:$16 sps:$4 sm:$0xff]   ;;  %v19276_v17 = vld [vmem:[#allocation19 + $0x640] ss:$16 sps:$4 sm:$0xff]  }
 0x8a3   :  { %12886 = vmatprep.subr.bf16.mxu1 %v19227_v18  ;;  %v19279_v18 = vld [vmem:[#allocation19 + $0x648] ss:$16 sps:$4 sm:$0xff]   ;;  %v19335_v7 = vld [vmem:[#allocation19 + $0x76c] ss:$16 sps:$4 sm:$0xff]  }
 0x8a5   :  { %12559 = vmatpush1.bf16.msra.mxu0 %v19222_v43  ;;  %v19284_v43 = vld [vmem:[#allocation19 + $0x664] ss:$16 sps:$4 sm:$0xff]  }
 0x8a6   :  { %12887 = vmatpush1.bf16.msra.mxu1 %v19225_v19  ;;  %12560 = vmatprep.subr.bf16.mxu0 %v19230_v20  ;;  %v19287_v19 = vld [vmem:[#allocation19 + $0x66c] ss:$16 sps:$4 sm:$0xff]   ;;  %v19282_v20 = vld [vmem:[#allocation19 + $0x660] ss:$16 sps:$4 sm:$0xff]  }
 0x8a7   :  { %12888 = vmatprep.subr.bf16.mxu1 %v19233_v10  ;;  %v19285_v10 = vld [vmem:[#allocation19 + $0x668] ss:$16 sps:$4 sm:$0xff]  }
 0x8a9   :  { %12561 = vmatpush1.bf16.msra.mxu0 %v19228_v8  ;;  %v19290_v8 = vld [vmem:[#allocation19 + $0x684] ss:$16 sps:$4 sm:$0xff]  }
 0x8aa   :  { %12889 = vmatpush1.bf16.msra.mxu1 %v19231_v56  ;;  %12562 = vmatprep.subr.bf16.mxu0 %v19236_v0  ;;  %v19293_v56 = vld [vmem:[#allocation19 + $0x68c] ss:$16 sps:$4 sm:$0xff]   ;;  %v19288_v0 = vld [vmem:[#allocation19 + $0x680] ss:$16 sps:$4 sm:$0xff]  }
 0x8ab   :  { %12890 = vmatprep.subr.bf16.mxu1 %v19239_v30  ;;  %v19291_v30 = vld [vmem:[#allocation19 + $0x688] ss:$16 sps:$4 sm:$0xff]  }
 0x8ad   :  { %12563 = vmatpush1.bf16.msra.mxu0 %v19234_v21  ;;  %v19296_v21 = vld [vmem:[#allocation19 + $0x6a4] ss:$16 sps:$4 sm:$0xff]  }
 0x8ae   :  { %12891 = vmatpush1.bf16.msra.mxu1 %v19237_v22  ;;  %12564 = vmatprep.subr.bf16.mxu0 %v19242_v23  ;;  %v19299_v22 = vld [vmem:[#allocation19 + $0x6ac] ss:$16 sps:$4 sm:$0xff]   ;;  %v19294_v23 = vld [vmem:[#allocation19 + $0x6a0] ss:$16 sps:$4 sm:$0xff]  }
 0x8af   :  { %12892 = vmatprep.subr.bf16.mxu1 %v19245_v31  ;;  %v19297_v31 = vld [vmem:[#allocation19 + $0x6a8] ss:$16 sps:$4 sm:$0xff]  }
 0x8b1   :  { %12565 = vmatpush1.bf16.msra.mxu0 %v19240_v24  ;;  %v19302_v24 = vld [vmem:[#allocation19 + $0x6c4] ss:$16 sps:$4 sm:$0xff]  }
 0x8b2   :  { %12893 = vmatpush1.bf16.msra.mxu1 %v19243_v44  ;;  %12566 = vmatprep.subr.bf16.mxu0 %v19248_v25  ;;  %v19305_v44 = vld [vmem:[#allocation19 + $0x6cc] ss:$16 sps:$4 sm:$0xff]   ;;  %v19300_v25 = vld [vmem:[#allocation19 + $0x6c0] ss:$16 sps:$4 sm:$0xff]  }
 0x8b3   :  { %12894 = vmatprep.subr.bf16.mxu1 %v19251_v13  ;;  %v19303_v13 = vld [vmem:[#allocation19 + $0x6c8] ss:$16 sps:$4 sm:$0xff]  }
 0x8b5   :  { %12567 = vmatpush1.bf16.msra.mxu0 %v19246_v16  ;;  %v19308_v16 = vld [vmem:[#allocation19 + $0x6e4] ss:$16 sps:$4 sm:$0xff]  }
 0x8b6   :  { %12895 = vmatpush1.bf16.msra.mxu1 %v19249_v34  ;;  %12568 = vmatprep.subr.bf16.mxu0 %v19254_v36  ;;  %v19306_v34 = vld [vmem:[#allocation19 + $0x6e0] ss:$16 sps:$4 sm:$0xff]   ;;  %v19309_v36 = vld [vmem:[#allocation19 + $0x6e8] ss:$16 sps:$4 sm:$0xff]  }
 0x8b7   :  { %12896 = vmatprep.subr.bf16.mxu1 %v19257_v28  ;;  %v19314_v28 = vld [vmem:[#allocation19 + $0x704] ss:$16 sps:$4 sm:$0xff]  }
 0x8b9   :  { %12569 = vmatpush1.bf16.msra.mxu0 %v19252_v32  ;;  %v19312_v32 = vld [vmem:[#allocation19 + $0x700] ss:$16 sps:$4 sm:$0xff]  }
 0x8ba   :  { %12897 = vmatpush1.bf16.msra.mxu1 %v19255_v33  ;;  %12570 = vmatprep.subr.bf16.mxu0 %v19260_v37  ;;  %v19320_v33 = vld [vmem:[#allocation19 + $0x724] ss:$16 sps:$4 sm:$0xff]   ;;  %v19323_v37 = vld [vmem:[#allocation19 + $0x72c] ss:$16 sps:$4 sm:$0xff]  }
 0x8bb   :  { %12898 = vmatprep.subr.bf16.mxu1 %v19263_v38  ;;  %v19318_v38 = vld [vmem:[#allocation19 + $0x720] ss:$16 sps:$4 sm:$0xff]  }
 0x8bd   :  { %12571 = vmatpush1.bf16.msra.mxu0 %v19258_v42  ;;  %v19326_v42 = vld [vmem:[#allocation19 + $0x744] ss:$16 sps:$4 sm:$0xff]  }
 0x8be   :  { %12899 = vmatpush1.bf16.msra.mxu1 %v19261_v63  ;;  %12581 = vmatprep.subr.bf16.mxu0 %v19266_v5  ;;  %v19324_v63 = vld [vmem:[#allocation19 + $0x740] ss:$16 sps:$4 sm:$0xff]   ;;  %v19327_v5 = vld [vmem:[#allocation19 + $0x748] ss:$16 sps:$4 sm:$0xff]  }
 0x8bf   :  { %12909 = vmatprep.subr.bf16.mxu1 %v19269_v54  ;;  %v19332_v54 = vld [vmem:[#allocation19 + $0x764] ss:$16 sps:$4 sm:$0xff]  }
 0x8c0   :  { %12573 = vmatmul.mubr.bf16.vlgmr.msra.gmra.mrb[56].mxu0 %v9352_v61 }
 0x8c1   :  { %12901 = vmatmul.mubr.bf16.vlgmr.msra.gmra.mrb[60].mxu1 %v9352_v61  ;;  %12582 = vmatpush1.bf16.msra.mxu0 %v19264_v59  ;;  %v19330_v59 = vld [vmem:[#allocation19 + $0x760] ss:$16 sps:$4 sm:$0xff]   ;;  %v19333_v61 = vld [vmem:[#allocation19 + $0x768] ss:$16 sps:$4 sm:$0xff]  }
 0x8c2   :  { %12613 = vmatprep.mubr.bf16.mxu0 %v9355_v11  ;;  %12910 = vmatpush1.bf16.msra.mxu1 %v19267_v9  ;;  %v19338_v9 = vld [vmem:[#allocation19 + $0x784] ss:$16 sps:$4 sm:$0xff]  }
 0x8c3   :  { %12941 = vmatprep.mubr.bf16.mxu1 %v9355_v11  ;;  %12583 = vmatprep.subr.bf16.mxu0 %v19272_v1  ;;  %v19341_v1 = vld [vmem:[#allocation19 + $0x78c] ss:$16 sps:$4 sm:$0xff]   ;;  %v19336_v11 = vld [vmem:[#allocation19 + $0x780] ss:$16 sps:$4 sm:$0xff]  }
 0x8c4   :  { %12911 = vmatprep.subr.bf16.mxu1 %v19275_v62  ;;  %v19339_v62 = vld [vmem:[#allocation19 + $0x788] ss:$16 sps:$4 sm:$0xff]  }
 0x8c5   :  { %12584 = vmatpush1.bf16.msra.mxu0 %v19270_v14  ;;  %v19344_v14 = vld [vmem:[#allocation19 + $0x7a4] ss:$16 sps:$4 sm:$0xff]  }
 0x8c6   :  { %12912 = vmatpush1.bf16.msra.mxu1 %v19273_v12  ;;  %12585 = vmatprep.subr.bf16.mxu0 %v19278_v39  ;;  %v19347_v12 = vld [vmem:[#allocation19 + $0x7ac] ss:$16 sps:$4 sm:$0xff]   ;;  %v19342_v39 = vld [vmem:[#allocation19 + $0x7a0] ss:$16 sps:$4 sm:$0xff]  }
 0x8c7   :  { %12913 = vmatprep.subr.bf16.mxu1 %v19281_v15  ;;  %v8311_v15 = vrot.slane %v21240_v4, %v21196_v47 }
 0x8c9   :  { %12586 = vmatpush1.bf16.msra.mxu0 %v19276_v17  ;;  %v19345_v17 = vld [vmem:[#allocation19 + $0x7a8] ss:$16 sps:$4 sm:$0xff]  }
 0x8ca   :  { %12914 = vmatpush1.bf16.msra.mxu1 %v19279_v18  ;;  %12587 = vmatprep.subr.bf16.mxu0 %v19284_v43  ;;  %v19350_v18 = vld [vmem:[#allocation19 + $0x7c4] ss:$16 sps:$4 sm:$0xff]   ;;  %v19353_v43 = vld [vmem:[#allocation19 + $0x7cc] ss:$16 sps:$4 sm:$0xff]  }
 0x8cb   :  { %12915 = vmatprep.subr.bf16.mxu1 %v19287_v19  ;;  %v8323_v19 = vrot.slane %v21258_v26, %v21079_v58 }
 0x8cd   :  { %12588 = vmatpush1.bf16.msra.mxu0 %v19282_v20  ;;  %v19348_v20 = vld [vmem:[#allocation19 + $0x7c0] ss:$16 sps:$4 sm:$0xff]   ;;  %v9205_v4 = vadd.f32 %v21274_v48, %v8323_v19  ;;  %v19371_v48 = vld [vmem:[#allocation19 + $0x82c] ss:$16 sps:$4 sm:$0xff]   ;;  %v19416_v19 = vld [vmem:[#allocation19 + $0x924] ss:$16 sps:$4 sm:$0xff]  }
 0x8ce   :  { %12916 = vmatpush1.bf16.msra.mxu1 %v19285_v10  ;;  %12589 = vmatprep.subr.bf16.mxu0 %v19290_v8  ;;  %v9162_v10 = vadd.f32 %v21252_v60, %v8311_v15  ;;  %v19351_v8 = vld [vmem:[#allocation19 + $0x7c8] ss:$16 sps:$4 sm:$0xff]   ;;  %v19360_v60 = vld [vmem:[#allocation19 + $0x800] ss:$16 sps:$4 sm:$0xff]   ;;  %v19410_v15 = vld [vmem:[#allocation19 + $0x904] ss:$16 sps:$4 sm:$0xff]  }
 0x8cf   :  { %12917 = vmatprep.subr.bf16.mxu1 %v19293_v56  ;;  %v19356_v56 = vld [vmem:[#allocation19 + $0x7e4] ss:$16 sps:$4 sm:$0xff]  }
 0x8d1   :  { %12590 = vmatpush1.bf16.msra.mxu0 %v19288_v0  ;;  %v19359_v0 = vld [vmem:[#allocation19 + $0x7ec] ss:$16 sps:$4 sm:$0xff]  }
 0x8d2   :  { %12918 = vmatpush1.bf16.msra.mxu1 %v19291_v30  ;;  %12591 = vmatprep.subr.bf16.mxu0 %v19296_v21  ;;  %v19354_v30 = vld [vmem:[#allocation19 + $0x7e0] ss:$16 sps:$4 sm:$0xff]   ;;  %v9338_v21 = vmax.f32 %v9162_v10, 0.0 }
 0x8d3   :  { %12919 = vmatprep.subr.bf16.mxu1 %v19299_v22  ;;  %v19357_v22 = vld [vmem:[#allocation19 + $0x7e8] ss:$16 sps:$4 sm:$0xff]   ;;  %v19414_v10 = vld [vmem:[#allocation19 + $0x920] ss:$16 sps:$4 sm:$0xff]  }
 0x8d5   :  { %12592 = vmatpush1.bf16.msra.mxu0 %v19294_v23  ;;  %v19362_v23 = vld [vmem:[#allocation19 + $0x804] ss:$16 sps:$4 sm:$0xff]  }
 0x8d6   :  { %12920 = vmatpush1.bf16.msra.mxu1 %v19297_v31  ;;  %12593 = vmatprep.subr.bf16.mxu0 %v19302_v24  ;;  %v19365_v31 = vld [vmem:[#allocation19 + $0x80c] ss:$16 sps:$4 sm:$0xff]   ;;  %v9341_v24 = vmax.f32 %v9205_v4, 0.0  ;;  %v19420_v4 = vld [vmem:[#allocation19 + $0x940] ss:$16 sps:$4 sm:$0xff]  }
 0x8d7   :  { %12921 = vmatprep.subr.bf16.mxu1 %v19305_v44  ;;  %v9354_v44 = vpack.c.bf16 %v9338_v21, %v9338_v21  ;;  %v19428_v21 = vld [vmem:[#allocation19 + $0x964] ss:$16 sps:$4 sm:$0xff]  }
 0x8d9   :  { %12594 = vmatpush1.bf16.msra.mxu0 %v19300_v25  ;;  %v19363_v25 = vld [vmem:[#allocation19 + $0x808] ss:$16 sps:$4 sm:$0xff]  }
 0x8da   :  { %12922 = vmatpush1.bf16.msra.mxu1 %v19303_v13  ;;  %12595 = vmatprep.subr.bf16.mxu0 %v19308_v16  ;;  %v19368_v13 = vld [vmem:[#allocation19 + $0x824] ss:$16 sps:$4 sm:$0xff]   ;;  %v9357_v16 = vpack.c.bf16 %v9341_v24, %v9341_v24 }
 0x8db   :  { %12923 = vmatprep.subr.bf16.mxu1 %v19311_v27  ;;  %v19366_v27 = vld [vmem:[#allocation19 + $0x820] ss:$16 sps:$4 sm:$0xff]   ;;  %v19434_v24 = vld [vmem:[#allocation19 + $0x984] ss:$16 sps:$4 sm:$0xff]  }
 0x8dd   :  { %12596 = vmatpush1.bf16.msra.mxu0 %v19306_v34  ;;  %v19369_v34 = vld [vmem:[#allocation19 + $0x828] ss:$16 sps:$4 sm:$0xff]  }
 0x8de   :  { %12924 = vmatpush1.bf16.msra.mxu1 %v19309_v36  ;;  %12597 = vmatprep.subr.bf16.mxu0 %v19314_v28  ;;  %v19374_v36 = vld [vmem:[#allocation19 + $0x844] ss:$16 sps:$4 sm:$0xff]   ;;  %v19377_v28 = vld [vmem:[#allocation19 + $0x84c] ss:$16 sps:$4 sm:$0xff]  }
 0x8df   :  { %12925 = vmatprep.subr.bf16.mxu1 %v19317_v29  ;;  %v19372_v29 = vld [vmem:[#allocation19 + $0x840] ss:$16 sps:$4 sm:$0xff]  }
 0x8e1   :  { %12598 = vmatpush1.bf16.msra.mxu0 %v19312_v32  ;;  %v19375_v32 = vld [vmem:[#allocation19 + $0x848] ss:$16 sps:$4 sm:$0xff]  }
 0x8e2   :  { %12926 = vmatpush1.bf16.msra.mxu1 %v19315_v51  ;;  %12599 = vmatprep.subr.bf16.mxu0 %v19320_v33  ;;  %v19380_v51 = vld [vmem:[#allocation19 + $0x864] ss:$16 sps:$4 sm:$0xff]   ;;  %v19383_v33 = vld [vmem:[#allocation19 + $0x86c] ss:$16 sps:$4 sm:$0xff]  }
 0x8e3   :  { %12927 = vmatprep.subr.bf16.mxu1 %v19323_v37  ;;  %v19378_v37 = vld [vmem:[#allocation19 + $0x860] ss:$16 sps:$4 sm:$0xff]  }
 0x8e5   :  { %12600 = vmatpush1.bf16.msra.mxu0 %v19318_v38  ;;  %v19381_v38 = vld [vmem:[#allocation19 + $0x868] ss:$16 sps:$4 sm:$0xff]  }
 0x8e6   :  { %12928 = vmatpush1.bf16.msra.mxu1 %v19321_v40  ;;  %12601 = vmatprep.subr.bf16.mxu0 %v19326_v42  ;;  %v19386_v40 = vld [vmem:[#allocation19 + $0x884] ss:$16 sps:$4 sm:$0xff]   ;;  %v19389_v42 = vld [vmem:[#allocation19 + $0x88c] ss:$16 sps:$4 sm:$0xff]  }
 0x8e7   :  { %12929 = vmatprep.subr.bf16.mxu1 %v19329_v55  ;;  %v19384_v55 = vld [vmem:[#allocation19 + $0x880] ss:$16 sps:$4 sm:$0xff]  }
 0x8e9   :  { %12602 = vmatpush1.bf16.msra.mxu0 %v19324_v63  ;;  %v19387_v63 = vld [vmem:[#allocation19 + $0x888] ss:$16 sps:$4 sm:$0xff]  }
 0x8ea   :  { %12930 = vmatpush1.bf16.msra.mxu1 %v19327_v5  ;;  %12603 = vmatprep.subr.bf16.mxu0 %v19332_v54  ;;  %v19392_v5 = vld [vmem:[#allocation19 + $0x8a4] ss:$16 sps:$4 sm:$0xff]   ;;  %v19395_v54 = vld [vmem:[#allocation19 + $0x8ac] ss:$16 sps:$4 sm:$0xff]  }
 0x8eb   :  { %12931 = vmatprep.subr.bf16.mxu1 %v19335_v7  ;;  %v19390_v7 = vld [vmem:[#allocation19 + $0x8a0] ss:$16 sps:$4 sm:$0xff]  }
 0x8ed   :  { %12604 = vmatpush1.bf16.msra.mxu0 %v19330_v59  ;;  %v19393_v59 = vld [vmem:[#allocation19 + $0x8a8] ss:$16 sps:$4 sm:$0xff]  }
 0x8ee   :  { %12932 = vmatpush1.bf16.msra.mxu1 %v19333_v61  ;;  %12605 = vmatprep.subr.bf16.mxu0 %v19338_v9  ;;  %v19398_v61 = vld [vmem:[#allocation19 + $0x8c4] ss:$16 sps:$4 sm:$0xff]   ;;  %v19401_v9 = vld [vmem:[#allocation19 + $0x8cc] ss:$16 sps:$4 sm:$0xff]  }
 0x8ef   :  { %12933 = vmatprep.subr.bf16.mxu1 %v19341_v1  ;;  %v19396_v1 = vld [vmem:[#allocation19 + $0x8c0] ss:$16 sps:$4 sm:$0xff]  }
 0x8f1   :  { %12606 = vmatpush1.bf16.msra.mxu0 %v19336_v11  ;;  %v19399_v11 = vld [vmem:[#allocation19 + $0x8c8] ss:$16 sps:$4 sm:$0xff]  }
 0x8f2   :  { %12934 = vmatpush1.bf16.msra.mxu1 %v19339_v62  ;;  %12607 = vmatprep.subr.bf16.mxu0 %v19344_v14  ;;  %v19404_v62 = vld [vmem:[#allocation19 + $0x8e4] ss:$16 sps:$4 sm:$0xff]   ;;  %v19407_v14 = vld [vmem:[#allocation19 + $0x8ec] ss:$16 sps:$4 sm:$0xff]  }
 0x8f3   :  { %12935 = vmatprep.subr.bf16.mxu1 %v19347_v12  ;;  %v19402_v12 = vld [vmem:[#allocation19 + $0x8e0] ss:$16 sps:$4 sm:$0xff]  }
 0x8f5   :  { %12608 = vmatpush1.bf16.msra.mxu0 %v19342_v39  ;;  %v19405_v39 = vld [vmem:[#allocation19 + $0x8e8] ss:$16 sps:$4 sm:$0xff]  }
 0x8f6   :  { %12936 = vmatpush1.bf16.msra.mxu1 %v19345_v17  ;;  %12609 = vmatprep.subr.bf16.mxu0 %v19350_v18  ;;  %v19413_v17 = vld [vmem:[#allocation19 + $0x90c] ss:$16 sps:$4 sm:$0xff]   ;;  %v19408_v18 = vld [vmem:[#allocation19 + $0x900] ss:$16 sps:$4 sm:$0xff]  }
 0x8f7   :  { %12937 = vmatprep.subr.bf16.mxu1 %v19353_v43  ;;  %v19411_v43 = vld [vmem:[#allocation19 + $0x908] ss:$16 sps:$4 sm:$0xff]  }
 0x8f9   :  { %12610 = vmatpush1.bf16.msra.mxu0 %v19348_v20  ;;  %v19419_v20 = vld [vmem:[#allocation19 + $0x92c] ss:$16 sps:$4 sm:$0xff]  }
 0x8fa   :  { %12938 = vmatpush1.bf16.msra.mxu1 %v19351_v8  ;;  %12611 = vmatprep.subr.bf16.mxu0 %v19356_v56  ;;  %v19417_v8 = vld [vmem:[#allocation19 + $0x928] ss:$16 sps:$4 sm:$0xff]   ;;  %v19422_v56 = vld [vmem:[#allocation19 + $0x944] ss:$16 sps:$4 sm:$0xff]  }
 0x8fb   :  { %12939 = vmatprep.subr.bf16.mxu1 %v19359_v0  ;;  %v19425_v0 = vld [vmem:[#allocation19 + $0x94c] ss:$16 sps:$4 sm:$0xff]  }
 0x8fd   :  { %12612 = vmatpush1.bf16.msra.mxu0 %v19354_v30  ;;  %v19423_v30 = vld [vmem:[#allocation19 + $0x948] ss:$16 sps:$4 sm:$0xff]  }
 0x8fe   :  { %12940 = vmatpush1.bf16.msra.mxu1 %v19357_v22  ;;  %12622 = vmatprep.subr.bf16.mxu0 %v19362_v23  ;;  %v19431_v22 = vld [vmem:[#allocation19 + $0x96c] ss:$16 sps:$4 sm:$0xff]   ;;  %v19426_v23 = vld [vmem:[#allocation19 + $0x960] ss:$16 sps:$4 sm:$0xff]  }
 0x8ff   :  { %12950 = vmatprep.subr.bf16.mxu1 %v19365_v31  ;;  %v19429_v31 = vld [vmem:[#allocation19 + $0x968] ss:$16 sps:$4 sm:$0xff]  }
 0x900   :  { %12614 = vmatmul.mubr.bf16.vlgmr.msra.gmra.mrb[56].mxu0 %v9354_v44 }
 0x901   :  { %12942 = vmatmul.mubr.bf16.vlgmr.msra.gmra.mrb[60].mxu1 %v9354_v44  ;;  %12623 = vmatpush1.bf16.msra.mxu0 %v19360_v60  ;;  %v19437_v60 = vld [vmem:[#allocation19 + $0x98c] ss:$16 sps:$4 sm:$0xff]   ;;  %v19432_v44 = vld [vmem:[#allocation19 + $0x980] ss:$16 sps:$4 sm:$0xff]  }
 0x902   :  { %12654 = vmatprep.mubr.bf16.mxu0 %v9357_v16  ;;  %12951 = vmatpush1.bf16.msra.mxu1 %v19363_v25  ;;  %v19435_v25 = vld [vmem:[#allocation19 + $0x988] ss:$16 sps:$4 sm:$0xff]  }
 0x903   :  { %12982 = vmatprep.mubr.bf16.mxu1 %v9357_v16  ;;  %12624 = vmatprep.subr.bf16.mxu0 %v19368_v13  ;;  %v19440_v13 = vld [vmem:[#allocation19 + $0x9a4] ss:$16 sps:$4 sm:$0xff]   ;;  %v19443_v16 = vld [vmem:[#allocation19 + $0x9ac] ss:$16 sps:$4 sm:$0xff]  }
 0x904   :  { %12952 = vmatprep.subr.bf16.mxu1 %v19371_v48  ;;  %v19438_v48 = vld [vmem:[#allocation19 + $0x9a0] ss:$16 sps:$4 sm:$0xff]  }
 0x905   :  { %12625 = vmatpush1.bf16.msra.mxu0 %v19366_v27  ;;  %v8319_v27 = vrot.slane %v21258_v26, %v21076_v57  ;;  %v19453_v26 = vld [vmem:[#allocation19 + $0x9e8] ss:$16 sps:$4 sm:$0xff]  }
 0x906   :  { %12953 = vmatpush1.bf16.msra.mxu1 %v19369_v34  ;;  %12626 = vmatprep.subr.bf16.mxu0 %v19374_v36  ;;  %v19441_v34 = vld [vmem:[#allocation19 + $0x9a8] ss:$16 sps:$4 sm:$0xff]   ;;  %v19446_v36 = vld [vmem:[#allocation19 + $0x9c4] ss:$16 sps:$4 sm:$0xff]  }
 0x907   :  { %12954 = vmatprep.subr.bf16.mxu1 %v19377_v28  ;;  %v19449_v28 = vld [vmem:[#allocation19 + $0x9cc] ss:$16 sps:$4 sm:$0xff]  }
 0x909   :  { %12627 = vmatpush1.bf16.msra.mxu0 %v19372_v29  ;;  %v19444_v29 = vld [vmem:[#allocation19 + $0x9c0] ss:$16 sps:$4 sm:$0xff]  }
 0x90a   :  { %12955 = vmatpush1.bf16.msra.mxu1 %v19375_v32  ;;  %12628 = vmatprep.subr.bf16.mxu0 %v19380_v51  ;;  %v9203_v32 = vadd.f32 %v21270_v41, %v8319_v27  ;;  %v19447_v51 = vld [vmem:[#allocation19 + $0x9c8] ss:$16 sps:$4 sm:$0xff]   ;;  %v19515_v27 = vld [vmem:[#allocation19 + $0xb2c] ss:$16 sps:$4 sm:$0xff]  }
 0x90b   :  { %12956 = vmatprep.subr.bf16.mxu1 %v19383_v33  ;;  %v19452_v33 = vld [vmem:[#allocation19 + $0x9e4] ss:$16 sps:$4 sm:$0xff]  }
 0x90d   :  { %12629 = vmatpush1.bf16.msra.mxu0 %v19378_v37  ;;  %v19455_v37 = vld [vmem:[#allocation19 + $0x9ec] ss:$16 sps:$4 sm:$0xff]  }
 0x90e   :  { %12957 = vmatpush1.bf16.msra.mxu1 %v19381_v38  ;;  %12630 = vmatprep.subr.bf16.mxu0 %v19386_v40  ;;  %v19450_v38 = vld [vmem:[#allocation19 + $0x9e0] ss:$16 sps:$4 sm:$0xff]   ;;  %v9340_v40 = vmax.f32 %v9203_v32, 0.0 }
 0x90f   :  { %12958 = vmatprep.subr.bf16.mxu1 %v19389_v42  ;;  %v19458_v42 = vld [vmem:[#allocation19 + $0xa04] ss:$16 sps:$4 sm:$0xff]   ;;  %v19516_v32 = vld [vmem:[#allocation19 + $0xb40] ss:$16 sps:$4 sm:$0xff]  }
 0x910   :  { %v9356_v41 = vpack.c.bf16 %v9340_v40, %v9340_v40  ;;  %v19525_v40 = vld [vmem:[#allocation19 + $0xb68] ss:$16 sps:$4 sm:$0xff]  }
 0x911   :  { %12631 = vmatpush1.bf16.msra.mxu0 %v19384_v55  ;;  %v19461_v55 = vld [vmem:[#allocation19 + $0xa0c] ss:$16 sps:$4 sm:$0xff]  }
 0x912   :  { %12959 = vmatpush1.bf16.msra.mxu1 %v19387_v63  ;;  %12632 = vmatprep.subr.bf16.mxu0 %v19392_v5  ;;  %v9343_v63 = vmax.f32 %v21276_v52, 0.0  ;;  %v19456_v5 = vld [vmem:[#allocation19 + $0xa00] ss:$16 sps:$4 sm:$0xff]   ;;  %v19473_v52 = vld [vmem:[#allocation19 + $0xa4c] ss:$16 sps:$4 sm:$0xff]  }
 0x913   :  { %12960 = vmatprep.subr.bf16.mxu1 %v19395_v54  ;;  %v19459_v54 = vld [vmem:[#allocation19 + $0xa08] ss:$16 sps:$4 sm:$0xff]  }
 0x915   :  { %12633 = vmatpush1.bf16.msra.mxu0 %v19390_v7  ;;  %v19464_v7 = vld [vmem:[#allocation19 + $0xa24] ss:$16 sps:$4 sm:$0xff]  }
 0x916   :  { %12961 = vmatpush1.bf16.msra.mxu1 %v19393_v59  ;;  %12634 = vmatprep.subr.bf16.mxu0 %v19398_v61  ;;  %v9359_v59 = vpack.c.bf16 %v9343_v63, %v9343_v63  ;;  %v19467_v61 = vld [vmem:[#allocation19 + $0xa2c] ss:$16 sps:$4 sm:$0xff]   ;;  %v19531_v63 = vld [vmem:[#allocation19 + $0xb88] ss:$16 sps:$4 sm:$0xff]  }
 0x917   :  { %12962 = vmatprep.subr.bf16.mxu1 %v19401_v9  ;;  %v19462_v9 = vld [vmem:[#allocation19 + $0xa20] ss:$16 sps:$4 sm:$0xff]  }
 0x919   :  { %12635 = vmatpush1.bf16.msra.mxu0 %v19396_v1  ;;  %v19465_v1 = vld [vmem:[#allocation19 + $0xa28] ss:$16 sps:$4 sm:$0xff]  }
 0x91a   :  { %12963 = vmatpush1.bf16.msra.mxu1 %v19399_v11  ;;  %12636 = vmatprep.subr.bf16.mxu0 %v19404_v62  ;;  %v19470_v11 = vld [vmem:[#allocation19 + $0xa44] ss:$16 sps:$4 sm:$0xff]   ;;  %v19468_v62 = vld [vmem:[#allocation19 + $0xa40] ss:$16 sps:$4 sm:$0xff]  }
 0x91b   :  { %12964 = vmatprep.subr.bf16.mxu1 %v19407_v14  ;;  %v19471_v14 = vld [vmem:[#allocation19 + $0xa48] ss:$16 sps:$4 sm:$0xff]  }
 0x91d   :  { %12637 = vmatpush1.bf16.msra.mxu0 %v19402_v12  ;;  %v19476_v12 = vld [vmem:[#allocation19 + $0xa64] ss:$16 sps:$4 sm:$0xff]  }
 0x91e   :  { %12965 = vmatpush1.bf16.msra.mxu1 %v19405_v39  ;;  %12638 = vmatprep.subr.bf16.mxu0 %v19410_v15  ;;  %v19479_v39 = vld [vmem:[#allocation19 + $0xa6c] ss:$16 sps:$4 sm:$0xff]   ;;  %v19474_v15 = vld [vmem:[#allocation19 + $0xa60] ss:$16 sps:$4 sm:$0xff]  }
 0x91f   :  { %12966 = vmatprep.subr.bf16.mxu1 %v19413_v17  ;;  %v19477_v17 = vld [vmem:[#allocation19 + $0xa68] ss:$16 sps:$4 sm:$0xff]  }
 0x921   :  { %12639 = vmatpush1.bf16.msra.mxu0 %v19408_v18  ;;  %v19482_v18 = vld [vmem:[#allocation19 + $0xa84] ss:$16 sps:$4 sm:$0xff]  }
 0x922   :  { %12967 = vmatpush1.bf16.msra.mxu1 %v19411_v43  ;;  %12640 = vmatprep.subr.bf16.mxu0 %v19416_v19  ;;  %v19485_v43 = vld [vmem:[#allocation19 + $0xa8c] ss:$16 sps:$4 sm:$0xff]   ;;  %v19480_v19 = vld [vmem:[#allocation19 + $0xa80] ss:$16 sps:$4 sm:$0xff]  }
 0x923   :  { %12968 = vmatprep.subr.bf16.mxu1 %v19419_v20  ;;  %v19483_v20 = vld [vmem:[#allocation19 + $0xa88] ss:$16 sps:$4 sm:$0xff]  }
 0x925   :  { %12641 = vmatpush1.bf16.msra.mxu0 %v19414_v10  ;;  %v19488_v10 = vld [vmem:[#allocation19 + $0xaa4] ss:$16 sps:$4 sm:$0xff]  }
 0x926   :  { %12969 = vmatpush1.bf16.msra.mxu1 %v19417_v8  ;;  %12642 = vmatprep.subr.bf16.mxu0 %v19422_v56  ;;  %v19491_v8 = vld [vmem:[#allocation19 + $0xaac] ss:$16 sps:$4 sm:$0xff]   ;;  %v19486_v56 = vld [vmem:[#allocation19 + $0xaa0] ss:$16 sps:$4 sm:$0xff]  }
 0x927   :  { %12970 = vmatprep.subr.bf16.mxu1 %v19425_v0  ;;  %v19489_v0 = vld [vmem:[#allocation19 + $0xaa8] ss:$16 sps:$4 sm:$0xff]  }
 0x929   :  { %12643 = vmatpush1.bf16.msra.mxu0 %v19420_v4  ;;  %v19494_v4 = vld [vmem:[#allocation19 + $0xac4] ss:$16 sps:$4 sm:$0xff]  }
 0x92a   :  { %12971 = vmatpush1.bf16.msra.mxu1 %v19423_v30  ;;  %12644 = vmatprep.subr.bf16.mxu0 %v19428_v21  ;;  %v19497_v30 = vld [vmem:[#allocation19 + $0xacc] ss:$16 sps:$4 sm:$0xff]   ;;  %v19492_v21 = vld [vmem:[#allocation19 + $0xac0] ss:$16 sps:$4 sm:$0xff]  }
 0x92b   :  { %12972 = vmatprep.subr.bf16.mxu1 %v19431_v22  ;;  %v19495_v22 = vld [vmem:[#allocation19 + $0xac8] ss:$16 sps:$4 sm:$0xff]  }
 0x92d   :  { %12645 = vmatpush1.bf16.msra.mxu0 %v19426_v23  ;;  %v19500_v23 = vld [vmem:[#allocation19 + $0xae4] ss:$16 sps:$4 sm:$0xff]  }
 0x92e   :  { %12973 = vmatpush1.bf16.msra.mxu1 %v19429_v31  ;;  %12646 = vmatprep.subr.bf16.mxu0 %v19434_v24  ;;  %v19503_v31 = vld [vmem:[#allocation19 + $0xaec] ss:$16 sps:$4 sm:$0xff]   ;;  %v19498_v24 = vld [vmem:[#allocation19 + $0xae0] ss:$16 sps:$4 sm:$0xff]  }
 0x92f   :  { %12974 = vmatprep.subr.bf16.mxu1 %v19437_v60  ;;  %v19501_v60 = vld [vmem:[#allocation19 + $0xae8] ss:$16 sps:$4 sm:$0xff]  }
 0x931   :  { %12647 = vmatpush1.bf16.msra.mxu0 %v19432_v44  ;;  %v19506_v44 = vld [vmem:[#allocation19 + $0xb04] ss:$16 sps:$4 sm:$0xff]  }
 0x932   :  { %12975 = vmatpush1.bf16.msra.mxu1 %v19435_v25  ;;  %12648 = vmatprep.subr.bf16.mxu0 %v19440_v13  ;;  %v19509_v25 = vld [vmem:[#allocation19 + $0xb0c] ss:$16 sps:$4 sm:$0xff]   ;;  %v19504_v13 = vld [vmem:[#allocation19 + $0xb00] ss:$16 sps:$4 sm:$0xff]  }
 0x933   :  { %12976 = vmatprep.subr.bf16.mxu1 %v19443_v16  ;;  %v19507_v16 = vld [vmem:[#allocation19 + $0xb08] ss:$16 sps:$4 sm:$0xff]  }
 0x935   :  { %12649 = vmatpush1.bf16.msra.mxu0 %v19438_v48  ;;  %v19512_v48 = vld [vmem:[#allocation19 + $0xb24] ss:$16 sps:$4 sm:$0xff]  }
 0x936   :  { %12977 = vmatpush1.bf16.msra.mxu1 %v19441_v34  ;;  %12650 = vmatprep.subr.bf16.mxu0 %v19446_v36  ;;  %v19510_v34 = vld [vmem:[#allocation19 + $0xb20] ss:$16 sps:$4 sm:$0xff]   ;;  %v19513_v36 = vld [vmem:[#allocation19 + $0xb28] ss:$16 sps:$4 sm:$0xff]  }
 0x937   :  { %12978 = vmatprep.subr.bf16.mxu1 %v19449_v28  ;;  %v19518_v28 = vld [vmem:[#allocation19 + $0xb44] ss:$16 sps:$4 sm:$0xff]  }
 0x939   :  { %12651 = vmatpush1.bf16.msra.mxu0 %v19444_v29  ;;  %v19521_v29 = vld [vmem:[#allocation19 + $0xb4c] ss:$16 sps:$4 sm:$0xff]  }
 0x93a   :  { %12979 = vmatpush1.bf16.msra.mxu1 %v19447_v51  ;;  %12652 = vmatprep.subr.bf16.mxu0 %v19452_v33  ;;  %v19519_v51 = vld [vmem:[#allocation19 + $0xb48] ss:$16 sps:$4 sm:$0xff]   ;;  %v19524_v33 = vld [vmem:[#allocation19 + $0xb64] ss:$16 sps:$4 sm:$0xff]  }
 0x93b   :  { %12980 = vmatprep.subr.bf16.mxu1 %v19455_v37  ;;  %v19527_v37 = vld [vmem:[#allocation19 + $0xb6c] ss:$16 sps:$4 sm:$0xff]  }
 0x93d   :  { %12653 = vmatpush1.bf16.msra.mxu0 %v19450_v38  ;;  %v19522_v38 = vld [vmem:[#allocation19 + $0xb60] ss:$16 sps:$4 sm:$0xff]  }
 0x93e   :  { %12981 = vmatpush1.bf16.msra.mxu1 %v19453_v26  ;;  %12663 = vmatprep.subr.bf16.mxu0 %v19458_v42  ;;  %v19530_v26 = vld [vmem:[#allocation19 + $0xb84] ss:$16 sps:$4 sm:$0xff]   ;;  %v19533_v42 = vld [vmem:[#allocation19 + $0xb8c] ss:$16 sps:$4 sm:$0xff]  }
 0x93f   :  { %12991 = vmatprep.subr.bf16.mxu1 %v19461_v55  ;;  %v19528_v55 = vld [vmem:[#allocation19 + $0xb80] ss:$16 sps:$4 sm:$0xff]  }
 0x940   :  { %12655 = vmatmul.mubr.bf16.vlgmr.msra.gmra.mrb[56].mxu0 %v9356_v41 }
 0x941   :  { %12983 = vmatmul.mubr.bf16.vlgmr.msra.gmra.mrb[60].mxu1 %v9356_v41  ;;  %12664 = vmatpush1.bf16.msra.mxu0 %v19456_v5  ;;  %v19536_v5 = vld [vmem:[#allocation19 + $0xba4] ss:$16 sps:$4 sm:$0xff]   ;;  %v19539_v41 = vld [vmem:[#allocation19 + $0xbac] ss:$16 sps:$4 sm:$0xff]  }
 0x942   :  { %12695 = vmatprep.mubr.bf16.mxu0 %v9359_v59  ;;  %12992 = vmatpush1.bf16.msra.mxu1 %v19459_v54  ;;  %v19534_v54 = vld [vmem:[#allocation19 + $0xba0] ss:$16 sps:$4 sm:$0xff]  }
 0x943   :  { %13023 = vmatprep.mubr.bf16.mxu1 %v9359_v59  ;;  %12665 = vmatprep.subr.bf16.mxu0 %v19464_v7  ;;  %v19537_v7 = vld [vmem:[#allocation19 + $0xba8] ss:$16 sps:$4 sm:$0xff]   ;;  %v19542_v59 = vld [vmem:[#allocation19 + $0xbc4] ss:$16 sps:$4 sm:$0xff]  }
 0x944   :  { %12993 = vmatprep.subr.bf16.mxu1 %v19467_v61  ;;  %v19545_v61 = vld [vmem:[#allocation19 + $0xbcc] ss:$16 sps:$4 sm:$0xff]  }
 0x945   :  { %12666 = vmatpush1.bf16.msra.mxu0 %v19462_v9  ;;  %v19540_v9 = vld [vmem:[#allocation19 + $0xbc0] ss:$16 sps:$4 sm:$0xff]  }
 0x946   :  { %12994 = vmatpush1.bf16.msra.mxu1 %v19465_v1  ;;  %12667 = vmatprep.subr.bf16.mxu0 %v19470_v11  ;;  %v19543_v1 = vld [vmem:[#allocation19 + $0xbc8] ss:$16 sps:$4 sm:$0xff]   ;;  %v19548_v11 = vld [vmem:[#allocation19 + $0xbe4] ss:$16 sps:$4 sm:$0xff]  }
 0x947   :  { %12995 = vmatprep.subr.bf16.mxu1 %v19473_v52  ;;  %v19551_v52 = vld [vmem:[#allocation19 + $0xbec] ss:$16 sps:$4 sm:$0xff]  }
 0x949   :  { %12668 = vmatpush1.bf16.msra.mxu0 %v19468_v62  ;;  %v19546_v62 = vld [vmem:[#allocation19 + $0xbe0] ss:$16 sps:$4 sm:$0xff]  }
 0x94a   :  { %12996 = vmatpush1.bf16.msra.mxu1 %v19471_v14  ;;  %12669 = vmatprep.subr.bf16.mxu0 %v19476_v12  ;;  %v9342_v14 = vmax.f32 %v21272_v45, 0.0  ;;  %v19549_v12 = vld [vmem:[#allocation19 + $0xbe8] ss:$16 sps:$4 sm:$0xff]   ;;  %v19558_v45 = vld [vmem:[#allocation19 + $0xc20] ss:$16 sps:$4 sm:$0xff]  }
 0x94b   :  { %12997 = vmatprep.subr.bf16.mxu1 %v19479_v39  ;;  %v19554_v39 = vld [vmem:[#allocation19 + $0xc04] ss:$16 sps:$4 sm:$0xff]  }
 0x94d   :  { %12670 = vmatpush1.bf16.msra.mxu0 %v19474_v15  ;;  %v19557_v15 = vld [vmem:[#allocation19 + $0xc0c] ss:$16 sps:$4 sm:$0xff]  }
 0x94e   :  { %12998 = vmatpush1.bf16.msra.mxu1 %v19477_v17  ;;  %12671 = vmatprep.subr.bf16.mxu0 %v19482_v18  ;;  %v9345_v17 = vmax.f32 %v21290_v46, 0.0  ;;  %v19552_v18 = vld [vmem:[#allocation19 + $0xc00] ss:$16 sps:$4 sm:$0xff]   ;;  %v19569_v46 = vld [vmem:[#allocation19 + $0xc4c] ss:$16 sps:$4 sm:$0xff]  }
 0x94f   :  { %12999 = vmatprep.subr.bf16.mxu1 %v19485_v43  ;;  %v9358_v43 = vpack.c.bf16 %v9342_v14, %v9342_v14  ;;  %v19629_v14 = vld [vmem:[#allocation19 + $0xd8c] ss:$16 sps:$4 sm:$0xff]  }
 0x951   :  { %12672 = vmatpush1.bf16.msra.mxu0 %v19480_v19  ;;  %v19555_v19 = vld [vmem:[#allocation19 + $0xc08] ss:$16 sps:$4 sm:$0xff]  }
 0x952   :  { %13000 = vmatpush1.bf16.msra.mxu1 %v19483_v20  ;;  %12673 = vmatprep.subr.bf16.mxu0 %v19488_v10  ;;  %v19560_v20 = vld [vmem:[#allocation19 + $0xc24] ss:$16 sps:$4 sm:$0xff]   ;;  %v9361_v10 = vpack.c.bf16 %v9345_v17, %v9345_v17  ;;  %v19635_v17 = vld [vmem:[#allocation19 + $0xdac] ss:$16 sps:$4 sm:$0xff]  }
 0x953   :  { %13001 = vmatprep.subr.bf16.mxu1 %v19491_v8  ;;  %v19563_v8 = vld [vmem:[#allocation19 + $0xc2c] ss:$16 sps:$4 sm:$0xff]  }
 0x955   :  { %12674 = vmatpush1.bf16.msra.mxu0 %v19486_v56  ;;  %v19561_v56 = vld [vmem:[#allocation19 + $0xc28] ss:$16 sps:$4 sm:$0xff]  }
 0x956   :  { %13002 = vmatpush1.bf16.msra.mxu1 %v19489_v0  ;;  %12675 = vmatprep.subr.bf16.mxu0 %v19494_v4  ;;  %v19566_v0 = vld [vmem:[#allocation19 + $0xc44] ss:$16 sps:$4 sm:$0xff]   ;;  %v19564_v4 = vld [vmem:[#allocation19 + $0xc40] ss:$16 sps:$4 sm:$0xff]  }
 0x957   :  { %13003 = vmatprep.subr.bf16.mxu1 %v19497_v30  ;;  %v19567_v30 = vld [vmem:[#allocation19 + $0xc48] ss:$16 sps:$4 sm:$0xff]  }
 0x959   :  { %12676 = vmatpush1.bf16.msra.mxu0 %v19492_v21  ;;  %v19572_v21 = vld [vmem:[#allocation19 + $0xc64] ss:$16 sps:$4 sm:$0xff]  }
 0x95a   :  { %13004 = vmatpush1.bf16.msra.mxu1 %v19495_v22  ;;  %12677 = vmatprep.subr.bf16.mxu0 %v19500_v23  ;;  %v19575_v22 = vld [vmem:[#allocation19 + $0xc6c] ss:$16 sps:$4 sm:$0xff]   ;;  %v19570_v23 = vld [vmem:[#allocation19 + $0xc60] ss:$16 sps:$4 sm:$0xff]  }
 0x95b   :  { %13005 = vmatprep.subr.bf16.mxu1 %v19503_v31  ;;  %v19573_v31 = vld [vmem:[#allocation19 + $0xc68] ss:$16 sps:$4 sm:$0xff]  }
 0x95d   :  { %12678 = vmatpush1.bf16.msra.mxu0 %v19498_v24  ;;  %v19578_v24 = vld [vmem:[#allocation19 + $0xc84] ss:$16 sps:$4 sm:$0xff]  }
 0x95e   :  { %13006 = vmatpush1.bf16.msra.mxu1 %v19501_v60  ;;  %12679 = vmatprep.subr.bf16.mxu0 %v19506_v44  ;;  %v19581_v60 = vld [vmem:[#allocation19 + $0xc8c] ss:$16 sps:$4 sm:$0xff]   ;;  %v19576_v44 = vld [vmem:[#allocation19 + $0xc80] ss:$16 sps:$4 sm:$0xff]  }
 0x95f   :  { %13007 = vmatprep.subr.bf16.mxu1 %v19509_v25  ;;  %v19579_v25 = vld [vmem:[#allocation19 + $0xc88] ss:$16 sps:$4 sm:$0xff]  }
 0x961   :  { %12680 = vmatpush1.bf16.msra.mxu0 %v19504_v13  ;;  %v19584_v13 = vld [vmem:[#allocation19 + $0xca4] ss:$16 sps:$4 sm:$0xff]  }
 0x962   :  { %13008 = vmatpush1.bf16.msra.mxu1 %v19507_v16  ;;  %12681 = vmatprep.subr.bf16.mxu0 %v19512_v48  ;;  %v19587_v16 = vld [vmem:[#allocation19 + $0xcac] ss:$16 sps:$4 sm:$0xff]   ;;  %v19582_v48 = vld [vmem:[#allocation19 + $0xca0] ss:$16 sps:$4 sm:$0xff]  }
 0x963   :  { %13009 = vmatprep.subr.bf16.mxu1 %v19515_v27  ;;  %v19585_v27 = vld [vmem:[#allocation19 + $0xca8] ss:$16 sps:$4 sm:$0xff]  }
 0x965   :  { %12682 = vmatpush1.bf16.msra.mxu0 %v19510_v34  ;;  %v19590_v34 = vld [vmem:[#allocation19 + $0xcc4] ss:$16 sps:$4 sm:$0xff]  }
 0x966   :  { %13010 = vmatpush1.bf16.msra.mxu1 %v19513_v36  ;;  %12683 = vmatprep.subr.bf16.mxu0 %v19518_v28  ;;  %v19593_v36 = vld [vmem:[#allocation19 + $0xccc] ss:$16 sps:$4 sm:$0xff]   ;;  %v19588_v28 = vld [vmem:[#allocation19 + $0xcc0] ss:$16 sps:$4 sm:$0xff]  }
 0x967   :  { %13011 = vmatprep.subr.bf16.mxu1 %v19521_v29  ;;  %v19591_v29 = vld [vmem:[#allocation19 + $0xcc8] ss:$16 sps:$4 sm:$0xff]  }
 0x969   :  { %12684 = vmatpush1.bf16.msra.mxu0 %v19516_v32  ;;  %v19596_v32 = vld [vmem:[#allocation19 + $0xce4] ss:$16 sps:$4 sm:$0xff]  }
 0x96a   :  { %13012 = vmatpush1.bf16.msra.mxu1 %v19519_v51  ;;  %12685 = vmatprep.subr.bf16.mxu0 %v19524_v33  ;;  %v19599_v51 = vld [vmem:[#allocation19 + $0xcec] ss:$16 sps:$4 sm:$0xff]   ;;  %v19594_v33 = vld [vmem:[#allocation19 + $0xce0] ss:$16 sps:$4 sm:$0xff]  }
 0x96b   :  { %13013 = vmatprep.subr.bf16.mxu1 %v19527_v37  ;;  %v19597_v37 = vld [vmem:[#allocation19 + $0xce8] ss:$16 sps:$4 sm:$0xff]  }
 0x96d   :  { %12686 = vmatpush1.bf16.msra.mxu0 %v19522_v38  ;;  %v19602_v38 = vld [vmem:[#allocation19 + $0xd04] ss:$16 sps:$4 sm:$0xff]  }
 0x96e   :  { %13014 = vmatpush1.bf16.msra.mxu1 %v19525_v40  ;;  %12687 = vmatprep.subr.bf16.mxu0 %v19530_v26  ;;  %v19605_v40 = vld [vmem:[#allocation19 + $0xd0c] ss:$16 sps:$4 sm:$0xff]   ;;  %v19600_v26 = vld [vmem:[#allocation19 + $0xd00] ss:$16 sps:$4 sm:$0xff]  }
 0x96f   :  { %13015 = vmatprep.subr.bf16.mxu1 %v19533_v42  ;;  %v19603_v42 = vld [vmem:[#allocation19 + $0xd08] ss:$16 sps:$4 sm:$0xff]  }
 0x971   :  { %12688 = vmatpush1.bf16.msra.mxu0 %v19528_v55  ;;  %v19608_v55 = vld [vmem:[#allocation19 + $0xd24] ss:$16 sps:$4 sm:$0xff]  }
 0x972   :  { %13016 = vmatpush1.bf16.msra.mxu1 %v19531_v63  ;;  %12689 = vmatprep.subr.bf16.mxu0 %v19536_v5  ;;  %v19611_v63 = vld [vmem:[#allocation19 + $0xd2c] ss:$16 sps:$4 sm:$0xff]   ;;  %v19606_v5 = vld [vmem:[#allocation19 + $0xd20] ss:$16 sps:$4 sm:$0xff]  }
 0x973   :  { %13017 = vmatprep.subr.bf16.mxu1 %v19539_v41  ;;  %v19609_v41 = vld [vmem:[#allocation19 + $0xd28] ss:$16 sps:$4 sm:$0xff]  }
 0x975   :  { %12690 = vmatpush1.bf16.msra.mxu0 %v19534_v54  ;;  %v19614_v54 = vld [vmem:[#allocation19 + $0xd44] ss:$16 sps:$4 sm:$0xff]  }
 0x976   :  { %13018 = vmatpush1.bf16.msra.mxu1 %v19537_v7  ;;  %12691 = vmatprep.subr.bf16.mxu0 %v19542_v59  ;;  %v19617_v7 = vld [vmem:[#allocation19 + $0xd4c] ss:$16 sps:$4 sm:$0xff]   ;;  %v19612_v59 = vld [vmem:[#allocation19 + $0xd40] ss:$16 sps:$4 sm:$0xff]  }
 0x977   :  { %13019 = vmatprep.subr.bf16.mxu1 %v19545_v61  ;;  %v19615_v61 = vld [vmem:[#allocation19 + $0xd48] ss:$16 sps:$4 sm:$0xff]  }
 0x979   :  { %12692 = vmatpush1.bf16.msra.mxu0 %v19540_v9  ;;  %v19620_v9 = vld [vmem:[#allocation19 + $0xd64] ss:$16 sps:$4 sm:$0xff]  }
 0x97a   :  { %13020 = vmatpush1.bf16.msra.mxu1 %v19543_v1  ;;  %12693 = vmatprep.subr.bf16.mxu0 %v19548_v11  ;;  %v19623_v1 = vld [vmem:[#allocation19 + $0xd6c] ss:$16 sps:$4 sm:$0xff]   ;;  %v19618_v11 = vld [vmem:[#allocation19 + $0xd60] ss:$16 sps:$4 sm:$0xff]  }
 0x97b   :  { %13021 = vmatprep.subr.bf16.mxu1 %v19551_v52  ;;  %v19621_v52 = vld [vmem:[#allocation19 + $0xd68] ss:$16 sps:$4 sm:$0xff]  }
 0x97d   :  { %12694 = vmatpush1.bf16.msra.mxu0 %v19546_v62  ;;  %v19626_v62 = vld [vmem:[#allocation19 + $0xd84] ss:$16 sps:$4 sm:$0xff]  }
 0x97e   :  { %13022 = vmatpush1.bf16.msra.mxu1 %v19549_v12  ;;  %12704 = vmatprep.subr.bf16.mxu0 %v19554_v39  ;;  %v19624_v12 = vld [vmem:[#allocation19 + $0xd80] ss:$16 sps:$4 sm:$0xff]   ;;  %v19627_v39 = vld [vmem:[#allocation19 + $0xd88] ss:$16 sps:$4 sm:$0xff]  }
 0x97f   :  { %13032 = vmatprep.subr.bf16.mxu1 %v19557_v15  ;;  %v19632_v15 = vld [vmem:[#allocation19 + $0xda4] ss:$16 sps:$4 sm:$0xff]  }
 0x980   :  { %12696 = vmatmul.mubr.bf16.vlgmr.msra.gmra.mrb[56].mxu0 %v9358_v43 }
 0x981   :  { %13024 = vmatmul.mubr.bf16.vlgmr.msra.gmra.mrb[60].mxu1 %v9358_v43  ;;  %12705 = vmatpush1.bf16.msra.mxu0 %v19552_v18  ;;  %v19630_v18 = vld [vmem:[#allocation19 + $0xda0] ss:$16 sps:$4 sm:$0xff]   ;;  %v19633_v43 = vld [vmem:[#allocation19 + $0xda8] ss:$16 sps:$4 sm:$0xff]  }
 0x982   :  { %12736 = vmatprep.mubr.bf16.mxu0 %v9361_v10  ;;  %13033 = vmatpush1.bf16.msra.mxu1 %v19555_v19  ;;  %v19638_v19 = vld [vmem:[#allocation19 + $0xdc4] ss:$16 sps:$4 sm:$0xff]  }
 0x983   :  { %13064 = vmatprep.mubr.bf16.mxu1 %v9361_v10  ;;  %12706 = vmatprep.subr.bf16.mxu0 %v19560_v20  ;;  %v19641_v20 = vld [vmem:[#allocation19 + $0xdcc] ss:$16 sps:$4 sm:$0xff]   ;;  %v19636_v10 = vld [vmem:[#allocation19 + $0xdc0] ss:$16 sps:$4 sm:$0xff]  }
 0x984   :  { %13034 = vmatprep.subr.bf16.mxu1 %v19563_v8  ;;  %v19639_v8 = vld [vmem:[#allocation19 + $0xdc8] ss:$16 sps:$4 sm:$0xff]  }
 0x985   :  { %12707 = vmatpush1.bf16.msra.mxu0 %v19558_v45  ;;  %v19644_v45 = vld [vmem:[#allocation19 + $0xde4] ss:$16 sps:$4 sm:$0xff]  }
 0x986   :  { %13035 = vmatpush1.bf16.msra.mxu1 %v19561_v56  ;;  %12708 = vmatprep.subr.bf16.mxu0 %v19566_v0  ;;  %v19647_v56 = vld [vmem:[#allocation19 + $0xdec] ss:$16 sps:$4 sm:$0xff]   ;;  %v19642_v0 = vld [vmem:[#allocation19 + $0xde0] ss:$16 sps:$4 sm:$0xff]  }
 0x987   :  { %13036 = vmatprep.subr.bf16.mxu1 %v19569_v46  ;;  %v9344_v46 = vmax.f32 %v21286_v49, 0.0  ;;  %v19654_v49 = vld [vmem:[#allocation19 + $0xe20] ss:$16 sps:$4 sm:$0xff]  }
 0x989   :  { %12709 = vmatpush1.bf16.msra.mxu0 %v19564_v4  ;;  %v19645_v4 = vld [vmem:[#allocation19 + $0xde8] ss:$16 sps:$4 sm:$0xff]  }
 0x98a   :  { %13037 = vmatpush1.bf16.msra.mxu1 %v19567_v30  ;;  %12710 = vmatprep.subr.bf16.mxu0 %v19572_v21  ;;  %v19650_v30 = vld [vmem:[#allocation19 + $0xe04] ss:$16 sps:$4 sm:$0xff]   ;;  %v19653_v21 = vld [vmem:[#allocation19 + $0xe0c] ss:$16 sps:$4 sm:$0xff]  }
 0x98b   :  { %13038 = vmatprep.subr.bf16.mxu1 %v19575_v22  ;;  %v9347_v22 = vmax.f32 %v21292_v2, 0.0  ;;  %v19665_v2 = vld [vmem:[#allocation19 + $0xe4c] ss:$16 sps:$4 sm:$0xff]  }
 0x98d   :  { %12711 = vmatpush1.bf16.msra.mxu0 %v19570_v23  ;;  %v19648_v23 = vld [vmem:[#allocation19 + $0xe00] ss:$16 sps:$4 sm:$0xff]  }
 0x98e   :  { %13039 = vmatpush1.bf16.msra.mxu1 %v19573_v31  ;;  %12712 = vmatprep.subr.bf16.mxu0 %v19578_v24  ;;  %v9360_v31 = vpack.c.bf16 %v9344_v46, %v9344_v46  ;;  %v19651_v24 = vld [vmem:[#allocation19 + $0xe08] ss:$16 sps:$4 sm:$0xff]  }
 0x98f   :  { %13040 = vmatprep.subr.bf16.mxu1 %v19581_v60  ;;  %v19656_v60 = vld [vmem:[#allocation19 + $0xe24] ss:$16 sps:$4 sm:$0xff]   ;;  %v19723_v46 = vld [vmem:[#allocation19 + $0xf88] ss:$16 sps:$4 sm:$0xff]  }
 0x991   :  { %12713 = vmatpush1.bf16.msra.mxu0 %v19576_v44  ;;  %v9363_v44 = vpack.c.bf16 %v9347_v22, %v9347_v22  ;;  %v19729_v22 = vld [vmem:[#allocation19 + $0xfa8] ss:$16 sps:$4 sm:$0xff]  }
 0x992   :  { %13041 = vmatpush1.bf16.msra.mxu1 %v19579_v25  ;;  %12714 = vmatprep.subr.bf16.mxu0 %v19584_v13  ;;  %v19659_v25 = vld [vmem:[#allocation19 + $0xe2c] ss:$16 sps:$4 sm:$0xff]   ;;  %v19657_v13 = vld [vmem:[#allocation19 + $0xe28] ss:$16 sps:$4 sm:$0xff]  }
 0x993   :  { %13042 = vmatprep.subr.bf16.mxu1 %v19587_v16  ;;  %v19662_v16 = vld [vmem:[#allocation19 + $0xe44] ss:$16 sps:$4 sm:$0xff]  }
 0x995   :  { %12715 = vmatpush1.bf16.msra.mxu0 %v19582_v48  ;;  %v19660_v48 = vld [vmem:[#allocation19 + $0xe40] ss:$16 sps:$4 sm:$0xff]  }
 0x996   :  { %13043 = vmatpush1.bf16.msra.mxu1 %v19585_v27  ;;  %12716 = vmatprep.subr.bf16.mxu0 %v19590_v34  ;;  %v19663_v27 = vld [vmem:[#allocation19 + $0xe48] ss:$16 sps:$4 sm:$0xff]   ;;  %v19668_v34 = vld [vmem:[#allocation19 + $0xe64] ss:$16 sps:$4 sm:$0xff]  }
 0x997   :  { %13044 = vmatprep.subr.bf16.mxu1 %v19593_v36  ;;  %v19671_v36 = vld [vmem:[#allocation19 + $0xe6c] ss:$16 sps:$4 sm:$0xff]  }
 0x999   :  { %12717 = vmatpush1.bf16.msra.mxu0 %v19588_v28  ;;  %v19666_v28 = vld [vmem:[#allocation19 + $0xe60] ss:$16 sps:$4 sm:$0xff]  }
 0x99a   :  { %13045 = vmatpush1.bf16.msra.mxu1 %v19591_v29  ;;  %12718 = vmatprep.subr.bf16.mxu0 %v19596_v32  ;;  %v19669_v29 = vld [vmem:[#allocation19 + $0xe68] ss:$16 sps:$4 sm:$0xff]   ;;  %v19674_v32 = vld [vmem:[#allocation19 + $0xe84] ss:$16 sps:$4 sm:$0xff]  }
 0x99b   :  { %13046 = vmatprep.subr.bf16.mxu1 %v19599_v51  ;;  %v19677_v51 = vld [vmem:[#allocation19 + $0xe8c] ss:$16 sps:$4 sm:$0xff]  }
 0x99d   :  { %12719 = vmatpush1.bf16.msra.mxu0 %v19594_v33  ;;  %v19672_v33 = vld [vmem:[#allocation19 + $0xe80] ss:$16 sps:$4 sm:$0xff]  }
 0x99e   :  { %13047 = vmatpush1.bf16.msra.mxu1 %v19597_v37  ;;  %12720 = vmatprep.subr.bf16.mxu0 %v19602_v38  ;;  %v19675_v37 = vld [vmem:[#allocation19 + $0xe88] ss:$16 sps:$4 sm:$0xff]   ;;  %v19680_v38 = vld [vmem:[#allocation19 + $0xea4] ss:$16 sps:$4 sm:$0xff]  }
 0x99f   :  { %13048 = vmatprep.subr.bf16.mxu1 %v19605_v40  ;;  %v19683_v40 = vld [vmem:[#allocation19 + $0xeac] ss:$16 sps:$4 sm:$0xff]  }
 0x9a1   :  { %12721 = vmatpush1.bf16.msra.mxu0 %v19600_v26  ;;  %v19678_v26 = vld [vmem:[#allocation19 + $0xea0] ss:$16 sps:$4 sm:$0xff]  }
 0x9a2   :  { %13049 = vmatpush1.bf16.msra.mxu1 %v19603_v42  ;;  %12722 = vmatprep.subr.bf16.mxu0 %v19608_v55  ;;  %v19681_v42 = vld [vmem:[#allocation19 + $0xea8] ss:$16 sps:$4 sm:$0xff]   ;;  %v19686_v55 = vld [vmem:[#allocation19 + $0xec4] ss:$16 sps:$4 sm:$0xff]  }
 0x9a3   :  { %13050 = vmatprep.subr.bf16.mxu1 %v19611_v63  ;;  %v19689_v63 = vld [vmem:[#allocation19 + $0xecc] ss:$16 sps:$4 sm:$0xff]  }
 0x9a5   :  { %12723 = vmatpush1.bf16.msra.mxu0 %v19606_v5  ;;  %v19684_v5 = vld [vmem:[#allocation19 + $0xec0] ss:$16 sps:$4 sm:$0xff]  }
 0x9a6   :  { %13051 = vmatpush1.bf16.msra.mxu1 %v19609_v41  ;;  %12724 = vmatprep.subr.bf16.mxu0 %v19614_v54  ;;  %v19687_v41 = vld [vmem:[#allocation19 + $0xec8] ss:$16 sps:$4 sm:$0xff]   ;;  %v19692_v54 = vld [vmem:[#allocation19 + $0xee4] ss:$16 sps:$4 sm:$0xff]  }
 0x9a7   :  { %13052 = vmatprep.subr.bf16.mxu1 %v19617_v7  ;;  %v19695_v7 = vld [vmem:[#allocation19 + $0xeec] ss:$16 sps:$4 sm:$0xff]  }
 0x9a9   :  { %12725 = vmatpush1.bf16.msra.mxu0 %v19612_v59  ;;  %v19690_v59 = vld [vmem:[#allocation19 + $0xee0] ss:$16 sps:$4 sm:$0xff]  }
 0x9aa   :  { %13053 = vmatpush1.bf16.msra.mxu1 %v19615_v61  ;;  %12726 = vmatprep.subr.bf16.mxu0 %v19620_v9  ;;  %v19693_v61 = vld [vmem:[#allocation19 + $0xee8] ss:$16 sps:$4 sm:$0xff]   ;;  %v19698_v9 = vld [vmem:[#allocation19 + $0xf04] ss:$16 sps:$4 sm:$0xff]  }
 0x9ab   :  { %13054 = vmatprep.subr.bf16.mxu1 %v19623_v1  ;;  %v19701_v1 = vld [vmem:[#allocation19 + $0xf0c] ss:$16 sps:$4 sm:$0xff]  }
 0x9ad   :  { %12727 = vmatpush1.bf16.msra.mxu0 %v19618_v11  ;;  %v19696_v11 = vld [vmem:[#allocation19 + $0xf00] ss:$16 sps:$4 sm:$0xff]  }
 0x9ae   :  { %13055 = vmatpush1.bf16.msra.mxu1 %v19621_v52  ;;  %12728 = vmatprep.subr.bf16.mxu0 %v19626_v62  ;;  %v19699_v52 = vld [vmem:[#allocation19 + $0xf08] ss:$16 sps:$4 sm:$0xff]   ;;  %v19704_v62 = vld [vmem:[#allocation19 + $0xf24] ss:$16 sps:$4 sm:$0xff]  }
 0x9af   :  { %13056 = vmatprep.subr.bf16.mxu1 %v19629_v14  ;;  %v19707_v14 = vld [vmem:[#allocation19 + $0xf2c] ss:$16 sps:$4 sm:$0xff]  }
 0x9b1   :  { %12729 = vmatpush1.bf16.msra.mxu0 %v19624_v12  ;;  %v19702_v12 = vld [vmem:[#allocation19 + $0xf20] ss:$16 sps:$4 sm:$0xff]  }
 0x9b2   :  { %13057 = vmatpush1.bf16.msra.mxu1 %v19627_v39  ;;  %12730 = vmatprep.subr.bf16.mxu0 %v19632_v15  ;;  %v19705_v39 = vld [vmem:[#allocation19 + $0xf28] ss:$16 sps:$4 sm:$0xff]   ;;  %v19710_v15 = vld [vmem:[#allocation19 + $0xf44] ss:$16 sps:$4 sm:$0xff]  }
 0x9b3   :  { %13058 = vmatprep.subr.bf16.mxu1 %v19635_v17  ;;  %v19713_v17 = vld [vmem:[#allocation19 + $0xf4c] ss:$16 sps:$4 sm:$0xff]  }
 0x9b5   :  { %12731 = vmatpush1.bf16.msra.mxu0 %v19630_v18  ;;  %v19708_v18 = vld [vmem:[#allocation19 + $0xf40] ss:$16 sps:$4 sm:$0xff]  }
 0x9b6   :  { %13059 = vmatpush1.bf16.msra.mxu1 %v19633_v43  ;;  %12732 = vmatprep.subr.bf16.mxu0 %v19638_v19  ;;  %v19711_v43 = vld [vmem:[#allocation19 + $0xf48] ss:$16 sps:$4 sm:$0xff]   ;;  %v19716_v19 = vld [vmem:[#allocation19 + $0xf64] ss:$16 sps:$4 sm:$0xff]  }
 0x9b7   :  { %13060 = vmatprep.subr.bf16.mxu1 %v19641_v20  ;;  %v19719_v20 = vld [vmem:[#allocation19 + $0xf6c] ss:$16 sps:$4 sm:$0xff]  }
 0x9b9   :  { %12733 = vmatpush1.bf16.msra.mxu0 %v19636_v10  ;;  %v19714_v10 = vld [vmem:[#allocation19 + $0xf60] ss:$16 sps:$4 sm:$0xff]  }
 0x9ba   :  { %13061 = vmatpush1.bf16.msra.mxu1 %v19639_v8  ;;  %12734 = vmatprep.subr.bf16.mxu0 %v19644_v45  ;;  %v19717_v8 = vld [vmem:[#allocation19 + $0xf68] ss:$16 sps:$4 sm:$0xff]   ;;  %v19722_v45 = vld [vmem:[#allocation19 + $0xf84] ss:$16 sps:$4 sm:$0xff]  }
 0x9bb   :  { %13062 = vmatprep.subr.bf16.mxu1 %v19647_v56  ;;  %v19725_v56 = vld [vmem:[#allocation19 + $0xf8c] ss:$16 sps:$4 sm:$0xff]  }
 0x9bd   :  { %12735 = vmatpush1.bf16.msra.mxu0 %v19642_v0  ;;  %v19720_v0 = vld [vmem:[#allocation19 + $0xf80] ss:$16 sps:$4 sm:$0xff]  }
 0x9be   :  { %13063 = vmatpush1.bf16.msra.mxu1 %v19645_v4  ;;  %12745 = vmatprep.subr.bf16.mxu0 %v19650_v30  ;;  %v19728_v4 = vld [vmem:[#allocation19 + $0xfa4] ss:$16 sps:$4 sm:$0xff]   ;;  %v19731_v30 = vld [vmem:[#allocation19 + $0xfac] ss:$16 sps:$4 sm:$0xff]  }
 0x9bf   :  { %13073 = vmatprep.subr.bf16.mxu1 %v19653_v21  ;;  %v19726_v21 = vld [vmem:[#allocation19 + $0xfa0] ss:$16 sps:$4 sm:$0xff]  }
 0x9c0   :  { %12737 = vmatmul.mubr.bf16.vlgmr.msra.gmra.mrb[56].mxu0 %v9360_v31 }
 0x9c1   :  { %13065 = vmatmul.mubr.bf16.vlgmr.msra.gmra.mrb[60].mxu1 %v9360_v31  ;;  %12746 = vmatpush1.bf16.msra.mxu0 %v19648_v23  ;;  %v19734_v23 = vld [vmem:[#allocation19 + $0xfc4] ss:$16 sps:$4 sm:$0xff]   ;;  %v19737_v31 = vld [vmem:[#allocation19 + $0xfcc] ss:$16 sps:$4 sm:$0xff]  }
 0x9c2   :  { %12777 = vmatprep.mubr.bf16.mxu0 %v9363_v44  ;;  %13074 = vmatpush1.bf16.msra.mxu1 %v19651_v24  ;;  %v19732_v24 = vld [vmem:[#allocation19 + $0xfc0] ss:$16 sps:$4 sm:$0xff]  }
 0x9c3   :  { %13105 = vmatprep.mubr.bf16.mxu1 %v9363_v44  ;;  %12747 = vmatprep.subr.bf16.mxu0 %v19656_v60  ;;  %v19735_v60 = vld [vmem:[#allocation19 + $0xfc8] ss:$16 sps:$4 sm:$0xff]   ;;  %v19740_v44 = vld [vmem:[#allocation19 + $0xfe4] ss:$16 sps:$4 sm:$0xff]  }
 0x9c4   :  { %13075 = vmatprep.subr.bf16.mxu1 %v19659_v25  ;;  %v19743_v25 = vld [vmem:[#allocation19 + $0xfec] ss:$16 sps:$4 sm:$0xff]  }
 0x9c5   :  { %12748 = vmatpush1.bf16.msra.mxu0 %v19654_v49  ;;  %v19738_v49 = vld [vmem:[#allocation19 + $0xfe0] ss:$16 sps:$4 sm:$0xff]  }
 0x9c6   :  { %13076 = vmatpush1.bf16.msra.mxu1 %v19657_v13  ;;  %12749 = vmatprep.subr.bf16.mxu0 %v19662_v16  ;;  %v9346_v13 = vmax.f32 %v21288_v50, 0.0  ;;  %v19741_v16 = vld [vmem:[#allocation19 + $0xfe8] ss:$16 sps:$4 sm:$0xff]   ;;  %v19753_v50 = vld [vmem:[#allocation22 + $0x28] ss:$16 sps:$4 sm:$0xff]  }
 0x9c7   :  { %13077 = vmatprep.subr.bf16.mxu1 %v19665_v2  ;;  %v19746_v2 = vld [vmem:[#allocation22 + $0x4] ss:$16 sps:$4 sm:$0xff]  }
 0x9c9   :  { %12750 = vmatpush1.bf16.msra.mxu0 %v19660_v48  ;;  %v19749_v48 = vld [vmem:[#allocation22 + $0xc] ss:$16 sps:$4 sm:$0xff]  }
 0x9ca   :  { %13078 = vmatpush1.bf16.msra.mxu1 %v19663_v27  ;;  %12751 = vmatprep.subr.bf16.mxu0 %v19668_v34  ;;  %v19744_v27 = vld [vmem:[#allocation22] ss:$16 sps:$4 sm:$0xff]   ;;  %v9362_v34 = vpack.c.bf16 %v9346_v13, %v9346_v13 }
 0x9cb   :  { %13079 = vmatprep.subr.bf16.mxu1 %v19671_v36  ;;  %v19747_v36 = vld [vmem:[#allocation22 + $0x8] ss:$16 sps:$4 sm:$0xff]   ;;  %v19822_v13 = vld [vmem:[#allocation22 + $0x1a0] ss:$16 sps:$4 sm:$0xff]  }
 0x9cd   :  { %12752 = vmatpush1.bf16.msra.mxu0 %v19666_v28  ;;  %v19752_v28 = vld [vmem:[#allocation22 + $0x24] ss:$16 sps:$4 sm:$0xff]  }
 0x9ce   :  { %13080 = vmatpush1.bf16.msra.mxu1 %v19669_v29  ;;  %12753 = vmatprep.subr.bf16.mxu0 %v19674_v32  ;;  %v19755_v29 = vld [vmem:[#allocation22 + $0x2c] ss:$16 sps:$4 sm:$0xff]   ;;  %v19750_v32 = vld [vmem:[#allocation22 + $0x20] ss:$16 sps:$4 sm:$0xff]  }
 0x9cf   :  { %13081 = vmatprep.subr.bf16.mxu1 %v19677_v51  ;;  %v19758_v51 = vld [vmem:[#allocation22 + $0x44] ss:$16 sps:$4 sm:$0xff]  }
 0x9d1   :  { %12754 = vmatpush1.bf16.msra.mxu0 %v19672_v33  ;;  %v19761_v33 = vld [vmem:[#allocation22 + $0x4c] ss:$16 sps:$4 sm:$0xff]  }
 0x9d2   :  { %13082 = vmatpush1.bf16.msra.mxu1 %v19675_v37  ;;  %12755 = vmatprep.subr.bf16.mxu0 %v19680_v38  ;;  %v19756_v37 = vld [vmem:[#allocation22 + $0x40] ss:$16 sps:$4 sm:$0xff]   ;;  %v19759_v38 = vld [vmem:[#allocation22 + $0x48] ss:$16 sps:$4 sm:$0xff]  }
 0x9d3   :  { %13083 = vmatprep.subr.bf16.mxu1 %v19683_v40  ;;  %v19764_v40 = vld [vmem:[#allocation22 + $0x64] ss:$16 sps:$4 sm:$0xff]  }
 0x9d5   :  { %12756 = vmatpush1.bf16.msra.mxu0 %v19678_v26  ;;  %v19767_v26 = vld [vmem:[#allocation22 + $0x6c] ss:$16 sps:$4 sm:$0xff]  }
 0x9d6   :  { %13084 = vmatpush1.bf16.msra.mxu1 %v19681_v42  ;;  %12757 = vmatprep.subr.bf16.mxu0 %v19686_v55  ;;  %v19762_v42 = vld [vmem:[#allocation22 + $0x60] ss:$16 sps:$4 sm:$0xff]   ;;  %v19765_v55 = vld [vmem:[#allocation22 + $0x68] ss:$16 sps:$4 sm:$0xff]  }
 0x9d7   :  { %13085 = vmatprep.subr.bf16.mxu1 %v19689_v63  ;;  %v19770_v63 = vld [vmem:[#allocation22 + $0x84] ss:$16 sps:$4 sm:$0xff]  }
 0x9d9   :  { %12758 = vmatpush1.bf16.msra.mxu0 %v19684_v5  ;;  %v19773_v5 = vld [vmem:[#allocation22 + $0x8c] ss:$16 sps:$4 sm:$0xff]  }
 0x9da   :  { %13086 = vmatpush1.bf16.msra.mxu1 %v19687_v41  ;;  %12759 = vmatprep.subr.bf16.mxu0 %v19692_v54  ;;  %v19768_v41 = vld [vmem:[#allocation22 + $0x80] ss:$16 sps:$4 sm:$0xff]   ;;  %v19771_v54 = vld [vmem:[#allocation22 + $0x88] ss:$16 sps:$4 sm:$0xff]  }
 0x9db   :  { %13087 = vmatprep.subr.bf16.mxu1 %v19695_v7  ;;  %v19776_v7 = vld [vmem:[#allocation22 + $0xa4] ss:$16 sps:$4 sm:$0xff]  }
 0x9dd   :  { %12760 = vmatpush1.bf16.msra.mxu0 %v19690_v59  ;;  %v19779_v59 = vld [vmem:[#allocation22 + $0xac] ss:$16 sps:$4 sm:$0xff]  }
 0x9de   :  { %13088 = vmatpush1.bf16.msra.mxu1 %v19693_v61  ;;  %12761 = vmatprep.subr.bf16.mxu0 %v19698_v9  ;;  %v19774_v61 = vld [vmem:[#allocation22 + $0xa0] ss:$16 sps:$4 sm:$0xff]   ;;  %v19777_v9 = vld [vmem:[#allocation22 + $0xa8] ss:$16 sps:$4 sm:$0xff]  }
 0x9df   :  { %13089 = vmatprep.subr.bf16.mxu1 %v19701_v1  ;;  %v19782_v1 = vld [vmem:[#allocation22 + $0xc4] ss:$16 sps:$4 sm:$0xff]  }
 0x9e1   :  { %12762 = vmatpush1.bf16.msra.mxu0 %v19696_v11  ;;  %v19785_v11 = vld [vmem:[#allocation22 + $0xcc] ss:$16 sps:$4 sm:$0xff]  }
 0x9e2   :  { %13090 = vmatpush1.bf16.msra.mxu1 %v19699_v52  ;;  %12763 = vmatprep.subr.bf16.mxu0 %v19704_v62  ;;  %v19780_v52 = vld [vmem:[#allocation22 + $0xc0] ss:$16 sps:$4 sm:$0xff]   ;;  %v19783_v62 = vld [vmem:[#allocation22 + $0xc8] ss:$16 sps:$4 sm:$0xff]  }
 0x9e3   :  { %13091 = vmatprep.subr.bf16.mxu1 %v19707_v14  ;;  %v19788_v14 = vld [vmem:[#allocation22 + $0xe4] ss:$16 sps:$4 sm:$0xff]  }
 0x9e5   :  { %12764 = vmatpush1.bf16.msra.mxu0 %v19702_v12  ;;  %v19791_v12 = vld [vmem:[#allocation22 + $0xec] ss:$16 sps:$4 sm:$0xff]  }
 0x9e6   :  { %13092 = vmatpush1.bf16.msra.mxu1 %v19705_v39  ;;  %12765 = vmatprep.subr.bf16.mxu0 %v19710_v15  ;;  %v19786_v39 = vld [vmem:[#allocation22 + $0xe0] ss:$16 sps:$4 sm:$0xff]   ;;  %v19789_v15 = vld [vmem:[#allocation22 + $0xe8] ss:$16 sps:$4 sm:$0xff]  }
 0x9e7   :  { %13093 = vmatprep.subr.bf16.mxu1 %v19713_v17  ;;  %v19794_v17 = vld [vmem:[#allocation22 + $0x104] ss:$16 sps:$4 sm:$0xff]  }
 0x9e9   :  { %12766 = vmatpush1.bf16.msra.mxu0 %v19708_v18  ;;  %v19797_v18 = vld [vmem:[#allocation22 + $0x10c] ss:$16 sps:$4 sm:$0xff]  }
 0x9ea   :  { %13094 = vmatpush1.bf16.msra.mxu1 %v19711_v43  ;;  %12767 = vmatprep.subr.bf16.mxu0 %v19716_v19  ;;  %v19792_v43 = vld [vmem:[#allocation22 + $0x100] ss:$16 sps:$4 sm:$0xff]   ;;  %v19795_v19 = vld [vmem:[#allocation22 + $0x108] ss:$16 sps:$4 sm:$0xff]  }
 0x9eb   :  { %13095 = vmatprep.subr.bf16.mxu1 %v19719_v20  ;;  %v19800_v20 = vld [vmem:[#allocation22 + $0x124] ss:$16 sps:$4 sm:$0xff]  }
 0x9ed   :  { %12768 = vmatpush1.bf16.msra.mxu0 %v19714_v10  ;;  %v19803_v10 = vld [vmem:[#allocation22 + $0x12c] ss:$16 sps:$4 sm:$0xff]  }
 0x9ee   :  { %13096 = vmatpush1.bf16.msra.mxu1 %v19717_v8  ;;  %12769 = vmatprep.subr.bf16.mxu0 %v19722_v45  ;;  %v19798_v8 = vld [vmem:[#allocation22 + $0x120] ss:$16 sps:$4 sm:$0xff]   ;;  %v19801_v45 = vld [vmem:[#allocation22 + $0x128] ss:$16 sps:$4 sm:$0xff]  }
 0x9ef   :  { %13097 = vmatprep.subr.bf16.mxu1 %v19725_v56  ;;  %v19806_v56 = vld [vmem:[#allocation22 + $0x144] ss:$16 sps:$4 sm:$0xff]  }
 0x9f1   :  { %12770 = vmatpush1.bf16.msra.mxu0 %v19720_v0  ;;  %v19809_v0 = vld [vmem:[#allocation22 + $0x14c] ss:$16 sps:$4 sm:$0xff]  }
 0x9f2   :  { %13098 = vmatpush1.bf16.msra.mxu1 %v19723_v46  ;;  %12771 = vmatprep.subr.bf16.mxu0 %v19728_v4  ;;  %v19804_v46 = vld [vmem:[#allocation22 + $0x140] ss:$16 sps:$4 sm:$0xff]   ;;  %v19807_v4 = vld [vmem:[#allocation22 + $0x148] ss:$16 sps:$4 sm:$0xff]  }
 0x9f3   :  { %13099 = vmatprep.subr.bf16.mxu1 %v19731_v30  ;;  %v19812_v30 = vld [vmem:[#allocation22 + $0x164] ss:$16 sps:$4 sm:$0xff]  }
 0x9f5   :  { %12772 = vmatpush1.bf16.msra.mxu0 %v19726_v21  ;;  %v19815_v21 = vld [vmem:[#allocation22 + $0x16c] ss:$16 sps:$4 sm:$0xff]  }
 0x9f6   :  { %13100 = vmatpush1.bf16.msra.mxu1 %v19729_v22  ;;  %12773 = vmatprep.subr.bf16.mxu0 %v19734_v23  ;;  %v19810_v22 = vld [vmem:[#allocation22 + $0x160] ss:$16 sps:$4 sm:$0xff]   ;;  %v19813_v23 = vld [vmem:[#allocation22 + $0x168] ss:$16 sps:$4 sm:$0xff]  }
 0x9f7   :  { %13101 = vmatprep.subr.bf16.mxu1 %v19737_v31  ;;  %v19818_v31 = vld [vmem:[#allocation22 + $0x184] ss:$16 sps:$4 sm:$0xff]  }
 0x9f9   :  { %12774 = vmatpush1.bf16.msra.mxu0 %v19732_v24  ;;  %v19821_v24 = vld [vmem:[#allocation22 + $0x18c] ss:$16 sps:$4 sm:$0xff]  }
 0x9fa   :  { %13102 = vmatpush1.bf16.msra.mxu1 %v19735_v60  ;;  %12775 = vmatprep.subr.bf16.mxu0 %v19740_v44  ;;  %v19816_v60 = vld [vmem:[#allocation22 + $0x180] ss:$16 sps:$4 sm:$0xff]   ;;  %v19819_v44 = vld [vmem:[#allocation22 + $0x188] ss:$16 sps:$4 sm:$0xff]  }
 0x9fb   :  { %13103 = vmatprep.subr.bf16.mxu1 %v19743_v25  ;;  %v19824_v25 = vld [vmem:[#allocation22 + $0x1a4] ss:$16 sps:$4 sm:$0xff]  }
 0x9fd   :  { %12776 = vmatpush1.bf16.msra.mxu0 %v19738_v49  ;;  %v19827_v49 = vld [vmem:[#allocation22 + $0x1ac] ss:$16 sps:$4 sm:$0xff]  }
 0x9fe   :  { %13104 = vmatpush1.bf16.msra.mxu1 %v19741_v16  ;;  %13912 = vmatprep.subr.bf16.mxu0 %v19746_v2  ;;  %v19825_v16 = vld [vmem:[#allocation22 + $0x1a8] ss:$16 sps:$4 sm:$0xff]   ;;  %v19830_v2 = vld [vmem:[#allocation22 + $0x1c4] ss:$16 sps:$4 sm:$0xff]  }
 0x9ff   :  { %13994 = vmatprep.subr.bf16.mxu1 %v19749_v48  ;;  %v19833_v48 = vld [vmem:[#allocation22 + $0x1cc] ss:$16 sps:$4 sm:$0xff]  }
 0xa00   :  { %12778 = vmatmul.mubr.bf16.vlgmr.msra.gmra.mrb[56].mxu0 %v9362_v34 }
 0xa01   :  { %13106 = vmatmul.mubr.bf16.vlgmr.msra.gmra.mrb[60].mxu1 %v9362_v34  ;;  %13913 = vmatpush1.bf16.msra.mxu0 %v19744_v27  ;;  %v19828_v27 = vld [vmem:[#allocation22 + $0x1c0] ss:$16 sps:$4 sm:$0xff]   ;;  %v19831_v34 = vld [vmem:[#allocation22 + $0x1c8] ss:$16 sps:$4 sm:$0xff]  }
 0xa02   :  { %13995 = vmatpush1.bf16.msra.mxu1 %v19747_v36  ;;  %13914 = vmatprep.subr.bf16.mxu0 %v19752_v28  ;;  %v19836_v36 = vld [vmem:[#allocation22 + $0x1e4] ss:$16 sps:$4 sm:$0xff]   ;;  %v19839_v28 = vld [vmem:[#allocation22 + $0x1ec] ss:$16 sps:$4 sm:$0xff]  }
 0xa03   :  { %13996 = vmatprep.subr.bf16.mxu1 %v19755_v29  ;;  %v19834_v29 = vld [vmem:[#allocation22 + $0x1e0] ss:$16 sps:$4 sm:$0xff]  }
 0xa05   :  { %13915 = vmatpush1.bf16.msra.mxu0 %v19750_v32  ;;  %v19837_v32 = vld [vmem:[#allocation22 + $0x1e8] ss:$16 sps:$4 sm:$0xff]  }
 0xa06   :  { %13997 = vmatpush1.bf16.msra.mxu1 %v19753_v50  ;;  %13916 = vmatprep.subr.bf16.mxu0 %v19758_v51  ;;  %v19842_v50 = vld [vmem:[#allocation22 + $0x204] ss:$16 sps:$4 sm:$0xff]   ;;  %v19845_v51 = vld [vmem:[#allocation22 + $0x20c] ss:$16 sps:$4 sm:$0xff]  }
 0xa07   :  { %13998 = vmatprep.subr.bf16.mxu1 %v19761_v33  ;;  %v21315_v33 = vld [vmem:[#allocation20] sm:$0xf] }
 0xa09   :  { %13917 = vmatpush1.bf16.msra.mxu0 %v19756_v37  ;;  %v9881_v37 = vrot.slane %v21315_v33, %v21076_v57 }
 0xa0a   :  { %13999 = vmatpush1.bf16.msra.mxu1 %v19759_v38  ;;  %13918 = vmatprep.subr.bf16.mxu0 %v19764_v40  ;;  %v9885_v38 = vrot.slane %v21315_v33, %v21079_v58  ;;  %v9893_v40 = vrot.slane %v21315_v33, %v21091_v6 }
 0xa0b   :  { %14000 = vmatprep.subr.bf16.mxu1 %v19767_v26 }
 0xa0d   :  { %13919 = vmatpush1.bf16.msra.mxu0 %v19762_v42 }
 0xa0e   :  { %14001 = vmatpush1.bf16.msra.mxu1 %v19765_v55  ;;  %13920 = vmatprep.subr.bf16.mxu0 %v19770_v63 }
 0xa0f   :  { %14002 = vmatprep.subr.bf16.mxu1 %v19773_v5 }
 0xa11   :  { %13921 = vmatpush1.bf16.msra.mxu0 %v19768_v41 }
 0xa12   :  { %14003 = vmatpush1.bf16.msra.mxu1 %v19771_v54  ;;  %13922 = vmatprep.subr.bf16.mxu0 %v19776_v7 }
 0xa13   :  { %14004 = vmatprep.subr.bf16.mxu1 %v19779_v59 }
 0xa15   :  { %13923 = vmatpush1.bf16.msra.mxu0 %v19774_v61 }
 0xa16   :  { %14005 = vmatpush1.bf16.msra.mxu1 %v19777_v9  ;;  %13924 = vmatprep.subr.bf16.mxu0 %v19782_v1 }
 0xa17   :  { %14006 = vmatprep.subr.bf16.mxu1 %v19785_v11 }
 0xa19   :  { %13925 = vmatpush1.bf16.msra.mxu0 %v19780_v52 }
 0xa1a   :  { %14007 = vmatpush1.bf16.msra.mxu1 %v19783_v62  ;;  %13926 = vmatprep.subr.bf16.mxu0 %v19788_v14  ;;  %v19840_v14 = vld [vmem:[#allocation22 + $0x200] ss:$16 sps:$4 sm:$0xff]  }
 0xa1b   :  { %14008 = vmatprep.subr.bf16.mxu1 %v19791_v12  ;;  %v19843_v12 = vld [vmem:[#allocation22 + $0x208] ss:$16 sps:$4 sm:$0xff]  }
 0xa1d   :  { %13927 = vmatpush1.bf16.msra.mxu0 %v19786_v39 }
 0xa1e   :  { %14009 = vmatpush1.bf16.msra.mxu1 %v19789_v15  ;;  %13928 = vmatprep.subr.bf16.mxu0 %v19794_v17  ;;  %v19848_v15 = vld [vmem:[#allocation22 + $0x224] ss:$16 sps:$4 sm:$0xff]   ;;  %v19851_v17 = vld [vmem:[#allocation22 + $0x22c] ss:$16 sps:$4 sm:$0xff]  }
 0xa1f   :  { %14010 = vmatprep.subr.bf16.mxu1 %v19797_v18 }
 0xa21   :  { %13929 = vmatpush1.bf16.msra.mxu0 %v19792_v43  ;;  %v19846_v43 = vld [vmem:[#allocation22 + $0x220] ss:$16 sps:$4 sm:$0xff]  }
 0xa22   :  { %14011 = vmatpush1.bf16.msra.mxu1 %v19795_v19  ;;  %13930 = vmatprep.subr.bf16.mxu0 %v19800_v20  ;;  %v19849_v19 = vld [vmem:[#allocation22 + $0x228] ss:$16 sps:$4 sm:$0xff]   ;;  %v19854_v20 = vld [vmem:[#allocation22 + $0x244] ss:$16 sps:$4 sm:$0xff]  }
 0xa23   :  { %14012 = vmatprep.subr.bf16.mxu1 %v19803_v10  ;;  %v19857_v10 = vld [vmem:[#allocation22 + $0x24c] ss:$16 sps:$4 sm:$0xff]  }
 0xa25   :  { %13931 = vmatpush1.bf16.msra.mxu0 %v19798_v8  ;;  %v19852_v8 = vld [vmem:[#allocation22 + $0x240] ss:$16 sps:$4 sm:$0xff]  }
 0xa26   :  { %14013 = vmatpush1.bf16.msra.mxu1 %v19801_v45  ;;  %13932 = vmatprep.subr.bf16.mxu0 %v19806_v56  ;;  %v19855_v45 = vld [vmem:[#allocation22 + $0x248] ss:$16 sps:$4 sm:$0xff]   ;;  %v19860_v56 = vld [vmem:[#allocation22 + $0x264] ss:$16 sps:$4 sm:$0xff]  }
 0xa27   :  { %14014 = vmatprep.subr.bf16.mxu1 %v19809_v0  ;;  %v19863_v0 = vld [vmem:[#allocation22 + $0x26c] ss:$16 sps:$4 sm:$0xff]  }
 0xa29   :  { %13933 = vmatpush1.bf16.msra.mxu0 %v19804_v46  ;;  %v19858_v46 = vld [vmem:[#allocation22 + $0x260] ss:$16 sps:$4 sm:$0xff]  }
 0xa2a   :  { %14015 = vmatpush1.bf16.msra.mxu1 %v19807_v4  ;;  %13934 = vmatprep.subr.bf16.mxu0 %v19812_v30  ;;  %v19861_v4 = vld [vmem:[#allocation22 + $0x268] ss:$16 sps:$4 sm:$0xff]   ;;  %v19866_v30 = vld [vmem:[#allocation22 + $0x284] ss:$16 sps:$4 sm:$0xff]  }
 0xa2b   :  { %14016 = vmatprep.subr.bf16.mxu1 %v19815_v21  ;;  %v19869_v21 = vld [vmem:[#allocation22 + $0x28c] ss:$16 sps:$4 sm:$0xff]  }
 0xa2d   :  { %13935 = vmatpush1.bf16.msra.mxu0 %v19810_v22  ;;  %v19864_v22 = vld [vmem:[#allocation22 + $0x280] ss:$16 sps:$4 sm:$0xff]  }
 0xa2e   :  { %14017 = vmatpush1.bf16.msra.mxu1 %v19813_v23  ;;  %13936 = vmatprep.subr.bf16.mxu0 %v19818_v31  ;;  %v19867_v23 = vld [vmem:[#allocation22 + $0x288] ss:$16 sps:$4 sm:$0xff]   ;;  %v19872_v31 = vld [vmem:[#allocation22 + $0x2a4] ss:$16 sps:$4 sm:$0xff]  }
 0xa2f   :  { %14018 = vmatprep.subr.bf16.mxu1 %v19821_v24  ;;  %v19875_v24 = vld [vmem:[#allocation22 + $0x2ac] ss:$16 sps:$4 sm:$0xff]  }
 0xa31   :  { %13937 = vmatpush1.bf16.msra.mxu0 %v19816_v60  ;;  %v19870_v60 = vld [vmem:[#allocation22 + $0x2a0] ss:$16 sps:$4 sm:$0xff]  }
 0xa32   :  { %14019 = vmatpush1.bf16.msra.mxu1 %v19819_v44  ;;  %13938 = vmatprep.subr.bf16.mxu0 %v19824_v25  ;;  %v19873_v44 = vld [vmem:[#allocation22 + $0x2a8] ss:$16 sps:$4 sm:$0xff]   ;;  %v19878_v25 = vld [vmem:[#allocation22 + $0x2c4] ss:$16 sps:$4 sm:$0xff]  }
 0xa33   :  { %14020 = vmatprep.subr.bf16.mxu1 %v19827_v49  ;;  %v19881_v49 = vld [vmem:[#allocation22 + $0x2cc] ss:$16 sps:$4 sm:$0xff]  }
 0xa35   :  { %13939 = vmatpush1.bf16.msra.mxu0 %v19822_v13  ;;  %v19876_v13 = vld [vmem:[#allocation22 + $0x2c0] ss:$16 sps:$4 sm:$0xff]  }
 0xa36   :  { %14021 = vmatpush1.bf16.msra.mxu1 %v19825_v16  ;;  %13940 = vmatprep.subr.bf16.mxu0 %v19830_v2  ;;  %v19879_v16 = vld [vmem:[#allocation22 + $0x2c8] ss:$16 sps:$4 sm:$0xff]   ;;  %v19884_v2 = vld [vmem:[#allocation22 + $0x2e4] ss:$16 sps:$4 sm:$0xff]  }
 0xa37   :  { %14022 = vmatprep.subr.bf16.mxu1 %v19833_v48  ;;  %v19887_v48 = vld [vmem:[#allocation22 + $0x2ec] ss:$16 sps:$4 sm:$0xff]  }
 0xa39   :  { %13941 = vmatpush1.bf16.msra.mxu0 %v19828_v27  ;;  %v19882_v27 = vld [vmem:[#allocation22 + $0x2e0] ss:$16 sps:$4 sm:$0xff]  }
 0xa3a   :  { %14023 = vmatpush1.bf16.msra.mxu1 %v19831_v34  ;;  %13942 = vmatprep.subr.bf16.mxu0 %v19836_v36  ;;  %v19885_v34 = vld [vmem:[#allocation22 + $0x2e8] ss:$16 sps:$4 sm:$0xff]   ;;  %v19890_v36 = vld [vmem:[#allocation22 + $0x304] ss:$16 sps:$4 sm:$0xff]  }
 0xa3b   :  { %14024 = vmatprep.subr.bf16.mxu1 %v19839_v28  ;;  %v19893_v28 = vld [vmem:[#allocation22 + $0x30c] ss:$16 sps:$4 sm:$0xff]  }
 0xa3d   :  { %13943 = vmatpush1.bf16.msra.mxu0 %v19834_v29  ;;  %v19888_v29 = vld [vmem:[#allocation22 + $0x300] ss:$16 sps:$4 sm:$0xff]  }
 0xa3e   :  { %14025 = vmatpush1.bf16.msra.mxu1 %v19837_v32  ;;  %13953 = vmatprep.subr.bf16.mxu0 %v19842_v50  ;;  %v19891_v32 = vld [vmem:[#allocation22 + $0x308] ss:$16 sps:$4 sm:$0xff]   ;;  %v19896_v50 = vld [vmem:[#allocation22 + $0x324] ss:$16 sps:$4 sm:$0xff]  }
 0xa3f   :  { %14035 = vmatprep.subr.bf16.mxu1 %v19845_v51  ;;  %v19899_v51 = vld [vmem:[#allocation22 + $0x32c] ss:$16 sps:$4 sm:$0xff]  }
 0xad3   :  { %v12779_v26 = vpop.f32.mrb[56].mxu0 }
 0xad4   :  { %v18137_v42 = vadd.f32 %v12779_v26, %v9881_v37  ;;  %v21323_v55 = vpop.f32.mrb[60].mxu1  ;;  %v12781_v63 = vpop.f32.mrb[57].mxu0  ;;  %v19894_v37 = vld [vmem:[#allocation22 + $0x320] ss:$16 sps:$4 sm:$0xff]   ;;  %v19905_v26 = vld [vmem:[#allocation22 + $0x34c] ss:$16 sps:$4 sm:$0xff]  }
 0xad5   :  { %v18138_v5 = vadd.f32 %v12781_v63, %v9885_v38  ;;  %v13109_v41 = vpop.f32.mrb[61].mxu1  ;;  %v12783_v54 = vpop.f32.mrb[58].mxu0  ;;  %v19897_v38 = vld [vmem:[#allocation22 + $0x328] ss:$16 sps:$4 sm:$0xff]  }
 0xad6   :  { %v13114_v7 = vmax.f32 %v18137_v42, 0.0  ;;  %v18140_v59 = vadd.f32 %v13109_v41, %v9893_v40  ;;  %v13111_v61 = vpop.f32.mrb[62].mxu1  ;;  %v12784_v9 = vpop.f32.mrb[59].mxu0  ;;  %v19902_v40 = vld [vmem:[#allocation22 + $0x344] ss:$16 sps:$4 sm:$0xff]  }
 0xad7   :  { %v13115_v1 = vmax.f32 %v18138_v5, 0.0  ;;  %v13112_v11 = vpop.f32.mrb[63].mxu1  ;;  %v19900_v42 = vld [vmem:[#allocation22 + $0x340] ss:$16 sps:$4 sm:$0xff]   ;;  %v19903_v63 = vld [vmem:[#allocation22 + $0x348] ss:$16 sps:$4 sm:$0xff]  }
 0xad8   :  { %v13117_v52 = vmax.f32 %v18140_v59, 0.0  ;;  %v13118_v39 = vpack.c.bf16 %v13114_v7, %v13114_v7  ;;  %v19908_v5 = vld [vmem:[#allocation22 + $0x364] ss:$16 sps:$4 sm:$0xff]   ;;  %v19911_v41 = vld [vmem:[#allocation22 + $0x36c] ss:$16 sps:$4 sm:$0xff]  }
 0xad9   :  { %v13119_v62 = vpack.c.bf16 %v13115_v1, %v13115_v1  ;;  %v19906_v54 = vld [vmem:[#allocation22 + $0x360] ss:$16 sps:$4 sm:$0xff]   ;;  %v19909_v7 = vld [vmem:[#allocation22 + $0x368] ss:$16 sps:$4 sm:$0xff]   ;;  %v19914_v59 = vld [vmem:[#allocation22 + $0x384] ss:$16 sps:$4 sm:$0xff]  }
 0xada   :  { %v13121_v18 = vpack.c.bf16 %v13117_v52, %v13117_v52  ;;  %v19917_v61 = vld [vmem:[#allocation22 + $0x38c] ss:$16 sps:$4 sm:$0xff]   ;;  %v19912_v9 = vld [vmem:[#allocation22 + $0x380] ss:$16 sps:$4 sm:$0xff]   ;;  %v19915_v1 = vld [vmem:[#allocation22 + $0x388] ss:$16 sps:$4 sm:$0xff]  }
 0xadb   :  { %13944 = vmatprep.mubr.bf16.mxu0 %v13119_v62  ;;  %14026 = vmatprep.mubr.bf16.mxu1 %v13119_v62  ;;  %v19920_v11 = vld [vmem:[#allocation22 + $0x3a4] ss:$16 sps:$4 sm:$0xff]   ;;  %v19923_v52 = vld [vmem:[#allocation22 + $0x3ac] ss:$16 sps:$4 sm:$0xff]   ;;  %v19918_v62 = vld [vmem:[#allocation22 + $0x3a0] ss:$16 sps:$4 sm:$0xff]  }
 0xadc   :  { %13945 = vmatmul.mubr.bf16.vlgmr.msra.gmra.mrb[60].mxu0 %v13118_v39  ;;  %14027 = vmatmul.mubr.bf16.vlgmr.msra.gmra.mrb[64].mxu1 %v13118_v39  ;;  %v19926_v39 = vld [vmem:[#allocation22 + $0x3c4] ss:$16 sps:$4 sm:$0xff]  }
 0xadd   :  { %13954 = vmatpush1.bf16.msra.mxu0 %v19840_v14  ;;  %14036 = vmatpush1.bf16.msra.mxu1 %v19843_v12  ;;  %v19921_v14 = vld [vmem:[#allocation22 + $0x3a8] ss:$16 sps:$4 sm:$0xff]   ;;  %v9889_v12 = vrot.slane %v21315_v33, %v21088_v3 }
 0xade   :  { %13985 = vmatprep.mubr.bf16.mxu0 %v13121_v18  ;;  %14067 = vmatprep.mubr.bf16.mxu1 %v13121_v18  ;;  %v19927_v18 = vld [vmem:[#allocation22 + $0x3c8] ss:$16 sps:$4 sm:$0xff]  }
 0xadf   :  { %13955 = vmatprep.subr.bf16.mxu0 %v19848_v15  ;;  %14037 = vmatprep.subr.bf16.mxu1 %v19851_v17  ;;  %v19929_v15 = vld [vmem:[#allocation22 + $0x3cc] ss:$16 sps:$4 sm:$0xff]   ;;  %v19924_v17 = vld [vmem:[#allocation22 + $0x3c0] ss:$16 sps:$4 sm:$0xff]   ;;  %v19938_v33 = vld [vmem:[#allocation25 + $0x4] ss:$28 sps:$4 sm:$0xff]  }
 0xae1   :  { %13956 = vmatpush1.bf16.msra.mxu0 %v19846_v43  ;;  %14038 = vmatpush1.bf16.msra.mxu1 %v19849_v19  ;;  %v18139_v43 = vadd.f32 %v21323_v55, %v9889_v12  ;;  %v19932_v19 = vld [vmem:[#allocation22 + $0x3e4] ss:$16 sps:$4 sm:$0xff]   ;;  %v19944_v55 = vld [vmem:[#allocation25 + $0x3c] ss:$28 sps:$4 sm:$0xff]  }
 0xae2   :  { %13957 = vmatprep.subr.bf16.mxu0 %v19854_v20  ;;  %14039 = vmatprep.subr.bf16.mxu1 %v19857_v10  ;;  %v19935_v20 = vld [vmem:[#allocation22 + $0x3ec] ss:$16 sps:$4 sm:$0xff]   ;;  %v19930_v10 = vld [vmem:[#allocation22 + $0x3e0] ss:$16 sps:$4 sm:$0xff]   ;;  %v20007_v12 = vld [vmem:[#allocation25 + $0x274] ss:$28 sps:$4 sm:$0xff]  }
 0xae5   :  { %13958 = vmatpush1.bf16.msra.mxu0 %v19852_v8  ;;  %14040 = vmatpush1.bf16.msra.mxu1 %v19855_v45  ;;  %v19933_v8 = vld [vmem:[#allocation22 + $0x3e8] ss:$16 sps:$4 sm:$0xff]   ;;  %v13116_v45 = vmax.f32 %v18139_v43, 0.0  ;;  %v20008_v43 = vld [vmem:[#allocation25 + $0x2a0] ss:$28 sps:$4 sm:$0xff]  }
 0xae6   :  { %13959 = vmatprep.subr.bf16.mxu0 %v19860_v56  ;;  %14041 = vmatprep.subr.bf16.mxu1 %v19863_v0  ;;  %v19941_v56 = vld [vmem:[#allocation25 + $0xc] ss:$28 sps:$4 sm:$0xff]   ;;  %v19936_v0 = vld [vmem:[#allocation25] ss:$28 sps:$4 sm:$0xff]  }
 0xae9   :  { %13960 = vmatpush1.bf16.msra.mxu0 %v19858_v46  ;;  %14042 = vmatpush1.bf16.msra.mxu1 %v19861_v4  ;;  %v19939_v46 = vld [vmem:[#allocation25 + $0x8] ss:$28 sps:$4 sm:$0xff]   ;;  %v13120_v4 = vpack.c.bf16 %v13116_v45, %v13116_v45  ;;  %v20017_v45 = vld [vmem:[#allocation25 + $0x2e0] ss:$28 sps:$4 sm:$0xff]  }
 0xaea   :  { %13961 = vmatprep.subr.bf16.mxu0 %v19866_v30  ;;  %14043 = vmatprep.subr.bf16.mxu1 %v19869_v21  ;;  %v19947_v30 = vld [vmem:[#allocation25 + $0x44] ss:$28 sps:$4 sm:$0xff]   ;;  %v19942_v21 = vld [vmem:[#allocation25 + $0x38] ss:$28 sps:$4 sm:$0xff]  }
 0xaed   :  { %13962 = vmatpush1.bf16.msra.mxu0 %v19864_v22  ;;  %14044 = vmatpush1.bf16.msra.mxu1 %v19867_v23  ;;  %v19945_v22 = vld [vmem:[#allocation25 + $0x40] ss:$28 sps:$4 sm:$0xff]   ;;  %v19950_v23 = vld [vmem:[#allocation25 + $0x74] ss:$28 sps:$4 sm:$0xff]  }
 0xaee   :  { %13963 = vmatprep.subr.bf16.mxu0 %v19872_v31  ;;  %14045 = vmatprep.subr.bf16.mxu1 %v19875_v24  ;;  %v19953_v31 = vld [vmem:[#allocation25 + $0x7c] ss:$28 sps:$4 sm:$0xff]   ;;  %v19948_v24 = vld [vmem:[#allocation25 + $0x70] ss:$28 sps:$4 sm:$0xff]  }
 0xaf1   :  { %13964 = vmatpush1.bf16.msra.mxu0 %v19870_v60  ;;  %14046 = vmatpush1.bf16.msra.mxu1 %v19873_v44  ;;  %v19951_v60 = vld [vmem:[#allocation25 + $0x78] ss:$28 sps:$4 sm:$0xff]   ;;  %v19956_v44 = vld [vmem:[#allocation25 + $0xac] ss:$28 sps:$4 sm:$0xff]  }
 0xaf2   :  { %13965 = vmatprep.subr.bf16.mxu0 %v19878_v25  ;;  %14047 = vmatprep.subr.bf16.mxu1 %v19881_v49  ;;  %v19959_v25 = vld [vmem:[#allocation25 + $0xb4] ss:$28 sps:$4 sm:$0xff]   ;;  %v19954_v49 = vld [vmem:[#allocation25 + $0xa8] ss:$28 sps:$4 sm:$0xff]  }
 0xaf5   :  { %13966 = vmatpush1.bf16.msra.mxu0 %v19876_v13  ;;  %14048 = vmatpush1.bf16.msra.mxu1 %v19879_v16  ;;  %v19957_v13 = vld [vmem:[#allocation25 + $0xb0] ss:$28 sps:$4 sm:$0xff]   ;;  %v19962_v16 = vld [vmem:[#allocation25 + $0xe4] ss:$28 sps:$4 sm:$0xff]  }
 0xaf6   :  { %13967 = vmatprep.subr.bf16.mxu0 %v19884_v2  ;;  %14049 = vmatprep.subr.bf16.mxu1 %v19887_v48  ;;  %v19965_v2 = vld [vmem:[#allocation25 + $0xec] ss:$28 sps:$4 sm:$0xff]   ;;  %v19960_v48 = vld [vmem:[#allocation25 + $0xe0] ss:$28 sps:$4 sm:$0xff]  }
 0xaf9   :  { %13968 = vmatpush1.bf16.msra.mxu0 %v19882_v27  ;;  %14050 = vmatpush1.bf16.msra.mxu1 %v19885_v34  ;;  %v19963_v27 = vld [vmem:[#allocation25 + $0xe8] ss:$28 sps:$4 sm:$0xff]   ;;  %v19968_v34 = vld [vmem:[#allocation25 + $0x11c] ss:$28 sps:$4 sm:$0xff]  }
 0xafa   :  { %13969 = vmatprep.subr.bf16.mxu0 %v19890_v36  ;;  %14051 = vmatprep.subr.bf16.mxu1 %v19893_v28  ;;  %v19971_v36 = vld [vmem:[#allocation25 + $0x124] ss:$28 sps:$4 sm:$0xff]   ;;  %v19966_v28 = vld [vmem:[#allocation25 + $0x118] ss:$28 sps:$4 sm:$0xff]  }
 0xafd   :  { %13970 = vmatpush1.bf16.msra.mxu0 %v19888_v29  ;;  %14052 = vmatpush1.bf16.msra.mxu1 %v19891_v32  ;;  %v19969_v29 = vld [vmem:[#allocation25 + $0x120] ss:$28 sps:$4 sm:$0xff]   ;;  %v19974_v32 = vld [vmem:[#allocation25 + $0x154] ss:$28 sps:$4 sm:$0xff]  }
 0xafe   :  { %13971 = vmatprep.subr.bf16.mxu0 %v19896_v50  ;;  %14053 = vmatprep.subr.bf16.mxu1 %v19899_v51  ;;  %v19977_v50 = vld [vmem:[#allocation25 + $0x15c] ss:$28 sps:$4 sm:$0xff]   ;;  %v19972_v51 = vld [vmem:[#allocation25 + $0x150] ss:$28 sps:$4 sm:$0xff]  }
 0xb01   :  { %13972 = vmatpush1.bf16.msra.mxu0 %v19894_v37  ;;  %14054 = vmatpush1.bf16.msra.mxu1 %v19897_v38  ;;  %v19975_v37 = vld [vmem:[#allocation25 + $0x158] ss:$28 sps:$4 sm:$0xff]   ;;  %v19980_v38 = vld [vmem:[#allocation25 + $0x18c] ss:$28 sps:$4 sm:$0xff]  }
 0xb02   :  { %13973 = vmatprep.subr.bf16.mxu0 %v19902_v40  ;;  %14055 = vmatprep.subr.bf16.mxu1 %v19905_v26  ;;  %v19983_v40 = vld [vmem:[#allocation25 + $0x194] ss:$28 sps:$4 sm:$0xff]   ;;  %v19978_v26 = vld [vmem:[#allocation25 + $0x188] ss:$28 sps:$4 sm:$0xff]  }
 0xb05   :  { %13974 = vmatpush1.bf16.msra.mxu0 %v19900_v42  ;;  %14056 = vmatpush1.bf16.msra.mxu1 %v19903_v63  ;;  %v19981_v42 = vld [vmem:[#allocation25 + $0x190] ss:$28 sps:$4 sm:$0xff]   ;;  %v19986_v63 = vld [vmem:[#allocation25 + $0x1c4] ss:$28 sps:$4 sm:$0xff]  }
 0xb06   :  { %13975 = vmatprep.subr.bf16.mxu0 %v19908_v5  ;;  %14057 = vmatprep.subr.bf16.mxu1 %v19911_v41  ;;  %v19989_v5 = vld [vmem:[#allocation25 + $0x1cc] ss:$28 sps:$4 sm:$0xff]   ;;  %v19984_v41 = vld [vmem:[#allocation25 + $0x1c0] ss:$28 sps:$4 sm:$0xff]  }
 0xb09   :  { %13976 = vmatpush1.bf16.msra.mxu0 %v19906_v54  ;;  %14058 = vmatpush1.bf16.msra.mxu1 %v19909_v7  ;;  %v19987_v54 = vld [vmem:[#allocation25 + $0x1c8] ss:$28 sps:$4 sm:$0xff]   ;;  %v19992_v7 = vld [vmem:[#allocation25 + $0x1fc] ss:$28 sps:$4 sm:$0xff]  }
 0xb0a   :  { %13977 = vmatprep.subr.bf16.mxu0 %v19914_v59  ;;  %14059 = vmatprep.subr.bf16.mxu1 %v19917_v61  ;;  %v19995_v59 = vld [vmem:[#allocation25 + $0x204] ss:$28 sps:$4 sm:$0xff]   ;;  %v19990_v61 = vld [vmem:[#allocation25 + $0x1f8] ss:$28 sps:$4 sm:$0xff]  }
 0xb0d   :  { %13978 = vmatpush1.bf16.msra.mxu0 %v19912_v9  ;;  %14060 = vmatpush1.bf16.msra.mxu1 %v19915_v1  ;;  %v19993_v9 = vld [vmem:[#allocation25 + $0x200] ss:$28 sps:$4 sm:$0xff]   ;;  %v19998_v1 = vld [vmem:[#allocation25 + $0x234] ss:$28 sps:$4 sm:$0xff]  }
 0xb0e   :  { %13979 = vmatprep.subr.bf16.mxu0 %v19920_v11  ;;  %14061 = vmatprep.subr.bf16.mxu1 %v19923_v52  ;;  %v20001_v11 = vld [vmem:[#allocation25 + $0x23c] ss:$28 sps:$4 sm:$0xff]   ;;  %v19996_v52 = vld [vmem:[#allocation25 + $0x230] ss:$28 sps:$4 sm:$0xff]  }
 0xb11   :  { %13980 = vmatpush1.bf16.msra.mxu0 %v19918_v62  ;;  %14062 = vmatpush1.bf16.msra.mxu1 %v19921_v14  ;;  %v19999_v62 = vld [vmem:[#allocation25 + $0x238] ss:$28 sps:$4 sm:$0xff]   ;;  %v20004_v14 = vld [vmem:[#allocation25 + $0x26c] ss:$28 sps:$4 sm:$0xff]  }
 0xb12   :  { %13981 = vmatprep.subr.bf16.mxu0 %v19926_v39  ;;  %14063 = vmatprep.subr.bf16.mxu1 %v19929_v15  ;;  %v20002_v39 = vld [vmem:[#allocation25 + $0x268] ss:$28 sps:$4 sm:$0xff]   ;;  %v20005_v15 = vld [vmem:[#allocation25 + $0x270] ss:$28 sps:$4 sm:$0xff]  }
 0xb15   :  { %13982 = vmatpush1.bf16.msra.mxu0 %v19924_v17  ;;  %14064 = vmatpush1.bf16.msra.mxu1 %v19927_v18  ;;  %v20010_v17 = vld [vmem:[#allocation25 + $0x2a4] ss:$28 sps:$4 sm:$0xff]   ;;  %v20013_v18 = vld [vmem:[#allocation25 + $0x2ac] ss:$28 sps:$4 sm:$0xff]  }
 0xb16   :  { %13983 = vmatprep.subr.bf16.mxu0 %v19932_v19  ;;  %14065 = vmatprep.subr.bf16.mxu1 %v19935_v20  ;;  %v20011_v19 = vld [vmem:[#allocation25 + $0x2a8] ss:$28 sps:$4 sm:$0xff]   ;;  %v20016_v20 = vld [vmem:[#allocation25 + $0x2dc] ss:$28 sps:$4 sm:$0xff]  }
 0xb19   :  { %13984 = vmatpush1.bf16.msra.mxu0 %v19930_v10  ;;  %14066 = vmatpush1.bf16.msra.mxu1 %v19933_v8  ;;  %v20019_v10 = vld [vmem:[#allocation25 + $0x2e4] ss:$28 sps:$4 sm:$0xff]   ;;  %v20014_v8 = vld [vmem:[#allocation25 + $0x2d8] ss:$28 sps:$4 sm:$0xff]  }
 0xb1a   :  { %15529 = vmatprep.subr.bf16.mxu0 %v19938_v33  ;;  %15611 = vmatprep.subr.bf16.mxu1 %v19941_v56  ;;  %v20022_v33 = vld [vmem:[#allocation25 + $0x314] ss:$28 sps:$4 sm:$0xff]   ;;  %v20025_v56 = vld [vmem:[#allocation25 + $0x31c] ss:$28 sps:$4 sm:$0xff]  }
 0xb1c   :  { %13986 = vmatmul.mubr.bf16.vlgmr.msra.gmra.mrb[60].mxu0 %v13120_v4  ;;  %14068 = vmatmul.mubr.bf16.vlgmr.msra.gmra.mrb[64].mxu1 %v13120_v4  ;;  %v20028_v4 = vld [vmem:[#allocation25 + $0x34c] ss:$28 sps:$4 sm:$0xff]  }
 0xb1d   :  { %15530 = vmatpush1.bf16.msra.mxu0 %v19936_v0  ;;  %15612 = vmatpush1.bf16.msra.mxu1 %v19939_v46  ;;  %v20020_v0 = vld [vmem:[#allocation25 + $0x310] ss:$28 sps:$4 sm:$0xff]   ;;  %v20023_v46 = vld [vmem:[#allocation25 + $0x318] ss:$28 sps:$4 sm:$0xff]  }
 0xb1e   :  { %15531 = vmatprep.subr.bf16.mxu0 %v19944_v55  ;;  %15613 = vmatprep.subr.bf16.mxu1 %v19947_v30  ;;  %v20031_v55 = vld [vmem:[#allocation25 + $0x354] ss:$28 sps:$4 sm:$0xff]   ;;  %v20026_v30 = vld [vmem:[#allocation25 + $0x348] ss:$28 sps:$4 sm:$0xff]  }
 0xb21   :  { %15532 = vmatpush1.bf16.msra.mxu0 %v19942_v21  ;;  %15614 = vmatpush1.bf16.msra.mxu1 %v19945_v22  ;;  %v20029_v21 = vld [vmem:[#allocation25 + $0x350] ss:$28 sps:$4 sm:$0xff]   ;;  %v20034_v22 = vld [vmem:[#allocation25 + $0x384] ss:$28 sps:$4 sm:$0xff]  }
 0xb22   :  { %15533 = vmatprep.subr.bf16.mxu0 %v19950_v23  ;;  %15615 = vmatprep.subr.bf16.mxu1 %v19953_v31  ;;  %v20037_v23 = vld [vmem:[#allocation25 + $0x38c] ss:$28 sps:$4 sm:$0xff]   ;;  %v21328_v31 = vld [vmem:[#allocation23] sm:$0xf] }
 0xb25   :  { %15534 = vmatpush1.bf16.msra.mxu0 %v19948_v24  ;;  %15616 = vmatpush1.bf16.msra.mxu1 %v19951_v60  ;;  %v13255_v24 = vrot.slane %v21328_v31, %v21076_v57  ;;  %v13259_v60 = vrot.slane %v21328_v31, %v21079_v58 }
 0xb26   :  { %15535 = vmatprep.subr.bf16.mxu0 %v19956_v44  ;;  %15617 = vmatprep.subr.bf16.mxu1 %v19959_v25  ;;  %v13267_v44 = vrot.slane %v21328_v31, %v21091_v6 }
 0xb29   :  { %15536 = vmatpush1.bf16.msra.mxu0 %v19954_v49  ;;  %15618 = vmatpush1.bf16.msra.mxu1 %v19957_v13 }
 0xb2a   :  { %15537 = vmatprep.subr.bf16.mxu0 %v19962_v16  ;;  %15619 = vmatprep.subr.bf16.mxu1 %v19965_v2 }
 0xb2d   :  { %15538 = vmatpush1.bf16.msra.mxu0 %v19960_v48  ;;  %15620 = vmatpush1.bf16.msra.mxu1 %v19963_v27 }
 0xb2e   :  { %15539 = vmatprep.subr.bf16.mxu0 %v19968_v34  ;;  %15621 = vmatprep.subr.bf16.mxu1 %v19971_v36 }
 0xb31   :  { %15540 = vmatpush1.bf16.msra.mxu0 %v19966_v28  ;;  %15622 = vmatpush1.bf16.msra.mxu1 %v19969_v29 }
 0xb32   :  { %15541 = vmatprep.subr.bf16.mxu0 %v19974_v32  ;;  %15623 = vmatprep.subr.bf16.mxu1 %v19977_v50 }
 0xb35   :  { %15542 = vmatpush1.bf16.msra.mxu0 %v19972_v51  ;;  %15624 = vmatpush1.bf16.msra.mxu1 %v19975_v37 }
 0xb36   :  { %15543 = vmatprep.subr.bf16.mxu0 %v19980_v38  ;;  %15625 = vmatprep.subr.bf16.mxu1 %v19983_v40  ;;  %v20032_v38 = vld [vmem:[#allocation25 + $0x380] ss:$28 sps:$4 sm:$0xff]   ;;  %v20035_v40 = vld [vmem:[#allocation25 + $0x388] ss:$28 sps:$4 sm:$0xff]  }
 0xb39   :  { %15544 = vmatpush1.bf16.msra.mxu0 %v19978_v26  ;;  %15626 = vmatpush1.bf16.msra.mxu1 %v19981_v42  ;;  %v20040_v42 = vld [vmem:[#allocation25 + $0x3bc] ss:$28 sps:$4 sm:$0xff]  }
 0xb3a   :  { %15545 = vmatprep.subr.bf16.mxu0 %v19986_v63  ;;  %15627 = vmatprep.subr.bf16.mxu1 %v19989_v5  ;;  %v20043_v63 = vld [vmem:[#allocation25 + $0x3c4] ss:$28 sps:$4 sm:$0xff]  }
 0xb3d   :  { %15546 = vmatpush1.bf16.msra.mxu0 %v19984_v41  ;;  %15628 = vmatpush1.bf16.msra.mxu1 %v19987_v54  ;;  %v20038_v41 = vld [vmem:[#allocation25 + $0x3b8] ss:$28 sps:$4 sm:$0xff]   ;;  %v20041_v54 = vld [vmem:[#allocation25 + $0x3c0] ss:$28 sps:$4 sm:$0xff]  }
 0xb3e   :  { %15547 = vmatprep.subr.bf16.mxu0 %v19992_v7  ;;  %15629 = vmatprep.subr.bf16.mxu1 %v19995_v59  ;;  %v20046_v7 = vld [vmem:[#allocation25 + $0x3f4] ss:$28 sps:$4 sm:$0xff]   ;;  %v20049_v59 = vld [vmem:[#allocation25 + $0x3fc] ss:$28 sps:$4 sm:$0xff]  }
 0xb41   :  { %15548 = vmatpush1.bf16.msra.mxu0 %v19990_v61  ;;  %15630 = vmatpush1.bf16.msra.mxu1 %v19993_v9  ;;  %v20044_v61 = vld [vmem:[#allocation25 + $0x3f0] ss:$28 sps:$4 sm:$0xff]   ;;  %v20047_v9 = vld [vmem:[#allocation25 + $0x3f8] ss:$28 sps:$4 sm:$0xff]  }
 0xb42   :  { %15549 = vmatprep.subr.bf16.mxu0 %v19998_v1  ;;  %15631 = vmatprep.subr.bf16.mxu1 %v20001_v11  ;;  %v20052_v1 = vld [vmem:[#allocation25 + $0x42c] ss:$28 sps:$4 sm:$0xff]   ;;  %v20055_v11 = vld [vmem:[#allocation25 + $0x434] ss:$28 sps:$4 sm:$0xff]  }
 0xb45   :  { %15550 = vmatpush1.bf16.msra.mxu0 %v19996_v52  ;;  %15632 = vmatpush1.bf16.msra.mxu1 %v19999_v62  ;;  %v20050_v52 = vld [vmem:[#allocation25 + $0x428] ss:$28 sps:$4 sm:$0xff]   ;;  %v20053_v62 = vld [vmem:[#allocation25 + $0x430] ss:$28 sps:$4 sm:$0xff]  }
 0xb46   :  { %15551 = vmatprep.subr.bf16.mxu0 %v20004_v14  ;;  %15633 = vmatprep.subr.bf16.mxu1 %v20007_v12  ;;  %v20058_v14 = vld [vmem:[#allocation25 + $0x464] ss:$28 sps:$4 sm:$0xff]   ;;  %v20061_v12 = vld [vmem:[#allocation25 + $0x46c] ss:$28 sps:$4 sm:$0xff]  }
 0xb49   :  { %15552 = vmatpush1.bf16.msra.mxu0 %v20002_v39  ;;  %15634 = vmatpush1.bf16.msra.mxu1 %v20005_v15  ;;  %v20056_v39 = vld [vmem:[#allocation25 + $0x460] ss:$28 sps:$4 sm:$0xff]   ;;  %v20059_v15 = vld [vmem:[#allocation25 + $0x468] ss:$28 sps:$4 sm:$0xff]  }
 0xb4a   :  { %15553 = vmatprep.subr.bf16.mxu0 %v20010_v17  ;;  %15635 = vmatprep.subr.bf16.mxu1 %v20013_v18  ;;  %v20064_v17 = vld [vmem:[#allocation25 + $0x49c] ss:$28 sps:$4 sm:$0xff]   ;;  %v20067_v18 = vld [vmem:[#allocation25 + $0x4a4] ss:$28 sps:$4 sm:$0xff]  }
 0xb4d   :  { %15554 = vmatpush1.bf16.msra.mxu0 %v20008_v43  ;;  %15636 = vmatpush1.bf16.msra.mxu1 %v20011_v19  ;;  %v20062_v43 = vld [vmem:[#allocation25 + $0x498] ss:$28 sps:$4 sm:$0xff]   ;;  %v20065_v19 = vld [vmem:[#allocation25 + $0x4a0] ss:$28 sps:$4 sm:$0xff]  }
 0xb4e   :  { %15555 = vmatprep.subr.bf16.mxu0 %v20016_v20  ;;  %15637 = vmatprep.subr.bf16.mxu1 %v20019_v10  ;;  %v20070_v20 = vld [vmem:[#allocation25 + $0x4d4] ss:$28 sps:$4 sm:$0xff]   ;;  %v20073_v10 = vld [vmem:[#allocation25 + $0x4dc] ss:$28 sps:$4 sm:$0xff]  }
 0xb51   :  { %15556 = vmatpush1.bf16.msra.mxu0 %v20014_v8  ;;  %15638 = vmatpush1.bf16.msra.mxu1 %v20017_v45  ;;  %v20068_v8 = vld [vmem:[#allocation25 + $0x4d0] ss:$28 sps:$4 sm:$0xff]   ;;  %v20071_v45 = vld [vmem:[#allocation25 + $0x4d8] ss:$28 sps:$4 sm:$0xff]  }
 0xb52   :  { %15557 = vmatprep.subr.bf16.mxu0 %v20022_v33  ;;  %15639 = vmatprep.subr.bf16.mxu1 %v20025_v56  ;;  %v20076_v33 = vld [vmem:[#allocation25 + $0x50c] ss:$28 sps:$4 sm:$0xff]   ;;  %v20079_v56 = vld [vmem:[#allocation25 + $0x514] ss:$28 sps:$4 sm:$0xff]  }
 0xb55   :  { %15558 = vmatpush1.bf16.msra.mxu0 %v20020_v0  ;;  %15640 = vmatpush1.bf16.msra.mxu1 %v20023_v46  ;;  %v20074_v0 = vld [vmem:[#allocation25 + $0x508] ss:$28 sps:$4 sm:$0xff]   ;;  %v20077_v46 = vld [vmem:[#allocation25 + $0x510] ss:$28 sps:$4 sm:$0xff]  }
 0xb56   :  { %15559 = vmatprep.subr.bf16.mxu0 %v20028_v4  ;;  %15641 = vmatprep.subr.bf16.mxu1 %v20031_v55  ;;  %v20082_v4 = vld [vmem:[#allocation25 + $0x544] ss:$28 sps:$4 sm:$0xff]   ;;  %v20085_v55 = vld [vmem:[#allocation25 + $0x54c] ss:$28 sps:$4 sm:$0xff]  }
 0xb59   :  { %15560 = vmatpush1.bf16.msra.mxu0 %v20026_v30  ;;  %15642 = vmatpush1.bf16.msra.mxu1 %v20029_v21  ;;  %v20080_v30 = vld [vmem:[#allocation25 + $0x540] ss:$28 sps:$4 sm:$0xff]   ;;  %v20083_v21 = vld [vmem:[#allocation25 + $0x548] ss:$28 sps:$4 sm:$0xff]  }
 0xb5a   :  { %15570 = vmatprep.subr.bf16.mxu0 %v20034_v22  ;;  %15652 = vmatprep.subr.bf16.mxu1 %v20037_v23  ;;  %v20088_v22 = vld [vmem:[#allocation25 + $0x57c] ss:$28 sps:$4 sm:$0xff]   ;;  %v20091_v23 = vld [vmem:[#allocation25 + $0x584] ss:$28 sps:$4 sm:$0xff]  }
 0xbef   :  { %v13987_v25 = vpop.f32.mrb[60].mxu0  ;;  %v21336_v49 = vpop.f32.mrb[64].mxu1 }
 0xbf0   :  { %v18141_v13 = vadd.f32 %v13987_v25, %v13255_v24  ;;  %v13989_v16 = vpop.f32.mrb[61].mxu0  ;;  %v14071_v2 = vpop.f32.mrb[65].mxu1  ;;  %v20086_v24 = vld [vmem:[#allocation25 + $0x578] ss:$28 sps:$4 sm:$0xff]  }
 0xbf1   :  { %v18142_v48 = vadd.f32 %v13989_v16, %v13259_v60  ;;  %v18144_v27 = vadd.f32 %v14071_v2, %v13267_v44  ;;  %v13991_v34 = vpop.f32.mrb[62].mxu0  ;;  %v14073_v36 = vpop.f32.mrb[66].mxu1  ;;  %v20089_v60 = vld [vmem:[#allocation25 + $0x580] ss:$28 sps:$4 sm:$0xff]   ;;  %v20094_v44 = vld [vmem:[#allocation25 + $0x5b4] ss:$28 sps:$4 sm:$0xff]  }
 0xbf2   :  { %v14076_v28 = vmax.f32 %v18141_v13, 0.0  ;;  %v13992_v29 = vpop.f32.mrb[63].mxu0  ;;  %v14074_v32 = vpop.f32.mrb[67].mxu1  ;;  %v20097_v25 = vld [vmem:[#allocation25 + $0x5bc] ss:$28 sps:$4 sm:$0xff]  }
 0xbf3   :  { %v14077_v50 = vmax.f32 %v18142_v48, 0.0  ;;  %v14079_v51 = vmax.f32 %v18144_v27, 0.0  ;;  %v20092_v13 = vld [vmem:[#allocation25 + $0x5b0] ss:$28 sps:$4 sm:$0xff]   ;;  %v20095_v16 = vld [vmem:[#allocation25 + $0x5b8] ss:$28 sps:$4 sm:$0xff]  }
 0xbf4   :  { %v21340_v26 = vpack.c.bf16 %v14076_v28, %v14076_v28  ;;  %v20100_v2 = vld [vmem:[#allocation25 + $0x5ec] ss:$28 sps:$4 sm:$0xff]   ;;  %v20103_v48 = vld [vmem:[#allocation25 + $0x5f4] ss:$28 sps:$4 sm:$0xff]   ;;  %v20106_v36 = vld [vmem:[#allocation25 + $0x624] ss:$28 sps:$4 sm:$0xff]  }
 0xbf5   :  { %v21338_v37 = vpack.c.bf16 %v14077_v50, %v14077_v50  ;;  %v21344_v5 = vpack.c.bf16 %v14079_v51, %v14079_v51  ;;  %v20098_v27 = vld [vmem:[#allocation25 + $0x5e8] ss:$28 sps:$4 sm:$0xff]   ;;  %v20101_v34 = vld [vmem:[#allocation25 + $0x5f0] ss:$28 sps:$4 sm:$0xff]   ;;  %v20104_v29 = vld [vmem:[#allocation25 + $0x620] ss:$28 sps:$4 sm:$0xff]  }
 0xbf6   :  { %v20109_v28 = vld [vmem:[#allocation25 + $0x62c] ss:$28 sps:$4 sm:$0xff]   ;;  %v20112_v50 = vld [vmem:[#allocation25 + $0x65c] ss:$28 sps:$4 sm:$0xff]   ;;  %v20115_v51 = vld [vmem:[#allocation25 + $0x664] ss:$28 sps:$4 sm:$0xff]  }
 0xbf7   :  { %15561 = vmatprep.mubr.bf16.mxu0 %v21338_v37  ;;  %15643 = vmatprep.mubr.bf16.mxu1 %v21338_v37  ;;  %v20107_v32 = vld [vmem:[#allocation25 + $0x628] ss:$28 sps:$4 sm:$0xff]  }
 0xbf8   :  { %15562 = vmatmul.mubr.bf16.vlgmr.msra.gmra.mrb[64].mxu0 %v21340_v26  ;;  %15644 = vmatmul.mubr.bf16.vlgmr.msra.gmra.mrb[68].mxu1 %v21340_v26 }
 0xbf9   :  { %15571 = vmatpush1.bf16.msra.mxu0 %v20032_v38  ;;  %15653 = vmatpush1.bf16.msra.mxu1 %v20035_v40  ;;  %v20110_v38 = vld [vmem:[#allocation25 + $0x658] ss:$28 sps:$4 sm:$0xff]   ;;  %v20113_v40 = vld [vmem:[#allocation25 + $0x660] ss:$28 sps:$4 sm:$0xff]  }
 0xbfa   :  { %15602 = vmatprep.mubr.bf16.mxu0 %v21344_v5  ;;  %15684 = vmatprep.mubr.bf16.mxu1 %v21344_v5 }
 0xbfb   :  { %15572 = vmatprep.subr.bf16.mxu0 %v20040_v42  ;;  %15654 = vmatprep.subr.bf16.mxu1 %v20043_v63  ;;  %v13263_v42 = vrot.slane %v21328_v31, %v21088_v3  ;;  %v20118_v63 = vld [vmem:[#allocation25 + $0x694] ss:$28 sps:$4 sm:$0xff]  }
 0xbfc   :  { %v20130_v31 = vld [vmem:[#allocation25 + $0x14] ss:$28 sps:$4 sm:$0xff]  }
 0xbfd   :  { %15573 = vmatpush1.bf16.msra.mxu0 %v20038_v41  ;;  %15655 = vmatpush1.bf16.msra.mxu1 %v20041_v54  ;;  %v20121_v41 = vld [vmem:[#allocation25 + $0x69c] ss:$28 sps:$4 sm:$0xff]   ;;  %v20116_v54 = vld [vmem:[#allocation25 + $0x690] ss:$28 sps:$4 sm:$0xff]  }
 0xbfe   :  { %15574 = vmatprep.subr.bf16.mxu0 %v20046_v7  ;;  %15656 = vmatprep.subr.bf16.mxu1 %v20049_v59  ;;  %v20119_v7 = vld [vmem:[#allocation25 + $0x698] ss:$28 sps:$4 sm:$0xff]   ;;  %v18143_v59 = vadd.f32 %v21336_v49, %v13263_v42  ;;  %v20182_v42 = vld [vmem:[#allocation25 + $0x408] ss:$28 sps:$4 sm:$0xff]  }
 0xbff   :  { %v20132_v49 = vld [vmem:[#allocation25 + $0x18] ss:$28 sps:$4 sm:$0xff]  }
 0xc01   :  { %15575 = vmatpush1.bf16.msra.mxu0 %v20044_v61  ;;  %15657 = vmatpush1.bf16.msra.mxu1 %v20047_v9  ;;  %v20124_v61 = vld [vmem:[#allocation25 + $0x6cc] ss:$28 sps:$4 sm:$0xff]   ;;  %v20127_v9 = vld [vmem:[#allocation25 + $0x6d4] ss:$28 sps:$4 sm:$0xff]  }
 0xc02   :  { %15576 = vmatprep.subr.bf16.mxu0 %v20052_v1  ;;  %15658 = vmatprep.subr.bf16.mxu1 %v20055_v11  ;;  %v20122_v1 = vld [vmem:[#allocation25 + $0x6c8] ss:$28 sps:$4 sm:$0xff]   ;;  %v20125_v11 = vld [vmem:[#allocation25 + $0x6d0] ss:$28 sps:$4 sm:$0xff]  }
 0xc05   :  { %15577 = vmatpush1.bf16.msra.mxu0 %v20050_v52  ;;  %15659 = vmatpush1.bf16.msra.mxu1 %v20053_v62  ;;  %v14078_v52 = vmax.f32 %v18143_v59, 0.0  ;;  %v20131_v62 = vld [vmem:[#allocation25 + $0x1d8] ss:$28 sps:$4 sm:$0xff]  }
 0xc06   :  { %15578 = vmatprep.subr.bf16.mxu0 %v20058_v14  ;;  %15660 = vmatprep.subr.bf16.mxu1 %v20061_v12  ;;  %v20128_v14 = vld [vmem:[#allocation25 + $0x10] ss:$28 sps:$4 sm:$0xff]  }
 0xc07   :  { %v21353_v12 = vpack.c.bf16 %v14078_v52, %v14078_v52  ;;  %v20190_v59 = vld [vmem:[#allocation25 + $0x2b4] ss:$28 sps:$4 sm:$0xff]  }
 0xc08   :  { %v20196_v52 = vld [vmem:[#allocation25 + $0x670] ss:$28 sps:$4 sm:$0xff]  }
 0xc09   :  { %15579 = vmatpush1.bf16.msra.mxu0 %v20056_v39  ;;  %15661 = vmatpush1.bf16.msra.mxu1 %v20059_v15  ;;  %v20135_v39 = vld [vmem:[#allocation25 + $0x4c] ss:$28 sps:$4 sm:$0xff]  }
 0xc0a   :  { %15580 = vmatprep.subr.bf16.mxu0 %v20064_v17  ;;  %15662 = vmatprep.subr.bf16.mxu1 %v20067_v18  ;;  %v20136_v15 = vld [vmem:[#allocation25 + $0x210] ss:$28 sps:$4 sm:$0xff]   ;;  %v20133_v17 = vld [vmem:[#allocation25 + $0x48] ss:$28 sps:$4 sm:$0xff]  }
 0xc0b   :  { %v20137_v18 = vld [vmem:[#allocation25 + $0x50] ss:$28 sps:$4 sm:$0xff]  }
 0xc0d   :  { %15581 = vmatpush1.bf16.msra.mxu0 %v20062_v43  ;;  %15663 = vmatpush1.bf16.msra.mxu1 %v20065_v19  ;;  %v20140_v43 = vld [vmem:[#allocation25 + $0x84] ss:$28 sps:$4 sm:$0xff]  }
 0xc0e   :  { %15582 = vmatprep.subr.bf16.mxu0 %v20070_v20  ;;  %15664 = vmatprep.subr.bf16.mxu1 %v20073_v10  ;;  %v20141_v19 = vld [vmem:[#allocation25 + $0x248] ss:$28 sps:$4 sm:$0xff]   ;;  %v20138_v20 = vld [vmem:[#allocation25 + $0x80] ss:$28 sps:$4 sm:$0xff]  }
 0xc0f   :  { %v20142_v10 = vld [vmem:[#allocation25 + $0x88] ss:$28 sps:$4 sm:$0xff]  }
 0xc11   :  { %15583 = vmatpush1.bf16.msra.mxu0 %v20068_v8  ;;  %15665 = vmatpush1.bf16.msra.mxu1 %v20071_v45  ;;  %v20145_v8 = vld [vmem:[#allocation25 + $0xbc] ss:$28 sps:$4 sm:$0xff]  }
 0xc12   :  { %15584 = vmatprep.subr.bf16.mxu0 %v20076_v33  ;;  %15666 = vmatprep.subr.bf16.mxu1 %v20079_v56  ;;  %v20146_v45 = vld [vmem:[#allocation25 + $0x280] ss:$28 sps:$4 sm:$0xff]   ;;  %v20143_v33 = vld [vmem:[#allocation25 + $0xb8] ss:$28 sps:$4 sm:$0xff]  }
 0xc13   :  { %v20147_v56 = vld [vmem:[#allocation25 + $0xc0] ss:$28 sps:$4 sm:$0xff]  }
 0xc15   :  { %15585 = vmatpush1.bf16.msra.mxu0 %v20074_v0  ;;  %15667 = vmatpush1.bf16.msra.mxu1 %v20077_v46  ;;  %v20150_v0 = vld [vmem:[#allocation25 + $0xf4] ss:$28 sps:$4 sm:$0xff]  }
 0xc16   :  { %15586 = vmatprep.subr.bf16.mxu0 %v20082_v4  ;;  %15668 = vmatprep.subr.bf16.mxu1 %v20085_v55  ;;  %v20148_v46 = vld [vmem:[#allocation25 + $0xf0] ss:$28 sps:$4 sm:$0xff]   ;;  %v20152_v4 = vld [vmem:[#allocation25 + $0xf8] ss:$28 sps:$4 sm:$0xff]  }
 0xc17   :  { %v20155_v55 = vld [vmem:[#allocation25 + $0x12c] ss:$28 sps:$4 sm:$0xff]  }
 0xc19   :  { %15587 = vmatpush1.bf16.msra.mxu0 %v20080_v30  ;;  %15669 = vmatpush1.bf16.msra.mxu1 %v20083_v21  ;;  %v20156_v30 = vld [vmem:[#allocation25 + $0x2f0] ss:$28 sps:$4 sm:$0xff]   ;;  %v20153_v21 = vld [vmem:[#allocation25 + $0x128] ss:$28 sps:$4 sm:$0xff]  }
 0xc1a   :  { %15588 = vmatprep.subr.bf16.mxu0 %v20088_v22  ;;  %15670 = vmatprep.subr.bf16.mxu1 %v20091_v23  ;;  %v20157_v22 = vld [vmem:[#allocation25 + $0x130] ss:$28 sps:$4 sm:$0xff]   ;;  %v20160_v23 = vld [vmem:[#allocation25 + $0x164] ss:$28 sps:$4 sm:$0xff]  }
 0xc1d   :  { %15589 = vmatpush1.bf16.msra.mxu0 %v20086_v24  ;;  %15671 = vmatpush1.bf16.msra.mxu1 %v20089_v60  ;;  %v20161_v24 = vld [vmem:[#allocation25 + $0x328] ss:$28 sps:$4 sm:$0xff]   ;;  %v20158_v60 = vld [vmem:[#allocation25 + $0x160] ss:$28 sps:$4 sm:$0xff]  }
 0xc1e   :  { %15590 = vmatprep.subr.bf16.mxu0 %v20094_v44  ;;  %15672 = vmatprep.subr.bf16.mxu1 %v20097_v25  ;;  %v20162_v44 = vld [vmem:[#allocation25 + $0x168] ss:$28 sps:$4 sm:$0xff]   ;;  %v20165_v25 = vld [vmem:[#allocation25 + $0x19c] ss:$28 sps:$4 sm:$0xff]  }
 0xc21   :  { %15591 = vmatpush1.bf16.msra.mxu0 %v20092_v13  ;;  %15673 = vmatpush1.bf16.msra.mxu1 %v20095_v16  ;;  %v20166_v13 = vld [vmem:[#allocation25 + $0x360] ss:$28 sps:$4 sm:$0xff]   ;;  %v20163_v16 = vld [vmem:[#allocation25 + $0x198] ss:$28 sps:$4 sm:$0xff]  }
 0xc22   :  { %15592 = vmatprep.subr.bf16.mxu0 %v20100_v2  ;;  %15674 = vmatprep.subr.bf16.mxu1 %v20103_v48  ;;  %v20167_v2 = vld [vmem:[#allocation25 + $0x1a0] ss:$28 sps:$4 sm:$0xff]   ;;  %v20170_v48 = vld [vmem:[#allocation25 + $0x1d4] ss:$28 sps:$4 sm:$0xff]  }
 0xc25   :  { %15593 = vmatpush1.bf16.msra.mxu0 %v20098_v27  ;;  %15675 = vmatpush1.bf16.msra.mxu1 %v20101_v34  ;;  %v20171_v27 = vld [vmem:[#allocation25 + $0x558] ss:$28 sps:$4 sm:$0xff]   ;;  %v20168_v34 = vld [vmem:[#allocation25 + $0x1d0] ss:$28 sps:$4 sm:$0xff]  }
 0xc26   :  { %15594 = vmatprep.subr.bf16.mxu0 %v20106_v36  ;;  %15676 = vmatprep.subr.bf16.mxu1 %v20109_v28  ;;  %v20172_v36 = vld [vmem:[#allocation25 + $0x398] ss:$28 sps:$4 sm:$0xff]   ;;  %v20175_v28 = vld [vmem:[#allocation25 + $0x20c] ss:$28 sps:$4 sm:$0xff]  }
 0xc29   :  { %15595 = vmatpush1.bf16.msra.mxu0 %v20104_v29  ;;  %15677 = vmatpush1.bf16.msra.mxu1 %v20107_v32  ;;  %v20176_v29 = vld [vmem:[#allocation25 + $0x590] ss:$28 sps:$4 sm:$0xff]   ;;  %v20173_v32 = vld [vmem:[#allocation25 + $0x208] ss:$28 sps:$4 sm:$0xff]  }
 0xc2a   :  { %15596 = vmatprep.subr.bf16.mxu0 %v20112_v50  ;;  %15678 = vmatprep.subr.bf16.mxu1 %v20115_v51  ;;  %v20177_v50 = vld [vmem:[#allocation25 + $0x3d0] ss:$28 sps:$4 sm:$0xff]   ;;  %v20180_v51 = vld [vmem:[#allocation25 + $0x244] ss:$28 sps:$4 sm:$0xff]  }
 0xc2d   :  { %15597 = vmatpush1.bf16.msra.mxu0 %v20110_v38  ;;  %15679 = vmatpush1.bf16.msra.mxu1 %v20113_v40  ;;  %v20181_v38 = vld [vmem:[#allocation25 + $0x5c8] ss:$28 sps:$4 sm:$0xff]   ;;  %v20178_v40 = vld [vmem:[#allocation25 + $0x240] ss:$28 sps:$4 sm:$0xff]  }
 0xc2e   :  { %15598 = vmatprep.subr.bf16.mxu0 %v20118_v63  ;;  %15680 = vmatprep.subr.bf16.mxu1 %v20121_v41  ;;  %v20185_v63 = vld [vmem:[#allocation25 + $0x27c] ss:$28 sps:$4 sm:$0xff]  }
 0xc2f   :  { %v20186_v41 = vld [vmem:[#allocation25 + $0x600] ss:$28 sps:$4 sm:$0xff]  }
 0xc31   :  { %15599 = vmatpush1.bf16.msra.mxu0 %v20116_v54  ;;  %15681 = vmatpush1.bf16.msra.mxu1 %v20119_v7  ;;  %v20183_v54 = vld [vmem:[#allocation25 + $0x278] ss:$28 sps:$4 sm:$0xff]   ;;  %v20187_v7 = vld [vmem:[#allocation25 + $0x440] ss:$28 sps:$4 sm:$0xff]  }
 0xc32   :  { %15600 = vmatprep.subr.bf16.mxu0 %v20124_v61  ;;  %15682 = vmatprep.subr.bf16.mxu1 %v20127_v9  ;;  %v20191_v61 = vld [vmem:[#allocation25 + $0x638] ss:$28 sps:$4 sm:$0xff]   ;;  %v20188_v9 = vld [vmem:[#allocation25 + $0x2b0] ss:$28 sps:$4 sm:$0xff]  }
 0xc35   :  { %15601 = vmatpush1.bf16.msra.mxu0 %v20122_v1  ;;  %15683 = vmatpush1.bf16.msra.mxu1 %v20125_v11  ;;  %v20192_v1 = vld [vmem:[#allocation25 + $0x478] ss:$28 sps:$4 sm:$0xff]   ;;  %v20195_v11 = vld [vmem:[#allocation25 + $0x2ec] ss:$28 sps:$4 sm:$0xff]  }
 0xc36   :  { %15693 = vmatprep.subr.bf16.mxu0 %v20130_v31  ;;  %18067 = vmatprep.subr.bf16.mxu1 %v20131_v62  ;;  %v20193_v31 = vld [vmem:[#allocation25 + $0x2e8] ss:$28 sps:$4 sm:$0xff]   ;;  %v20197_v62 = vld [vmem:[#allocation25 + $0x4b0] ss:$28 sps:$4 sm:$0xff]  }
 0xc38   :  { %15603 = vmatmul.mubr.bf16.vlgmr.msra.gmra.mrb[64].mxu0 %v21353_v12  ;;  %15685 = vmatmul.mubr.bf16.vlgmr.msra.gmra.mrb[68].mxu1 %v21353_v12 }
 0xc39   :  { %15694 = vmatpush1.bf16.msra.mxu0 %v20128_v14  ;;  %15725 = vmatprep.mubr.bf16.mxu0 %v21338_v37  ;;  %v20200_v14 = vld [vmem:[#allocation25 + $0x324] ss:$28 sps:$4 sm:$0xff]  }
 0xc3a   :  { %18068 = vmatpush3.bf16.msra.mxu1 %v20132_v49  ;;  %15807 = vmatprep.mubr.bf16.mxu1 %v21338_v37  ;;  %v20151_v37 = vld [vmem:[#allocation25 + $0x2b8] ss:$28 sps:$4 sm:$0xff]   ;;  %v20201_v49 = vld [vmem:[#allocation25 + $0x6a8] ss:$28 sps:$4 sm:$0xff]  }
 0xc3b   :  { %15695 = vmatprep.subr.bf16.mxu0 %v20135_v39  ;;  %18069 = vmatprep.subr.bf16.mxu1 %v20136_v15  ;;  %v20198_v39 = vld [vmem:[#allocation25 + $0x320] ss:$28 sps:$4 sm:$0xff]   ;;  %v20202_v15 = vld [vmem:[#allocation25 + $0x4e8] ss:$28 sps:$4 sm:$0xff]  }
 0xc3d   :  { %15696 = vmatpush1.bf16.msra.mxu0 %v20133_v17  ;;  %v20205_v17 = vld [vmem:[#allocation25 + $0x35c] ss:$28 sps:$4 sm:$0xff]  }
 0xc3e   :  { %18070 = vmatpush3.bf16.msra.mxu1 %v20137_v18  ;;  %15697 = vmatprep.subr.bf16.mxu0 %v20140_v43  ;;  %v20206_v18 = vld [vmem:[#allocation25 + $0x6e0] ss:$28 sps:$4 sm:$0xff]   ;;  %v20203_v43 = vld [vmem:[#allocation25 + $0x358] ss:$28 sps:$4 sm:$0xff]  }
 0xc3f   :  { %18071 = vmatprep.subr.bf16.mxu1 %v20141_v19  ;;  %v20207_v19 = vld [vmem:[#allocation25 + $0x520] ss:$28 sps:$4 sm:$0xff]  }
 0xc41   :  { %15698 = vmatpush1.bf16.msra.mxu0 %v20138_v20  ;;  %v20210_v20 = vld [vmem:[#allocation25 + $0x394] ss:$28 sps:$4 sm:$0xff]  }
 0xc42   :  { %18072 = vmatpush3.bf16.msra.mxu1 %v20142_v10  ;;  %15699 = vmatprep.subr.bf16.mxu0 %v20145_v8  ;;  %v20208_v10 = vld [vmem:[#allocation25 + $0x390] ss:$28 sps:$4 sm:$0xff]  }
 0xc43   :  { %18073 = vmatprep.subr.bf16.mxu1 %v20146_v45  ;;  %v20213_v8 = vld [vmem:[#allocation25 + $0x3cc] ss:$28 sps:$4 sm:$0xff]  }
 0xc44   :  { %v20211_v45 = vld [vmem:[#allocation25 + $0x3c8] ss:$28 sps:$4 sm:$0xff]  }
 0xc45   :  { %15700 = vmatpush1.bf16.msra.mxu0 %v20143_v33  ;;  %v20216_v33 = vld [vmem:[#allocation25 + $0x404] ss:$28 sps:$4 sm:$0xff]  }
 0xc46   :  { %18074 = vmatpush3.bf16.msra.mxu1 %v20147_v56  ;;  %15701 = vmatprep.subr.bf16.mxu0 %v20150_v0  ;;  %v20214_v56 = vld [vmem:[#allocation25 + $0x400] ss:$28 sps:$4 sm:$0xff]  }
 0xc47   :  { %18075 = vmatprep.subr.bf16.mxu1 %v20151_v37  ;;  %v20219_v0 = vld [vmem:[#allocation25 + $0x43c] ss:$28 sps:$4 sm:$0xff]  }
 0xc48   :  { %v20217_v37 = vld [vmem:[#allocation25 + $0x438] ss:$28 sps:$4 sm:$0xff]  }
 0xc49   :  { %15702 = vmatpush1.bf16.msra.mxu0 %v20148_v46  ;;  %v20222_v46 = vld [vmem:[#allocation25 + $0x474] ss:$28 sps:$4 sm:$0xff]  }
 0xc4a   :  { %18076 = vmatpush3.bf16.msra.mxu1 %v20152_v4  ;;  %15703 = vmatprep.subr.bf16.mxu0 %v20155_v55  ;;  %v20220_v4 = vld [vmem:[#allocation25 + $0x470] ss:$28 sps:$4 sm:$0xff]   ;;  %v20223_v55 = vld [vmem:[#allocation25 + $0x4a8] ss:$28 sps:$4 sm:$0xff]  }
 0xc4b   :  { %18077 = vmatprep.subr.bf16.mxu1 %v20156_v30  ;;  %v20228_v30 = vld [vmem:[#allocation25 + $0x4e4] ss:$28 sps:$4 sm:$0xff]  }
 0xc4d   :  { %15704 = vmatpush1.bf16.msra.mxu0 %v20153_v21  ;;  %v20231_v21 = vld [vmem:[#allocation25 + $0x51c] ss:$28 sps:$4 sm:$0xff]  }
 0xc4e   :  { %18078 = vmatpush3.bf16.msra.mxu1 %v20157_v22  ;;  %15705 = vmatprep.subr.bf16.mxu0 %v20160_v23  ;;  %v20229_v22 = vld [vmem:[#allocation25 + $0x518] ss:$28 sps:$4 sm:$0xff]  }
 0xc4f   :  { %18079 = vmatprep.subr.bf16.mxu1 %v20161_v24  ;;  %v20234_v23 = vld [vmem:[#allocation25 + $0x554] ss:$28 sps:$4 sm:$0xff]  }
 0xc50   :  { %v20232_v24 = vld [vmem:[#allocation25 + $0x550] ss:$28 sps:$4 sm:$0xff]  }
 0xc51   :  { %15706 = vmatpush1.bf16.msra.mxu0 %v20158_v60  ;;  %v20237_v60 = vld [vmem:[#allocation25 + $0x58c] ss:$28 sps:$4 sm:$0xff]  }
 0xc52   :  { %18080 = vmatpush3.bf16.msra.mxu1 %v20162_v44  ;;  %15707 = vmatprep.subr.bf16.mxu0 %v20165_v25  ;;  %v20235_v44 = vld [vmem:[#allocation25 + $0x588] ss:$28 sps:$4 sm:$0xff]  }
 0xc53   :  { %18081 = vmatprep.subr.bf16.mxu1 %v20166_v13  ;;  %v20240_v25 = vld [vmem:[#allocation25 + $0x5c4] ss:$28 sps:$4 sm:$0xff]  }
 0xc54   :  { %v20238_v13 = vld [vmem:[#allocation25 + $0x5c0] ss:$28 sps:$4 sm:$0xff]  }
 0xc55   :  { %15708 = vmatpush1.bf16.msra.mxu0 %v20163_v16  ;;  %v20243_v16 = vld [vmem:[#allocation25 + $0x5fc] ss:$28 sps:$4 sm:$0xff]  }
 0xc56   :  { %18082 = vmatpush3.bf16.msra.mxu1 %v20167_v2  ;;  %15709 = vmatprep.subr.bf16.mxu0 %v20170_v48  ;;  %v20241_v2 = vld [vmem:[#allocation25 + $0x5f8] ss:$28 sps:$4 sm:$0xff]  }
 0xc57   :  { %18089 = vmatprep.subr.bf16.mxu1 %v20171_v27  ;;  %v20246_v48 = vld [vmem:[#allocation25 + $0x634] ss:$28 sps:$4 sm:$0xff]  }
 0xc58   :  { %v20244_v27 = vld [vmem:[#allocation25 + $0x630] ss:$28 sps:$4 sm:$0xff]  }
 0xc59   :  { %15808 = vmatmul.mubr.bf16.vlgmr.msra.gmra.mrb[72].mxu1 %v21340_v26  ;;  %15710 = vmatpush1.bf16.msra.mxu0 %v20168_v34  ;;  %v20249_v34 = vld [vmem:[#allocation25 + $0x66c] ss:$28 sps:$4 sm:$0xff]  }
 0xc5a   :  { %18090 = vmatpush3.bf16.msra.mxu1 %v20172_v36  ;;  %15847 = vmatprep.mubr.bf16.mxu1 %v21344_v5  ;;  %v20247_v36 = vld [vmem:[#allocation25 + $0x668] ss:$28 sps:$4 sm:$0xff]  }
 0xc5b   :  { %15711 = vmatprep.subr.bf16.mxu0 %v20175_v28  ;;  %18091 = vmatprep.subr.bf16.mxu1 %v20176_v29  ;;  %v20252_v28 = vld [vmem:[#allocation25 + $0x6a4] ss:$28 sps:$4 sm:$0xff]  }
 0xc5c   :  { %v20250_v29 = vld [vmem:[#allocation25 + $0x6a0] ss:$28 sps:$4 sm:$0xff]  }
 0xc5d   :  { %15712 = vmatpush1.bf16.msra.mxu0 %v20173_v32  ;;  %v20255_v32 = vld [vmem:[#allocation25 + $0x6dc] ss:$28 sps:$4 sm:$0xff]  }
 0xc5e   :  { %18092 = vmatpush3.bf16.msra.mxu1 %v20177_v50  ;;  %15713 = vmatprep.subr.bf16.mxu0 %v20180_v51  ;;  %v20253_v50 = vld [vmem:[#allocation25 + $0x6d8] ss:$28 sps:$4 sm:$0xff]   ;;  %v14340_v51 = vld [vmem:[#allocation26] sm:$0xff] }
 0xc5f   :  { %18093 = vmatprep.subr.bf16.mxu1 %v20181_v38  ;;  %v14345_v38 = vrot.slane %v14340_v51, %v21076_v57 }
 0xc61   :  { %15714 = vmatpush1.bf16.msra.mxu0 %v20178_v40  ;;  %v14353_v40 = vrot.slane %v14340_v51, %v21088_v3 }
 0xc62   :  { %18094 = vmatpush3.bf16.msra.mxu1 %v20182_v42  ;;  %15715 = vmatprep.subr.bf16.mxu0 %v20185_v63  ;;  %v14349_v42 = vrot.slane %v14340_v51, %v21079_v58  ;;  %v14357_v63 = vrot.slane %v14340_v51, %v21091_v6 }
 0xc63   :  { %18095 = vmatprep.subr.bf16.mxu1 %v20186_v41 }
 0xc65   :  { %15716 = vmatpush1.bf16.msra.mxu0 %v20183_v54 }
 0xc66   :  { %18096 = vmatpush3.bf16.msra.mxu1 %v20187_v7  ;;  %15717 = vmatprep.subr.bf16.mxu0 %v20190_v59 }
 0xc67   :  { %18097 = vmatprep.subr.bf16.mxu1 %v20191_v61 }
 0xc69   :  { %15718 = vmatpush1.bf16.msra.mxu0 %v20188_v9 }
 0xc6a   :  { %18098 = vmatpush3.bf16.msra.mxu1 %v20192_v1  ;;  %15719 = vmatprep.subr.bf16.mxu0 %v20195_v11 }
 0xc6b   :  { %18099 = vmatprep.subr.bf16.mxu1 %v20196_v52 }
 0xc6d   :  { %15720 = vmatpush1.bf16.msra.mxu0 %v20193_v31 }
 0xc6e   :  { %18100 = vmatpush3.bf16.msra.mxu1 %v20197_v62  ;;  %15721 = vmatprep.subr.bf16.mxu0 %v20200_v14 }
 0xc6f   :  { %18101 = vmatprep.subr.bf16.mxu1 %v20201_v49 }
 0xc71   :  { %15722 = vmatpush1.bf16.msra.mxu0 %v20198_v39 }
 0xc72   :  { %18102 = vmatpush3.bf16.msra.mxu1 %v20202_v15  ;;  %15723 = vmatprep.subr.bf16.mxu0 %v20205_v17 }
 0xc73   :  { %18103 = vmatprep.subr.bf16.mxu1 %v20206_v18 }
 0xc75   :  { %15724 = vmatpush1.bf16.msra.mxu0 %v20203_v43 }
 0xc76   :  { %18104 = vmatpush3.bf16.msra.mxu1 %v20207_v19  ;;  %15734 = vmatprep.subr.bf16.mxu0 %v20210_v20 }
 0xc78   :  { %15726 = vmatmul.mubr.bf16.vlgmr.msra.gmra.mrb[68].mxu0 %v21340_v26  ;;  %v20225_v26 = vld [vmem:[#allocation25 + $0x4ac] ss:$28 sps:$4 sm:$0xff]  }
 0xc79   :  { %15848 = vmatmul.mubr.bf16.vlgmr.msra.gmra.mrb[76].mxu1 %v21353_v12  ;;  %15735 = vmatpush1.bf16.msra.mxu0 %v20208_v10 }
 0xc7a   :  { %15766 = vmatprep.mubr.bf16.mxu0 %v21344_v5  ;;  %15736 = vmatprep.subr.bf16.mxu0 %v20213_v8  ;;  %v20226_v5 = vld [vmem:[#allocation25 + $0x4e0] ss:$28 sps:$4 sm:$0xff]  }
 0xc7d   :  { %15737 = vmatpush1.bf16.msra.mxu0 %v20211_v45 }
 0xc7e   :  { %15738 = vmatprep.subr.bf16.mxu0 %v20216_v33 }
 0xc81   :  { %15739 = vmatpush1.bf16.msra.mxu0 %v20214_v56 }
 0xc82   :  { %15740 = vmatprep.subr.bf16.mxu0 %v20219_v0 }
 0xc85   :  { %15741 = vmatpush1.bf16.msra.mxu0 %v20217_v37 }
 0xc86   :  { %15742 = vmatprep.subr.bf16.mxu0 %v20222_v46 }
 0xc89   :  { %15743 = vmatpush1.bf16.msra.mxu0 %v20220_v4 }
 0xc8a   :  { %15744 = vmatprep.subr.bf16.mxu0 %v20225_v26 }
 0xc8d   :  { %15745 = vmatpush1.bf16.msra.mxu0 %v20223_v55 }
 0xc8e   :  { %15746 = vmatprep.subr.bf16.mxu0 %v20228_v30 }
 0xc91   :  { %15747 = vmatpush1.bf16.msra.mxu0 %v20226_v5 }
 0xc92   :  { %15748 = vmatprep.subr.bf16.mxu0 %v20231_v21 }
 0xc95   :  { %15749 = vmatpush1.bf16.msra.mxu0 %v20229_v22 }
 0xc96   :  { %15750 = vmatprep.subr.bf16.mxu0 %v20234_v23 }
 0xc99   :  { %15751 = vmatpush1.bf16.msra.mxu0 %v20232_v24 }
 0xc9a   :  { %15752 = vmatprep.subr.bf16.mxu0 %v20237_v60 }
 0xc9d   :  { %15753 = vmatpush1.bf16.msra.mxu0 %v20235_v44 }
 0xc9e   :  { %15754 = vmatprep.subr.bf16.mxu0 %v20240_v25 }
 0xca1   :  { %15755 = vmatpush1.bf16.msra.mxu0 %v20238_v13 }
 0xca2   :  { %15756 = vmatprep.subr.bf16.mxu0 %v20243_v16 }
 0xca5   :  { %15757 = vmatpush1.bf16.msra.mxu0 %v20241_v2 }
 0xca6   :  { %15758 = vmatprep.subr.bf16.mxu0 %v20246_v48 }
 0xca9   :  { %15759 = vmatpush1.bf16.msra.mxu0 %v20244_v27 }
 0xcaa   :  { %15760 = vmatprep.subr.bf16.mxu0 %v20249_v34 }
 0xcad   :  { %15761 = vmatpush1.bf16.msra.mxu0 %v20247_v36 }
 0xcae   :  { %15762 = vmatprep.subr.bf16.mxu0 %v20252_v28 }
 0xcb1   :  { %15763 = vmatpush1.bf16.msra.mxu0 %v20250_v29 }
 0xcb2   :  { %15764 = vmatprep.subr.bf16.mxu0 %v20255_v32 }
 0xcb5   :  { %15765 = vmatpush1.bf16.msra.mxu0 %v20253_v50 }
 0xcb8   :  { %15767 = vmatmul.mubr.bf16.vlgmr.msra.gmra.mrb[68].mxu0 %v21353_v12 }
 0xd0b   :  { %v15604_v41 = vpop.f32.mrb[64].mxu0  ;;  %v15686_v54 = vpop.f32.mrb[68].mxu1 }
 0xd0c   :  { %v18145_v7 = vadd.f32 %v15604_v41, %v14345_v38  ;;  %v18147_v59 = vadd.f32 %v15686_v54, %v14353_v40  ;;  %v15606_v61 = vpop.f32.mrb[65].mxu0  ;;  %v15688_v9 = vpop.f32.mrb[69].mxu1 }
 0xd0d   :  { %v18146_v1 = vadd.f32 %v15606_v61, %v14349_v42  ;;  %v18148_v11 = vadd.f32 %v15688_v9, %v14357_v63  ;;  %v15608_v52 = vpop.f32.mrb[66].mxu0  ;;  %v15690_v31 = vpop.f32.mrb[70].mxu1 }
 0xd0e   :  { %15855 = vst [vmem:[#allocation29] sm:$0xff] %v18145_v7  ;;  %15857 = vst [vmem:[#allocation29 + $0x10] sm:$0xff] %v18147_v59  ;;  %v15609_v12 = vpop.f32.mrb[67].mxu0  ;;  %v15691_v57 = vpop.f32.mrb[71].mxu1 }
 0xd0f   :  { %15856 = vst [vmem:[#allocation29 + $0x8] sm:$0xff] %v18146_v1  ;;  %15858 = vst [vmem:[#allocation29 + $0x18] sm:$0xff] %v18148_v11 }
 0xd10   :  { %20620 = shalt.err (!%p20617_p6)
}
 0xd11   :  { %s20621_s9 = scalar_lea.hbm %s21413_s17, 128 }
 0xd12   :  { %p20622_p7 = scmp.ne.s32.totalorder %s21413_s17, %s20621_s9  ;;  %p20625_p8 = scmp.lt.u32.totalorder %s20621_s9, %s21413_s17 }
 0xd14   :  { %p20627_p9 = pnand %p20625_p8, %p20622_p7 }
 0xd16   :  { %20630 = shalt.err (!%p20627_p9)
}
 0xd17   :  { %15871 = dma.vmem_to_hbm [thread:$0]  %s15869_s13, 128, %s21413_s17, [#allocation4]   ;;  %v14369_v49 = vrot.slane %v14340_v51, %v21196_v47  ;;  %v14361_v10 = vrot.slane %v14340_v51, %v21193_v35  ;;  %v14365_v8 = vrot.slane %v14340_v51, %v21175_v53 }
 0xd18   :  { %s20700_s17 = smov [#allocation29]  }
 0xd19   :  { %s15878_s28 = sshll.u32 %s20700_s17, 4  ;;  %s15879_s28 = int_to_ptr.vmem [resolvable:$true] %s15878_s28 }
 0xd1a   :  { %s20631_s27 = scalar_lea.vmem %s15879_s28, 896  ;;  %p20636_p11 = scmp.lt.s32.totalorder %s15879_s28, %s15879_s28 }
 0xd1b   :  { %p20632_p10 = scmp.ne.s32.totalorder %s15879_s28, %s20631_s27  ;;  %p20637_p12 = scmp.lt.s32.totalorder %s20631_s27, %s20631_s27 }
 0xd1d   :  { %p20638_p13 = por %p20637_p12, %p20636_p11 }
 0xd1f   :  { %p20639_p0 = pnand %p20638_p13, %p20632_p10 }
 0xd2c   :  { %v18083_v58 = vpop.f32.mrb[72].mxu1 }
 0xd2d   :  { %v18084_v3 = vpop.f32.mrb[73].mxu1 }
 0xd2e   :  { %v18085_v6 = vadd.f32 %v18084_v3, %v18083_v58  ;;  %v18086_v62 = vpop.f32.mrb[74].mxu1 }
 0xd2f   :  { %v18087_v14 = vpop.f32.mrb[75].mxu1 }
 0xd30   :  { %v15810_v17 = vadd.f32 %v18085_v6, %v14369_v49 }
 0xd4c   :  { %v18105_v39 = vpop.f32.mrb[76].mxu1 }
 0xd4d   :  { %v18106_v15 = vpop.f32.mrb[77].mxu1 }
 0xd4e   :  { %v18107_v18 = vadd.f32 %v18106_v15, %v18105_v39  ;;  %v18108_v43 = vpop.f32.mrb[78].mxu1 }
 0xd4f   :  { %v18109_v19 = vpop.f32.mrb[79].mxu1 }
 0xd50   :  { %v15850_v20 = vadd.f32 %v18107_v18, %v15810_v17 }
 0xd52   :  { %15861 = vst [vmem:[#allocation29 + $0x30] sm:$0xff] %v15850_v20 }
 0xd8b   :  { %v15768_v45 = vpop.f32.mrb[68].mxu0 }
 0xd8c   :  { %v18149_v33 = vadd.f32 %v15768_v45, %v14361_v10  ;;  %v15770_v56 = vpop.f32.mrb[69].mxu0 }
 0xd8d   :  { %v18150_v0 = vadd.f32 %v15770_v56, %v14365_v8  ;;  %v15772_v37 = vpop.f32.mrb[70].mxu0 }
 0xd8e   :  { %15859 = vst [vmem:[#allocation29 + $0x20] sm:$0xff] %v18149_v33  ;;  %v15773_v47 = vpop.f32.mrb[71].mxu0 }
 0xd8f   :  { %15860 = vst [vmem:[#allocation29 + $0x28] sm:$0xff] %v18150_v0 }
 0xd90   :  { %20642 = shalt.err (!%p20639_p0)
}
 0xd91   :  { %s20643_s7 = scalar_lea.hbm %s21414_s18, 896 }
 0xd92   :  { %p20644_p1 = scmp.ne.s32.totalorder %s21414_s18, %s20643_s7  ;;  %p20647_p2 = scmp.lt.u32.totalorder %s20643_s7, %s21414_s18 }
 0xd94   :  { %p20649_p3 = pnand %p20647_p2, %p20644_p1 }
 0xd96   :  { %20652 = shalt.err (!%p20649_p3)
}
 0xd97   :  { %15881 = dma.vmem_to_hbm [thread:$0]  %s15879_s28, 896, %s21414_s18, [#allocation30]  }
 0xd98   :  { %20671 = dma.done.wait [#allocation4], 128  }
 0xd99   :  { %20672 = vsyncadd [#allocation4], 4294967168 }
 0xd9a   :  { %20673 = dma.done.wait [#allocation30], 896  }
 0xd9b   :  { %20674 = vsyncadd [#allocation30], 4294966400 }
 0xd9c   :  { %15888 = vsyncpa [#allocation3], 1 }
 0xd9d   :  { %15889 = vsyncpa [#allocation6], 1 }
 0xd9e   :  { %15890 = vsyncpa [#allocation9], 1 }
 0xd9f   :  { %15891 = vsyncpa [#allocation12], 1 }
 0xda0   :  { %15892 = vsyncpa [#allocation15], 1 }
 0xda1   :  { %15893 = vsyncpa [#allocation18], 1 }
 0xda2   :  { %15894 = vsyncpa [#allocation21], 1 }
 0xda3   :  { %15895 = vsyncpa [#allocation24], 1 }
 0xda4   :  { %15896 = vsyncpa [#allocation27], 1 }
 0xda5   :  { %15897 = vsyncpa [#allocation4], 1 }
 0xda6   :  { %15898 = vsyncpa [#allocation30], 1 }

</bundles_post_ra>
